<compile_context>
chip_gen: v6e
topology: v6e:2x2x1
jax: 0.10.0
libtpu: 0.0.40
codegen_flags: <defaults>
</compile_context>

<pallas_src>
import functools
import math

import jax
import jax.numpy as jnp
from jax import lax
from jax.experimental import pallas as pl
from jax.experimental.pallas import tpu as pltpu

HIDDEN = 64          # hidden_size
PROJ = 32            # projection_size
PROJ_PAD = 128       # projector output padded to a full 128-lane store
NUM_LAYERS = 3       # lstm_layers
NDIR = 2             # bidirectional


# ------------------------------- kernel --------------------------------------
def _siamese_lstm_kernel(x_ref, wih0_ref, wih_ref, whh_ref, b_ref,
                         w1_ref, b1_ref, w2_ref, b2_ref,
                         out_ref,
                         buf_a, buf_b, gx_buf,
                         *, seq_len, batch, hidden):
    """One batch tile of forward_once.

    x_ref    : (1, L, Bt)   f32   time-major input slab (contiguous DMA)
    wih0_ref : (1, 8H)      f32   layer-0 input->gate weights, both directions
                                  (per-dir gate order i,f,o,g; fwd 0:4H, bwd 4H:8H)
    wih_ref  : (NL-1, 2H, 8H) bf16  layers>=1 input->gate weights, both dirs
    whh_ref  : (NL, 2H, 8H) bf16  hidden->gate weights, block-diagonal over dirs
    b_ref    : (NL, 1, 8H)  f32   combined bias (b_ih + b_hh), both directions
    w1/b1    : (2H, H), (1, H)    projector Linear 1 (f32)
    w2/b2    : (H, 128), (1, 128) projector Linear 2, lane-padded to 128 (f32)
    out_ref  : (Bt, 128)
    buf_a/b  : (2, L, Bt, H) f32  direction-major layer outputs (ping-pong)
    gx_buf   : (L, Bt, 8H)  f32   hoisted input gates for both directions
    """
    H, L, Bt = hidden, seq_len, batch
    G = 4 * H
    bf16 = jnp.bfloat16

    x_seq = x_ref[0]                                            # (L, Bt) f32

    def run_layer(layer, src_buf, dst_buf):
        bias = b_ref[layer]                                     # (1, 8H)

        # ---- hoisted input projection: BOTH directions in one shot ----------
        if layer == 0:
            # input_size == 1 -> broadcast multiply, no MXU, no padded K.
            gx_buf[...] = (x_seq[:, :, None] * wih0_ref[...][None]
                           + bias[None])                        # (L, Bt, 8H)
        else:
            w = wih_ref[layer - 1]                              # (2H, 8H) bf16
            src = jnp.concatenate(
                [src_buf[0].reshape(L * Bt, H),
                 src_buf[1].reshape(L * Bt, H)], axis=-1)       # (L*Bt, 2H)
            gx = jnp.dot(src.astype(bf16), w,
                         preferred_element_type=jnp.float32) + bias
            gx_buf[...] = gx.reshape(L, Bt, 2 * G)

        whh = whh_ref[layer]                                    # (2H, 8H) bf16

        def cell(gates, c):
            # Gate columns host-reordered to [i, f, o, g]:
            # one dense sigmoid over 3H lanes + one tanh over the trailing H.
            sig = jax.nn.sigmoid(gates[:, :3 * H])
            i_g = sig[:, 0:H]
            f_g = sig[:, H:2 * H]
            o_g = sig[:, 2 * H:3 * H]
            g_g = jnp.tanh(gates[:, 3 * H:])
            c_new = f_g * c + i_g * g_g
            h_new = o_g * jnp.tanh(c_new)
            return h_new, c_new

        def step(t, carry):
            # Fused directions: fwd handles time t, bwd handles time L-1-t in
            # the SAME iteration; one block-diagonal (Bt,2H)x(2H,8H) matmul
            # covers both hidden->gate products.
            h_cat, c_f, c_b = carry
            hh = jnp.dot(h_cat.astype(bf16), whh,
                         preferred_element_type=jnp.float32)    # (Bt, 8H) f32
            tr = L - 1 - t
            gates_f = gx_buf[t][:, :G] + hh[:, :G]
            gates_b = gx_buf[tr][:, G:] + hh[:, G:]
            h_f, c_f = cell(gates_f, c_f)
            h_b, c_b = cell(gates_b, c_b)
            dst_buf[0, t] = h_f                                 # fwd at time t
            dst_buf[1, tr] = h_b                                # bwd at time L-1-t
            return (jnp.concatenate([h_f, h_b], axis=-1), c_f, c_b)

        carry0 = (jnp.zeros((Bt, 2 * H), jnp.float32),
                  jnp.zeros((Bt, H), jnp.float32),
                  jnp.zeros((Bt, H), jnp.float32))
        # Fully unroll tiny sequences; partial unroll for long ones so the LLO
        # scheduler can interleave across steps and across directions.
        lax.fori_loop(0, L, step, carry0, unroll=(True if L <= 16 else 4))

    # Ping-pong across layers: no per-layer concat copy of the full sequence
    # except the bf16 source concat feeding the one hoisted matmul.
    bufs = (buf_a, buf_b)
    src = None
    for layer in range(NUM_LAYERS):
        dst = bufs[layer % 2]
        run_layer(layer, src, dst)
        src = dst

    # AdaptiveAvgPool1d(1) over time + projector MLP (one-off epilogue, f32).
    feat = jnp.concatenate([jnp.mean(src[0], axis=0),
                            jnp.mean(src[1], axis=0)], axis=-1)  # (Bt, 2H)
    h1 = jnp.maximum(
        jnp.dot(feat, w1_ref[...], preferred_element_type=jnp.float32)
        + b1_ref[...], 0.0)                                      # (Bt, H)
    # Full 128-lane (unmasked) output store; wrapper slices back to PROJ.
    out_ref[...] = (jnp.dot(h1, w2_ref[...], preferred_element_type=jnp.float32)
                    + b2_ref[...])


# ----------------------------- parameters ------------------------------------
def init_params(seed=0):
    """PyTorch-style init, gate order (i, f, g, o) — used by the reference."""
    H, P, NL = HIDDEN, PROJ, NUM_LAYERS
    key = jax.random.PRNGKey(seed)

    def u(k, shape, bound):
        return jax.random.uniform(k, shape, jnp.float32, -bound, bound)

    kH = 1.0 / math.sqrt(H)
    wih0 = jnp.zeros((NDIR, 1, 4 * H), jnp.float32)
    wih = jnp.zeros((NL - 1, NDIR, 2 * H, 4 * H), jnp.float32)
    whh = jnp.zeros((NL, NDIR, H, 4 * H), jnp.float32)
    b = jnp.zeros((NL, NDIR, 1, 4 * H), jnp.float32)
    for l in range(NL):
        for d in range(NDIR):
            key, k1, k2, k3, k4 = jax.random.split(key, 5)
            if l == 0:
                wih0 = wih0.at[d].set(u(k1, (1, 4 * H), kH))
            else:
                wih = wih.at[l - 1, d].set(u(k1, (2 * H, 4 * H), kH))
            whh = whh.at[l, d].set(u(k2, (H, 4 * H), kH))
            b = b.at[l, d, 0].set(u(k3, (4 * H,), kH) + u(k4, (4 * H,), kH))

    k2h = 1.0 / math.sqrt(2 * H)
    key, k1, k2, k3, k4 = jax.random.split(key, 5)
    w1 = u(k1, (2 * H, H), k2h)
    b1 = u(k2, (1, H), k2h)
    kh = 1.0 / math.sqrt(H)
    w2 = u(k3, (H, P), kh)
    b2 = u(k4, (1, P), kh)
    return dict(wih0=wih0, wih=wih, whh=whh, b=b, w1=w1, b1=b1, w2=w2, b2=b2)


def prepare_kernel_params(p):
    """Host-side weight transform for the kernel layout.

    * gate columns (i,f,g,o) -> (i,f,o,g) per direction
    * both directions merged on the gate axis (fwd 0:4H, bwd 4H:8H)
    * W_hh made block-diagonal over directions: (2H, 8H)
    * recurrent / input-projection weights stored bf16 (MXU single-pass)
    * projector W2/b2 padded to 128 lanes (dense output store)
    """
    H = HIDDEN

    def reorder(w):
        i, f, g, o = jnp.split(w, 4, axis=-1)
        return jnp.concatenate([i, f, o, g], axis=-1)

    w0 = reorder(p["wih0"])                                   # (2, 1, 4H)
    wih0 = jnp.concatenate([w0[0], w0[1]], axis=-1)           # (1, 8H) f32

    wr = reorder(p["wih"])                                    # (NL-1, 2, 2H, 4H)
    wih = jnp.concatenate([wr[:, 0], wr[:, 1]],
                          axis=-1).astype(jnp.bfloat16)       # (NL-1, 2H, 8H)

    hr = reorder(p["whh"])                                    # (NL, 2, H, 4H)
    whh = jnp.zeros((NUM_LAYERS, 2 * H, 8 * H), jnp.float32)
    whh = whh.at[:, 0:H, 0:4 * H].set(hr[:, 0])
    whh = whh.at[:, H:2 * H, 4 * H:8 * H].set(hr[:, 1])
    whh = whh.astype(jnp.bfloat16)                            # (NL, 2H, 8H)

    br = reorder(p["b"])                                      # (NL, 2, 1, 4H)
    b = jnp.concatenate([br[:, 0], br[:, 1]], axis=-1)        # (NL, 1, 8H) f32

    w2p = jnp.zeros((HIDDEN, PROJ_PAD), jnp.float32).at[:, :PROJ].set(p["w2"])
    b2p = jnp.zeros((1, PROJ_PAD), jnp.float32).at[:, :PROJ].set(p["b2"])
    return dict(wih0=wih0, wih=wih, whh=whh, b=b,
                w1=p["w1"], b1=p["b1"], w2=w2p, b2=b2p)


# ------------------------------ wrapper ---------------------------------------
def _vmem_capacity_bytes():
    # v7x has 64 MiB VMEM per TensorCore; v5e/v6e have 128 MiB.
    try:
        return int(pltpu.get_tpu_info().vmem_capacity_bytes)
    except Exception:
        return 64 * 1024 * 1024


def _pick_b_tile(b_pad):
    """Largest tile <=128 that keeps >= 2 programs (v7x's 2 TCs) when possible."""
    if b_pad <= 8:
        return b_pad
    for tile in (128, 64, 32, 16, 8):
        if b_pad % tile == 0 and b_pad // tile >= 2:
            return tile
    return 8


def forward_once_pallas(x, kp):
    # x: (B, 1, L) float32 (NCW, like the PyTorch module input)
    B, C, L = x.shape
    assert C == 1
    H = HIDDEN
    B_pad = ((B + 7) // 8) * 8
    b_tile = _pick_b_tile(B_pad)
    n_prog = B_pad // b_tile

    xb = jnp.squeeze(x, axis=1).astype(jnp.float32)              # (B, L)
    if B_pad != B:
        xb = jnp.pad(xb, ((0, B_pad - B), (0, 0)))
    # Pre-tile on host so each program's input block is ONE contiguous DMA
    # (no L tiny strided descriptors) and no in-kernel transpose is needed.
    x_tiled = jnp.transpose(xb.reshape(n_prog, b_tile, L), (0, 2, 1))

    weights = (kp["wih0"], kp["wih"], kp["whh"], kp["b"],
               kp["w1"], kp["b1"], kp["w2"], kp["b2"])

    def full_spec(a):
        nd = a.ndim
        return pl.BlockSpec(a.shape, lambda i, nd=nd: (0,) * nd)

    # VMEM budget: scratch (H=64 buffers lane-pad to 128) + double-buffered
    # inputs/outputs/weights + margin, capped generation-aware (v7x: 64 MiB).
    scratch_bytes = 4 * (2 * NDIR * L * b_tile * 2 * H           # buf_a + buf_b
                         + L * b_tile * 8 * H)                   # gx_buf
    w_bytes = sum(int(w.size) * w.dtype.itemsize for w in weights)
    io_bytes = 4 * (L * b_tile + b_tile * PROJ_PAD)
    needed = scratch_bytes + 2 * (w_bytes + io_bytes) + (4 << 20)
    vmem_limit = int(min(max(needed, 32 << 20),
                         int(0.8 * _vmem_capacity_bytes())))

    kernel = functools.partial(_siamese_lstm_kernel,
                               seq_len=L, batch=b_tile, hidden=H)

    out = pl.pallas_call(
        kernel,
        out_shape=jax.ShapeDtypeStruct((B_pad, PROJ_PAD), jnp.float32),
        grid=(n_prog,),
        in_specs=[pl.BlockSpec((1, L, b_tile), lambda i: (i, 0, 0))]
                 + [full_spec(w) for w in weights],
        out_specs=pl.BlockSpec((b_tile, PROJ_PAD), lambda i: (i, 0)),
        scratch_shapes=[
            pltpu.VMEM((NDIR, L, b_tile, H), jnp.float32),   # ping layer output
            pltpu.VMEM((NDIR, L, b_tile, H), jnp.float32),   # pong layer output
            pltpu.VMEM((L, b_tile, 8 * H), jnp.float32),     # hoisted input gates
        ],
        compiler_params=pltpu.CompilerParams(
            dimension_semantics=("parallel",),
            vmem_limit_bytes=vmem_limit,
        ),
    )(x_tiled, *weights)
    return out[:B, :PROJ]


@jax.jit
def siamese_forward(x1, x2, kernel_params):
    # Fuse both siamese branches into a single batched kernel call.
    B = x1.shape[0]
    x = jnp.concatenate([x1, x2], axis=0)            # (2B, 1, L)
    out = forward_once_pallas(x, kernel_params)      # (2B, PROJ)
    return out[:B], out[B:]


# ---------------- pure-JAX reference (correctness check) ----------------------
def forward_once_ref(x, params):
    H = HIDDEN
    B, _, L = x.shape
    inp = jnp.transpose(x, (2, 0, 1)).astype(jnp.float32)            # (L, B, 1)
    for l in range(NUM_LAYERS):
        outs = []
        for d in range(NDIR):
            wih = params["wih0"][d] if l == 0 else params["wih"][l - 1, d]
            whh = params["whh"][l, d]
            b = params["b"][l, d]
            xs = inp if d == 0 else inp[::-1]

            def step(carry, x_t):
                h, c = carry
                gates = x_t @ wih + h @ whh + b
                i_g = jax.nn.sigmoid(gates[:, :H])
                f_g = jax.nn.sigmoid(gates[:, H:2 * H])
                g_g = jnp.tanh(gates[:, 2 * H:3 * H])
                o_g = jax.nn.sigmoid(gates[:, 3 * H:])
                c = f_g * c + i_g * g_g
                h = o_g * jnp.tanh(c)
                return (h, c), h

            h0 = jnp.zeros((B, H), jnp.float32)
            c0 = jnp.zeros((B, H), jnp.float32)
            _, hs = lax.scan(step, (h0, c0), xs)
            if d == 1:
                hs = hs[::-1]
            outs.append(hs)
        inp = jnp.concatenate(outs, axis=-1)
    feat = jnp.mean(inp, axis=0)
    h1 = jnp.maximum(feat @ params["w1"] + params["b1"], 0.0)
    return h1 @ params["w2"] + params["b2"]


if __name__ == "__main__":
    B, L = 2, 8
    key = jax.random.PRNGKey(0)
    k1, k2 = jax.random.split(key)
    x1 = jax.random.normal(k1, (B, 1, L), jnp.float32)
    x2 = jax.random.normal(k2, (B, 1, L), jnp.float32)

    params = init_params(0)                  # standard gate order, for the reference
    kparams = prepare_kernel_params(params)  # kernel layout (merged dirs, bf16, padded)

    o1, o2 = siamese_forward(x1, x2, kparams)
    jax.block_until_ready((o1, o2))

    r1 = forward_once_ref(x1, params)
    r2 = forward_once_ref(x2, params)
    assert o1.shape == (B, PROJ) and o2.shape == (B, PROJ)
    # Tolerance loosened vs. the pure-f32 version: the recurrent and input
    # projection matmuls now use bf16 operands (f32 accumulation, f32 cell state).
    assert jnp.allclose(o1, r1, atol=2e-2, rtol=2e-2), \
        float(jnp.max(jnp.abs(o1 - r1)))
    assert jnp.allclose(o2, r2, atol=2e-2, rtol=2e-2), \
        float(jnp.max(jnp.abs(o2 - r2)))
    print("KERNEL_OK")
</pallas_src>

<mosaic_0001>
module attributes {stable_mosaic.version = 11 : i64} {
  func.func @_siamese_lstm_kernel(%arg0: i32, %arg1: memref<1x8x8xf32, #tpu.memory_space<vmem>>, %arg2: memref<1x512xf32, #tpu.memory_space<vmem>>, %arg3: memref<2x128x512xbf16, #tpu.memory_space<vmem>>, %arg4: memref<3x128x512xbf16, #tpu.memory_space<vmem>>, %arg5: memref<3x1x512xf32, #tpu.memory_space<vmem>>, %arg6: memref<128x64xf32, #tpu.memory_space<vmem>>, %arg7: memref<1x64xf32, #tpu.memory_space<vmem>>, %arg8: memref<64x128xf32, #tpu.memory_space<vmem>>, %arg9: memref<1x128xf32, #tpu.memory_space<vmem>>, %arg10: memref<8x128xf32, #tpu.memory_space<vmem>>, %arg11: memref<2x8x8x64xf32, #tpu.memory_space<vmem>>, %arg12: memref<2x8x8x64xf32, #tpu.memory_space<vmem>>, %arg13: memref<8x8x512xf32, #tpu.memory_space<vmem>>) attributes {dimension_semantics = [#tpu.dimension_semantics<parallel>], iteration_bounds = array<i64: 1>, scalar_prefetch = 0 : i64, scratch_operands = 3 : i64, tpu.core_type = #tpu.core_type<tc>, window_params = [{transform_indices = @transform_0, window_bounds = array<i64: 1, 8, 8>}, {pipeline_mode = #tpu.pipeline_mode<synchronous>, transform_indices = @transform_1, window_bounds = array<i64: 1, 512>}, {pipeline_mode = #tpu.pipeline_mode<synchronous>, transform_indices = @transform_2, window_bounds = array<i64: 2, 128, 512>}, {pipeline_mode = #tpu.pipeline_mode<synchronous>, transform_indices = @transform_3, window_bounds = array<i64: 3, 128, 512>}, {pipeline_mode = #tpu.pipeline_mode<synchronous>, transform_indices = @transform_4, window_bounds = array<i64: 3, 1, 512>}, {pipeline_mode = #tpu.pipeline_mode<synchronous>, transform_indices = @transform_5, window_bounds = array<i64: 128, 64>}, {pipeline_mode = #tpu.pipeline_mode<synchronous>, transform_indices = @transform_6, window_bounds = array<i64: 1, 64>}, {pipeline_mode = #tpu.pipeline_mode<synchronous>, transform_indices = @transform_7, window_bounds = array<i64: 64, 128>}, {pipeline_mode = #tpu.pipeline_mode<synchronous>, transform_indices = @transform_8, window_bounds = array<i64: 1, 128>}, {transform_indices = @transform_9, window_bounds = array<i64: 8, 128>}]} {
    %c0 = arith.constant 0 : index
    %c0_0 = arith.constant 0 : index
    %c0_1 = arith.constant 0 : index
    %0 = vector.load %arg1[%c0, %c0_0, %c0_1] : memref<1x8x8xf32, #tpu.memory_space<vmem>>, vector<1x8x8xf32>
    %1 = vector.shape_cast %0 : vector<1x8x8xf32> to vector<8x8xf32>
    %c0_2 = arith.constant 0 : index
    %c0_3 = arith.constant 0 : index
    %c0_4 = arith.constant 0 : index
    %2 = vector.load %arg5[%c0_2, %c0_3, %c0_4] : memref<3x1x512xf32, #tpu.memory_space<vmem>>, vector<1x1x512xf32>
    %3 = vector.shape_cast %2 : vector<1x1x512xf32> to vector<1x512xf32>
    %4 = vector.shape_cast %1 : vector<8x8xf32> to vector<8x8x1xf32>
    %c0_5 = arith.constant 0 : index
    %c0_6 = arith.constant 0 : index
    %5 = vector.load %arg2[%c0_5, %c0_6] : memref<1x512xf32, #tpu.memory_space<vmem>>, vector<1x512xf32>
    %6 = vector.shape_cast %5 : vector<1x512xf32> to vector<1x1x512xf32>
    %7 = vector.broadcast %4 : vector<8x8x1xf32> to vector<8x8x512xf32>
    %8 = vector.broadcast %6 : vector<1x1x512xf32> to vector<8x8x512xf32>
    %9 = arith.mulf %7, %8 : vector<8x8x512xf32>
    %10 = vector.shape_cast %3 : vector<1x512xf32> to vector<1x1x512xf32>
    %11 = vector.broadcast %10 : vector<1x1x512xf32> to vector<8x8x512xf32>
    %12 = arith.addf %9, %11 : vector<8x8x512xf32>
    %c0_7 = arith.constant 0 : index
    %c0_8 = arith.constant 0 : index
    %c0_9 = arith.constant 0 : index
    %13 = vector.load %arg13[%c0_7, %c0_8, %c0_9] : memref<8x8x512xf32, #tpu.memory_space<vmem>>, vector<8x8x512xf32>
    tpu.vector_store %arg13[%c0_7, %c0_8, %c0_9], %12 {strides = array<i32>} : memref<8x8x512xf32, #tpu.memory_space<vmem>>, vector<8x8x512xf32>,
    %c0_10 = arith.constant 0 : index
    %c0_11 = arith.constant 0 : index
    %c0_12 = arith.constant 0 : index
    %14 = vector.load %arg4[%c0_10, %c0_11, %c0_12] : memref<3x128x512xbf16, #tpu.memory_space<vmem>>, vector<1x128x512xbf16>
    %15 = vector.shape_cast %14 : vector<1x128x512xbf16> to vector<128x512xbf16>
    %cst = arith.constant 0.000000e+00 : f32
    %16 = vector.broadcast %cst : f32 to vector<8x128xf32>
    %cst_13 = arith.constant 0.000000e+00 : f32
    %17 = vector.broadcast %cst_13 : f32 to vector<8x64xf32>
    %cst_14 = arith.constant 0.000000e+00 : f32
    %18 = vector.broadcast %cst_14 : f32 to vector<8x64xf32>
    %c0_i32 = arith.constant 0 : i32
    %19 = arith.truncf %16 : vector<8x128xf32> to vector<8x128xbf16>
    %cst_15 = arith.constant dense<0.000000e+00> : vector<8x512xf32>
    %20 = tpu.matmul %19, %15, %cst_15 {dimension_numbers = #tpu.dot_dimension_numbers<[1], [0], [0], [1], [0, 0, 1, 1], [], []>} : vector<8x128xbf16>, vector<128x512xbf16>, vector<8x512xf32> -> vector<8x512xf32>
    %c7_i32 = arith.constant 7 : i32
    %21 = arith.subi %c7_i32, %c0_i32 : i32
    %22 = arith.index_cast %c0_i32 : i32 to index
    %c0_16 = arith.constant 0 : index
    %c0_17 = arith.constant 0 : index
    %23 = vector.load %arg13[%22, %c0_16, %c0_17] : memref<8x8x512xf32, #tpu.memory_space<vmem>>, vector<1x8x512xf32>
    %24 = vector.shape_cast %23 : vector<1x8x512xf32> to vector<8x512xf32>
    %25 = vector.extract_strided_slice %24 {offsets = [0, 0], sizes = [8, 256], strides = [1, 1]} : vector<8x512xf32> to vector<8x256xf32>
    %26 = vector.extract_strided_slice %20 {offsets = [0, 0], sizes = [8, 256], strides = [1, 1]} : vector<8x512xf32> to vector<8x256xf32>
    %27 = arith.addf %25, %26 : vector<8x256xf32>
    %28 = arith.index_cast %21 : i32 to index
    %c0_18 = arith.constant 0 : index
    %c0_19 = arith.constant 0 : index
    %29 = vector.load %arg13[%28, %c0_18, %c0_19] : memref<8x8x512xf32, #tpu.memory_space<vmem>>, vector<1x8x512xf32>
    %30 = vector.shape_cast %29 : vector<1x8x512xf32> to vector<8x512xf32>
    %31 = vector.extract_strided_slice %30 {offsets = [0, 256], sizes = [8, 256], strides = [1, 1]} : vector<8x512xf32> to vector<8x256xf32>
    %32 = vector.extract_strided_slice %20 {offsets = [0, 256], sizes = [8, 256], strides = [1, 1]} : vector<8x512xf32> to vector<8x256xf32>
    %33 = arith.addf %31, %32 : vector<8x256xf32>
    %34 = vector.extract_strided_slice %27 {offsets = [0, 0], sizes = [8, 192], strides = [1, 1]} : vector<8x256xf32> to vector<8x192xf32>
    %35 = arith.negf %34 : vector<8x192xf32>
    %36 = math.exp %35 : vector<8x192xf32>
    %cst_20 = arith.constant 1.000000e+00 : f32
    %37 = vector.broadcast %cst_20 : f32 to vector<8x192xf32>
    %38 = arith.addf %37, %36 : vector<8x192xf32>
    %39 = arith.divf %37, %38 : vector<8x192xf32>
    %40 = vector.extract_strided_slice %39 {offsets = [0, 0], sizes = [8, 64], strides = [1, 1]} : vector<8x192xf32> to vector<8x64xf32>
    %41 = vector.extract_strided_slice %39 {offsets = [0, 64], sizes = [8, 64], strides = [1, 1]} : vector<8x192xf32> to vector<8x64xf32>
    %42 = vector.extract_strided_slice %39 {offsets = [0, 128], sizes = [8, 64], strides = [1, 1]} : vector<8x192xf32> to vector<8x64xf32>
    %43 = vector.extract_strided_slice %27 {offsets = [0, 192], sizes = [8, 64], strides = [1, 1]} : vector<8x256xf32> to vector<8x64xf32>
    %44 = math.tanh %43 : vector<8x64xf32>
    %45 = arith.mulf %41, %17 : vector<8x64xf32>
    %46 = arith.mulf %40, %44 : vector<8x64xf32>
    %47 = arith.addf %45, %46 : vector<8x64xf32>
    %48 = math.tanh %47 : vector<8x64xf32>
    %49 = arith.mulf %42, %48 : vector<8x64xf32>
    %50 = vector.extract_strided_slice %33 {offsets = [0, 0], sizes = [8, 192], strides = [1, 1]} : vector<8x256xf32> to vector<8x192xf32>
    %51 = arith.negf %50 : vector<8x192xf32>
    %52 = math.exp %51 : vector<8x192xf32>
    %cst_21 = arith.constant 1.000000e+00 : f32
    %53 = vector.broadcast %cst_21 : f32 to vector<8x192xf32>
    %54 = arith.addf %53, %52 : vector<8x192xf32>
    %55 = arith.divf %53, %54 : vector<8x192xf32>
    %56 = vector.extract_strided_slice %55 {offsets = [0, 0], sizes = [8, 64], strides = [1, 1]} : vector<8x192xf32> to vector<8x64xf32>
    %57 = vector.extract_strided_slice %55 {offsets = [0, 64], sizes = [8, 64], strides = [1, 1]} : vector<8x192xf32> to vector<8x64xf32>
    %58 = vector.extract_strided_slice %55 {offsets = [0, 128], sizes = [8, 64], strides = [1, 1]} : vector<8x192xf32> to vector<8x64xf32>
    %59 = vector.extract_strided_slice %33 {offsets = [0, 192], sizes = [8, 64], strides = [1, 1]} : vector<8x256xf32> to vector<8x64xf32>
    %60 = math.tanh %59 : vector<8x64xf32>
    %61 = arith.mulf %57, %18 : vector<8x64xf32>
    %62 = arith.mulf %56, %60 : vector<8x64xf32>
    %63 = arith.addf %61, %62 : vector<8x64xf32>
    %64 = math.tanh %63 : vector<8x64xf32>
    %65 = arith.mulf %58, %64 : vector<8x64xf32>
    %c0_22 = arith.constant 0 : index
    %66 = arith.index_cast %c0_i32 : i32 to index
    %c0_23 = arith.constant 0 : index
    %c0_24 = arith.constant 0 : index
    %67 = vector.load %arg11[%c0_22, %66, %c0_23, %c0_24] : memref<2x8x8x64xf32, #tpu.memory_space<vmem>>, vector<1x1x8x64xf32>
    %68 = vector.shape_cast %67 : vector<1x1x8x64xf32> to vector<8x64xf32>
    %69 = vector.shape_cast %49 : vector<8x64xf32> to vector<1x1x8x64xf32>
    tpu.vector_store %arg11[%c0_22, %66, %c0_23, %c0_24], %69 {strides = array<i32>} : memref<2x8x8x64xf32, #tpu.memory_space<vmem>>, vector<1x1x8x64xf32>,
    %c1 = arith.constant 1 : index
    %70 = arith.index_cast %21 : i32 to index
    %c0_25 = arith.constant 0 : index
    %c0_26 = arith.constant 0 : index
    %71 = vector.load %arg11[%c1, %70, %c0_25, %c0_26] : memref<2x8x8x64xf32, #tpu.memory_space<vmem>>, vector<1x1x8x64xf32>
    %72 = vector.shape_cast %71 : vector<1x1x8x64xf32> to vector<8x64xf32>
    %73 = vector.shape_cast %65 : vector<8x64xf32> to vector<1x1x8x64xf32>
    tpu.vector_store %arg11[%c1, %70, %c0_25, %c0_26], %73 {strides = array<i32>} : memref<2x8x8x64xf32, #tpu.memory_space<vmem>>, vector<1x1x8x64xf32>,
    %74 = tpu.concatenate %49, %65 in 1 : vector<8x64xf32>, vector<8x64xf32> -> vector<8x128xf32>
    %c1_i32 = arith.constant 1 : i32
    %75 = arith.truncf %74 : vector<8x128xf32> to vector<8x128xbf16>
    %cst_27 = arith.constant dense<0.000000e+00> : vector<8x512xf32>
    %76 = tpu.matmul %75, %15, %cst_27 {dimension_numbers = #tpu.dot_dimension_numbers<[1], [0], [0], [1], [0, 0, 1, 1], [], []>} : vector<8x128xbf16>, vector<128x512xbf16>, vector<8x512xf32> -> vector<8x512xf32>
    %c7_i32_28 = arith.constant 7 : i32
    %77 = arith.subi %c7_i32_28, %c1_i32 : i32
    %78 = arith.index_cast %c1_i32 : i32 to index
    %c0_29 = arith.constant 0 : index
    %c0_30 = arith.constant 0 : index
    %79 = vector.load %arg13[%78, %c0_29, %c0_30] : memref<8x8x512xf32, #tpu.memory_space<vmem>>, vector<1x8x512xf32>
    %80 = vector.shape_cast %79 : vector<1x8x512xf32> to vector<8x512xf32>
    %81 = vector.extract_strided_slice %80 {offsets = [0, 0], sizes = [8, 256], strides = [1, 1]} : vector<8x512xf32> to vector<8x256xf32>
    %82 = vector.extract_strided_slice %76 {offsets = [0, 0], sizes = [8, 256], strides = [1, 1]} : vector<8x512xf32> to vector<8x256xf32>
    %83 = arith.addf %81, %82 : vector<8x256xf32>
    %84 = arith.index_cast %77 : i32 to index
    %c0_31 = arith.constant 0 : index
    %c0_32 = arith.constant 0 : index
    %85 = vector.load %arg13[%84, %c0_31, %c0_32] : memref<8x8x512xf32, #tpu.memory_space<vmem>>, vector<1x8x512xf32>
    %86 = vector.shape_cast %85 : vector<1x8x512xf32> to vector<8x512xf32>
    %87 = vector.extract_strided_slice %86 {offsets = [0, 256], sizes = [8, 256], strides = [1, 1]} : vector<8x512xf32> to vector<8x256xf32>
    %88 = vector.extract_strided_slice %76 {offsets = [0, 256], sizes = [8, 256], strides = [1, 1]} : vector<8x512xf32> to vector<8x256xf32>
    %89 = arith.addf %87, %88 : vector<8x256xf32>
    %90 = vector.extract_strided_slice %83 {offsets = [0, 0], sizes = [8, 192], strides = [1, 1]} : vector<8x256xf32> to vector<8x192xf32>
    %91 = arith.negf %90 : vector<8x192xf32>
    %92 = math.exp %91 : vector<8x192xf32>
    %cst_33 = arith.constant 1.000000e+00 : f32
    %93 = vector.broadcast %cst_33 : f32 to vector<8x192xf32>
    %94 = arith.addf %93, %92 : vector<8x192xf32>
    %95 = arith.divf %93, %94 : vector<8x192xf32>
    %96 = vector.extract_strided_slice %95 {offsets = [0, 0], sizes = [8, 64], strides = [1, 1]} : vector<8x192xf32> to vector<8x64xf32>
    %97 = vector.extract_strided_slice %95 {offsets = [0, 64], sizes = [8, 64], strides = [1, 1]} : vector<8x192xf32> to vector<8x64xf32>
    %98 = vector.extract_strided_slice %95 {offsets = [0, 128], sizes = [8, 64], strides = [1, 1]} : vector<8x192xf32> to vector<8x64xf32>
    %99 = vector.extract_strided_slice %83 {offsets = [0, 192], sizes = [8, 64], strides = [1, 1]} : vector<8x256xf32> to vector<8x64xf32>
    %100 = math.tanh %99 : vector<8x64xf32>
    %101 = arith.mulf %97, %47 : vector<8x64xf32>
    %102 = arith.mulf %96, %100 : vector<8x64xf32>
    %103 = arith.addf %101, %102 : vector<8x64xf32>
    %104 = math.tanh %103 : vector<8x64xf32>
    %105 = arith.mulf %98, %104 : vector<8x64xf32>
    %106 = vector.extract_strided_slice %89 {offsets = [0, 0], sizes = [8, 192], strides = [1, 1]} : vector<8x256xf32> to vector<8x192xf32>
    %107 = arith.negf %106 : vector<8x192xf32>
    %108 = math.exp %107 : vector<8x192xf32>
    %cst_34 = arith.constant 1.000000e+00 : f32
    %109 = vector.broadcast %cst_34 : f32 to vector<8x192xf32>
    %110 = arith.addf %109, %108 : vector<8x192xf32>
    %111 = arith.divf %109, %110 : vector<8x192xf32>
    %112 = vector.extract_strided_slice %111 {offsets = [0, 0], sizes = [8, 64], strides = [1, 1]} : vector<8x192xf32> to vector<8x64xf32>
    %113 = vector.extract_strided_slice %111 {offsets = [0, 64], sizes = [8, 64], strides = [1, 1]} : vector<8x192xf32> to vector<8x64xf32>
    %114 = vector.extract_strided_slice %111 {offsets = [0, 128], sizes = [8, 64], strides = [1, 1]} : vector<8x192xf32> to vector<8x64xf32>
    %115 = vector.extract_strided_slice %89 {offsets = [0, 192], sizes = [8, 64], strides = [1, 1]} : vector<8x256xf32> to vector<8x64xf32>
    %116 = math.tanh %115 : vector<8x64xf32>
    %117 = arith.mulf %113, %63 : vector<8x64xf32>
    %118 = arith.mulf %112, %116 : vector<8x64xf32>
    %119 = arith.addf %117, %118 : vector<8x64xf32>
    %120 = math.tanh %119 : vector<8x64xf32>
    %121 = arith.mulf %114, %120 : vector<8x64xf32>
    %c0_35 = arith.constant 0 : index
    %122 = arith.index_cast %c1_i32 : i32 to index
    %c0_36 = arith.constant 0 : index
    %c0_37 = arith.constant 0 : index
    %123 = vector.load %arg11[%c0_35, %122, %c0_36, %c0_37] : memref<2x8x8x64xf32, #tpu.memory_space<vmem>>, vector<1x1x8x64xf32>
    %124 = vector.shape_cast %123 : vector<1x1x8x64xf32> to vector<8x64xf32>
    %125 = vector.shape_cast %105 : vector<8x64xf32> to vector<1x1x8x64xf32>
    tpu.vector_store %arg11[%c0_35, %122, %c0_36, %c0_37], %125 {strides = array<i32>} : memref<2x8x8x64xf32, #tpu.memory_space<vmem>>, vector<1x1x8x64xf32>,
    %c1_38 = arith.constant 1 : index
    %126 = arith.index_cast %77 : i32 to index
    %c0_39 = arith.constant 0 : index
    %c0_40 = arith.constant 0 : index
    %127 = vector.load %arg11[%c1_38, %126, %c0_39, %c0_40] : memref<2x8x8x64xf32, #tpu.memory_space<vmem>>, vector<1x1x8x64xf32>
    %128 = vector.shape_cast %127 : vector<1x1x8x64xf32> to vector<8x64xf32>
    %129 = vector.shape_cast %121 : vector<8x64xf32> to vector<1x1x8x64xf32>
    tpu.vector_store %arg11[%c1_38, %126, %c0_39, %c0_40], %129 {strides = array<i32>} : memref<2x8x8x64xf32, #tpu.memory_space<vmem>>, vector<1x1x8x64xf32>,
    %130 = tpu.concatenate %105, %121 in 1 : vector<8x64xf32>, vector<8x64xf32> -> vector<8x128xf32>
    %c2_i32 = arith.constant 2 : i32
    %131 = arith.truncf %130 : vector<8x128xf32> to vector<8x128xbf16>
    %cst_41 = arith.constant dense<0.000000e+00> : vector<8x512xf32>
    %132 = tpu.matmul %131, %15, %cst_41 {dimension_numbers = #tpu.dot_dimension_numbers<[1], [0], [0], [1], [0, 0, 1, 1], [], []>} : vector<8x128xbf16>, vector<128x512xbf16>, vector<8x512xf32> -> vector<8x512xf32>
    %c7_i32_42 = arith.constant 7 : i32
    %133 = arith.subi %c7_i32_42, %c2_i32 : i32
    %134 = arith.index_cast %c2_i32 : i32 to index
    %c0_43 = arith.constant 0 : index
    %c0_44 = arith.constant 0 : index
    %135 = vector.load %arg13[%134, %c0_43, %c0_44] : memref<8x8x512xf32, #tpu.memory_space<vmem>>, vector<1x8x512xf32>
    %136 = vector.shape_cast %135 : vector<1x8x512xf32> to vector<8x512xf32>
    %137 = vector.extract_strided_slice %136 {offsets = [0, 0], sizes = [8, 256], strides = [1, 1]} : vector<8x512xf32> to vector<8x256xf32>
    %138 = vector.extract_strided_slice %132 {offsets = [0, 0], sizes = [8, 256], strides = [1, 1]} : vector<8x512xf32> to vector<8x256xf32>
    %139 = arith.addf %137, %138 : vector<8x256xf32>
    %140 = arith.index_cast %133 : i32 to index
    %c0_45 = arith.constant 0 : index
    %c0_46 = arith.constant 0 : index
    %141 = vector.load %arg13[%140, %c0_45, %c0_46] : memref<8x8x512xf32, #tpu.memory_space<vmem>>, vector<1x8x512xf32>
    %142 = vector.shape_cast %141 : vector<1x8x512xf32> to vector<8x512xf32>
    %143 = vector.extract_strided_slice %142 {offsets = [0, 256], sizes = [8, 256], strides = [1, 1]} : vector<8x512xf32> to vector<8x256xf32>
    %144 = vector.extract_strided_slice %132 {offsets = [0, 256], sizes = [8, 256], strides = [1, 1]} : vector<8x512xf32> to vector<8x256xf32>
    %145 = arith.addf %143, %144 : vector<8x256xf32>
    %146 = vector.extract_strided_slice %139 {offsets = [0, 0], sizes = [8, 192], strides = [1, 1]} : vector<8x256xf32> to vector<8x192xf32>
    %147 = arith.negf %146 : vector<8x192xf32>
    %148 = math.exp %147 : vector<8x192xf32>
    %cst_47 = arith.constant 1.000000e+00 : f32
    %149 = vector.broadcast %cst_47 : f32 to vector<8x192xf32>
    %150 = arith.addf %149, %148 : vector<8x192xf32>
    %151 = arith.divf %149, %150 : vector<8x192xf32>
    %152 = vector.extract_strided_slice %151 {offsets = [0, 0], sizes = [8, 64], strides = [1, 1]} : vector<8x192xf32> to vector<8x64xf32>
    %153 = vector.extract_strided_slice %151 {offsets = [0, 64], sizes = [8, 64], strides = [1, 1]} : vector<8x192xf32> to vector<8x64xf32>
    %154 = vector.extract_strided_slice %151 {offsets = [0, 128], sizes = [8, 64], strides = [1, 1]} : vector<8x192xf32> to vector<8x64xf32>
    %155 = vector.extract_strided_slice %139 {offsets = [0, 192], sizes = [8, 64], strides = [1, 1]} : vector<8x256xf32> to vector<8x64xf32>
    %156 = math.tanh %155 : vector<8x64xf32>
    %157 = arith.mulf %153, %103 : vector<8x64xf32>
    %158 = arith.mulf %152, %156 : vector<8x64xf32>
    %159 = arith.addf %157, %158 : vector<8x64xf32>
    %160 = math.tanh %159 : vector<8x64xf32>
    %161 = arith.mulf %154, %160 : vector<8x64xf32>
    %162 = vector.extract_strided_slice %145 {offsets = [0, 0], sizes = [8, 192], strides = [1, 1]} : vector<8x256xf32> to vector<8x192xf32>
    %163 = arith.negf %162 : vector<8x192xf32>
    %164 = math.exp %163 : vector<8x192xf32>
    %cst_48 = arith.constant 1.000000e+00 : f32
    %165 = vector.broadcast %cst_48 : f32 to vector<8x192xf32>
    %166 = arith.addf %165, %164 : vector<8x192xf32>
    %167 = arith.divf %165, %166 : vector<8x192xf32>
    %168 = vector.extract_strided_slice %167 {offsets = [0, 0], sizes = [8, 64], strides = [1, 1]} : vector<8x192xf32> to vector<8x64xf32>
    %169 = vector.extract_strided_slice %167 {offsets = [0, 64], sizes = [8, 64], strides = [1, 1]} : vector<8x192xf32> to vector<8x64xf32>
    %170 = vector.extract_strided_slice %167 {offsets = [0, 128], sizes = [8, 64], strides = [1, 1]} : vector<8x192xf32> to vector<8x64xf32>
    %171 = vector.extract_strided_slice %145 {offsets = [0, 192], sizes = [8, 64], strides = [1, 1]} : vector<8x256xf32> to vector<8x64xf32>
    %172 = math.tanh %171 : vector<8x64xf32>
    %173 = arith.mulf %169, %119 : vector<8x64xf32>
    %174 = arith.mulf %168, %172 : vector<8x64xf32>
    %175 = arith.addf %173, %174 : vector<8x64xf32>
    %176 = math.tanh %175 : vector<8x64xf32>
    %177 = arith.mulf %170, %176 : vector<8x64xf32>
    %c0_49 = arith.constant 0 : index
    %178 = arith.index_cast %c2_i32 : i32 to index
    %c0_50 = arith.constant 0 : index
    %c0_51 = arith.constant 0 : index
    %179 = vector.load %arg11[%c0_49, %178, %c0_50, %c0_51] : memref<2x8x8x64xf32, #tpu.memory_space<vmem>>, vector<1x1x8x64xf32>
    %180 = vector.shape_cast %179 : vector<1x1x8x64xf32> to vector<8x64xf32>
    %181 = vector.shape_cast %161 : vector<8x64xf32> to vector<1x1x8x64xf32>
    tpu.vector_store %arg11[%c0_49, %178, %c0_50, %c0_51], %181 {strides = array<i32>} : memref<2x8x8x64xf32, #tpu.memory_space<vmem>>, vector<1x1x8x64xf32>,
    %c1_52 = arith.constant 1 : index
    %182 = arith.index_cast %133 : i32 to index
    %c0_53 = arith.constant 0 : index
    %c0_54 = arith.constant 0 : index
    %183 = vector.load %arg11[%c1_52, %182, %c0_53, %c0_54] : memref<2x8x8x64xf32, #tpu.memory_space<vmem>>, vector<1x1x8x64xf32>
    %184 = vector.shape_cast %183 : vector<1x1x8x64xf32> to vector<8x64xf32>
    %185 = vector.shape_cast %177 : vector<8x64xf32> to vector<1x1x8x64xf32>
    tpu.vector_store %arg11[%c1_52, %182, %c0_53, %c0_54], %185 {strides = array<i32>} : memref<2x8x8x64xf32, #tpu.memory_space<vmem>>, vector<1x1x8x64xf32>,
    %186 = tpu.concatenate %161, %177 in 1 : vector<8x64xf32>, vector<8x64xf32> -> vector<8x128xf32>
    %c3_i32 = arith.constant 3 : i32
    %187 = arith.truncf %186 : vector<8x128xf32> to vector<8x128xbf16>
    %cst_55 = arith.constant dense<0.000000e+00> : vector<8x512xf32>
    %188 = tpu.matmul %187, %15, %cst_55 {dimension_numbers = #tpu.dot_dimension_numbers<[1], [0], [0], [1], [0, 0, 1, 1], [], []>} : vector<8x128xbf16>, vector<128x512xbf16>, vector<8x512xf32> -> vector<8x512xf32>
    %c7_i32_56 = arith.constant 7 : i32
    %189 = arith.subi %c7_i32_56, %c3_i32 : i32
    %190 = arith.index_cast %c3_i32 : i32 to index
    %c0_57 = arith.constant 0 : index
    %c0_58 = arith.constant 0 : index
    %191 = vector.load %arg13[%190, %c0_57, %c0_58] : memref<8x8x512xf32, #tpu.memory_space<vmem>>, vector<1x8x512xf32>
    %192 = vector.shape_cast %191 : vector<1x8x512xf32> to vector<8x512xf32>
    %193 = vector.extract_strided_slice %192 {offsets = [0, 0], sizes = [8, 256], strides = [1, 1]} : vector<8x512xf32> to vector<8x256xf32>
    %194 = vector.extract_strided_slice %188 {offsets = [0, 0], sizes = [8, 256], strides = [1, 1]} : vector<8x512xf32> to vector<8x256xf32>
    %195 = arith.addf %193, %194 : vector<8x256xf32>
    %196 = arith.index_cast %189 : i32 to index
    %c0_59 = arith.constant 0 : index
    %c0_60 = arith.constant 0 : index
    %197 = vector.load %arg13[%196, %c0_59, %c0_60] : memref<8x8x512xf32, #tpu.memory_space<vmem>>, vector<1x8x512xf32>
    %198 = vector.shape_cast %197 : vector<1x8x512xf32> to vector<8x512xf32>
    %199 = vector.extract_strided_slice %198 {offsets = [0, 256], sizes = [8, 256], strides = [1, 1]} : vector<8x512xf32> to vector<8x256xf32>
    %200 = vector.extract_strided_slice %188 {offsets = [0, 256], sizes = [8, 256], strides = [1, 1]} : vector<8x512xf32> to vector<8x256xf32>
    %201 = arith.addf %199, %200 : vector<8x256xf32>
    %202 = vector.extract_strided_slice %195 {offsets = [0, 0], sizes = [8, 192], strides = [1, 1]} : vector<8x256xf32> to vector<8x192xf32>
    %203 = arith.negf %202 : vector<8x192xf32>
    %204 = math.exp %203 : vector<8x192xf32>
    %cst_61 = arith.constant 1.000000e+00 : f32
    %205 = vector.broadcast %cst_61 : f32 to vector<8x192xf32>
    %206 = arith.addf %205, %204 : vector<8x192xf32>
    %207 = arith.divf %205, %206 : vector<8x192xf32>
    %208 = vector.extract_strided_slice %207 {offsets = [0, 0], sizes = [8, 64], strides = [1, 1]} : vector<8x192xf32> to vector<8x64xf32>
    %209 = vector.extract_strided_slice %207 {offsets = [0, 64], sizes = [8, 64], strides = [1, 1]} : vector<8x192xf32> to vector<8x64xf32>
    %210 = vector.extract_strided_slice %207 {offsets = [0, 128], sizes = [8, 64], strides = [1, 1]} : vector<8x192xf32> to vector<8x64xf32>
    %211 = vector.extract_strided_slice %195 {offsets = [0, 192], sizes = [8, 64], strides = [1, 1]} : vector<8x256xf32> to vector<8x64xf32>
    %212 = math.tanh %211 : vector<8x64xf32>
    %213 = arith.mulf %209, %159 : vector<8x64xf32>
    %214 = arith.mulf %208, %212 : vector<8x64xf32>
    %215 = arith.addf %213, %214 : vector<8x64xf32>
    %216 = math.tanh %215 : vector<8x64xf32>
    %217 = arith.mulf %210, %216 : vector<8x64xf32>
    %218 = vector.extract_strided_slice %201 {offsets = [0, 0], sizes = [8, 192], strides = [1, 1]} : vector<8x256xf32> to vector<8x192xf32>
    %219 = arith.negf %218 : vector<8x192xf32>
    %220 = math.exp %219 : vector<8x192xf32>
    %cst_62 = arith.constant 1.000000e+00 : f32
    %221 = vector.broadcast %cst_62 : f32 to vector<8x192xf32>
    %222 = arith.addf %221, %220 : vector<8x192xf32>
    %223 = arith.divf %221, %222 : vector<8x192xf32>
    %224 = vector.extract_strided_slice %223 {offsets = [0, 0], sizes = [8, 64], strides = [1, 1]} : vector<8x192xf32> to vector<8x64xf32>
    %225 = vector.extract_strided_slice %223 {offsets = [0, 64], sizes = [8, 64], strides = [1, 1]} : vector<8x192xf32> to vector<8x64xf32>
    %226 = vector.extract_strided_slice %223 {offsets = [0, 128], sizes = [8, 64], strides = [1, 1]} : vector<8x192xf32> to vector<8x64xf32>
    %227 = vector.extract_strided_slice %201 {offsets = [0, 192], sizes = [8, 64], strides = [1, 1]} : vector<8x256xf32> to vector<8x64xf32>
    %228 = math.tanh %227 : vector<8x64xf32>
    %229 = arith.mulf %225, %175 : vector<8x64xf32>
    %230 = arith.mulf %224, %228 : vector<8x64xf32>
    %231 = arith.addf %229, %230 : vector<8x64xf32>
    %232 = math.tanh %231 : vector<8x64xf32>
    %233 = arith.mulf %226, %232 : vector<8x64xf32>
    %c0_63 = arith.constant 0 : index
    %234 = arith.index_cast %c3_i32 : i32 to index
    %c0_64 = arith.constant 0 : index
    %c0_65 = arith.constant 0 : index
    %235 = vector.load %arg11[%c0_63, %234, %c0_64, %c0_65] : memref<2x8x8x64xf32, #tpu.memory_space<vmem>>, vector<1x1x8x64xf32>
    %236 = vector.shape_cast %235 : vector<1x1x8x64xf32> to vector<8x64xf32>
    %237 = vector.shape_cast %217 : vector<8x64xf32> to vector<1x1x8x64xf32>
    tpu.vector_store %arg11[%c0_63, %234, %c0_64, %c0_65], %237 {strides = array<i32>} : memref<2x8x8x64xf32, #tpu.memory_space<vmem>>, vector<1x1x8x64xf32>,
    %c1_66 = arith.constant 1 : index
    %238 = arith.index_cast %189 : i32 to index
    %c0_67 = arith.constant 0 : index
    %c0_68 = arith.constant 0 : index
    %239 = vector.load %arg11[%c1_66, %238, %c0_67, %c0_68] : memref<2x8x8x64xf32, #tpu.memory_space<vmem>>, vector<1x1x8x64xf32>
    %240 = vector.shape_cast %239 : vector<1x1x8x64xf32> to vector<8x64xf32>
    %241 = vector.shape_cast %233 : vector<8x64xf32> to vector<1x1x8x64xf32>
    tpu.vector_store %arg11[%c1_66, %238, %c0_67, %c0_68], %241 {strides = array<i32>} : memref<2x8x8x64xf32, #tpu.memory_space<vmem>>, vector<1x1x8x64xf32>,
    %242 = tpu.concatenate %217, %233 in 1 : vector<8x64xf32>, vector<8x64xf32> -> vector<8x128xf32>
    %c4_i32 = arith.constant 4 : i32
    %243 = arith.truncf %242 : vector<8x128xf32> to vector<8x128xbf16>
    %cst_69 = arith.constant dense<0.000000e+00> : vector<8x512xf32>
    %244 = tpu.matmul %243, %15, %cst_69 {dimension_numbers = #tpu.dot_dimension_numbers<[1], [0], [0], [1], [0, 0, 1, 1], [], []>} : vector<8x128xbf16>, vector<128x512xbf16>, vector<8x512xf32> -> vector<8x512xf32>
    %c7_i32_70 = arith.constant 7 : i32
    %245 = arith.subi %c7_i32_70, %c4_i32 : i32
    %246 = arith.index_cast %c4_i32 : i32 to index
    %c0_71 = arith.constant 0 : index
    %c0_72 = arith.constant 0 : index
    %247 = vector.load %arg13[%246, %c0_71, %c0_72] : memref<8x8x512xf32, #tpu.memory_space<vmem>>, vector<1x8x512xf32>
    %248 = vector.shape_cast %247 : vector<1x8x512xf32> to vector<8x512xf32>
    %249 = vector.extract_strided_slice %248 {offsets = [0, 0], sizes = [8, 256], strides = [1, 1]} : vector<8x512xf32> to vector<8x256xf32>
    %250 = vector.extract_strided_slice %244 {offsets = [0, 0], sizes = [8, 256], strides = [1, 1]} : vector<8x512xf32> to vector<8x256xf32>
    %251 = arith.addf %249, %250 : vector<8x256xf32>
    %252 = arith.index_cast %245 : i32 to index
    %c0_73 = arith.constant 0 : index
    %c0_74 = arith.constant 0 : index
    %253 = vector.load %arg13[%252, %c0_73, %c0_74] : memref<8x8x512xf32, #tpu.memory_space<vmem>>, vector<1x8x512xf32>
    %254 = vector.shape_cast %253 : vector<1x8x512xf32> to vector<8x512xf32>
    %255 = vector.extract_strided_slice %254 {offsets = [0, 256], sizes = [8, 256], strides = [1, 1]} : vector<8x512xf32> to vector<8x256xf32>
    %256 = vector.extract_strided_slice %244 {offsets = [0, 256], sizes = [8, 256], strides = [1, 1]} : vector<8x512xf32> to vector<8x256xf32>
    %257 = arith.addf %255, %256 : vector<8x256xf32>
    %258 = vector.extract_strided_slice %251 {offsets = [0, 0], sizes = [8, 192], strides = [1, 1]} : vector<8x256xf32> to vector<8x192xf32>
    %259 = arith.negf %258 : vector<8x192xf32>
    %260 = math.exp %259 : vector<8x192xf32>
    %cst_75 = arith.constant 1.000000e+00 : f32
    %261 = vector.broadcast %cst_75 : f32 to vector<8x192xf32>
    %262 = arith.addf %261, %260 : vector<8x192xf32>
    %263 = arith.divf %261, %262 : vector<8x192xf32>
    %264 = vector.extract_strided_slice %263 {offsets = [0, 0], sizes = [8, 64], strides = [1, 1]} : vector<8x192xf32> to vector<8x64xf32>
    %265 = vector.extract_strided_slice %263 {offsets = [0, 64], sizes = [8, 64], strides = [1, 1]} : vector<8x192xf32> to vector<8x64xf32>
    %266 = vector.extract_strided_slice %263 {offsets = [0, 128], sizes = [8, 64], strides = [1, 1]} : vector<8x192xf32> to vector<8x64xf32>
    %267 = vector.extract_strided_slice %251 {offsets = [0, 192], sizes = [8, 64], strides = [1, 1]} : vector<8x256xf32> to vector<8x64xf32>
    %268 = math.tanh %267 : vector<8x64xf32>
    %269 = arith.mulf %265, %215 : vector<8x64xf32>
    %270 = arith.mulf %264, %268 : vector<8x64xf32>
    %271 = arith.addf %269, %270 : vector<8x64xf32>
    %272 = math.tanh %271 : vector<8x64xf32>
    %273 = arith.mulf %266, %272 : vector<8x64xf32>
    %274 = vector.extract_strided_slice %257 {offsets = [0, 0], sizes = [8, 192], strides = [1, 1]} : vector<8x256xf32> to vector<8x192xf32>
    %275 = arith.negf %274 : vector<8x192xf32>
    %276 = math.exp %275 : vector<8x192xf32>
    %cst_76 = arith.constant 1.000000e+00 : f32
    %277 = vector.broadcast %cst_76 : f32 to vector<8x192xf32>
    %278 = arith.addf %277, %276 : vector<8x192xf32>
    %279 = arith.divf %277, %278 : vector<8x192xf32>
    %280 = vector.extract_strided_slice %279 {offsets = [0, 0], sizes = [8, 64], strides = [1, 1]} : vector<8x192xf32> to vector<8x64xf32>
    %281 = vector.extract_strided_slice %279 {offsets = [0, 64], sizes = [8, 64], strides = [1, 1]} : vector<8x192xf32> to vector<8x64xf32>
    %282 = vector.extract_strided_slice %279 {offsets = [0, 128], sizes = [8, 64], strides = [1, 1]} : vector<8x192xf32> to vector<8x64xf32>
    %283 = vector.extract_strided_slice %257 {offsets = [0, 192], sizes = [8, 64], strides = [1, 1]} : vector<8x256xf32> to vector<8x64xf32>
    %284 = math.tanh %283 : vector<8x64xf32>
    %285 = arith.mulf %281, %231 : vector<8x64xf32>
    %286 = arith.mulf %280, %284 : vector<8x64xf32>
    %287 = arith.addf %285, %286 : vector<8x64xf32>
    %288 = math.tanh %287 : vector<8x64xf32>
    %289 = arith.mulf %282, %288 : vector<8x64xf32>
    %c0_77 = arith.constant 0 : index
    %290 = arith.index_cast %c4_i32 : i32 to index
    %c0_78 = arith.constant 0 : index
    %c0_79 = arith.constant 0 : index
    %291 = vector.load %arg11[%c0_77, %290, %c0_78, %c0_79] : memref<2x8x8x64xf32, #tpu.memory_space<vmem>>, vector<1x1x8x64xf32>
    %292 = vector.shape_cast %291 : vector<1x1x8x64xf32> to vector<8x64xf32>
    %293 = vector.shape_cast %273 : vector<8x64xf32> to vector<1x1x8x64xf32>
    tpu.vector_store %arg11[%c0_77, %290, %c0_78, %c0_79], %293 {strides = array<i32>} : memref<2x8x8x64xf32, #tpu.memory_space<vmem>>, vector<1x1x8x64xf32>,
    %c1_80 = arith.constant 1 : index
    %294 = arith.index_cast %245 : i32 to index
    %c0_81 = arith.constant 0 : index
    %c0_82 = arith.constant 0 : index
    %295 = vector.load %arg11[%c1_80, %294, %c0_81, %c0_82] : memref<2x8x8x64xf32, #tpu.memory_space<vmem>>, vector<1x1x8x64xf32>
    %296 = vector.shape_cast %295 : vector<1x1x8x64xf32> to vector<8x64xf32>
    %297 = vector.shape_cast %289 : vector<8x64xf32> to vector<1x1x8x64xf32>
    tpu.vector_store %arg11[%c1_80, %294, %c0_81, %c0_82], %297 {strides = array<i32>} : memref<2x8x8x64xf32, #tpu.memory_space<vmem>>, vector<1x1x8x64xf32>,
    %298 = tpu.concatenate %273, %289 in 1 : vector<8x64xf32>, vector<8x64xf32> -> vector<8x128xf32>
    %c5_i32 = arith.constant 5 : i32
    %299 = arith.truncf %298 : vector<8x128xf32> to vector<8x128xbf16>
    %cst_83 = arith.constant dense<0.000000e+00> : vector<8x512xf32>
    %300 = tpu.matmul %299, %15, %cst_83 {dimension_numbers = #tpu.dot_dimension_numbers<[1], [0], [0], [1], [0, 0, 1, 1], [], []>} : vector<8x128xbf16>, vector<128x512xbf16>, vector<8x512xf32> -> vector<8x512xf32>
    %c7_i32_84 = arith.constant 7 : i32
    %301 = arith.subi %c7_i32_84, %c5_i32 : i32
    %302 = arith.index_cast %c5_i32 : i32 to index
    %c0_85 = arith.constant 0 : index
    %c0_86 = arith.constant 0 : index
    %303 = vector.load %arg13[%302, %c0_85, %c0_86] : memref<8x8x512xf32, #tpu.memory_space<vmem>>, vector<1x8x512xf32>
    %304 = vector.shape_cast %303 : vector<1x8x512xf32> to vector<8x512xf32>
    %305 = vector.extract_strided_slice %304 {offsets = [0, 0], sizes = [8, 256], strides = [1, 1]} : vector<8x512xf32> to vector<8x256xf32>
    %306 = vector.extract_strided_slice %300 {offsets = [0, 0], sizes = [8, 256], strides = [1, 1]} : vector<8x512xf32> to vector<8x256xf32>
    %307 = arith.addf %305, %306 : vector<8x256xf32>
    %308 = arith.index_cast %301 : i32 to index
    %c0_87 = arith.constant 0 : index
    %c0_88 = arith.constant 0 : index
    %309 = vector.load %arg13[%308, %c0_87, %c0_88] : memref<8x8x512xf32, #tpu.memory_space<vmem>>, vector<1x8x512xf32>
    %310 = vector.shape_cast %309 : vector<1x8x512xf32> to vector<8x512xf32>
    %311 = vector.extract_strided_slice %310 {offsets = [0, 256], sizes = [8, 256], strides = [1, 1]} : vector<8x512xf32> to vector<8x256xf32>
    %312 = vector.extract_strided_slice %300 {offsets = [0, 256], sizes = [8, 256], strides = [1, 1]} : vector<8x512xf32> to vector<8x256xf32>
    %313 = arith.addf %311, %312 : vector<8x256xf32>
    %314 = vector.extract_strided_slice %307 {offsets = [0, 0], sizes = [8, 192], strides = [1, 1]} : vector<8x256xf32> to vector<8x192xf32>
    %315 = arith.negf %314 : vector<8x192xf32>
    %316 = math.exp %315 : vector<8x192xf32>
    %cst_89 = arith.constant 1.000000e+00 : f32
    %317 = vector.broadcast %cst_89 : f32 to vector<8x192xf32>
    %318 = arith.addf %317, %316 : vector<8x192xf32>
    %319 = arith.divf %317, %318 : vector<8x192xf32>
    %320 = vector.extract_strided_slice %319 {offsets = [0, 0], sizes = [8, 64], strides = [1, 1]} : vector<8x192xf32> to vector<8x64xf32>
    %321 = vector.extract_strided_slice %319 {offsets = [0, 64], sizes = [8, 64], strides = [1, 1]} : vector<8x192xf32> to vector<8x64xf32>
    %322 = vector.extract_strided_slice %319 {offsets = [0, 128], sizes = [8, 64], strides = [1, 1]} : vector<8x192xf32> to vector<8x64xf32>
    %323 = vector.extract_strided_slice %307 {offsets = [0, 192], sizes = [8, 64], strides = [1, 1]} : vector<8x256xf32> to vector<8x64xf32>
    %324 = math.tanh %323 : vector<8x64xf32>
    %325 = arith.mulf %321, %271 : vector<8x64xf32>
    %326 = arith.mulf %320, %324 : vector<8x64xf32>
    %327 = arith.addf %325, %326 : vector<8x64xf32>
    %328 = math.tanh %327 : vector<8x64xf32>
    %329 = arith.mulf %322, %328 : vector<8x64xf32>
    %330 = vector.extract_strided_slice %313 {offsets = [0, 0], sizes = [8, 192], strides = [1, 1]} : vector<8x256xf32> to vector<8x192xf32>
    %331 = arith.negf %330 : vector<8x192xf32>
    %332 = math.exp %331 : vector<8x192xf32>
    %cst_90 = arith.constant 1.000000e+00 : f32
    %333 = vector.broadcast %cst_90 : f32 to vector<8x192xf32>
    %334 = arith.addf %333, %332 : vector<8x192xf32>
    %335 = arith.divf %333, %334 : vector<8x192xf32>
    %336 = vector.extract_strided_slice %335 {offsets = [0, 0], sizes = [8, 64], strides = [1, 1]} : vector<8x192xf32> to vector<8x64xf32>
    %337 = vector.extract_strided_slice %335 {offsets = [0, 64], sizes = [8, 64], strides = [1, 1]} : vector<8x192xf32> to vector<8x64xf32>
    %338 = vector.extract_strided_slice %335 {offsets = [0, 128], sizes = [8, 64], strides = [1, 1]} : vector<8x192xf32> to vector<8x64xf32>
    %339 = vector.extract_strided_slice %313 {offsets = [0, 192], sizes = [8, 64], strides = [1, 1]} : vector<8x256xf32> to vector<8x64xf32>
    %340 = math.tanh %339 : vector<8x64xf32>
    %341 = arith.mulf %337, %287 : vector<8x64xf32>
    %342 = arith.mulf %336, %340 : vector<8x64xf32>
    %343 = arith.addf %341, %342 : vector<8x64xf32>
    %344 = math.tanh %343 : vector<8x64xf32>
    %345 = arith.mulf %338, %344 : vector<8x64xf32>
    %c0_91 = arith.constant 0 : index
    %346 = arith.index_cast %c5_i32 : i32 to index
    %c0_92 = arith.constant 0 : index
    %c0_93 = arith.constant 0 : index
    %347 = vector.load %arg11[%c0_91, %346, %c0_92, %c0_93] : memref<2x8x8x64xf32, #tpu.memory_space<vmem>>, vector<1x1x8x64xf32>
    %348 = vector.shape_cast %347 : vector<1x1x8x64xf32> to vector<8x64xf32>
    %349 = vector.shape_cast %329 : vector<8x64xf32> to vector<1x1x8x64xf32>
    tpu.vector_store %arg11[%c0_91, %346, %c0_92, %c0_93], %349 {strides = array<i32>} : memref<2x8x8x64xf32, #tpu.memory_space<vmem>>, vector<1x1x8x64xf32>,
    %c1_94 = arith.constant 1 : index
    %350 = arith.index_cast %301 : i32 to index
    %c0_95 = arith.constant 0 : index
    %c0_96 = arith.constant 0 : index
    %351 = vector.load %arg11[%c1_94, %350, %c0_95, %c0_96] : memref<2x8x8x64xf32, #tpu.memory_space<vmem>>, vector<1x1x8x64xf32>
    %352 = vector.shape_cast %351 : vector<1x1x8x64xf32> to vector<8x64xf32>
    %353 = vector.shape_cast %345 : vector<8x64xf32> to vector<1x1x8x64xf32>
    tpu.vector_store %arg11[%c1_94, %350, %c0_95, %c0_96], %353 {strides = array<i32>} : memref<2x8x8x64xf32, #tpu.memory_space<vmem>>, vector<1x1x8x64xf32>,
    %354 = tpu.concatenate %329, %345 in 1 : vector<8x64xf32>, vector<8x64xf32> -> vector<8x128xf32>
    %c6_i32 = arith.constant 6 : i32
    %355 = arith.truncf %354 : vector<8x128xf32> to vector<8x128xbf16>
    %cst_97 = arith.constant dense<0.000000e+00> : vector<8x512xf32>
    %356 = tpu.matmul %355, %15, %cst_97 {dimension_numbers = #tpu.dot_dimension_numbers<[1], [0], [0], [1], [0, 0, 1, 1], [], []>} : vector<8x128xbf16>, vector<128x512xbf16>, vector<8x512xf32> -> vector<8x512xf32>
    %c7_i32_98 = arith.constant 7 : i32
    %357 = arith.subi %c7_i32_98, %c6_i32 : i32
    %358 = arith.index_cast %c6_i32 : i32 to index
    %c0_99 = arith.constant 0 : index
    %c0_100 = arith.constant 0 : index
    %359 = vector.load %arg13[%358, %c0_99, %c0_100] : memref<8x8x512xf32, #tpu.memory_space<vmem>>, vector<1x8x512xf32>
    %360 = vector.shape_cast %359 : vector<1x8x512xf32> to vector<8x512xf32>
    %361 = vector.extract_strided_slice %360 {offsets = [0, 0], sizes = [8, 256], strides = [1, 1]} : vector<8x512xf32> to vector<8x256xf32>
    %362 = vector.extract_strided_slice %356 {offsets = [0, 0], sizes = [8, 256], strides = [1, 1]} : vector<8x512xf32> to vector<8x256xf32>
    %363 = arith.addf %361, %362 : vector<8x256xf32>
    %364 = arith.index_cast %357 : i32 to index
    %c0_101 = arith.constant 0 : index
    %c0_102 = arith.constant 0 : index
    %365 = vector.load %arg13[%364, %c0_101, %c0_102] : memref<8x8x512xf32, #tpu.memory_space<vmem>>, vector<1x8x512xf32>
    %366 = vector.shape_cast %365 : vector<1x8x512xf32> to vector<8x512xf32>
    %367 = vector.extract_strided_slice %366 {offsets = [0, 256], sizes = [8, 256], strides = [1, 1]} : vector<8x512xf32> to vector<8x256xf32>
    %368 = vector.extract_strided_slice %356 {offsets = [0, 256], sizes = [8, 256], strides = [1, 1]} : vector<8x512xf32> to vector<8x256xf32>
    %369 = arith.addf %367, %368 : vector<8x256xf32>
    %370 = vector.extract_strided_slice %363 {offsets = [0, 0], sizes = [8, 192], strides = [1, 1]} : vector<8x256xf32> to vector<8x192xf32>
    %371 = arith.negf %370 : vector<8x192xf32>
    %372 = math.exp %371 : vector<8x192xf32>
    %cst_103 = arith.constant 1.000000e+00 : f32
    %373 = vector.broadcast %cst_103 : f32 to vector<8x192xf32>
    %374 = arith.addf %373, %372 : vector<8x192xf32>
    %375 = arith.divf %373, %374 : vector<8x192xf32>
    %376 = vector.extract_strided_slice %375 {offsets = [0, 0], sizes = [8, 64], strides = [1, 1]} : vector<8x192xf32> to vector<8x64xf32>
    %377 = vector.extract_strided_slice %375 {offsets = [0, 64], sizes = [8, 64], strides = [1, 1]} : vector<8x192xf32> to vector<8x64xf32>
    %378 = vector.extract_strided_slice %375 {offsets = [0, 128], sizes = [8, 64], strides = [1, 1]} : vector<8x192xf32> to vector<8x64xf32>
    %379 = vector.extract_strided_slice %363 {offsets = [0, 192], sizes = [8, 64], strides = [1, 1]} : vector<8x256xf32> to vector<8x64xf32>
    %380 = math.tanh %379 : vector<8x64xf32>
    %381 = arith.mulf %377, %327 : vector<8x64xf32>
    %382 = arith.mulf %376, %380 : vector<8x64xf32>
    %383 = arith.addf %381, %382 : vector<8x64xf32>
    %384 = math.tanh %383 : vector<8x64xf32>
    %385 = arith.mulf %378, %384 : vector<8x64xf32>
    %386 = vector.extract_strided_slice %369 {offsets = [0, 0], sizes = [8, 192], strides = [1, 1]} : vector<8x256xf32> to vector<8x192xf32>
    %387 = arith.negf %386 : vector<8x192xf32>
    %388 = math.exp %387 : vector<8x192xf32>
    %cst_104 = arith.constant 1.000000e+00 : f32
    %389 = vector.broadcast %cst_104 : f32 to vector<8x192xf32>
    %390 = arith.addf %389, %388 : vector<8x192xf32>
    %391 = arith.divf %389, %390 : vector<8x192xf32>
    %392 = vector.extract_strided_slice %391 {offsets = [0, 0], sizes = [8, 64], strides = [1, 1]} : vector<8x192xf32> to vector<8x64xf32>
    %393 = vector.extract_strided_slice %391 {offsets = [0, 64], sizes = [8, 64], strides = [1, 1]} : vector<8x192xf32> to vector<8x64xf32>
    %394 = vector.extract_strided_slice %391 {offsets = [0, 128], sizes = [8, 64], strides = [1, 1]} : vector<8x192xf32> to vector<8x64xf32>
    %395 = vector.extract_strided_slice %369 {offsets = [0, 192], sizes = [8, 64], strides = [1, 1]} : vector<8x256xf32> to vector<8x64xf32>
    %396 = math.tanh %395 : vector<8x64xf32>
    %397 = arith.mulf %393, %343 : vector<8x64xf32>
    %398 = arith.mulf %392, %396 : vector<8x64xf32>
    %399 = arith.addf %397, %398 : vector<8x64xf32>
    %400 = math.tanh %399 : vector<8x64xf32>
    %401 = arith.mulf %394, %400 : vector<8x64xf32>
    %c0_105 = arith.constant 0 : index
    %402 = arith.index_cast %c6_i32 : i32 to index
    %c0_106 = arith.constant 0 : index
    %c0_107 = arith.constant 0 : index
    %403 = vector.load %arg11[%c0_105, %402, %c0_106, %c0_107] : memref<2x8x8x64xf32, #tpu.memory_space<vmem>>, vector<1x1x8x64xf32>
    %404 = vector.shape_cast %403 : vector<1x1x8x64xf32> to vector<8x64xf32>
    %405 = vector.shape_cast %385 : vector<8x64xf32> to vector<1x1x8x64xf32>
    tpu.vector_store %arg11[%c0_105, %402, %c0_106, %c0_107], %405 {strides = array<i32>} : memref<2x8x8x64xf32, #tpu.memory_space<vmem>>, vector<1x1x8x64xf32>,
    %c1_108 = arith.constant 1 : index
    %406 = arith.index_cast %357 : i32 to index
    %c0_109 = arith.constant 0 : index
    %c0_110 = arith.constant 0 : index
    %407 = vector.load %arg11[%c1_108, %406, %c0_109, %c0_110] : memref<2x8x8x64xf32, #tpu.memory_space<vmem>>, vector<1x1x8x64xf32>
    %408 = vector.shape_cast %407 : vector<1x1x8x64xf32> to vector<8x64xf32>
    %409 = vector.shape_cast %401 : vector<8x64xf32> to vector<1x1x8x64xf32>
    tpu.vector_store %arg11[%c1_108, %406, %c0_109, %c0_110], %409 {strides = array<i32>} : memref<2x8x8x64xf32, #tpu.memory_space<vmem>>, vector<1x1x8x64xf32>,
    %410 = tpu.concatenate %385, %401 in 1 : vector<8x64xf32>, vector<8x64xf32> -> vector<8x128xf32>
    %c7_i32_111 = arith.constant 7 : i32
    %411 = arith.truncf %410 : vector<8x128xf32> to vector<8x128xbf16>
    %cst_112 = arith.constant dense<0.000000e+00> : vector<8x512xf32>
    %412 = tpu.matmul %411, %15, %cst_112 {dimension_numbers = #tpu.dot_dimension_numbers<[1], [0], [0], [1], [0, 0, 1, 1], [], []>} : vector<8x128xbf16>, vector<128x512xbf16>, vector<8x512xf32> -> vector<8x512xf32>
    %c7_i32_113 = arith.constant 7 : i32
    %413 = arith.subi %c7_i32_113, %c7_i32_111 : i32
    %414 = arith.index_cast %c7_i32_111 : i32 to index
    %c0_114 = arith.constant 0 : index
    %c0_115 = arith.constant 0 : index
    %415 = vector.load %arg13[%414, %c0_114, %c0_115] : memref<8x8x512xf32, #tpu.memory_space<vmem>>, vector<1x8x512xf32>
    %416 = vector.shape_cast %415 : vector<1x8x512xf32> to vector<8x512xf32>
    %417 = vector.extract_strided_slice %416 {offsets = [0, 0], sizes = [8, 256], strides = [1, 1]} : vector<8x512xf32> to vector<8x256xf32>
    %418 = vector.extract_strided_slice %412 {offsets = [0, 0], sizes = [8, 256], strides = [1, 1]} : vector<8x512xf32> to vector<8x256xf32>
    %419 = arith.addf %417, %418 : vector<8x256xf32>
    %420 = arith.index_cast %413 : i32 to index
    %c0_116 = arith.constant 0 : index
    %c0_117 = arith.constant 0 : index
    %421 = vector.load %arg13[%420, %c0_116, %c0_117] : memref<8x8x512xf32, #tpu.memory_space<vmem>>, vector<1x8x512xf32>
    %422 = vector.shape_cast %421 : vector<1x8x512xf32> to vector<8x512xf32>
    %423 = vector.extract_strided_slice %422 {offsets = [0, 256], sizes = [8, 256], strides = [1, 1]} : vector<8x512xf32> to vector<8x256xf32>
    %424 = vector.extract_strided_slice %412 {offsets = [0, 256], sizes = [8, 256], strides = [1, 1]} : vector<8x512xf32> to vector<8x256xf32>
    %425 = arith.addf %423, %424 : vector<8x256xf32>
    %426 = vector.extract_strided_slice %419 {offsets = [0, 0], sizes = [8, 192], strides = [1, 1]} : vector<8x256xf32> to vector<8x192xf32>
    %427 = arith.negf %426 : vector<8x192xf32>
    %428 = math.exp %427 : vector<8x192xf32>
    %cst_118 = arith.constant 1.000000e+00 : f32
    %429 = vector.broadcast %cst_118 : f32 to vector<8x192xf32>
    %430 = arith.addf %429, %428 : vector<8x192xf32>
    %431 = arith.divf %429, %430 : vector<8x192xf32>
    %432 = vector.extract_strided_slice %431 {offsets = [0, 0], sizes = [8, 64], strides = [1, 1]} : vector<8x192xf32> to vector<8x64xf32>
    %433 = vector.extract_strided_slice %431 {offsets = [0, 64], sizes = [8, 64], strides = [1, 1]} : vector<8x192xf32> to vector<8x64xf32>
    %434 = vector.extract_strided_slice %431 {offsets = [0, 128], sizes = [8, 64], strides = [1, 1]} : vector<8x192xf32> to vector<8x64xf32>
    %435 = vector.extract_strided_slice %419 {offsets = [0, 192], sizes = [8, 64], strides = [1, 1]} : vector<8x256xf32> to vector<8x64xf32>
    %436 = math.tanh %435 : vector<8x64xf32>
    %437 = arith.mulf %433, %383 : vector<8x64xf32>
    %438 = arith.mulf %432, %436 : vector<8x64xf32>
    %439 = arith.addf %437, %438 : vector<8x64xf32>
    %440 = math.tanh %439 : vector<8x64xf32>
    %441 = arith.mulf %434, %440 : vector<8x64xf32>
    %442 = vector.extract_strided_slice %425 {offsets = [0, 0], sizes = [8, 192], strides = [1, 1]} : vector<8x256xf32> to vector<8x192xf32>
    %443 = arith.negf %442 : vector<8x192xf32>
    %444 = math.exp %443 : vector<8x192xf32>
    %cst_119 = arith.constant 1.000000e+00 : f32
    %445 = vector.broadcast %cst_119 : f32 to vector<8x192xf32>
    %446 = arith.addf %445, %444 : vector<8x192xf32>
    %447 = arith.divf %445, %446 : vector<8x192xf32>
    %448 = vector.extract_strided_slice %447 {offsets = [0, 0], sizes = [8, 64], strides = [1, 1]} : vector<8x192xf32> to vector<8x64xf32>
    %449 = vector.extract_strided_slice %447 {offsets = [0, 64], sizes = [8, 64], strides = [1, 1]} : vector<8x192xf32> to vector<8x64xf32>
    %450 = vector.extract_strided_slice %447 {offsets = [0, 128], sizes = [8, 64], strides = [1, 1]} : vector<8x192xf32> to vector<8x64xf32>
    %451 = vector.extract_strided_slice %425 {offsets = [0, 192], sizes = [8, 64], strides = [1, 1]} : vector<8x256xf32> to vector<8x64xf32>
    %452 = math.tanh %451 : vector<8x64xf32>
    %453 = arith.mulf %449, %399 : vector<8x64xf32>
    %454 = arith.mulf %448, %452 : vector<8x64xf32>
    %455 = arith.addf %453, %454 : vector<8x64xf32>
    %456 = math.tanh %455 : vector<8x64xf32>
    %457 = arith.mulf %450, %456 : vector<8x64xf32>
    %c0_120 = arith.constant 0 : index
    %458 = arith.index_cast %c7_i32_111 : i32 to index
    %c0_121 = arith.constant 0 : index
    %c0_122 = arith.constant 0 : index
    %459 = vector.load %arg11[%c0_120, %458, %c0_121, %c0_122] : memref<2x8x8x64xf32, #tpu.memory_space<vmem>>, vector<1x1x8x64xf32>
    %460 = vector.shape_cast %459 : vector<1x1x8x64xf32> to vector<8x64xf32>
    %461 = vector.shape_cast %441 : vector<8x64xf32> to vector<1x1x8x64xf32>
    tpu.vector_store %arg11[%c0_120, %458, %c0_121, %c0_122], %461 {strides = array<i32>} : memref<2x8x8x64xf32, #tpu.memory_space<vmem>>, vector<1x1x8x64xf32>,
    %c1_123 = arith.constant 1 : index
    %462 = arith.index_cast %413 : i32 to index
    %c0_124 = arith.constant 0 : index
    %c0_125 = arith.constant 0 : index
    %463 = vector.load %arg11[%c1_123, %462, %c0_124, %c0_125] : memref<2x8x8x64xf32, #tpu.memory_space<vmem>>, vector<1x1x8x64xf32>
    %464 = vector.shape_cast %463 : vector<1x1x8x64xf32> to vector<8x64xf32>
    %465 = vector.shape_cast %457 : vector<8x64xf32> to vector<1x1x8x64xf32>
    tpu.vector_store %arg11[%c1_123, %462, %c0_124, %c0_125], %465 {strides = array<i32>} : memref<2x8x8x64xf32, #tpu.memory_space<vmem>>, vector<1x1x8x64xf32>,
    %466 = tpu.concatenate %441, %457 in 1 : vector<8x64xf32>, vector<8x64xf32> -> vector<8x128xf32>
    %c8_i32 = arith.constant 8 : i32
    %c1_126 = arith.constant 1 : index
    %c0_127 = arith.constant 0 : index
    %c0_128 = arith.constant 0 : index
    %467 = vector.load %arg5[%c1_126, %c0_127, %c0_128] : memref<3x1x512xf32, #tpu.memory_space<vmem>>, vector<1x1x512xf32>
    %468 = vector.shape_cast %467 : vector<1x1x512xf32> to vector<1x512xf32>
    %c0_129 = arith.constant 0 : index
    %c0_130 = arith.constant 0 : index
    %c0_131 = arith.constant 0 : index
    %469 = vector.load %arg3[%c0_129, %c0_130, %c0_131] : memref<2x128x512xbf16, #tpu.memory_space<vmem>>, vector<1x128x512xbf16>
    %470 = vector.shape_cast %469 : vector<1x128x512xbf16> to vector<128x512xbf16>
    %c0_132 = arith.constant 0 : index
    %c0_133 = arith.constant 0 : index
    %c0_134 = arith.constant 0 : index
    %c0_135 = arith.constant 0 : index
    %471 = vector.load %arg11[%c0_132, %c0_133, %c0_134, %c0_135] : memref<2x8x8x64xf32, #tpu.memory_space<vmem>>, vector<1x8x8x64xf32>
    %472 = vector.shape_cast %471 : vector<1x8x8x64xf32> to vector<8x8x64xf32>
    %473 = vector.shape_cast %472 : vector<8x8x64xf32> to vector<64x64xf32>
    %c1_136 = arith.constant 1 : index
    %c0_137 = arith.constant 0 : index
    %c0_138 = arith.constant 0 : index
    %c0_139 = arith.constant 0 : index
    %474 = vector.load %arg11[%c1_136, %c0_137, %c0_138, %c0_139] : memref<2x8x8x64xf32, #tpu.memory_space<vmem>>, vector<1x8x8x64xf32>
    %475 = vector.shape_cast %474 : vector<1x8x8x64xf32> to vector<8x8x64xf32>
    %476 = vector.shape_cast %475 : vector<8x8x64xf32> to vector<64x64xf32>
    %477 = tpu.concatenate %473, %476 in 1 : vector<64x64xf32>, vector<64x64xf32> -> vector<64x128xf32>
    %478 = arith.truncf %477 : vector<64x128xf32> to vector<64x128xbf16>
    %cst_140 = arith.constant dense<0.000000e+00> : vector<64x512xf32>
    %479 = tpu.matmul %478, %470, %cst_140 {dimension_numbers = #tpu.dot_dimension_numbers<[1], [0], [0], [1], [0, 0, 1, 1], [], []>} : vector<64x128xbf16>, vector<128x512xbf16>, vector<64x512xf32> -> vector<64x512xf32>
    %480 = vector.broadcast %468 : vector<1x512xf32> to vector<64x512xf32>
    %481 = arith.addf %479, %480 : vector<64x512xf32>
    %482 = vector.shape_cast %481 : vector<64x512xf32> to vector<8x8x512xf32>
    %c0_141 = arith.constant 0 : index
    %c0_142 = arith.constant 0 : index
    %c0_143 = arith.constant 0 : index
    %483 = vector.load %arg13[%c0_141, %c0_142, %c0_143] : memref<8x8x512xf32, #tpu.memory_space<vmem>>, vector<8x8x512xf32>
    tpu.vector_store %arg13[%c0_141, %c0_142, %c0_143], %482 {strides = array<i32>} : memref<8x8x512xf32, #tpu.memory_space<vmem>>, vector<8x8x512xf32>,
    %c1_144 = arith.constant 1 : index
    %c0_145 = arith.constant 0 : index
    %c0_146 = arith.constant 0 : index
    %484 = vector.load %arg4[%c1_144, %c0_145, %c0_146] : memref<3x128x512xbf16, #tpu.memory_space<vmem>>, vector<1x128x512xbf16>
    %485 = vector.shape_cast %484 : vector<1x128x512xbf16> to vector<128x512xbf16>
    %cst_147 = arith.constant 0.000000e+00 : f32
    %486 = vector.broadcast %cst_147 : f32 to vector<8x128xf32>
    %cst_148 = arith.constant 0.000000e+00 : f32
    %487 = vector.broadcast %cst_148 : f32 to vector<8x64xf32>
    %cst_149 = arith.constant 0.000000e+00 : f32
    %488 = vector.broadcast %cst_149 : f32 to vector<8x64xf32>
    %c0_i32_150 = arith.constant 0 : i32
    %489 = arith.truncf %486 : vector<8x128xf32> to vector<8x128xbf16>
    %cst_151 = arith.constant dense<0.000000e+00> : vector<8x512xf32>
    %490 = tpu.matmul %489, %485, %cst_151 {dimension_numbers = #tpu.dot_dimension_numbers<[1], [0], [0], [1], [0, 0, 1, 1], [], []>} : vector<8x128xbf16>, vector<128x512xbf16>, vector<8x512xf32> -> vector<8x512xf32>
    %c7_i32_152 = arith.constant 7 : i32
    %491 = arith.subi %c7_i32_152, %c0_i32_150 : i32
    %492 = arith.index_cast %c0_i32_150 : i32 to index
    %c0_153 = arith.constant 0 : index
    %c0_154 = arith.constant 0 : index
    %493 = vector.load %arg13[%492, %c0_153, %c0_154] : memref<8x8x512xf32, #tpu.memory_space<vmem>>, vector<1x8x512xf32>
    %494 = vector.shape_cast %493 : vector<1x8x512xf32> to vector<8x512xf32>
    %495 = vector.extract_strided_slice %494 {offsets = [0, 0], sizes = [8, 256], strides = [1, 1]} : vector<8x512xf32> to vector<8x256xf32>
    %496 = vector.extract_strided_slice %490 {offsets = [0, 0], sizes = [8, 256], strides = [1, 1]} : vector<8x512xf32> to vector<8x256xf32>
    %497 = arith.addf %495, %496 : vector<8x256xf32>
    %498 = arith.index_cast %491 : i32 to index
    %c0_155 = arith.constant 0 : index
    %c0_156 = arith.constant 0 : index
    %499 = vector.load %arg13[%498, %c0_155, %c0_156] : memref<8x8x512xf32, #tpu.memory_space<vmem>>, vector<1x8x512xf32>
    %500 = vector.shape_cast %499 : vector<1x8x512xf32> to vector<8x512xf32>
    %501 = vector.extract_strided_slice %500 {offsets = [0, 256], sizes = [8, 256], strides = [1, 1]} : vector<8x512xf32> to vector<8x256xf32>
    %502 = vector.extract_strided_slice %490 {offsets = [0, 256], sizes = [8, 256], strides = [1, 1]} : vector<8x512xf32> to vector<8x256xf32>
    %503 = arith.addf %501, %502 : vector<8x256xf32>
    %504 = vector.extract_strided_slice %497 {offsets = [0, 0], sizes = [8, 192], strides = [1, 1]} : vector<8x256xf32> to vector<8x192xf32>
    %505 = arith.negf %504 : vector<8x192xf32>
    %506 = math.exp %505 : vector<8x192xf32>
    %cst_157 = arith.constant 1.000000e+00 : f32
    %507 = vector.broadcast %cst_157 : f32 to vector<8x192xf32>
    %508 = arith.addf %507, %506 : vector<8x192xf32>
    %509 = arith.divf %507, %508 : vector<8x192xf32>
    %510 = vector.extract_strided_slice %509 {offsets = [0, 0], sizes = [8, 64], strides = [1, 1]} : vector<8x192xf32> to vector<8x64xf32>
    %511 = vector.extract_strided_slice %509 {offsets = [0, 64], sizes = [8, 64], strides = [1, 1]} : vector<8x192xf32> to vector<8x64xf32>
    %512 = vector.extract_strided_slice %509 {offsets = [0, 128], sizes = [8, 64], strides = [1, 1]} : vector<8x192xf32> to vector<8x64xf32>
    %513 = vector.extract_strided_slice %497 {offsets = [0, 192], sizes = [8, 64], strides = [1, 1]} : vector<8x256xf32> to vector<8x64xf32>
    %514 = math.tanh %513 : vector<8x64xf32>
    %515 = arith.mulf %511, %487 : vector<8x64xf32>
    %516 = arith.mulf %510, %514 : vector<8x64xf32>
    %517 = arith.addf %515, %516 : vector<8x64xf32>
    %518 = math.tanh %517 : vector<8x64xf32>
    %519 = arith.mulf %512, %518 : vector<8x64xf32>
    %520 = vector.extract_strided_slice %503 {offsets = [0, 0], sizes = [8, 192], strides = [1, 1]} : vector<8x256xf32> to vector<8x192xf32>
    %521 = arith.negf %520 : vector<8x192xf32>
    %522 = math.exp %521 : vector<8x192xf32>
    %cst_158 = arith.constant 1.000000e+00 : f32
    %523 = vector.broadcast %cst_158 : f32 to vector<8x192xf32>
    %524 = arith.addf %523, %522 : vector<8x192xf32>
    %525 = arith.divf %523, %524 : vector<8x192xf32>
    %526 = vector.extract_strided_slice %525 {offsets = [0, 0], sizes = [8, 64], strides = [1, 1]} : vector<8x192xf32> to vector<8x64xf32>
    %527 = vector.extract_strided_slice %525 {offsets = [0, 64], sizes = [8, 64], strides = [1, 1]} : vector<8x192xf32> to vector<8x64xf32>
    %528 = vector.extract_strided_slice %525 {offsets = [0, 128], sizes = [8, 64], strides = [1, 1]} : vector<8x192xf32> to vector<8x64xf32>
    %529 = vector.extract_strided_slice %503 {offsets = [0, 192], sizes = [8, 64], strides = [1, 1]} : vector<8x256xf32> to vector<8x64xf32>
    %530 = math.tanh %529 : vector<8x64xf32>
    %531 = arith.mulf %527, %488 : vector<8x64xf32>
    %532 = arith.mulf %526, %530 : vector<8x64xf32>
    %533 = arith.addf %531, %532 : vector<8x64xf32>
    %534 = math.tanh %533 : vector<8x64xf32>
    %535 = arith.mulf %528, %534 : vector<8x64xf32>
    %c0_159 = arith.constant 0 : index
    %536 = arith.index_cast %c0_i32_150 : i32 to index
    %c0_160 = arith.constant 0 : index
    %c0_161 = arith.constant 0 : index
    %537 = vector.load %arg12[%c0_159, %536, %c0_160, %c0_161] : memref<2x8x8x64xf32, #tpu.memory_space<vmem>>, vector<1x1x8x64xf32>
    %538 = vector.shape_cast %537 : vector<1x1x8x64xf32> to vector<8x64xf32>
    %539 = vector.shape_cast %519 : vector<8x64xf32> to vector<1x1x8x64xf32>
    tpu.vector_store %arg12[%c0_159, %536, %c0_160, %c0_161], %539 {strides = array<i32>} : memref<2x8x8x64xf32, #tpu.memory_space<vmem>>, vector<1x1x8x64xf32>,
    %c1_162 = arith.constant 1 : index
    %540 = arith.index_cast %491 : i32 to index
    %c0_163 = arith.constant 0 : index
    %c0_164 = arith.constant 0 : index
    %541 = vector.load %arg12[%c1_162, %540, %c0_163, %c0_164] : memref<2x8x8x64xf32, #tpu.memory_space<vmem>>, vector<1x1x8x64xf32>
    %542 = vector.shape_cast %541 : vector<1x1x8x64xf32> to vector<8x64xf32>
    %543 = vector.shape_cast %535 : vector<8x64xf32> to vector<1x1x8x64xf32>
    tpu.vector_store %arg12[%c1_162, %540, %c0_163, %c0_164], %543 {strides = array<i32>} : memref<2x8x8x64xf32, #tpu.memory_space<vmem>>, vector<1x1x8x64xf32>,
    %544 = tpu.concatenate %519, %535 in 1 : vector<8x64xf32>, vector<8x64xf32> -> vector<8x128xf32>
    %c1_i32_165 = arith.constant 1 : i32
    %545 = arith.truncf %544 : vector<8x128xf32> to vector<8x128xbf16>
    %cst_166 = arith.constant dense<0.000000e+00> : vector<8x512xf32>
    %546 = tpu.matmul %545, %485, %cst_166 {dimension_numbers = #tpu.dot_dimension_numbers<[1], [0], [0], [1], [0, 0, 1, 1], [], []>} : vector<8x128xbf16>, vector<128x512xbf16>, vector<8x512xf32> -> vector<8x512xf32>
    %c7_i32_167 = arith.constant 7 : i32
    %547 = arith.subi %c7_i32_167, %c1_i32_165 : i32
    %548 = arith.index_cast %c1_i32_165 : i32 to index
    %c0_168 = arith.constant 0 : index
    %c0_169 = arith.constant 0 : index
    %549 = vector.load %arg13[%548, %c0_168, %c0_169] : memref<8x8x512xf32, #tpu.memory_space<vmem>>, vector<1x8x512xf32>
    %550 = vector.shape_cast %549 : vector<1x8x512xf32> to vector<8x512xf32>
    %551 = vector.extract_strided_slice %550 {offsets = [0, 0], sizes = [8, 256], strides = [1, 1]} : vector<8x512xf32> to vector<8x256xf32>
    %552 = vector.extract_strided_slice %546 {offsets = [0, 0], sizes = [8, 256], strides = [1, 1]} : vector<8x512xf32> to vector<8x256xf32>
    %553 = arith.addf %551, %552 : vector<8x256xf32>
    %554 = arith.index_cast %547 : i32 to index
    %c0_170 = arith.constant 0 : index
    %c0_171 = arith.constant 0 : index
    %555 = vector.load %arg13[%554, %c0_170, %c0_171] : memref<8x8x512xf32, #tpu.memory_space<vmem>>, vector<1x8x512xf32>
    %556 = vector.shape_cast %555 : vector<1x8x512xf32> to vector<8x512xf32>
    %557 = vector.extract_strided_slice %556 {offsets = [0, 256], sizes = [8, 256], strides = [1, 1]} : vector<8x512xf32> to vector<8x256xf32>
    %558 = vector.extract_strided_slice %546 {offsets = [0, 256], sizes = [8, 256], strides = [1, 1]} : vector<8x512xf32> to vector<8x256xf32>
    %559 = arith.addf %557, %558 : vector<8x256xf32>
    %560 = vector.extract_strided_slice %553 {offsets = [0, 0], sizes = [8, 192], strides = [1, 1]} : vector<8x256xf32> to vector<8x192xf32>
    %561 = arith.negf %560 : vector<8x192xf32>
    %562 = math.exp %561 : vector<8x192xf32>
    %cst_172 = arith.constant 1.000000e+00 : f32
    %563 = vector.broadcast %cst_172 : f32 to vector<8x192xf32>
    %564 = arith.addf %563, %562 : vector<8x192xf32>
    %565 = arith.divf %563, %564 : vector<8x192xf32>
    %566 = vector.extract_strided_slice %565 {offsets = [0, 0], sizes = [8, 64], strides = [1, 1]} : vector<8x192xf32> to vector<8x64xf32>
    %567 = vector.extract_strided_slice %565 {offsets = [0, 64], sizes = [8, 64], strides = [1, 1]} : vector<8x192xf32> to vector<8x64xf32>
    %568 = vector.extract_strided_slice %565 {offsets = [0, 128], sizes = [8, 64], strides = [1, 1]} : vector<8x192xf32> to vector<8x64xf32>
    %569 = vector.extract_strided_slice %553 {offsets = [0, 192], sizes = [8, 64], strides = [1, 1]} : vector<8x256xf32> to vector<8x64xf32>
    %570 = math.tanh %569 : vector<8x64xf32>
    %571 = arith.mulf %567, %517 : vector<8x64xf32>
    %572 = arith.mulf %566, %570 : vector<8x64xf32>
    %573 = arith.addf %571, %572 : vector<8x64xf32>
    %574 = math.tanh %573 : vector<8x64xf32>
    %575 = arith.mulf %568, %574 : vector<8x64xf32>
    %576 = vector.extract_strided_slice %559 {offsets = [0, 0], sizes = [8, 192], strides = [1, 1]} : vector<8x256xf32> to vector<8x192xf32>
    %577 = arith.negf %576 : vector<8x192xf32>
    %578 = math.exp %577 : vector<8x192xf32>
    %cst_173 = arith.constant 1.000000e+00 : f32
    %579 = vector.broadcast %cst_173 : f32 to vector<8x192xf32>
    %580 = arith.addf %579, %578 : vector<8x192xf32>
    %581 = arith.divf %579, %580 : vector<8x192xf32>
    %582 = vector.extract_strided_slice %581 {offsets = [0, 0], sizes = [8, 64], strides = [1, 1]} : vector<8x192xf32> to vector<8x64xf32>
    %583 = vector.extract_strided_slice %581 {offsets = [0, 64], sizes = [8, 64], strides = [1, 1]} : vector<8x192xf32> to vector<8x64xf32>
    %584 = vector.extract_strided_slice %581 {offsets = [0, 128], sizes = [8, 64], strides = [1, 1]} : vector<8x192xf32> to vector<8x64xf32>
    %585 = vector.extract_strided_slice %559 {offsets = [0, 192], sizes = [8, 64], strides = [1, 1]} : vector<8x256xf32> to vector<8x64xf32>
    %586 = math.tanh %585 : vector<8x64xf32>
    %587 = arith.mulf %583, %533 : vector<8x64xf32>
    %588 = arith.mulf %582, %586 : vector<8x64xf32>
    %589 = arith.addf %587, %588 : vector<8x64xf32>
    %590 = math.tanh %589 : vector<8x64xf32>
    %591 = arith.mulf %584, %590 : vector<8x64xf32>
    %c0_174 = arith.constant 0 : index
    %592 = arith.index_cast %c1_i32_165 : i32 to index
    %c0_175 = arith.constant 0 : index
    %c0_176 = arith.constant 0 : index
    %593 = vector.load %arg12[%c0_174, %592, %c0_175, %c0_176] : memref<2x8x8x64xf32, #tpu.memory_space<vmem>>, vector<1x1x8x64xf32>
    %594 = vector.shape_cast %593 : vector<1x1x8x64xf32> to vector<8x64xf32>
    %595 = vector.shape_cast %575 : vector<8x64xf32> to vector<1x1x8x64xf32>
    tpu.vector_store %arg12[%c0_174, %592, %c0_175, %c0_176], %595 {strides = array<i32>} : memref<2x8x8x64xf32, #tpu.memory_space<vmem>>, vector<1x1x8x64xf32>,
    %c1_177 = arith.constant 1 : index
    %596 = arith.index_cast %547 : i32 to index
    %c0_178 = arith.constant 0 : index
    %c0_179 = arith.constant 0 : index
    %597 = vector.load %arg12[%c1_177, %596, %c0_178, %c0_179] : memref<2x8x8x64xf32, #tpu.memory_space<vmem>>, vector<1x1x8x64xf32>
    %598 = vector.shape_cast %597 : vector<1x1x8x64xf32> to vector<8x64xf32>
    %599 = vector.shape_cast %591 : vector<8x64xf32> to vector<1x1x8x64xf32>
    tpu.vector_store %arg12[%c1_177, %596, %c0_178, %c0_179], %599 {strides = array<i32>} : memref<2x8x8x64xf32, #tpu.memory_space<vmem>>, vector<1x1x8x64xf32>,
    %600 = tpu.concatenate %575, %591 in 1 : vector<8x64xf32>, vector<8x64xf32> -> vector<8x128xf32>
    %c2_i32_180 = arith.constant 2 : i32
    %601 = arith.truncf %600 : vector<8x128xf32> to vector<8x128xbf16>
    %cst_181 = arith.constant dense<0.000000e+00> : vector<8x512xf32>
    %602 = tpu.matmul %601, %485, %cst_181 {dimension_numbers = #tpu.dot_dimension_numbers<[1], [0], [0], [1], [0, 0, 1, 1], [], []>} : vector<8x128xbf16>, vector<128x512xbf16>, vector<8x512xf32> -> vector<8x512xf32>
    %c7_i32_182 = arith.constant 7 : i32
    %603 = arith.subi %c7_i32_182, %c2_i32_180 : i32
    %604 = arith.index_cast %c2_i32_180 : i32 to index
    %c0_183 = arith.constant 0 : index
    %c0_184 = arith.constant 0 : index
    %605 = vector.load %arg13[%604, %c0_183, %c0_184] : memref<8x8x512xf32, #tpu.memory_space<vmem>>, vector<1x8x512xf32>
    %606 = vector.shape_cast %605 : vector<1x8x512xf32> to vector<8x512xf32>
    %607 = vector.extract_strided_slice %606 {offsets = [0, 0], sizes = [8, 256], strides = [1, 1]} : vector<8x512xf32> to vector<8x256xf32>
    %608 = vector.extract_strided_slice %602 {offsets = [0, 0], sizes = [8, 256], strides = [1, 1]} : vector<8x512xf32> to vector<8x256xf32>
    %609 = arith.addf %607, %608 : vector<8x256xf32>
    %610 = arith.index_cast %603 : i32 to index
    %c0_185 = arith.constant 0 : index
    %c0_186 = arith.constant 0 : index
    %611 = vector.load %arg13[%610, %c0_185, %c0_186] : memref<8x8x512xf32, #tpu.memory_space<vmem>>, vector<1x8x512xf32>
    %612 = vector.shape_cast %611 : vector<1x8x512xf32> to vector<8x512xf32>
    %613 = vector.extract_strided_slice %612 {offsets = [0, 256], sizes = [8, 256], strides = [1, 1]} : vector<8x512xf32> to vector<8x256xf32>
    %614 = vector.extract_strided_slice %602 {offsets = [0, 256], sizes = [8, 256], strides = [1, 1]} : vector<8x512xf32> to vector<8x256xf32>
    %615 = arith.addf %613, %614 : vector<8x256xf32>
    %616 = vector.extract_strided_slice %609 {offsets = [0, 0], sizes = [8, 192], strides = [1, 1]} : vector<8x256xf32> to vector<8x192xf32>
    %617 = arith.negf %616 : vector<8x192xf32>
    %618 = math.exp %617 : vector<8x192xf32>
    %cst_187 = arith.constant 1.000000e+00 : f32
    %619 = vector.broadcast %cst_187 : f32 to vector<8x192xf32>
    %620 = arith.addf %619, %618 : vector<8x192xf32>
    %621 = arith.divf %619, %620 : vector<8x192xf32>
    %622 = vector.extract_strided_slice %621 {offsets = [0, 0], sizes = [8, 64], strides = [1, 1]} : vector<8x192xf32> to vector<8x64xf32>
    %623 = vector.extract_strided_slice %621 {offsets = [0, 64], sizes = [8, 64], strides = [1, 1]} : vector<8x192xf32> to vector<8x64xf32>
    %624 = vector.extract_strided_slice %621 {offsets = [0, 128], sizes = [8, 64], strides = [1, 1]} : vector<8x192xf32> to vector<8x64xf32>
    %625 = vector.extract_strided_slice %609 {offsets = [0, 192], sizes = [8, 64], strides = [1, 1]} : vector<8x256xf32> to vector<8x64xf32>
    %626 = math.tanh %625 : vector<8x64xf32>
    %627 = arith.mulf %623, %573 : vector<8x64xf32>
    %628 = arith.mulf %622, %626 : vector<8x64xf32>
    %629 = arith.addf %627, %628 : vector<8x64xf32>
    %630 = math.tanh %629 : vector<8x64xf32>
    %631 = arith.mulf %624, %630 : vector<8x64xf32>
    %632 = vector.extract_strided_slice %615 {offsets = [0, 0], sizes = [8, 192], strides = [1, 1]} : vector<8x256xf32> to vector<8x192xf32>
    %633 = arith.negf %632 : vector<8x192xf32>
    %634 = math.exp %633 : vector<8x192xf32>
    %cst_188 = arith.constant 1.000000e+00 : f32
    %635 = vector.broadcast %cst_188 : f32 to vector<8x192xf32>
    %636 = arith.addf %635, %634 : vector<8x192xf32>
    %637 = arith.divf %635, %636 : vector<8x192xf32>
    %638 = vector.extract_strided_slice %637 {offsets = [0, 0], sizes = [8, 64], strides = [1, 1]} : vector<8x192xf32> to vector<8x64xf32>
    %639 = vector.extract_strided_slice %637 {offsets = [0, 64], sizes = [8, 64], strides = [1, 1]} : vector<8x192xf32> to vector<8x64xf32>
    %640 = vector.extract_strided_slice %637 {offsets = [0, 128], sizes = [8, 64], strides = [1, 1]} : vector<8x192xf32> to vector<8x64xf32>
    %641 = vector.extract_strided_slice %615 {offsets = [0, 192], sizes = [8, 64], strides = [1, 1]} : vector<8x256xf32> to vector<8x64xf32>
    %642 = math.tanh %641 : vector<8x64xf32>
    %643 = arith.mulf %639, %589 : vector<8x64xf32>
    %644 = arith.mulf %638, %642 : vector<8x64xf32>
    %645 = arith.addf %643, %644 : vector<8x64xf32>
    %646 = math.tanh %645 : vector<8x64xf32>
    %647 = arith.mulf %640, %646 : vector<8x64xf32>
    %c0_189 = arith.constant 0 : index
    %648 = arith.index_cast %c2_i32_180 : i32 to index
    %c0_190 = arith.constant 0 : index
    %c0_191 = arith.constant 0 : index
    %649 = vector.load %arg12[%c0_189, %648, %c0_190, %c0_191] : memref<2x8x8x64xf32, #tpu.memory_space<vmem>>, vector<1x1x8x64xf32>
    %650 = vector.shape_cast %649 : vector<1x1x8x64xf32> to vector<8x64xf32>
    %651 = vector.shape_cast %631 : vector<8x64xf32> to vector<1x1x8x64xf32>
    tpu.vector_store %arg12[%c0_189, %648, %c0_190, %c0_191], %651 {strides = array<i32>} : memref<2x8x8x64xf32, #tpu.memory_space<vmem>>, vector<1x1x8x64xf32>,
    %c1_192 = arith.constant 1 : index
    %652 = arith.index_cast %603 : i32 to index
    %c0_193 = arith.constant 0 : index
    %c0_194 = arith.constant 0 : index
    %653 = vector.load %arg12[%c1_192, %652, %c0_193, %c0_194] : memref<2x8x8x64xf32, #tpu.memory_space<vmem>>, vector<1x1x8x64xf32>
    %654 = vector.shape_cast %653 : vector<1x1x8x64xf32> to vector<8x64xf32>
    %655 = vector.shape_cast %647 : vector<8x64xf32> to vector<1x1x8x64xf32>
    tpu.vector_store %arg12[%c1_192, %652, %c0_193, %c0_194], %655 {strides = array<i32>} : memref<2x8x8x64xf32, #tpu.memory_space<vmem>>, vector<1x1x8x64xf32>,
    %656 = tpu.concatenate %631, %647 in 1 : vector<8x64xf32>, vector<8x64xf32> -> vector<8x128xf32>
    %c3_i32_195 = arith.constant 3 : i32
    %657 = arith.truncf %656 : vector<8x128xf32> to vector<8x128xbf16>
    %cst_196 = arith.constant dense<0.000000e+00> : vector<8x512xf32>
    %658 = tpu.matmul %657, %485, %cst_196 {dimension_numbers = #tpu.dot_dimension_numbers<[1], [0], [0], [1], [0, 0, 1, 1], [], []>} : vector<8x128xbf16>, vector<128x512xbf16>, vector<8x512xf32> -> vector<8x512xf32>
    %c7_i32_197 = arith.constant 7 : i32
    %659 = arith.subi %c7_i32_197, %c3_i32_195 : i32
    %660 = arith.index_cast %c3_i32_195 : i32 to index
    %c0_198 = arith.constant 0 : index
    %c0_199 = arith.constant 0 : index
    %661 = vector.load %arg13[%660, %c0_198, %c0_199] : memref<8x8x512xf32, #tpu.memory_space<vmem>>, vector<1x8x512xf32>
    %662 = vector.shape_cast %661 : vector<1x8x512xf32> to vector<8x512xf32>
    %663 = vector.extract_strided_slice %662 {offsets = [0, 0], sizes = [8, 256], strides = [1, 1]} : vector<8x512xf32> to vector<8x256xf32>
    %664 = vector.extract_strided_slice %658 {offsets = [0, 0], sizes = [8, 256], strides = [1, 1]} : vector<8x512xf32> to vector<8x256xf32>
    %665 = arith.addf %663, %664 : vector<8x256xf32>
    %666 = arith.index_cast %659 : i32 to index
    %c0_200 = arith.constant 0 : index
    %c0_201 = arith.constant 0 : index
    %667 = vector.load %arg13[%666, %c0_200, %c0_201] : memref<8x8x512xf32, #tpu.memory_space<vmem>>, vector<1x8x512xf32>
    %668 = vector.shape_cast %667 : vector<1x8x512xf32> to vector<8x512xf32>
    %669 = vector.extract_strided_slice %668 {offsets = [0, 256], sizes = [8, 256], strides = [1, 1]} : vector<8x512xf32> to vector<8x256xf32>
    %670 = vector.extract_strided_slice %658 {offsets = [0, 256], sizes = [8, 256], strides = [1, 1]} : vector<8x512xf32> to vector<8x256xf32>
    %671 = arith.addf %669, %670 : vector<8x256xf32>
    %672 = vector.extract_strided_slice %665 {offsets = [0, 0], sizes = [8, 192], strides = [1, 1]} : vector<8x256xf32> to vector<8x192xf32>
    %673 = arith.negf %672 : vector<8x192xf32>
    %674 = math.exp %673 : vector<8x192xf32>
    %cst_202 = arith.constant 1.000000e+00 : f32
    %675 = vector.broadcast %cst_202 : f32 to vector<8x192xf32>
    %676 = arith.addf %675, %674 : vector<8x192xf32>
    %677 = arith.divf %675, %676 : vector<8x192xf32>
    %678 = vector.extract_strided_slice %677 {offsets = [0, 0], sizes = [8, 64], strides = [1, 1]} : vector<8x192xf32> to vector<8x64xf32>
    %679 = vector.extract_strided_slice %677 {offsets = [0, 64], sizes = [8, 64], strides = [1, 1]} : vector<8x192xf32> to vector<8x64xf32>
    %680 = vector.extract_strided_slice %677 {offsets = [0, 128], sizes = [8, 64], strides = [1, 1]} : vector<8x192xf32> to vector<8x64xf32>
    %681 = vector.extract_strided_slice %665 {offsets = [0, 192], sizes = [8, 64], strides = [1, 1]} : vector<8x256xf32> to vector<8x64xf32>
    %682 = math.tanh %681 : vector<8x64xf32>
    %683 = arith.mulf %679, %629 : vector<8x64xf32>
    %684 = arith.mulf %678, %682 : vector<8x64xf32>
    %685 = arith.addf %683, %684 : vector<8x64xf32>
    %686 = math.tanh %685 : vector<8x64xf32>
    %687 = arith.mulf %680, %686 : vector<8x64xf32>
    %688 = vector.extract_strided_slice %671 {offsets = [0, 0], sizes = [8, 192], strides = [1, 1]} : vector<8x256xf32> to vector<8x192xf32>
    %689 = arith.negf %688 : vector<8x192xf32>
    %690 = math.exp %689 : vector<8x192xf32>
    %cst_203 = arith.constant 1.000000e+00 : f32
    %691 = vector.broadcast %cst_203 : f32 to vector<8x192xf32>
    %692 = arith.addf %691, %690 : vector<8x192xf32>
    %693 = arith.divf %691, %692 : vector<8x192xf32>
    %694 = vector.extract_strided_slice %693 {offsets = [0, 0], sizes = [8, 64], strides = [1, 1]} : vector<8x192xf32> to vector<8x64xf32>
    %695 = vector.extract_strided_slice %693 {offsets = [0, 64], sizes = [8, 64], strides = [1, 1]} : vector<8x192xf32> to vector<8x64xf32>
    %696 = vector.extract_strided_slice %693 {offsets = [0, 128], sizes = [8, 64], strides = [1, 1]} : vector<8x192xf32> to vector<8x64xf32>
    %697 = vector.extract_strided_slice %671 {offsets = [0, 192], sizes = [8, 64], strides = [1, 1]} : vector<8x256xf32> to vector<8x64xf32>
    %698 = math.tanh %697 : vector<8x64xf32>
    %699 = arith.mulf %695, %645 : vector<8x64xf32>
    %700 = arith.mulf %694, %698 : vector<8x64xf32>
    %701 = arith.addf %699, %700 : vector<8x64xf32>
    %702 = math.tanh %701 : vector<8x64xf32>
    %703 = arith.mulf %696, %702 : vector<8x64xf32>
    %c0_204 = arith.constant 0 : index
    %704 = arith.index_cast %c3_i32_195 : i32 to index
    %c0_205 = arith.constant 0 : index
    %c0_206 = arith.constant 0 : index
    %705 = vector.load %arg12[%c0_204, %704, %c0_205, %c0_206] : memref<2x8x8x64xf32, #tpu.memory_space<vmem>>, vector<1x1x8x64xf32>
    %706 = vector.shape_cast %705 : vector<1x1x8x64xf32> to vector<8x64xf32>
    %707 = vector.shape_cast %687 : vector<8x64xf32> to vector<1x1x8x64xf32>
    tpu.vector_store %arg12[%c0_204, %704, %c0_205, %c0_206], %707 {strides = array<i32>} : memref<2x8x8x64xf32, #tpu.memory_space<vmem>>, vector<1x1x8x64xf32>,
    %c1_207 = arith.constant 1 : index
    %708 = arith.index_cast %659 : i32 to index
    %c0_208 = arith.constant 0 : index
    %c0_209 = arith.constant 0 : index
    %709 = vector.load %arg12[%c1_207, %708, %c0_208, %c0_209] : memref<2x8x8x64xf32, #tpu.memory_space<vmem>>, vector<1x1x8x64xf32>
    %710 = vector.shape_cast %709 : vector<1x1x8x64xf32> to vector<8x64xf32>
    %711 = vector.shape_cast %703 : vector<8x64xf32> to vector<1x1x8x64xf32>
    tpu.vector_store %arg12[%c1_207, %708, %c0_208, %c0_209], %711 {strides = array<i32>} : memref<2x8x8x64xf32, #tpu.memory_space<vmem>>, vector<1x1x8x64xf32>,
    %712 = tpu.concatenate %687, %703 in 1 : vector<8x64xf32>, vector<8x64xf32> -> vector<8x128xf32>
    %c4_i32_210 = arith.constant 4 : i32
    %713 = arith.truncf %712 : vector<8x128xf32> to vector<8x128xbf16>
    %cst_211 = arith.constant dense<0.000000e+00> : vector<8x512xf32>
    %714 = tpu.matmul %713, %485, %cst_211 {dimension_numbers = #tpu.dot_dimension_numbers<[1], [0], [0], [1], [0, 0, 1, 1], [], []>} : vector<8x128xbf16>, vector<128x512xbf16>, vector<8x512xf32> -> vector<8x512xf32>
    %c7_i32_212 = arith.constant 7 : i32
    %715 = arith.subi %c7_i32_212, %c4_i32_210 : i32
    %716 = arith.index_cast %c4_i32_210 : i32 to index
    %c0_213 = arith.constant 0 : index
    %c0_214 = arith.constant 0 : index
    %717 = vector.load %arg13[%716, %c0_213, %c0_214] : memref<8x8x512xf32, #tpu.memory_space<vmem>>, vector<1x8x512xf32>
    %718 = vector.shape_cast %717 : vector<1x8x512xf32> to vector<8x512xf32>
    %719 = vector.extract_strided_slice %718 {offsets = [0, 0], sizes = [8, 256], strides = [1, 1]} : vector<8x512xf32> to vector<8x256xf32>
    %720 = vector.extract_strided_slice %714 {offsets = [0, 0], sizes = [8, 256], strides = [1, 1]} : vector<8x512xf32> to vector<8x256xf32>
    %721 = arith.addf %719, %720 : vector<8x256xf32>
    %722 = arith.index_cast %715 : i32 to index
    %c0_215 = arith.constant 0 : index
    %c0_216 = arith.constant 0 : index
    %723 = vector.load %arg13[%722, %c0_215, %c0_216] : memref<8x8x512xf32, #tpu.memory_space<vmem>>, vector<1x8x512xf32>
    %724 = vector.shape_cast %723 : vector<1x8x512xf32> to vector<8x512xf32>
    %725 = vector.extract_strided_slice %724 {offsets = [0, 256], sizes = [8, 256], strides = [1, 1]} : vector<8x512xf32> to vector<8x256xf32>
    %726 = vector.extract_strided_slice %714 {offsets = [0, 256], sizes = [8, 256], strides = [1, 1]} : vector<8x512xf32> to vector<8x256xf32>
    %727 = arith.addf %725, %726 : vector<8x256xf32>
    %728 = vector.extract_strided_slice %721 {offsets = [0, 0], sizes = [8, 192], strides = [1, 1]} : vector<8x256xf32> to vector<8x192xf32>
    %729 = arith.negf %728 : vector<8x192xf32>
    %730 = math.exp %729 : vector<8x192xf32>
    %cst_217 = arith.constant 1.000000e+00 : f32
    %731 = vector.broadcast %cst_217 : f32 to vector<8x192xf32>
    %732 = arith.addf %731, %730 : vector<8x192xf32>
    %733 = arith.divf %731, %732 : vector<8x192xf32>
    %734 = vector.extract_strided_slice %733 {offsets = [0, 0], sizes = [8, 64], strides = [1, 1]} : vector<8x192xf32> to vector<8x64xf32>
    %735 = vector.extract_strided_slice %733 {offsets = [0, 64], sizes = [8, 64], strides = [1, 1]} : vector<8x192xf32> to vector<8x64xf32>
    %736 = vector.extract_strided_slice %733 {offsets = [0, 128], sizes = [8, 64], strides = [1, 1]} : vector<8x192xf32> to vector<8x64xf32>
    %737 = vector.extract_strided_slice %721 {offsets = [0, 192], sizes = [8, 64], strides = [1, 1]} : vector<8x256xf32> to vector<8x64xf32>
    %738 = math.tanh %737 : vector<8x64xf32>
    %739 = arith.mulf %735, %685 : vector<8x64xf32>
    %740 = arith.mulf %734, %738 : vector<8x64xf32>
    %741 = arith.addf %739, %740 : vector<8x64xf32>
    %742 = math.tanh %741 : vector<8x64xf32>
    %743 = arith.mulf %736, %742 : vector<8x64xf32>
    %744 = vector.extract_strided_slice %727 {offsets = [0, 0], sizes = [8, 192], strides = [1, 1]} : vector<8x256xf32> to vector<8x192xf32>
    %745 = arith.negf %744 : vector<8x192xf32>
    %746 = math.exp %745 : vector<8x192xf32>
    %cst_218 = arith.constant 1.000000e+00 : f32
    %747 = vector.broadcast %cst_218 : f32 to vector<8x192xf32>
    %748 = arith.addf %747, %746 : vector<8x192xf32>
    %749 = arith.divf %747, %748 : vector<8x192xf32>
    %750 = vector.extract_strided_slice %749 {offsets = [0, 0], sizes = [8, 64], strides = [1, 1]} : vector<8x192xf32> to vector<8x64xf32>
    %751 = vector.extract_strided_slice %749 {offsets = [0, 64], sizes = [8, 64], strides = [1, 1]} : vector<8x192xf32> to vector<8x64xf32>
    %752 = vector.extract_strided_slice %749 {offsets = [0, 128], sizes = [8, 64], strides = [1, 1]} : vector<8x192xf32> to vector<8x64xf32>
    %753 = vector.extract_strided_slice %727 {offsets = [0, 192], sizes = [8, 64], strides = [1, 1]} : vector<8x256xf32> to vector<8x64xf32>
    %754 = math.tanh %753 : vector<8x64xf32>
    %755 = arith.mulf %751, %701 : vector<8x64xf32>
    %756 = arith.mulf %750, %754 : vector<8x64xf32>
    %757 = arith.addf %755, %756 : vector<8x64xf32>
    %758 = math.tanh %757 : vector<8x64xf32>
    %759 = arith.mulf %752, %758 : vector<8x64xf32>
    %c0_219 = arith.constant 0 : index
    %760 = arith.index_cast %c4_i32_210 : i32 to index
    %c0_220 = arith.constant 0 : index
    %c0_221 = arith.constant 0 : index
    %761 = vector.load %arg12[%c0_219, %760, %c0_220, %c0_221] : memref<2x8x8x64xf32, #tpu.memory_space<vmem>>, vector<1x1x8x64xf32>
    %762 = vector.shape_cast %761 : vector<1x1x8x64xf32> to vector<8x64xf32>
    %763 = vector.shape_cast %743 : vector<8x64xf32> to vector<1x1x8x64xf32>
    tpu.vector_store %arg12[%c0_219, %760, %c0_220, %c0_221], %763 {strides = array<i32>} : memref<2x8x8x64xf32, #tpu.memory_space<vmem>>, vector<1x1x8x64xf32>,
    %c1_222 = arith.constant 1 : index
    %764 = arith.index_cast %715 : i32 to index
    %c0_223 = arith.constant 0 : index
    %c0_224 = arith.constant 0 : index
    %765 = vector.load %arg12[%c1_222, %764, %c0_223, %c0_224] : memref<2x8x8x64xf32, #tpu.memory_space<vmem>>, vector<1x1x8x64xf32>
    %766 = vector.shape_cast %765 : vector<1x1x8x64xf32> to vector<8x64xf32>
    %767 = vector.shape_cast %759 : vector<8x64xf32> to vector<1x1x8x64xf32>
    tpu.vector_store %arg12[%c1_222, %764, %c0_223, %c0_224], %767 {strides = array<i32>} : memref<2x8x8x64xf32, #tpu.memory_space<vmem>>, vector<1x1x8x64xf32>,
    %768 = tpu.concatenate %743, %759 in 1 : vector<8x64xf32>, vector<8x64xf32> -> vector<8x128xf32>
    %c5_i32_225 = arith.constant 5 : i32
    %769 = arith.truncf %768 : vector<8x128xf32> to vector<8x128xbf16>
    %cst_226 = arith.constant dense<0.000000e+00> : vector<8x512xf32>
    %770 = tpu.matmul %769, %485, %cst_226 {dimension_numbers = #tpu.dot_dimension_numbers<[1], [0], [0], [1], [0, 0, 1, 1], [], []>} : vector<8x128xbf16>, vector<128x512xbf16>, vector<8x512xf32> -> vector<8x512xf32>
    %c7_i32_227 = arith.constant 7 : i32
    %771 = arith.subi %c7_i32_227, %c5_i32_225 : i32
    %772 = arith.index_cast %c5_i32_225 : i32 to index
    %c0_228 = arith.constant 0 : index
    %c0_229 = arith.constant 0 : index
    %773 = vector.load %arg13[%772, %c0_228, %c0_229] : memref<8x8x512xf32, #tpu.memory_space<vmem>>, vector<1x8x512xf32>
    %774 = vector.shape_cast %773 : vector<1x8x512xf32> to vector<8x512xf32>
    %775 = vector.extract_strided_slice %774 {offsets = [0, 0], sizes = [8, 256], strides = [1, 1]} : vector<8x512xf32> to vector<8x256xf32>
    %776 = vector.extract_strided_slice %770 {offsets = [0, 0], sizes = [8, 256], strides = [1, 1]} : vector<8x512xf32> to vector<8x256xf32>
    %777 = arith.addf %775, %776 : vector<8x256xf32>
    %778 = arith.index_cast %771 : i32 to index
    %c0_230 = arith.constant 0 : index
    %c0_231 = arith.constant 0 : index
    %779 = vector.load %arg13[%778, %c0_230, %c0_231] : memref<8x8x512xf32, #tpu.memory_space<vmem>>, vector<1x8x512xf32>
    %780 = vector.shape_cast %779 : vector<1x8x512xf32> to vector<8x512xf32>
    %781 = vector.extract_strided_slice %780 {offsets = [0, 256], sizes = [8, 256], strides = [1, 1]} : vector<8x512xf32> to vector<8x256xf32>
    %782 = vector.extract_strided_slice %770 {offsets = [0, 256], sizes = [8, 256], strides = [1, 1]} : vector<8x512xf32> to vector<8x256xf32>
    %783 = arith.addf %781, %782 : vector<8x256xf32>
    %784 = vector.extract_strided_slice %777 {offsets = [0, 0], sizes = [8, 192], strides = [1, 1]} : vector<8x256xf32> to vector<8x192xf32>
    %785 = arith.negf %784 : vector<8x192xf32>
    %786 = math.exp %785 : vector<8x192xf32>
    %cst_232 = arith.constant 1.000000e+00 : f32
    %787 = vector.broadcast %cst_232 : f32 to vector<8x192xf32>
    %788 = arith.addf %787, %786 : vector<8x192xf32>
    %789 = arith.divf %787, %788 : vector<8x192xf32>
    %790 = vector.extract_strided_slice %789 {offsets = [0, 0], sizes = [8, 64], strides = [1, 1]} : vector<8x192xf32> to vector<8x64xf32>
    %791 = vector.extract_strided_slice %789 {offsets = [0, 64], sizes = [8, 64], strides = [1, 1]} : vector<8x192xf32> to vector<8x64xf32>
    %792 = vector.extract_strided_slice %789 {offsets = [0, 128], sizes = [8, 64], strides = [1, 1]} : vector<8x192xf32> to vector<8x64xf32>
    %793 = vector.extract_strided_slice %777 {offsets = [0, 192], sizes = [8, 64], strides = [1, 1]} : vector<8x256xf32> to vector<8x64xf32>
    %794 = math.tanh %793 : vector<8x64xf32>
    %795 = arith.mulf %791, %741 : vector<8x64xf32>
    %796 = arith.mulf %790, %794 : vector<8x64xf32>
    %797 = arith.addf %795, %796 : vector<8x64xf32>
    %798 = math.tanh %797 : vector<8x64xf32>
    %799 = arith.mulf %792, %798 : vector<8x64xf32>
    %800 = vector.extract_strided_slice %783 {offsets = [0, 0], sizes = [8, 192], strides = [1, 1]} : vector<8x256xf32> to vector<8x192xf32>
    %801 = arith.negf %800 : vector<8x192xf32>
    %802 = math.exp %801 : vector<8x192xf32>
    %cst_233 = arith.constant 1.000000e+00 : f32
    %803 = vector.broadcast %cst_233 : f32 to vector<8x192xf32>
    %804 = arith.addf %803, %802 : vector<8x192xf32>
    %805 = arith.divf %803, %804 : vector<8x192xf32>
    %806 = vector.extract_strided_slice %805 {offsets = [0, 0], sizes = [8, 64], strides = [1, 1]} : vector<8x192xf32> to vector<8x64xf32>
    %807 = vector.extract_strided_slice %805 {offsets = [0, 64], sizes = [8, 64], strides = [1, 1]} : vector<8x192xf32> to vector<8x64xf32>
    %808 = vector.extract_strided_slice %805 {offsets = [0, 128], sizes = [8, 64], strides = [1, 1]} : vector<8x192xf32> to vector<8x64xf32>
    %809 = vector.extract_strided_slice %783 {offsets = [0, 192], sizes = [8, 64], strides = [1, 1]} : vector<8x256xf32> to vector<8x64xf32>
    %810 = math.tanh %809 : vector<8x64xf32>
    %811 = arith.mulf %807, %757 : vector<8x64xf32>
    %812 = arith.mulf %806, %810 : vector<8x64xf32>
    %813 = arith.addf %811, %812 : vector<8x64xf32>
    %814 = math.tanh %813 : vector<8x64xf32>
    %815 = arith.mulf %808, %814 : vector<8x64xf32>
    %c0_234 = arith.constant 0 : index
    %816 = arith.index_cast %c5_i32_225 : i32 to index
    %c0_235 = arith.constant 0 : index
    %c0_236 = arith.constant 0 : index
    %817 = vector.load %arg12[%c0_234, %816, %c0_235, %c0_236] : memref<2x8x8x64xf32, #tpu.memory_space<vmem>>, vector<1x1x8x64xf32>
    %818 = vector.shape_cast %817 : vector<1x1x8x64xf32> to vector<8x64xf32>
    %819 = vector.shape_cast %799 : vector<8x64xf32> to vector<1x1x8x64xf32>
    tpu.vector_store %arg12[%c0_234, %816, %c0_235, %c0_236], %819 {strides = array<i32>} : memref<2x8x8x64xf32, #tpu.memory_space<vmem>>, vector<1x1x8x64xf32>,
    %c1_237 = arith.constant 1 : index
    %820 = arith.index_cast %771 : i32 to index
    %c0_238 = arith.constant 0 : index
    %c0_239 = arith.constant 0 : index
    %821 = vector.load %arg12[%c1_237, %820, %c0_238, %c0_239] : memref<2x8x8x64xf32, #tpu.memory_space<vmem>>, vector<1x1x8x64xf32>
    %822 = vector.shape_cast %821 : vector<1x1x8x64xf32> to vector<8x64xf32>
    %823 = vector.shape_cast %815 : vector<8x64xf32> to vector<1x1x8x64xf32>
    tpu.vector_store %arg12[%c1_237, %820, %c0_238, %c0_239], %823 {strides = array<i32>} : memref<2x8x8x64xf32, #tpu.memory_space<vmem>>, vector<1x1x8x64xf32>,
    %824 = tpu.concatenate %799, %815 in 1 : vector<8x64xf32>, vector<8x64xf32> -> vector<8x128xf32>
    %c6_i32_240 = arith.constant 6 : i32
    %825 = arith.truncf %824 : vector<8x128xf32> to vector<8x128xbf16>
    %cst_241 = arith.constant dense<0.000000e+00> : vector<8x512xf32>
    %826 = tpu.matmul %825, %485, %cst_241 {dimension_numbers = #tpu.dot_dimension_numbers<[1], [0], [0], [1], [0, 0, 1, 1], [], []>} : vector<8x128xbf16>, vector<128x512xbf16>, vector<8x512xf32> -> vector<8x512xf32>
    %c7_i32_242 = arith.constant 7 : i32
    %827 = arith.subi %c7_i32_242, %c6_i32_240 : i32
    %828 = arith.index_cast %c6_i32_240 : i32 to index
    %c0_243 = arith.constant 0 : index
    %c0_244 = arith.constant 0 : index
    %829 = vector.load %arg13[%828, %c0_243, %c0_244] : memref<8x8x512xf32, #tpu.memory_space<vmem>>, vector<1x8x512xf32>
    %830 = vector.shape_cast %829 : vector<1x8x512xf32> to vector<8x512xf32>
    %831 = vector.extract_strided_slice %830 {offsets = [0, 0], sizes = [8, 256], strides = [1, 1]} : vector<8x512xf32> to vector<8x256xf32>
    %832 = vector.extract_strided_slice %826 {offsets = [0, 0], sizes = [8, 256], strides = [1, 1]} : vector<8x512xf32> to vector<8x256xf32>
    %833 = arith.addf %831, %832 : vector<8x256xf32>
    %834 = arith.index_cast %827 : i32 to index
    %c0_245 = arith.constant 0 : index
    %c0_246 = arith.constant 0 : index
    %835 = vector.load %arg13[%834, %c0_245, %c0_246] : memref<8x8x512xf32, #tpu.memory_space<vmem>>, vector<1x8x512xf32>
    %836 = vector.shape_cast %835 : vector<1x8x512xf32> to vector<8x512xf32>
    %837 = vector.extract_strided_slice %836 {offsets = [0, 256], sizes = [8, 256], strides = [1, 1]} : vector<8x512xf32> to vector<8x256xf32>
    %838 = vector.extract_strided_slice %826 {offsets = [0, 256], sizes = [8, 256], strides = [1, 1]} : vector<8x512xf32> to vector<8x256xf32>
    %839 = arith.addf %837, %838 : vector<8x256xf32>
    %840 = vector.extract_strided_slice %833 {offsets = [0, 0], sizes = [8, 192], strides = [1, 1]} : vector<8x256xf32> to vector<8x192xf32>
    %841 = arith.negf %840 : vector<8x192xf32>
    %842 = math.exp %841 : vector<8x192xf32>
    %cst_247 = arith.constant 1.000000e+00 : f32
    %843 = vector.broadcast %cst_247 : f32 to vector<8x192xf32>
    %844 = arith.addf %843, %842 : vector<8x192xf32>
    %845 = arith.divf %843, %844 : vector<8x192xf32>
    %846 = vector.extract_strided_slice %845 {offsets = [0, 0], sizes = [8, 64], strides = [1, 1]} : vector<8x192xf32> to vector<8x64xf32>
    %847 = vector.extract_strided_slice %845 {offsets = [0, 64], sizes = [8, 64], strides = [1, 1]} : vector<8x192xf32> to vector<8x64xf32>
    %848 = vector.extract_strided_slice %845 {offsets = [0, 128], sizes = [8, 64], strides = [1, 1]} : vector<8x192xf32> to vector<8x64xf32>
    %849 = vector.extract_strided_slice %833 {offsets = [0, 192], sizes = [8, 64], strides = [1, 1]} : vector<8x256xf32> to vector<8x64xf32>
    %850 = math.tanh %849 : vector<8x64xf32>
    %851 = arith.mulf %847, %797 : vector<8x64xf32>
    %852 = arith.mulf %846, %850 : vector<8x64xf32>
    %853 = arith.addf %851, %852 : vector<8x64xf32>
    %854 = math.tanh %853 : vector<8x64xf32>
    %855 = arith.mulf %848, %854 : vector<8x64xf32>
    %856 = vector.extract_strided_slice %839 {offsets = [0, 0], sizes = [8, 192], strides = [1, 1]} : vector<8x256xf32> to vector<8x192xf32>
    %857 = arith.negf %856 : vector<8x192xf32>
    %858 = math.exp %857 : vector<8x192xf32>
    %cst_248 = arith.constant 1.000000e+00 : f32
    %859 = vector.broadcast %cst_248 : f32 to vector<8x192xf32>
    %860 = arith.addf %859, %858 : vector<8x192xf32>
    %861 = arith.divf %859, %860 : vector<8x192xf32>
    %862 = vector.extract_strided_slice %861 {offsets = [0, 0], sizes = [8, 64], strides = [1, 1]} : vector<8x192xf32> to vector<8x64xf32>
    %863 = vector.extract_strided_slice %861 {offsets = [0, 64], sizes = [8, 64], strides = [1, 1]} : vector<8x192xf32> to vector<8x64xf32>
    %864 = vector.extract_strided_slice %861 {offsets = [0, 128], sizes = [8, 64], strides = [1, 1]} : vector<8x192xf32> to vector<8x64xf32>
    %865 = vector.extract_strided_slice %839 {offsets = [0, 192], sizes = [8, 64], strides = [1, 1]} : vector<8x256xf32> to vector<8x64xf32>
    %866 = math.tanh %865 : vector<8x64xf32>
    %867 = arith.mulf %863, %813 : vector<8x64xf32>
    %868 = arith.mulf %862, %866 : vector<8x64xf32>
    %869 = arith.addf %867, %868 : vector<8x64xf32>
    %870 = math.tanh %869 : vector<8x64xf32>
    %871 = arith.mulf %864, %870 : vector<8x64xf32>
    %c0_249 = arith.constant 0 : index
    %872 = arith.index_cast %c6_i32_240 : i32 to index
    %c0_250 = arith.constant 0 : index
    %c0_251 = arith.constant 0 : index
    %873 = vector.load %arg12[%c0_249, %872, %c0_250, %c0_251] : memref<2x8x8x64xf32, #tpu.memory_space<vmem>>, vector<1x1x8x64xf32>
    %874 = vector.shape_cast %873 : vector<1x1x8x64xf32> to vector<8x64xf32>
    %875 = vector.shape_cast %855 : vector<8x64xf32> to vector<1x1x8x64xf32>
    tpu.vector_store %arg12[%c0_249, %872, %c0_250, %c0_251], %875 {strides = array<i32>} : memref<2x8x8x64xf32, #tpu.memory_space<vmem>>, vector<1x1x8x64xf32>,
    %c1_252 = arith.constant 1 : index
    %876 = arith.index_cast %827 : i32 to index
    %c0_253 = arith.constant 0 : index
    %c0_254 = arith.constant 0 : index
    %877 = vector.load %arg12[%c1_252, %876, %c0_253, %c0_254] : memref<2x8x8x64xf32, #tpu.memory_space<vmem>>, vector<1x1x8x64xf32>
    %878 = vector.shape_cast %877 : vector<1x1x8x64xf32> to vector<8x64xf32>
    %879 = vector.shape_cast %871 : vector<8x64xf32> to vector<1x1x8x64xf32>
    tpu.vector_store %arg12[%c1_252, %876, %c0_253, %c0_254], %879 {strides = array<i32>} : memref<2x8x8x64xf32, #tpu.memory_space<vmem>>, vector<1x1x8x64xf32>,
    %880 = tpu.concatenate %855, %871 in 1 : vector<8x64xf32>, vector<8x64xf32> -> vector<8x128xf32>
    %c7_i32_255 = arith.constant 7 : i32
    %881 = arith.truncf %880 : vector<8x128xf32> to vector<8x128xbf16>
    %cst_256 = arith.constant dense<0.000000e+00> : vector<8x512xf32>
    %882 = tpu.matmul %881, %485, %cst_256 {dimension_numbers = #tpu.dot_dimension_numbers<[1], [0], [0], [1], [0, 0, 1, 1], [], []>} : vector<8x128xbf16>, vector<128x512xbf16>, vector<8x512xf32> -> vector<8x512xf32>
    %c7_i32_257 = arith.constant 7 : i32
    %883 = arith.subi %c7_i32_257, %c7_i32_255 : i32
    %884 = arith.index_cast %c7_i32_255 : i32 to index
    %c0_258 = arith.constant 0 : index
    %c0_259 = arith.constant 0 : index
    %885 = vector.load %arg13[%884, %c0_258, %c0_259] : memref<8x8x512xf32, #tpu.memory_space<vmem>>, vector<1x8x512xf32>
    %886 = vector.shape_cast %885 : vector<1x8x512xf32> to vector<8x512xf32>
    %887 = vector.extract_strided_slice %886 {offsets = [0, 0], sizes = [8, 256], strides = [1, 1]} : vector<8x512xf32> to vector<8x256xf32>
    %888 = vector.extract_strided_slice %882 {offsets = [0, 0], sizes = [8, 256], strides = [1, 1]} : vector<8x512xf32> to vector<8x256xf32>
    %889 = arith.addf %887, %888 : vector<8x256xf32>
    %890 = arith.index_cast %883 : i32 to index
    %c0_260 = arith.constant 0 : index
    %c0_261 = arith.constant 0 : index
    %891 = vector.load %arg13[%890, %c0_260, %c0_261] : memref<8x8x512xf32, #tpu.memory_space<vmem>>, vector<1x8x512xf32>
    %892 = vector.shape_cast %891 : vector<1x8x512xf32> to vector<8x512xf32>
    %893 = vector.extract_strided_slice %892 {offsets = [0, 256], sizes = [8, 256], strides = [1, 1]} : vector<8x512xf32> to vector<8x256xf32>
    %894 = vector.extract_strided_slice %882 {offsets = [0, 256], sizes = [8, 256], strides = [1, 1]} : vector<8x512xf32> to vector<8x256xf32>
    %895 = arith.addf %893, %894 : vector<8x256xf32>
    %896 = vector.extract_strided_slice %889 {offsets = [0, 0], sizes = [8, 192], strides = [1, 1]} : vector<8x256xf32> to vector<8x192xf32>
    %897 = arith.negf %896 : vector<8x192xf32>
    %898 = math.exp %897 : vector<8x192xf32>
    %cst_262 = arith.constant 1.000000e+00 : f32
    %899 = vector.broadcast %cst_262 : f32 to vector<8x192xf32>
    %900 = arith.addf %899, %898 : vector<8x192xf32>
    %901 = arith.divf %899, %900 : vector<8x192xf32>
    %902 = vector.extract_strided_slice %901 {offsets = [0, 0], sizes = [8, 64], strides = [1, 1]} : vector<8x192xf32> to vector<8x64xf32>
    %903 = vector.extract_strided_slice %901 {offsets = [0, 64], sizes = [8, 64], strides = [1, 1]} : vector<8x192xf32> to vector<8x64xf32>
    %904 = vector.extract_strided_slice %901 {offsets = [0, 128], sizes = [8, 64], strides = [1, 1]} : vector<8x192xf32> to vector<8x64xf32>
    %905 = vector.extract_strided_slice %889 {offsets = [0, 192], sizes = [8, 64], strides = [1, 1]} : vector<8x256xf32> to vector<8x64xf32>
    %906 = math.tanh %905 : vector<8x64xf32>
    %907 = arith.mulf %903, %853 : vector<8x64xf32>
    %908 = arith.mulf %902, %906 : vector<8x64xf32>
    %909 = arith.addf %907, %908 : vector<8x64xf32>
    %910 = math.tanh %909 : vector<8x64xf32>
    %911 = arith.mulf %904, %910 : vector<8x64xf32>
    %912 = vector.extract_strided_slice %895 {offsets = [0, 0], sizes = [8, 192], strides = [1, 1]} : vector<8x256xf32> to vector<8x192xf32>
    %913 = arith.negf %912 : vector<8x192xf32>
    %914 = math.exp %913 : vector<8x192xf32>
    %cst_263 = arith.constant 1.000000e+00 : f32
    %915 = vector.broadcast %cst_263 : f32 to vector<8x192xf32>
    %916 = arith.addf %915, %914 : vector<8x192xf32>
    %917 = arith.divf %915, %916 : vector<8x192xf32>
    %918 = vector.extract_strided_slice %917 {offsets = [0, 0], sizes = [8, 64], strides = [1, 1]} : vector<8x192xf32> to vector<8x64xf32>
    %919 = vector.extract_strided_slice %917 {offsets = [0, 64], sizes = [8, 64], strides = [1, 1]} : vector<8x192xf32> to vector<8x64xf32>
    %920 = vector.extract_strided_slice %917 {offsets = [0, 128], sizes = [8, 64], strides = [1, 1]} : vector<8x192xf32> to vector<8x64xf32>
    %921 = vector.extract_strided_slice %895 {offsets = [0, 192], sizes = [8, 64], strides = [1, 1]} : vector<8x256xf32> to vector<8x64xf32>
    %922 = math.tanh %921 : vector<8x64xf32>
    %923 = arith.mulf %919, %869 : vector<8x64xf32>
    %924 = arith.mulf %918, %922 : vector<8x64xf32>
    %925 = arith.addf %923, %924 : vector<8x64xf32>
    %926 = math.tanh %925 : vector<8x64xf32>
    %927 = arith.mulf %920, %926 : vector<8x64xf32>
    %c0_264 = arith.constant 0 : index
    %928 = arith.index_cast %c7_i32_255 : i32 to index
    %c0_265 = arith.constant 0 : index
    %c0_266 = arith.constant 0 : index
    %929 = vector.load %arg12[%c0_264, %928, %c0_265, %c0_266] : memref<2x8x8x64xf32, #tpu.memory_space<vmem>>, vector<1x1x8x64xf32>
    %930 = vector.shape_cast %929 : vector<1x1x8x64xf32> to vector<8x64xf32>
    %931 = vector.shape_cast %911 : vector<8x64xf32> to vector<1x1x8x64xf32>
    tpu.vector_store %arg12[%c0_264, %928, %c0_265, %c0_266], %931 {strides = array<i32>} : memref<2x8x8x64xf32, #tpu.memory_space<vmem>>, vector<1x1x8x64xf32>,
    %c1_267 = arith.constant 1 : index
    %932 = arith.index_cast %883 : i32 to index
    %c0_268 = arith.constant 0 : index
    %c0_269 = arith.constant 0 : index
    %933 = vector.load %arg12[%c1_267, %932, %c0_268, %c0_269] : memref<2x8x8x64xf32, #tpu.memory_space<vmem>>, vector<1x1x8x64xf32>
    %934 = vector.shape_cast %933 : vector<1x1x8x64xf32> to vector<8x64xf32>
    %935 = vector.shape_cast %927 : vector<8x64xf32> to vector<1x1x8x64xf32>
    tpu.vector_store %arg12[%c1_267, %932, %c0_268, %c0_269], %935 {strides = array<i32>} : memref<2x8x8x64xf32, #tpu.memory_space<vmem>>, vector<1x1x8x64xf32>,
    %936 = tpu.concatenate %911, %927 in 1 : vector<8x64xf32>, vector<8x64xf32> -> vector<8x128xf32>
    %c8_i32_270 = arith.constant 8 : i32
    %c2 = arith.constant 2 : index
    %c0_271 = arith.constant 0 : index
    %c0_272 = arith.constant 0 : index
    %937 = vector.load %arg5[%c2, %c0_271, %c0_272] : memref<3x1x512xf32, #tpu.memory_space<vmem>>, vector<1x1x512xf32>
    %938 = vector.shape_cast %937 : vector<1x1x512xf32> to vector<1x512xf32>
    %c1_273 = arith.constant 1 : index
    %c0_274 = arith.constant 0 : index
    %c0_275 = arith.constant 0 : index
    %939 = vector.load %arg3[%c1_273, %c0_274, %c0_275] : memref<2x128x512xbf16, #tpu.memory_space<vmem>>, vector<1x128x512xbf16>
    %940 = vector.shape_cast %939 : vector<1x128x512xbf16> to vector<128x512xbf16>
    %c0_276 = arith.constant 0 : index
    %c0_277 = arith.constant 0 : index
    %c0_278 = arith.constant 0 : index
    %c0_279 = arith.constant 0 : index
    %941 = vector.load %arg12[%c0_276, %c0_277, %c0_278, %c0_279] : memref<2x8x8x64xf32, #tpu.memory_space<vmem>>, vector<1x8x8x64xf32>
    %942 = vector.shape_cast %941 : vector<1x8x8x64xf32> to vector<8x8x64xf32>
    %943 = vector.shape_cast %942 : vector<8x8x64xf32> to vector<64x64xf32>
    %c1_280 = arith.constant 1 : index
    %c0_281 = arith.constant 0 : index
    %c0_282 = arith.constant 0 : index
    %c0_283 = arith.constant 0 : index
    %944 = vector.load %arg12[%c1_280, %c0_281, %c0_282, %c0_283] : memref<2x8x8x64xf32, #tpu.memory_space<vmem>>, vector<1x8x8x64xf32>
    %945 = vector.shape_cast %944 : vector<1x8x8x64xf32> to vector<8x8x64xf32>
    %946 = vector.shape_cast %945 : vector<8x8x64xf32> to vector<64x64xf32>
    %947 = tpu.concatenate %943, %946 in 1 : vector<64x64xf32>, vector<64x64xf32> -> vector<64x128xf32>
    %948 = arith.truncf %947 : vector<64x128xf32> to vector<64x128xbf16>
    %cst_284 = arith.constant dense<0.000000e+00> : vector<64x512xf32>
    %949 = tpu.matmul %948, %940, %cst_284 {dimension_numbers = #tpu.dot_dimension_numbers<[1], [0], [0], [1], [0, 0, 1, 1], [], []>} : vector<64x128xbf16>, vector<128x512xbf16>, vector<64x512xf32> -> vector<64x512xf32>
    %950 = vector.broadcast %938 : vector<1x512xf32> to vector<64x512xf32>
    %951 = arith.addf %949, %950 : vector<64x512xf32>
    %952 = vector.shape_cast %951 : vector<64x512xf32> to vector<8x8x512xf32>
    %c0_285 = arith.constant 0 : index
    %c0_286 = arith.constant 0 : index
    %c0_287 = arith.constant 0 : index
    %953 = vector.load %arg13[%c0_285, %c0_286, %c0_287] : memref<8x8x512xf32, #tpu.memory_space<vmem>>, vector<8x8x512xf32>
    tpu.vector_store %arg13[%c0_285, %c0_286, %c0_287], %952 {strides = array<i32>} : memref<8x8x512xf32, #tpu.memory_space<vmem>>, vector<8x8x512xf32>,
    %c2_288 = arith.constant 2 : index
    %c0_289 = arith.constant 0 : index
    %c0_290 = arith.constant 0 : index
    %954 = vector.load %arg4[%c2_288, %c0_289, %c0_290] : memref<3x128x512xbf16, #tpu.memory_space<vmem>>, vector<1x128x512xbf16>
    %955 = vector.shape_cast %954 : vector<1x128x512xbf16> to vector<128x512xbf16>
    %cst_291 = arith.constant 0.000000e+00 : f32
    %956 = vector.broadcast %cst_291 : f32 to vector<8x128xf32>
    %cst_292 = arith.constant 0.000000e+00 : f32
    %957 = vector.broadcast %cst_292 : f32 to vector<8x64xf32>
    %cst_293 = arith.constant 0.000000e+00 : f32
    %958 = vector.broadcast %cst_293 : f32 to vector<8x64xf32>
    %c0_i32_294 = arith.constant 0 : i32
    %959 = arith.truncf %956 : vector<8x128xf32> to vector<8x128xbf16>
    %cst_295 = arith.constant dense<0.000000e+00> : vector<8x512xf32>
    %960 = tpu.matmul %959, %955, %cst_295 {dimension_numbers = #tpu.dot_dimension_numbers<[1], [0], [0], [1], [0, 0, 1, 1], [], []>} : vector<8x128xbf16>, vector<128x512xbf16>, vector<8x512xf32> -> vector<8x512xf32>
    %c7_i32_296 = arith.constant 7 : i32
    %961 = arith.subi %c7_i32_296, %c0_i32_294 : i32
    %962 = arith.index_cast %c0_i32_294 : i32 to index
    %c0_297 = arith.constant 0 : index
    %c0_298 = arith.constant 0 : index
    %963 = vector.load %arg13[%962, %c0_297, %c0_298] : memref<8x8x512xf32, #tpu.memory_space<vmem>>, vector<1x8x512xf32>
    %964 = vector.shape_cast %963 : vector<1x8x512xf32> to vector<8x512xf32>
    %965 = vector.extract_strided_slice %964 {offsets = [0, 0], sizes = [8, 256], strides = [1, 1]} : vector<8x512xf32> to vector<8x256xf32>
    %966 = vector.extract_strided_slice %960 {offsets = [0, 0], sizes = [8, 256], strides = [1, 1]} : vector<8x512xf32> to vector<8x256xf32>
    %967 = arith.addf %965, %966 : vector<8x256xf32>
    %968 = arith.index_cast %961 : i32 to index
    %c0_299 = arith.constant 0 : index
    %c0_300 = arith.constant 0 : index
    %969 = vector.load %arg13[%968, %c0_299, %c0_300] : memref<8x8x512xf32, #tpu.memory_space<vmem>>, vector<1x8x512xf32>
    %970 = vector.shape_cast %969 : vector<1x8x512xf32> to vector<8x512xf32>
    %971 = vector.extract_strided_slice %970 {offsets = [0, 256], sizes = [8, 256], strides = [1, 1]} : vector<8x512xf32> to vector<8x256xf32>
    %972 = vector.extract_strided_slice %960 {offsets = [0, 256], sizes = [8, 256], strides = [1, 1]} : vector<8x512xf32> to vector<8x256xf32>
    %973 = arith.addf %971, %972 : vector<8x256xf32>
    %974 = vector.extract_strided_slice %967 {offsets = [0, 0], sizes = [8, 192], strides = [1, 1]} : vector<8x256xf32> to vector<8x192xf32>
    %975 = arith.negf %974 : vector<8x192xf32>
    %976 = math.exp %975 : vector<8x192xf32>
    %cst_301 = arith.constant 1.000000e+00 : f32
    %977 = vector.broadcast %cst_301 : f32 to vector<8x192xf32>
    %978 = arith.addf %977, %976 : vector<8x192xf32>
    %979 = arith.divf %977, %978 : vector<8x192xf32>
    %980 = vector.extract_strided_slice %979 {offsets = [0, 0], sizes = [8, 64], strides = [1, 1]} : vector<8x192xf32> to vector<8x64xf32>
    %981 = vector.extract_strided_slice %979 {offsets = [0, 64], sizes = [8, 64], strides = [1, 1]} : vector<8x192xf32> to vector<8x64xf32>
    %982 = vector.extract_strided_slice %979 {offsets = [0, 128], sizes = [8, 64], strides = [1, 1]} : vector<8x192xf32> to vector<8x64xf32>
    %983 = vector.extract_strided_slice %967 {offsets = [0, 192], sizes = [8, 64], strides = [1, 1]} : vector<8x256xf32> to vector<8x64xf32>
    %984 = math.tanh %983 : vector<8x64xf32>
    %985 = arith.mulf %981, %957 : vector<8x64xf32>
    %986 = arith.mulf %980, %984 : vector<8x64xf32>
    %987 = arith.addf %985, %986 : vector<8x64xf32>
    %988 = math.tanh %987 : vector<8x64xf32>
    %989 = arith.mulf %982, %988 : vector<8x64xf32>
    %990 = vector.extract_strided_slice %973 {offsets = [0, 0], sizes = [8, 192], strides = [1, 1]} : vector<8x256xf32> to vector<8x192xf32>
    %991 = arith.negf %990 : vector<8x192xf32>
    %992 = math.exp %991 : vector<8x192xf32>
    %cst_302 = arith.constant 1.000000e+00 : f32
    %993 = vector.broadcast %cst_302 : f32 to vector<8x192xf32>
    %994 = arith.addf %993, %992 : vector<8x192xf32>
    %995 = arith.divf %993, %994 : vector<8x192xf32>
    %996 = vector.extract_strided_slice %995 {offsets = [0, 0], sizes = [8, 64], strides = [1, 1]} : vector<8x192xf32> to vector<8x64xf32>
    %997 = vector.extract_strided_slice %995 {offsets = [0, 64], sizes = [8, 64], strides = [1, 1]} : vector<8x192xf32> to vector<8x64xf32>
    %998 = vector.extract_strided_slice %995 {offsets = [0, 128], sizes = [8, 64], strides = [1, 1]} : vector<8x192xf32> to vector<8x64xf32>
    %999 = vector.extract_strided_slice %973 {offsets = [0, 192], sizes = [8, 64], strides = [1, 1]} : vector<8x256xf32> to vector<8x64xf32>
    %1000 = math.tanh %999 : vector<8x64xf32>
    %1001 = arith.mulf %997, %958 : vector<8x64xf32>
    %1002 = arith.mulf %996, %1000 : vector<8x64xf32>
    %1003 = arith.addf %1001, %1002 : vector<8x64xf32>
    %1004 = math.tanh %1003 : vector<8x64xf32>
    %1005 = arith.mulf %998, %1004 : vector<8x64xf32>
    %c0_303 = arith.constant 0 : index
    %1006 = arith.index_cast %c0_i32_294 : i32 to index
    %c0_304 = arith.constant 0 : index
    %c0_305 = arith.constant 0 : index
    %1007 = vector.load %arg11[%c0_303, %1006, %c0_304, %c0_305] : memref<2x8x8x64xf32, #tpu.memory_space<vmem>>, vector<1x1x8x64xf32>
    %1008 = vector.shape_cast %1007 : vector<1x1x8x64xf32> to vector<8x64xf32>
    %1009 = vector.shape_cast %989 : vector<8x64xf32> to vector<1x1x8x64xf32>
    tpu.vector_store %arg11[%c0_303, %1006, %c0_304, %c0_305], %1009 {strides = array<i32>} : memref<2x8x8x64xf32, #tpu.memory_space<vmem>>, vector<1x1x8x64xf32>,
    %c1_306 = arith.constant 1 : index
    %1010 = arith.index_cast %961 : i32 to index
    %c0_307 = arith.constant 0 : index
    %c0_308 = arith.constant 0 : index
    %1011 = vector.load %arg11[%c1_306, %1010, %c0_307, %c0_308] : memref<2x8x8x64xf32, #tpu.memory_space<vmem>>, vector<1x1x8x64xf32>
    %1012 = vector.shape_cast %1011 : vector<1x1x8x64xf32> to vector<8x64xf32>
    %1013 = vector.shape_cast %1005 : vector<8x64xf32> to vector<1x1x8x64xf32>
    tpu.vector_store %arg11[%c1_306, %1010, %c0_307, %c0_308], %1013 {strides = array<i32>} : memref<2x8x8x64xf32, #tpu.memory_space<vmem>>, vector<1x1x8x64xf32>,
    %1014 = tpu.concatenate %989, %1005 in 1 : vector<8x64xf32>, vector<8x64xf32> -> vector<8x128xf32>
    %c1_i32_309 = arith.constant 1 : i32
    %1015 = arith.truncf %1014 : vector<8x128xf32> to vector<8x128xbf16>
    %cst_310 = arith.constant dense<0.000000e+00> : vector<8x512xf32>
    %1016 = tpu.matmul %1015, %955, %cst_310 {dimension_numbers = #tpu.dot_dimension_numbers<[1], [0], [0], [1], [0, 0, 1, 1], [], []>} : vector<8x128xbf16>, vector<128x512xbf16>, vector<8x512xf32> -> vector<8x512xf32>
    %c7_i32_311 = arith.constant 7 : i32
    %1017 = arith.subi %c7_i32_311, %c1_i32_309 : i32
    %1018 = arith.index_cast %c1_i32_309 : i32 to index
    %c0_312 = arith.constant 0 : index
    %c0_313 = arith.constant 0 : index
    %1019 = vector.load %arg13[%1018, %c0_312, %c0_313] : memref<8x8x512xf32, #tpu.memory_space<vmem>>, vector<1x8x512xf32>
    %1020 = vector.shape_cast %1019 : vector<1x8x512xf32> to vector<8x512xf32>
    %1021 = vector.extract_strided_slice %1020 {offsets = [0, 0], sizes = [8, 256], strides = [1, 1]} : vector<8x512xf32> to vector<8x256xf32>
    %1022 = vector.extract_strided_slice %1016 {offsets = [0, 0], sizes = [8, 256], strides = [1, 1]} : vector<8x512xf32> to vector<8x256xf32>
    %1023 = arith.addf %1021, %1022 : vector<8x256xf32>
    %1024 = arith.index_cast %1017 : i32 to index
    %c0_314 = arith.constant 0 : index
    %c0_315 = arith.constant 0 : index
    %1025 = vector.load %arg13[%1024, %c0_314, %c0_315] : memref<8x8x512xf32, #tpu.memory_space<vmem>>, vector<1x8x512xf32>
    %1026 = vector.shape_cast %1025 : vector<1x8x512xf32> to vector<8x512xf32>
    %1027 = vector.extract_strided_slice %1026 {offsets = [0, 256], sizes = [8, 256], strides = [1, 1]} : vector<8x512xf32> to vector<8x256xf32>
    %1028 = vector.extract_strided_slice %1016 {offsets = [0, 256], sizes = [8, 256], strides = [1, 1]} : vector<8x512xf32> to vector<8x256xf32>
    %1029 = arith.addf %1027, %1028 : vector<8x256xf32>
    %1030 = vector.extract_strided_slice %1023 {offsets = [0, 0], sizes = [8, 192], strides = [1, 1]} : vector<8x256xf32> to vector<8x192xf32>
    %1031 = arith.negf %1030 : vector<8x192xf32>
    %1032 = math.exp %1031 : vector<8x192xf32>
    %cst_316 = arith.constant 1.000000e+00 : f32
    %1033 = vector.broadcast %cst_316 : f32 to vector<8x192xf32>
    %1034 = arith.addf %1033, %1032 : vector<8x192xf32>
    %1035 = arith.divf %1033, %1034 : vector<8x192xf32>
    %1036 = vector.extract_strided_slice %1035 {offsets = [0, 0], sizes = [8, 64], strides = [1, 1]} : vector<8x192xf32> to vector<8x64xf32>
    %1037 = vector.extract_strided_slice %1035 {offsets = [0, 64], sizes = [8, 64], strides = [1, 1]} : vector<8x192xf32> to vector<8x64xf32>
    %1038 = vector.extract_strided_slice %1035 {offsets = [0, 128], sizes = [8, 64], strides = [1, 1]} : vector<8x192xf32> to vector<8x64xf32>
    %1039 = vector.extract_strided_slice %1023 {offsets = [0, 192], sizes = [8, 64], strides = [1, 1]} : vector<8x256xf32> to vector<8x64xf32>
    %1040 = math.tanh %1039 : vector<8x64xf32>
    %1041 = arith.mulf %1037, %987 : vector<8x64xf32>
    %1042 = arith.mulf %1036, %1040 : vector<8x64xf32>
    %1043 = arith.addf %1041, %1042 : vector<8x64xf32>
    %1044 = math.tanh %1043 : vector<8x64xf32>
    %1045 = arith.mulf %1038, %1044 : vector<8x64xf32>
    %1046 = vector.extract_strided_slice %1029 {offsets = [0, 0], sizes = [8, 192], strides = [1, 1]} : vector<8x256xf32> to vector<8x192xf32>
    %1047 = arith.negf %1046 : vector<8x192xf32>
    %1048 = math.exp %1047 : vector<8x192xf32>
    %cst_317 = arith.constant 1.000000e+00 : f32
    %1049 = vector.broadcast %cst_317 : f32 to vector<8x192xf32>
    %1050 = arith.addf %1049, %1048 : vector<8x192xf32>
    %1051 = arith.divf %1049, %1050 : vector<8x192xf32>
    %1052 = vector.extract_strided_slice %1051 {offsets = [0, 0], sizes = [8, 64], strides = [1, 1]} : vector<8x192xf32> to vector<8x64xf32>
    %1053 = vector.extract_strided_slice %1051 {offsets = [0, 64], sizes = [8, 64], strides = [1, 1]} : vector<8x192xf32> to vector<8x64xf32>
    %1054 = vector.extract_strided_slice %1051 {offsets = [0, 128], sizes = [8, 64], strides = [1, 1]} : vector<8x192xf32> to vector<8x64xf32>
    %1055 = vector.extract_strided_slice %1029 {offsets = [0, 192], sizes = [8, 64], strides = [1, 1]} : vector<8x256xf32> to vector<8x64xf32>
    %1056 = math.tanh %1055 : vector<8x64xf32>
    %1057 = arith.mulf %1053, %1003 : vector<8x64xf32>
    %1058 = arith.mulf %1052, %1056 : vector<8x64xf32>
    %1059 = arith.addf %1057, %1058 : vector<8x64xf32>
    %1060 = math.tanh %1059 : vector<8x64xf32>
    %1061 = arith.mulf %1054, %1060 : vector<8x64xf32>
    %c0_318 = arith.constant 0 : index
    %1062 = arith.index_cast %c1_i32_309 : i32 to index
    %c0_319 = arith.constant 0 : index
    %c0_320 = arith.constant 0 : index
    %1063 = vector.load %arg11[%c0_318, %1062, %c0_319, %c0_320] : memref<2x8x8x64xf32, #tpu.memory_space<vmem>>, vector<1x1x8x64xf32>
    %1064 = vector.shape_cast %1063 : vector<1x1x8x64xf32> to vector<8x64xf32>
    %1065 = vector.shape_cast %1045 : vector<8x64xf32> to vector<1x1x8x64xf32>
    tpu.vector_store %arg11[%c0_318, %1062, %c0_319, %c0_320], %1065 {strides = array<i32>} : memref<2x8x8x64xf32, #tpu.memory_space<vmem>>, vector<1x1x8x64xf32>,
    %c1_321 = arith.constant 1 : index
    %1066 = arith.index_cast %1017 : i32 to index
    %c0_322 = arith.constant 0 : index
    %c0_323 = arith.constant 0 : index
    %1067 = vector.load %arg11[%c1_321, %1066, %c0_322, %c0_323] : memref<2x8x8x64xf32, #tpu.memory_space<vmem>>, vector<1x1x8x64xf32>
    %1068 = vector.shape_cast %1067 : vector<1x1x8x64xf32> to vector<8x64xf32>
    %1069 = vector.shape_cast %1061 : vector<8x64xf32> to vector<1x1x8x64xf32>
    tpu.vector_store %arg11[%c1_321, %1066, %c0_322, %c0_323], %1069 {strides = array<i32>} : memref<2x8x8x64xf32, #tpu.memory_space<vmem>>, vector<1x1x8x64xf32>,
    %1070 = tpu.concatenate %1045, %1061 in 1 : vector<8x64xf32>, vector<8x64xf32> -> vector<8x128xf32>
    %c2_i32_324 = arith.constant 2 : i32
    %1071 = arith.truncf %1070 : vector<8x128xf32> to vector<8x128xbf16>
    %cst_325 = arith.constant dense<0.000000e+00> : vector<8x512xf32>
    %1072 = tpu.matmul %1071, %955, %cst_325 {dimension_numbers = #tpu.dot_dimension_numbers<[1], [0], [0], [1], [0, 0, 1, 1], [], []>} : vector<8x128xbf16>, vector<128x512xbf16>, vector<8x512xf32> -> vector<8x512xf32>
    %c7_i32_326 = arith.constant 7 : i32
    %1073 = arith.subi %c7_i32_326, %c2_i32_324 : i32
    %1074 = arith.index_cast %c2_i32_324 : i32 to index
    %c0_327 = arith.constant 0 : index
    %c0_328 = arith.constant 0 : index
    %1075 = vector.load %arg13[%1074, %c0_327, %c0_328] : memref<8x8x512xf32, #tpu.memory_space<vmem>>, vector<1x8x512xf32>
    %1076 = vector.shape_cast %1075 : vector<1x8x512xf32> to vector<8x512xf32>
    %1077 = vector.extract_strided_slice %1076 {offsets = [0, 0], sizes = [8, 256], strides = [1, 1]} : vector<8x512xf32> to vector<8x256xf32>
    %1078 = vector.extract_strided_slice %1072 {offsets = [0, 0], sizes = [8, 256], strides = [1, 1]} : vector<8x512xf32> to vector<8x256xf32>
    %1079 = arith.addf %1077, %1078 : vector<8x256xf32>
    %1080 = arith.index_cast %1073 : i32 to index
    %c0_329 = arith.constant 0 : index
    %c0_330 = arith.constant 0 : index
    %1081 = vector.load %arg13[%1080, %c0_329, %c0_330] : memref<8x8x512xf32, #tpu.memory_space<vmem>>, vector<1x8x512xf32>
    %1082 = vector.shape_cast %1081 : vector<1x8x512xf32> to vector<8x512xf32>
    %1083 = vector.extract_strided_slice %1082 {offsets = [0, 256], sizes = [8, 256], strides = [1, 1]} : vector<8x512xf32> to vector<8x256xf32>
    %1084 = vector.extract_strided_slice %1072 {offsets = [0, 256], sizes = [8, 256], strides = [1, 1]} : vector<8x512xf32> to vector<8x256xf32>
    %1085 = arith.addf %1083, %1084 : vector<8x256xf32>
    %1086 = vector.extract_strided_slice %1079 {offsets = [0, 0], sizes = [8, 192], strides = [1, 1]} : vector<8x256xf32> to vector<8x192xf32>
    %1087 = arith.negf %1086 : vector<8x192xf32>
    %1088 = math.exp %1087 : vector<8x192xf32>
    %cst_331 = arith.constant 1.000000e+00 : f32
    %1089 = vector.broadcast %cst_331 : f32 to vector<8x192xf32>
    %1090 = arith.addf %1089, %1088 : vector<8x192xf32>
    %1091 = arith.divf %1089, %1090 : vector<8x192xf32>
    %1092 = vector.extract_strided_slice %1091 {offsets = [0, 0], sizes = [8, 64], strides = [1, 1]} : vector<8x192xf32> to vector<8x64xf32>
    %1093 = vector.extract_strided_slice %1091 {offsets = [0, 64], sizes = [8, 64], strides = [1, 1]} : vector<8x192xf32> to vector<8x64xf32>
    %1094 = vector.extract_strided_slice %1091 {offsets = [0, 128], sizes = [8, 64], strides = [1, 1]} : vector<8x192xf32> to vector<8x64xf32>
    %1095 = vector.extract_strided_slice %1079 {offsets = [0, 192], sizes = [8, 64], strides = [1, 1]} : vector<8x256xf32> to vector<8x64xf32>
    %1096 = math.tanh %1095 : vector<8x64xf32>
    %1097 = arith.mulf %1093, %1043 : vector<8x64xf32>
    %1098 = arith.mulf %1092, %1096 : vector<8x64xf32>
    %1099 = arith.addf %1097, %1098 : vector<8x64xf32>
    %1100 = math.tanh %1099 : vector<8x64xf32>
    %1101 = arith.mulf %1094, %1100 : vector<8x64xf32>
    %1102 = vector.extract_strided_slice %1085 {offsets = [0, 0], sizes = [8, 192], strides = [1, 1]} : vector<8x256xf32> to vector<8x192xf32>
    %1103 = arith.negf %1102 : vector<8x192xf32>
    %1104 = math.exp %1103 : vector<8x192xf32>
    %cst_332 = arith.constant 1.000000e+00 : f32
    %1105 = vector.broadcast %cst_332 : f32 to vector<8x192xf32>
    %1106 = arith.addf %1105, %1104 : vector<8x192xf32>
    %1107 = arith.divf %1105, %1106 : vector<8x192xf32>
    %1108 = vector.extract_strided_slice %1107 {offsets = [0, 0], sizes = [8, 64], strides = [1, 1]} : vector<8x192xf32> to vector<8x64xf32>
    %1109 = vector.extract_strided_slice %1107 {offsets = [0, 64], sizes = [8, 64], strides = [1, 1]} : vector<8x192xf32> to vector<8x64xf32>
    %1110 = vector.extract_strided_slice %1107 {offsets = [0, 128], sizes = [8, 64], strides = [1, 1]} : vector<8x192xf32> to vector<8x64xf32>
    %1111 = vector.extract_strided_slice %1085 {offsets = [0, 192], sizes = [8, 64], strides = [1, 1]} : vector<8x256xf32> to vector<8x64xf32>
    %1112 = math.tanh %1111 : vector<8x64xf32>
    %1113 = arith.mulf %1109, %1059 : vector<8x64xf32>
    %1114 = arith.mulf %1108, %1112 : vector<8x64xf32>
    %1115 = arith.addf %1113, %1114 : vector<8x64xf32>
    %1116 = math.tanh %1115 : vector<8x64xf32>
    %1117 = arith.mulf %1110, %1116 : vector<8x64xf32>
    %c0_333 = arith.constant 0 : index
    %1118 = arith.index_cast %c2_i32_324 : i32 to index
    %c0_334 = arith.constant 0 : index
    %c0_335 = arith.constant 0 : index
    %1119 = vector.load %arg11[%c0_333, %1118, %c0_334, %c0_335] : memref<2x8x8x64xf32, #tpu.memory_space<vmem>>, vector<1x1x8x64xf32>
    %1120 = vector.shape_cast %1119 : vector<1x1x8x64xf32> to vector<8x64xf32>
    %1121 = vector.shape_cast %1101 : vector<8x64xf32> to vector<1x1x8x64xf32>
    tpu.vector_store %arg11[%c0_333, %1118, %c0_334, %c0_335], %1121 {strides = array<i32>} : memref<2x8x8x64xf32, #tpu.memory_space<vmem>>, vector<1x1x8x64xf32>,
    %c1_336 = arith.constant 1 : index
    %1122 = arith.index_cast %1073 : i32 to index
    %c0_337 = arith.constant 0 : index
    %c0_338 = arith.constant 0 : index
    %1123 = vector.load %arg11[%c1_336, %1122, %c0_337, %c0_338] : memref<2x8x8x64xf32, #tpu.memory_space<vmem>>, vector<1x1x8x64xf32>
    %1124 = vector.shape_cast %1123 : vector<1x1x8x64xf32> to vector<8x64xf32>
    %1125 = vector.shape_cast %1117 : vector<8x64xf32> to vector<1x1x8x64xf32>
    tpu.vector_store %arg11[%c1_336, %1122, %c0_337, %c0_338], %1125 {strides = array<i32>} : memref<2x8x8x64xf32, #tpu.memory_space<vmem>>, vector<1x1x8x64xf32>,
    %1126 = tpu.concatenate %1101, %1117 in 1 : vector<8x64xf32>, vector<8x64xf32> -> vector<8x128xf32>
    %c3_i32_339 = arith.constant 3 : i32
    %1127 = arith.truncf %1126 : vector<8x128xf32> to vector<8x128xbf16>
    %cst_340 = arith.constant dense<0.000000e+00> : vector<8x512xf32>
    %1128 = tpu.matmul %1127, %955, %cst_340 {dimension_numbers = #tpu.dot_dimension_numbers<[1], [0], [0], [1], [0, 0, 1, 1], [], []>} : vector<8x128xbf16>, vector<128x512xbf16>, vector<8x512xf32> -> vector<8x512xf32>
    %c7_i32_341 = arith.constant 7 : i32
    %1129 = arith.subi %c7_i32_341, %c3_i32_339 : i32
    %1130 = arith.index_cast %c3_i32_339 : i32 to index
    %c0_342 = arith.constant 0 : index
    %c0_343 = arith.constant 0 : index
    %1131 = vector.load %arg13[%1130, %c0_342, %c0_343] : memref<8x8x512xf32, #tpu.memory_space<vmem>>, vector<1x8x512xf32>
    %1132 = vector.shape_cast %1131 : vector<1x8x512xf32> to vector<8x512xf32>
    %1133 = vector.extract_strided_slice %1132 {offsets = [0, 0], sizes = [8, 256], strides = [1, 1]} : vector<8x512xf32> to vector<8x256xf32>
    %1134 = vector.extract_strided_slice %1128 {offsets = [0, 0], sizes = [8, 256], strides = [1, 1]} : vector<8x512xf32> to vector<8x256xf32>
    %1135 = arith.addf %1133, %1134 : vector<8x256xf32>
    %1136 = arith.index_cast %1129 : i32 to index
    %c0_344 = arith.constant 0 : index
    %c0_345 = arith.constant 0 : index
    %1137 = vector.load %arg13[%1136, %c0_344, %c0_345] : memref<8x8x512xf32, #tpu.memory_space<vmem>>, vector<1x8x512xf32>
    %1138 = vector.shape_cast %1137 : vector<1x8x512xf32> to vector<8x512xf32>
    %1139 = vector.extract_strided_slice %1138 {offsets = [0, 256], sizes = [8, 256], strides = [1, 1]} : vector<8x512xf32> to vector<8x256xf32>
    %1140 = vector.extract_strided_slice %1128 {offsets = [0, 256], sizes = [8, 256], strides = [1, 1]} : vector<8x512xf32> to vector<8x256xf32>
    %1141 = arith.addf %1139, %1140 : vector<8x256xf32>
    %1142 = vector.extract_strided_slice %1135 {offsets = [0, 0], sizes = [8, 192], strides = [1, 1]} : vector<8x256xf32> to vector<8x192xf32>
    %1143 = arith.negf %1142 : vector<8x192xf32>
    %1144 = math.exp %1143 : vector<8x192xf32>
    %cst_346 = arith.constant 1.000000e+00 : f32
    %1145 = vector.broadcast %cst_346 : f32 to vector<8x192xf32>
    %1146 = arith.addf %1145, %1144 : vector<8x192xf32>
    %1147 = arith.divf %1145, %1146 : vector<8x192xf32>
    %1148 = vector.extract_strided_slice %1147 {offsets = [0, 0], sizes = [8, 64], strides = [1, 1]} : vector<8x192xf32> to vector<8x64xf32>
    %1149 = vector.extract_strided_slice %1147 {offsets = [0, 64], sizes = [8, 64], strides = [1, 1]} : vector<8x192xf32> to vector<8x64xf32>
    %1150 = vector.extract_strided_slice %1147 {offsets = [0, 128], sizes = [8, 64], strides = [1, 1]} : vector<8x192xf32> to vector<8x64xf32>
    %1151 = vector.extract_strided_slice %1135 {offsets = [0, 192], sizes = [8, 64], strides = [1, 1]} : vector<8x256xf32> to vector<8x64xf32>
    %1152 = math.tanh %1151 : vector<8x64xf32>
    %1153 = arith.mulf %1149, %1099 : vector<8x64xf32>
    %1154 = arith.mulf %1148, %1152 : vector<8x64xf32>
    %1155 = arith.addf %1153, %1154 : vector<8x64xf32>
    %1156 = math.tanh %1155 : vector<8x64xf32>
    %1157 = arith.mulf %1150, %1156 : vector<8x64xf32>
    %1158 = vector.extract_strided_slice %1141 {offsets = [0, 0], sizes = [8, 192], strides = [1, 1]} : vector<8x256xf32> to vector<8x192xf32>
    %1159 = arith.negf %1158 : vector<8x192xf32>
    %1160 = math.exp %1159 : vector<8x192xf32>
    %cst_347 = arith.constant 1.000000e+00 : f32
    %1161 = vector.broadcast %cst_347 : f32 to vector<8x192xf32>
    %1162 = arith.addf %1161, %1160 : vector<8x192xf32>
    %1163 = arith.divf %1161, %1162 : vector<8x192xf32>
    %1164 = vector.extract_strided_slice %1163 {offsets = [0, 0], sizes = [8, 64], strides = [1, 1]} : vector<8x192xf32> to vector<8x64xf32>
    %1165 = vector.extract_strided_slice %1163 {offsets = [0, 64], sizes = [8, 64], strides = [1, 1]} : vector<8x192xf32> to vector<8x64xf32>
    %1166 = vector.extract_strided_slice %1163 {offsets = [0, 128], sizes = [8, 64], strides = [1, 1]} : vector<8x192xf32> to vector<8x64xf32>
    %1167 = vector.extract_strided_slice %1141 {offsets = [0, 192], sizes = [8, 64], strides = [1, 1]} : vector<8x256xf32> to vector<8x64xf32>
    %1168 = math.tanh %1167 : vector<8x64xf32>
    %1169 = arith.mulf %1165, %1115 : vector<8x64xf32>
    %1170 = arith.mulf %1164, %1168 : vector<8x64xf32>
    %1171 = arith.addf %1169, %1170 : vector<8x64xf32>
    %1172 = math.tanh %1171 : vector<8x64xf32>
    %1173 = arith.mulf %1166, %1172 : vector<8x64xf32>
    %c0_348 = arith.constant 0 : index
    %1174 = arith.index_cast %c3_i32_339 : i32 to index
    %c0_349 = arith.constant 0 : index
    %c0_350 = arith.constant 0 : index
    %1175 = vector.load %arg11[%c0_348, %1174, %c0_349, %c0_350] : memref<2x8x8x64xf32, #tpu.memory_space<vmem>>, vector<1x1x8x64xf32>
    %1176 = vector.shape_cast %1175 : vector<1x1x8x64xf32> to vector<8x64xf32>
    %1177 = vector.shape_cast %1157 : vector<8x64xf32> to vector<1x1x8x64xf32>
    tpu.vector_store %arg11[%c0_348, %1174, %c0_349, %c0_350], %1177 {strides = array<i32>} : memref<2x8x8x64xf32, #tpu.memory_space<vmem>>, vector<1x1x8x64xf32>,
    %c1_351 = arith.constant 1 : index
    %1178 = arith.index_cast %1129 : i32 to index
    %c0_352 = arith.constant 0 : index
    %c0_353 = arith.constant 0 : index
    %1179 = vector.load %arg11[%c1_351, %1178, %c0_352, %c0_353] : memref<2x8x8x64xf32, #tpu.memory_space<vmem>>, vector<1x1x8x64xf32>
    %1180 = vector.shape_cast %1179 : vector<1x1x8x64xf32> to vector<8x64xf32>
    %1181 = vector.shape_cast %1173 : vector<8x64xf32> to vector<1x1x8x64xf32>
    tpu.vector_store %arg11[%c1_351, %1178, %c0_352, %c0_353], %1181 {strides = array<i32>} : memref<2x8x8x64xf32, #tpu.memory_space<vmem>>, vector<1x1x8x64xf32>,
    %1182 = tpu.concatenate %1157, %1173 in 1 : vector<8x64xf32>, vector<8x64xf32> -> vector<8x128xf32>
    %c4_i32_354 = arith.constant 4 : i32
    %1183 = arith.truncf %1182 : vector<8x128xf32> to vector<8x128xbf16>
    %cst_355 = arith.constant dense<0.000000e+00> : vector<8x512xf32>
    %1184 = tpu.matmul %1183, %955, %cst_355 {dimension_numbers = #tpu.dot_dimension_numbers<[1], [0], [0], [1], [0, 0, 1, 1], [], []>} : vector<8x128xbf16>, vector<128x512xbf16>, vector<8x512xf32> -> vector<8x512xf32>
    %c7_i32_356 = arith.constant 7 : i32
    %1185 = arith.subi %c7_i32_356, %c4_i32_354 : i32
    %1186 = arith.index_cast %c4_i32_354 : i32 to index
    %c0_357 = arith.constant 0 : index
    %c0_358 = arith.constant 0 : index
    %1187 = vector.load %arg13[%1186, %c0_357, %c0_358] : memref<8x8x512xf32, #tpu.memory_space<vmem>>, vector<1x8x512xf32>
    %1188 = vector.shape_cast %1187 : vector<1x8x512xf32> to vector<8x512xf32>
    %1189 = vector.extract_strided_slice %1188 {offsets = [0, 0], sizes = [8, 256], strides = [1, 1]} : vector<8x512xf32> to vector<8x256xf32>
    %1190 = vector.extract_strided_slice %1184 {offsets = [0, 0], sizes = [8, 256], strides = [1, 1]} : vector<8x512xf32> to vector<8x256xf32>
    %1191 = arith.addf %1189, %1190 : vector<8x256xf32>
    %1192 = arith.index_cast %1185 : i32 to index
    %c0_359 = arith.constant 0 : index
    %c0_360 = arith.constant 0 : index
    %1193 = vector.load %arg13[%1192, %c0_359, %c0_360] : memref<8x8x512xf32, #tpu.memory_space<vmem>>, vector<1x8x512xf32>
    %1194 = vector.shape_cast %1193 : vector<1x8x512xf32> to vector<8x512xf32>
    %1195 = vector.extract_strided_slice %1194 {offsets = [0, 256], sizes = [8, 256], strides = [1, 1]} : vector<8x512xf32> to vector<8x256xf32>
    %1196 = vector.extract_strided_slice %1184 {offsets = [0, 256], sizes = [8, 256], strides = [1, 1]} : vector<8x512xf32> to vector<8x256xf32>
    %1197 = arith.addf %1195, %1196 : vector<8x256xf32>
    %1198 = vector.extract_strided_slice %1191 {offsets = [0, 0], sizes = [8, 192], strides = [1, 1]} : vector<8x256xf32> to vector<8x192xf32>
    %1199 = arith.negf %1198 : vector<8x192xf32>
    %1200 = math.exp %1199 : vector<8x192xf32>
    %cst_361 = arith.constant 1.000000e+00 : f32
    %1201 = vector.broadcast %cst_361 : f32 to vector<8x192xf32>
    %1202 = arith.addf %1201, %1200 : vector<8x192xf32>
    %1203 = arith.divf %1201, %1202 : vector<8x192xf32>
    %1204 = vector.extract_strided_slice %1203 {offsets = [0, 0], sizes = [8, 64], strides = [1, 1]} : vector<8x192xf32> to vector<8x64xf32>
    %1205 = vector.extract_strided_slice %1203 {offsets = [0, 64], sizes = [8, 64], strides = [1, 1]} : vector<8x192xf32> to vector<8x64xf32>
    %1206 = vector.extract_strided_slice %1203 {offsets = [0, 128], sizes = [8, 64], strides = [1, 1]} : vector<8x192xf32> to vector<8x64xf32>
    %1207 = vector.extract_strided_slice %1191 {offsets = [0, 192], sizes = [8, 64], strides = [1, 1]} : vector<8x256xf32> to vector<8x64xf32>
    %1208 = math.tanh %1207 : vector<8x64xf32>
    %1209 = arith.mulf %1205, %1155 : vector<8x64xf32>
    %1210 = arith.mulf %1204, %1208 : vector<8x64xf32>
    %1211 = arith.addf %1209, %1210 : vector<8x64xf32>
    %1212 = math.tanh %1211 : vector<8x64xf32>
    %1213 = arith.mulf %1206, %1212 : vector<8x64xf32>
    %1214 = vector.extract_strided_slice %1197 {offsets = [0, 0], sizes = [8, 192], strides = [1, 1]} : vector<8x256xf32> to vector<8x192xf32>
    %1215 = arith.negf %1214 : vector<8x192xf32>
    %1216 = math.exp %1215 : vector<8x192xf32>
    %cst_362 = arith.constant 1.000000e+00 : f32
    %1217 = vector.broadcast %cst_362 : f32 to vector<8x192xf32>
    %1218 = arith.addf %1217, %1216 : vector<8x192xf32>
    %1219 = arith.divf %1217, %1218 : vector<8x192xf32>
    %1220 = vector.extract_strided_slice %1219 {offsets = [0, 0], sizes = [8, 64], strides = [1, 1]} : vector<8x192xf32> to vector<8x64xf32>
    %1221 = vector.extract_strided_slice %1219 {offsets = [0, 64], sizes = [8, 64], strides = [1, 1]} : vector<8x192xf32> to vector<8x64xf32>
    %1222 = vector.extract_strided_slice %1219 {offsets = [0, 128], sizes = [8, 64], strides = [1, 1]} : vector<8x192xf32> to vector<8x64xf32>
    %1223 = vector.extract_strided_slice %1197 {offsets = [0, 192], sizes = [8, 64], strides = [1, 1]} : vector<8x256xf32> to vector<8x64xf32>
    %1224 = math.tanh %1223 : vector<8x64xf32>
    %1225 = arith.mulf %1221, %1171 : vector<8x64xf32>
    %1226 = arith.mulf %1220, %1224 : vector<8x64xf32>
    %1227 = arith.addf %1225, %1226 : vector<8x64xf32>
    %1228 = math.tanh %1227 : vector<8x64xf32>
    %1229 = arith.mulf %1222, %1228 : vector<8x64xf32>
    %c0_363 = arith.constant 0 : index
    %1230 = arith.index_cast %c4_i32_354 : i32 to index
    %c0_364 = arith.constant 0 : index
    %c0_365 = arith.constant 0 : index
    %1231 = vector.load %arg11[%c0_363, %1230, %c0_364, %c0_365] : memref<2x8x8x64xf32, #tpu.memory_space<vmem>>, vector<1x1x8x64xf32>
    %1232 = vector.shape_cast %1231 : vector<1x1x8x64xf32> to vector<8x64xf32>
    %1233 = vector.shape_cast %1213 : vector<8x64xf32> to vector<1x1x8x64xf32>
    tpu.vector_store %arg11[%c0_363, %1230, %c0_364, %c0_365], %1233 {strides = array<i32>} : memref<2x8x8x64xf32, #tpu.memory_space<vmem>>, vector<1x1x8x64xf32>,
    %c1_366 = arith.constant 1 : index
    %1234 = arith.index_cast %1185 : i32 to index
    %c0_367 = arith.constant 0 : index
    %c0_368 = arith.constant 0 : index
    %1235 = vector.load %arg11[%c1_366, %1234, %c0_367, %c0_368] : memref<2x8x8x64xf32, #tpu.memory_space<vmem>>, vector<1x1x8x64xf32>
    %1236 = vector.shape_cast %1235 : vector<1x1x8x64xf32> to vector<8x64xf32>
    %1237 = vector.shape_cast %1229 : vector<8x64xf32> to vector<1x1x8x64xf32>
    tpu.vector_store %arg11[%c1_366, %1234, %c0_367, %c0_368], %1237 {strides = array<i32>} : memref<2x8x8x64xf32, #tpu.memory_space<vmem>>, vector<1x1x8x64xf32>,
    %1238 = tpu.concatenate %1213, %1229 in 1 : vector<8x64xf32>, vector<8x64xf32> -> vector<8x128xf32>
    %c5_i32_369 = arith.constant 5 : i32
    %1239 = arith.truncf %1238 : vector<8x128xf32> to vector<8x128xbf16>
    %cst_370 = arith.constant dense<0.000000e+00> : vector<8x512xf32>
    %1240 = tpu.matmul %1239, %955, %cst_370 {dimension_numbers = #tpu.dot_dimension_numbers<[1], [0], [0], [1], [0, 0, 1, 1], [], []>} : vector<8x128xbf16>, vector<128x512xbf16>, vector<8x512xf32> -> vector<8x512xf32>
    %c7_i32_371 = arith.constant 7 : i32
    %1241 = arith.subi %c7_i32_371, %c5_i32_369 : i32
    %1242 = arith.index_cast %c5_i32_369 : i32 to index
    %c0_372 = arith.constant 0 : index
    %c0_373 = arith.constant 0 : index
    %1243 = vector.load %arg13[%1242, %c0_372, %c0_373] : memref<8x8x512xf32, #tpu.memory_space<vmem>>, vector<1x8x512xf32>
    %1244 = vector.shape_cast %1243 : vector<1x8x512xf32> to vector<8x512xf32>
    %1245 = vector.extract_strided_slice %1244 {offsets = [0, 0], sizes = [8, 256], strides = [1, 1]} : vector<8x512xf32> to vector<8x256xf32>
    %1246 = vector.extract_strided_slice %1240 {offsets = [0, 0], sizes = [8, 256], strides = [1, 1]} : vector<8x512xf32> to vector<8x256xf32>
    %1247 = arith.addf %1245, %1246 : vector<8x256xf32>
    %1248 = arith.index_cast %1241 : i32 to index
    %c0_374 = arith.constant 0 : index
    %c0_375 = arith.constant 0 : index
    %1249 = vector.load %arg13[%1248, %c0_374, %c0_375] : memref<8x8x512xf32, #tpu.memory_space<vmem>>, vector<1x8x512xf32>
    %1250 = vector.shape_cast %1249 : vector<1x8x512xf32> to vector<8x512xf32>
    %1251 = vector.extract_strided_slice %1250 {offsets = [0, 256], sizes = [8, 256], strides = [1, 1]} : vector<8x512xf32> to vector<8x256xf32>
    %1252 = vector.extract_strided_slice %1240 {offsets = [0, 256], sizes = [8, 256], strides = [1, 1]} : vector<8x512xf32> to vector<8x256xf32>
    %1253 = arith.addf %1251, %1252 : vector<8x256xf32>
    %1254 = vector.extract_strided_slice %1247 {offsets = [0, 0], sizes = [8, 192], strides = [1, 1]} : vector<8x256xf32> to vector<8x192xf32>
    %1255 = arith.negf %1254 : vector<8x192xf32>
    %1256 = math.exp %1255 : vector<8x192xf32>
    %cst_376 = arith.constant 1.000000e+00 : f32
    %1257 = vector.broadcast %cst_376 : f32 to vector<8x192xf32>
    %1258 = arith.addf %1257, %1256 : vector<8x192xf32>
    %1259 = arith.divf %1257, %1258 : vector<8x192xf32>
    %1260 = vector.extract_strided_slice %1259 {offsets = [0, 0], sizes = [8, 64], strides = [1, 1]} : vector<8x192xf32> to vector<8x64xf32>
    %1261 = vector.extract_strided_slice %1259 {offsets = [0, 64], sizes = [8, 64], strides = [1, 1]} : vector<8x192xf32> to vector<8x64xf32>
    %1262 = vector.extract_strided_slice %1259 {offsets = [0, 128], sizes = [8, 64], strides = [1, 1]} : vector<8x192xf32> to vector<8x64xf32>
    %1263 = vector.extract_strided_slice %1247 {offsets = [0, 192], sizes = [8, 64], strides = [1, 1]} : vector<8x256xf32> to vector<8x64xf32>
    %1264 = math.tanh %1263 : vector<8x64xf32>
    %1265 = arith.mulf %1261, %1211 : vector<8x64xf32>
    %1266 = arith.mulf %1260, %1264 : vector<8x64xf32>
    %1267 = arith.addf %1265, %1266 : vector<8x64xf32>
    %1268 = math.tanh %1267 : vector<8x64xf32>
    %1269 = arith.mulf %1262, %1268 : vector<8x64xf32>
    %1270 = vector.extract_strided_slice %1253 {offsets = [0, 0], sizes = [8, 192], strides = [1, 1]} : vector<8x256xf32> to vector<8x192xf32>
    %1271 = arith.negf %1270 : vector<8x192xf32>
    %1272 = math.exp %1271 : vector<8x192xf32>
    %cst_377 = arith.constant 1.000000e+00 : f32
    %1273 = vector.broadcast %cst_377 : f32 to vector<8x192xf32>
    %1274 = arith.addf %1273, %1272 : vector<8x192xf32>
    %1275 = arith.divf %1273, %1274 : vector<8x192xf32>
    %1276 = vector.extract_strided_slice %1275 {offsets = [0, 0], sizes = [8, 64], strides = [1, 1]} : vector<8x192xf32> to vector<8x64xf32>
    %1277 = vector.extract_strided_slice %1275 {offsets = [0, 64], sizes = [8, 64], strides = [1, 1]} : vector<8x192xf32> to vector<8x64xf32>
    %1278 = vector.extract_strided_slice %1275 {offsets = [0, 128], sizes = [8, 64], strides = [1, 1]} : vector<8x192xf32> to vector<8x64xf32>
    %1279 = vector.extract_strided_slice %1253 {offsets = [0, 192], sizes = [8, 64], strides = [1, 1]} : vector<8x256xf32> to vector<8x64xf32>
    %1280 = math.tanh %1279 : vector<8x64xf32>
    %1281 = arith.mulf %1277, %1227 : vector<8x64xf32>
    %1282 = arith.mulf %1276, %1280 : vector<8x64xf32>
    %1283 = arith.addf %1281, %1282 : vector<8x64xf32>
    %1284 = math.tanh %1283 : vector<8x64xf32>
    %1285 = arith.mulf %1278, %1284 : vector<8x64xf32>
    %c0_378 = arith.constant 0 : index
    %1286 = arith.index_cast %c5_i32_369 : i32 to index
    %c0_379 = arith.constant 0 : index
    %c0_380 = arith.constant 0 : index
    %1287 = vector.load %arg11[%c0_378, %1286, %c0_379, %c0_380] : memref<2x8x8x64xf32, #tpu.memory_space<vmem>>, vector<1x1x8x64xf32>
    %1288 = vector.shape_cast %1287 : vector<1x1x8x64xf32> to vector<8x64xf32>
    %1289 = vector.shape_cast %1269 : vector<8x64xf32> to vector<1x1x8x64xf32>
    tpu.vector_store %arg11[%c0_378, %1286, %c0_379, %c0_380], %1289 {strides = array<i32>} : memref<2x8x8x64xf32, #tpu.memory_space<vmem>>, vector<1x1x8x64xf32>,
    %c1_381 = arith.constant 1 : index
    %1290 = arith.index_cast %1241 : i32 to index
    %c0_382 = arith.constant 0 : index
    %c0_383 = arith.constant 0 : index
    %1291 = vector.load %arg11[%c1_381, %1290, %c0_382, %c0_383] : memref<2x8x8x64xf32, #tpu.memory_space<vmem>>, vector<1x1x8x64xf32>
    %1292 = vector.shape_cast %1291 : vector<1x1x8x64xf32> to vector<8x64xf32>
    %1293 = vector.shape_cast %1285 : vector<8x64xf32> to vector<1x1x8x64xf32>
    tpu.vector_store %arg11[%c1_381, %1290, %c0_382, %c0_383], %1293 {strides = array<i32>} : memref<2x8x8x64xf32, #tpu.memory_space<vmem>>, vector<1x1x8x64xf32>,
    %1294 = tpu.concatenate %1269, %1285 in 1 : vector<8x64xf32>, vector<8x64xf32> -> vector<8x128xf32>
    %c6_i32_384 = arith.constant 6 : i32
    %1295 = arith.truncf %1294 : vector<8x128xf32> to vector<8x128xbf16>
    %cst_385 = arith.constant dense<0.000000e+00> : vector<8x512xf32>
    %1296 = tpu.matmul %1295, %955, %cst_385 {dimension_numbers = #tpu.dot_dimension_numbers<[1], [0], [0], [1], [0, 0, 1, 1], [], []>} : vector<8x128xbf16>, vector<128x512xbf16>, vector<8x512xf32> -> vector<8x512xf32>
    %c7_i32_386 = arith.constant 7 : i32
    %1297 = arith.subi %c7_i32_386, %c6_i32_384 : i32
    %1298 = arith.index_cast %c6_i32_384 : i32 to index
    %c0_387 = arith.constant 0 : index
    %c0_388 = arith.constant 0 : index
    %1299 = vector.load %arg13[%1298, %c0_387, %c0_388] : memref<8x8x512xf32, #tpu.memory_space<vmem>>, vector<1x8x512xf32>
    %1300 = vector.shape_cast %1299 : vector<1x8x512xf32> to vector<8x512xf32>
    %1301 = vector.extract_strided_slice %1300 {offsets = [0, 0], sizes = [8, 256], strides = [1, 1]} : vector<8x512xf32> to vector<8x256xf32>
    %1302 = vector.extract_strided_slice %1296 {offsets = [0, 0], sizes = [8, 256], strides = [1, 1]} : vector<8x512xf32> to vector<8x256xf32>
    %1303 = arith.addf %1301, %1302 : vector<8x256xf32>
    %1304 = arith.index_cast %1297 : i32 to index
    %c0_389 = arith.constant 0 : index
    %c0_390 = arith.constant 0 : index
    %1305 = vector.load %arg13[%1304, %c0_389, %c0_390] : memref<8x8x512xf32, #tpu.memory_space<vmem>>, vector<1x8x512xf32>
    %1306 = vector.shape_cast %1305 : vector<1x8x512xf32> to vector<8x512xf32>
    %1307 = vector.extract_strided_slice %1306 {offsets = [0, 256], sizes = [8, 256], strides = [1, 1]} : vector<8x512xf32> to vector<8x256xf32>
    %1308 = vector.extract_strided_slice %1296 {offsets = [0, 256], sizes = [8, 256], strides = [1, 1]} : vector<8x512xf32> to vector<8x256xf32>
    %1309 = arith.addf %1307, %1308 : vector<8x256xf32>
    %1310 = vector.extract_strided_slice %1303 {offsets = [0, 0], sizes = [8, 192], strides = [1, 1]} : vector<8x256xf32> to vector<8x192xf32>
    %1311 = arith.negf %1310 : vector<8x192xf32>
    %1312 = math.exp %1311 : vector<8x192xf32>
    %cst_391 = arith.constant 1.000000e+00 : f32
    %1313 = vector.broadcast %cst_391 : f32 to vector<8x192xf32>
    %1314 = arith.addf %1313, %1312 : vector<8x192xf32>
    %1315 = arith.divf %1313, %1314 : vector<8x192xf32>
    %1316 = vector.extract_strided_slice %1315 {offsets = [0, 0], sizes = [8, 64], strides = [1, 1]} : vector<8x192xf32> to vector<8x64xf32>
    %1317 = vector.extract_strided_slice %1315 {offsets = [0, 64], sizes = [8, 64], strides = [1, 1]} : vector<8x192xf32> to vector<8x64xf32>
    %1318 = vector.extract_strided_slice %1315 {offsets = [0, 128], sizes = [8, 64], strides = [1, 1]} : vector<8x192xf32> to vector<8x64xf32>
    %1319 = vector.extract_strided_slice %1303 {offsets = [0, 192], sizes = [8, 64], strides = [1, 1]} : vector<8x256xf32> to vector<8x64xf32>
    %1320 = math.tanh %1319 : vector<8x64xf32>
    %1321 = arith.mulf %1317, %1267 : vector<8x64xf32>
    %1322 = arith.mulf %1316, %1320 : vector<8x64xf32>
    %1323 = arith.addf %1321, %1322 : vector<8x64xf32>
    %1324 = math.tanh %1323 : vector<8x64xf32>
    %1325 = arith.mulf %1318, %1324 : vector<8x64xf32>
    %1326 = vector.extract_strided_slice %1309 {offsets = [0, 0], sizes = [8, 192], strides = [1, 1]} : vector<8x256xf32> to vector<8x192xf32>
    %1327 = arith.negf %1326 : vector<8x192xf32>
    %1328 = math.exp %1327 : vector<8x192xf32>
    %cst_392 = arith.constant 1.000000e+00 : f32
    %1329 = vector.broadcast %cst_392 : f32 to vector<8x192xf32>
    %1330 = arith.addf %1329, %1328 : vector<8x192xf32>
    %1331 = arith.divf %1329, %1330 : vector<8x192xf32>
    %1332 = vector.extract_strided_slice %1331 {offsets = [0, 0], sizes = [8, 64], strides = [1, 1]} : vector<8x192xf32> to vector<8x64xf32>
    %1333 = vector.extract_strided_slice %1331 {offsets = [0, 64], sizes = [8, 64], strides = [1, 1]} : vector<8x192xf32> to vector<8x64xf32>
    %1334 = vector.extract_strided_slice %1331 {offsets = [0, 128], sizes = [8, 64], strides = [1, 1]} : vector<8x192xf32> to vector<8x64xf32>
    %1335 = vector.extract_strided_slice %1309 {offsets = [0, 192], sizes = [8, 64], strides = [1, 1]} : vector<8x256xf32> to vector<8x64xf32>
    %1336 = math.tanh %1335 : vector<8x64xf32>
    %1337 = arith.mulf %1333, %1283 : vector<8x64xf32>
    %1338 = arith.mulf %1332, %1336 : vector<8x64xf32>
    %1339 = arith.addf %1337, %1338 : vector<8x64xf32>
    %1340 = math.tanh %1339 : vector<8x64xf32>
    %1341 = arith.mulf %1334, %1340 : vector<8x64xf32>
    %c0_393 = arith.constant 0 : index
    %1342 = arith.index_cast %c6_i32_384 : i32 to index
    %c0_394 = arith.constant 0 : index
    %c0_395 = arith.constant 0 : index
    %1343 = vector.load %arg11[%c0_393, %1342, %c0_394, %c0_395] : memref<2x8x8x64xf32, #tpu.memory_space<vmem>>, vector<1x1x8x64xf32>
    %1344 = vector.shape_cast %1343 : vector<1x1x8x64xf32> to vector<8x64xf32>
    %1345 = vector.shape_cast %1325 : vector<8x64xf32> to vector<1x1x8x64xf32>
    tpu.vector_store %arg11[%c0_393, %1342, %c0_394, %c0_395], %1345 {strides = array<i32>} : memref<2x8x8x64xf32, #tpu.memory_space<vmem>>, vector<1x1x8x64xf32>,
    %c1_396 = arith.constant 1 : index
    %1346 = arith.index_cast %1297 : i32 to index
    %c0_397 = arith.constant 0 : index
    %c0_398 = arith.constant 0 : index
    %1347 = vector.load %arg11[%c1_396, %1346, %c0_397, %c0_398] : memref<2x8x8x64xf32, #tpu.memory_space<vmem>>, vector<1x1x8x64xf32>
    %1348 = vector.shape_cast %1347 : vector<1x1x8x64xf32> to vector<8x64xf32>
    %1349 = vector.shape_cast %1341 : vector<8x64xf32> to vector<1x1x8x64xf32>
    tpu.vector_store %arg11[%c1_396, %1346, %c0_397, %c0_398], %1349 {strides = array<i32>} : memref<2x8x8x64xf32, #tpu.memory_space<vmem>>, vector<1x1x8x64xf32>,
    %1350 = tpu.concatenate %1325, %1341 in 1 : vector<8x64xf32>, vector<8x64xf32> -> vector<8x128xf32>
    %c7_i32_399 = arith.constant 7 : i32
    %1351 = arith.truncf %1350 : vector<8x128xf32> to vector<8x128xbf16>
    %cst_400 = arith.constant dense<0.000000e+00> : vector<8x512xf32>
    %1352 = tpu.matmul %1351, %955, %cst_400 {dimension_numbers = #tpu.dot_dimension_numbers<[1], [0], [0], [1], [0, 0, 1, 1], [], []>} : vector<8x128xbf16>, vector<128x512xbf16>, vector<8x512xf32> -> vector<8x512xf32>
    %c7_i32_401 = arith.constant 7 : i32
    %1353 = arith.subi %c7_i32_401, %c7_i32_399 : i32
    %1354 = arith.index_cast %c7_i32_399 : i32 to index
    %c0_402 = arith.constant 0 : index
    %c0_403 = arith.constant 0 : index
    %1355 = vector.load %arg13[%1354, %c0_402, %c0_403] : memref<8x8x512xf32, #tpu.memory_space<vmem>>, vector<1x8x512xf32>
    %1356 = vector.shape_cast %1355 : vector<1x8x512xf32> to vector<8x512xf32>
    %1357 = vector.extract_strided_slice %1356 {offsets = [0, 0], sizes = [8, 256], strides = [1, 1]} : vector<8x512xf32> to vector<8x256xf32>
    %1358 = vector.extract_strided_slice %1352 {offsets = [0, 0], sizes = [8, 256], strides = [1, 1]} : vector<8x512xf32> to vector<8x256xf32>
    %1359 = arith.addf %1357, %1358 : vector<8x256xf32>
    %1360 = arith.index_cast %1353 : i32 to index
    %c0_404 = arith.constant 0 : index
    %c0_405 = arith.constant 0 : index
    %1361 = vector.load %arg13[%1360, %c0_404, %c0_405] : memref<8x8x512xf32, #tpu.memory_space<vmem>>, vector<1x8x512xf32>
    %1362 = vector.shape_cast %1361 : vector<1x8x512xf32> to vector<8x512xf32>
    %1363 = vector.extract_strided_slice %1362 {offsets = [0, 256], sizes = [8, 256], strides = [1, 1]} : vector<8x512xf32> to vector<8x256xf32>
    %1364 = vector.extract_strided_slice %1352 {offsets = [0, 256], sizes = [8, 256], strides = [1, 1]} : vector<8x512xf32> to vector<8x256xf32>
    %1365 = arith.addf %1363, %1364 : vector<8x256xf32>
    %1366 = vector.extract_strided_slice %1359 {offsets = [0, 0], sizes = [8, 192], strides = [1, 1]} : vector<8x256xf32> to vector<8x192xf32>
    %1367 = arith.negf %1366 : vector<8x192xf32>
    %1368 = math.exp %1367 : vector<8x192xf32>
    %cst_406 = arith.constant 1.000000e+00 : f32
    %1369 = vector.broadcast %cst_406 : f32 to vector<8x192xf32>
    %1370 = arith.addf %1369, %1368 : vector<8x192xf32>
    %1371 = arith.divf %1369, %1370 : vector<8x192xf32>
    %1372 = vector.extract_strided_slice %1371 {offsets = [0, 0], sizes = [8, 64], strides = [1, 1]} : vector<8x192xf32> to vector<8x64xf32>
    %1373 = vector.extract_strided_slice %1371 {offsets = [0, 64], sizes = [8, 64], strides = [1, 1]} : vector<8x192xf32> to vector<8x64xf32>
    %1374 = vector.extract_strided_slice %1371 {offsets = [0, 128], sizes = [8, 64], strides = [1, 1]} : vector<8x192xf32> to vector<8x64xf32>
    %1375 = vector.extract_strided_slice %1359 {offsets = [0, 192], sizes = [8, 64], strides = [1, 1]} : vector<8x256xf32> to vector<8x64xf32>
    %1376 = math.tanh %1375 : vector<8x64xf32>
    %1377 = arith.mulf %1373, %1323 : vector<8x64xf32>
    %1378 = arith.mulf %1372, %1376 : vector<8x64xf32>
    %1379 = arith.addf %1377, %1378 : vector<8x64xf32>
    %1380 = math.tanh %1379 : vector<8x64xf32>
    %1381 = arith.mulf %1374, %1380 : vector<8x64xf32>
    %1382 = vector.extract_strided_slice %1365 {offsets = [0, 0], sizes = [8, 192], strides = [1, 1]} : vector<8x256xf32> to vector<8x192xf32>
    %1383 = arith.negf %1382 : vector<8x192xf32>
    %1384 = math.exp %1383 : vector<8x192xf32>
    %cst_407 = arith.constant 1.000000e+00 : f32
    %1385 = vector.broadcast %cst_407 : f32 to vector<8x192xf32>
    %1386 = arith.addf %1385, %1384 : vector<8x192xf32>
    %1387 = arith.divf %1385, %1386 : vector<8x192xf32>
    %1388 = vector.extract_strided_slice %1387 {offsets = [0, 0], sizes = [8, 64], strides = [1, 1]} : vector<8x192xf32> to vector<8x64xf32>
    %1389 = vector.extract_strided_slice %1387 {offsets = [0, 64], sizes = [8, 64], strides = [1, 1]} : vector<8x192xf32> to vector<8x64xf32>
    %1390 = vector.extract_strided_slice %1387 {offsets = [0, 128], sizes = [8, 64], strides = [1, 1]} : vector<8x192xf32> to vector<8x64xf32>
    %1391 = vector.extract_strided_slice %1365 {offsets = [0, 192], sizes = [8, 64], strides = [1, 1]} : vector<8x256xf32> to vector<8x64xf32>
    %1392 = math.tanh %1391 : vector<8x64xf32>
    %1393 = arith.mulf %1389, %1339 : vector<8x64xf32>
    %1394 = arith.mulf %1388, %1392 : vector<8x64xf32>
    %1395 = arith.addf %1393, %1394 : vector<8x64xf32>
    %1396 = math.tanh %1395 : vector<8x64xf32>
    %1397 = arith.mulf %1390, %1396 : vector<8x64xf32>
    %c0_408 = arith.constant 0 : index
    %1398 = arith.index_cast %c7_i32_399 : i32 to index
    %c0_409 = arith.constant 0 : index
    %c0_410 = arith.constant 0 : index
    %1399 = vector.load %arg11[%c0_408, %1398, %c0_409, %c0_410] : memref<2x8x8x64xf32, #tpu.memory_space<vmem>>, vector<1x1x8x64xf32>
    %1400 = vector.shape_cast %1399 : vector<1x1x8x64xf32> to vector<8x64xf32>
    %1401 = vector.shape_cast %1381 : vector<8x64xf32> to vector<1x1x8x64xf32>
    tpu.vector_store %arg11[%c0_408, %1398, %c0_409, %c0_410], %1401 {strides = array<i32>} : memref<2x8x8x64xf32, #tpu.memory_space<vmem>>, vector<1x1x8x64xf32>,
    %c1_411 = arith.constant 1 : index
    %1402 = arith.index_cast %1353 : i32 to index
    %c0_412 = arith.constant 0 : index
    %c0_413 = arith.constant 0 : index
    %1403 = vector.load %arg11[%c1_411, %1402, %c0_412, %c0_413] : memref<2x8x8x64xf32, #tpu.memory_space<vmem>>, vector<1x1x8x64xf32>
    %1404 = vector.shape_cast %1403 : vector<1x1x8x64xf32> to vector<8x64xf32>
    %1405 = vector.shape_cast %1397 : vector<8x64xf32> to vector<1x1x8x64xf32>
    tpu.vector_store %arg11[%c1_411, %1402, %c0_412, %c0_413], %1405 {strides = array<i32>} : memref<2x8x8x64xf32, #tpu.memory_space<vmem>>, vector<1x1x8x64xf32>,
    %1406 = tpu.concatenate %1381, %1397 in 1 : vector<8x64xf32>, vector<8x64xf32> -> vector<8x128xf32>
    %c8_i32_414 = arith.constant 8 : i32
    %c0_415 = arith.constant 0 : index
    %c0_416 = arith.constant 0 : index
    %c0_417 = arith.constant 0 : index
    %c0_418 = arith.constant 0 : index
    %1407 = vector.load %arg11[%c0_415, %c0_416, %c0_417, %c0_418] : memref<2x8x8x64xf32, #tpu.memory_space<vmem>>, vector<1x8x8x64xf32>
    %1408 = vector.shape_cast %1407 : vector<1x8x8x64xf32> to vector<8x8x64xf32>
    %cst_419 = arith.constant dense<0.000000e+00> : vector<8x64xf32>
    %1409 = vector.multi_reduction <add>, %1408, %cst_419 [0] : vector<8x8x64xf32> to vector<8x64xf32>
    %cst_420 = arith.constant 8.000000e+00 : f32
    %1410 = vector.broadcast %cst_420 : f32 to vector<8x64xf32>
    %1411 = arith.divf %1409, %1410 : vector<8x64xf32>
    %c1_421 = arith.constant 1 : index
    %c0_422 = arith.constant 0 : index
    %c0_423 = arith.constant 0 : index
    %c0_424 = arith.constant 0 : index
    %1412 = vector.load %arg11[%c1_421, %c0_422, %c0_423, %c0_424] : memref<2x8x8x64xf32, #tpu.memory_space<vmem>>, vector<1x8x8x64xf32>
    %1413 = vector.shape_cast %1412 : vector<1x8x8x64xf32> to vector<8x8x64xf32>
    %cst_425 = arith.constant dense<0.000000e+00> : vector<8x64xf32>
    %1414 = vector.multi_reduction <add>, %1413, %cst_425 [0] : vector<8x8x64xf32> to vector<8x64xf32>
    %cst_426 = arith.constant 8.000000e+00 : f32
    %1415 = vector.broadcast %cst_426 : f32 to vector<8x64xf32>
    %1416 = arith.divf %1414, %1415 : vector<8x64xf32>
    %1417 = tpu.concatenate %1411, %1416 in 1 : vector<8x64xf32>, vector<8x64xf32> -> vector<8x128xf32>
    %c0_427 = arith.constant 0 : index
    %c0_428 = arith.constant 0 : index
    %1418 = vector.load %arg6[%c0_427, %c0_428] : memref<128x64xf32, #tpu.memory_space<vmem>>, vector<128x64xf32>
    %cst_429 = arith.constant dense<0.000000e+00> : vector<8x64xf32>
    %1419 = tpu.matmul %1417, %1418, %cst_429 {dimension_numbers = #tpu.dot_dimension_numbers<[1], [0], [0], [1], [0, 0, 1, 1], [], []>} : vector<8x128xf32>, vector<128x64xf32>, vector<8x64xf32> -> vector<8x64xf32>
    %c0_430 = arith.constant 0 : index
    %c0_431 = arith.constant 0 : index
    %1420 = vector.load %arg7[%c0_430, %c0_431] : memref<1x64xf32, #tpu.memory_space<vmem>>, vector<1x64xf32>
    %1421 = vector.broadcast %1420 : vector<1x64xf32> to vector<8x64xf32>
    %1422 = arith.addf %1419, %1421 : vector<8x64xf32>
    %cst_432 = arith.constant 0.000000e+00 : f32
    %1423 = vector.broadcast %cst_432 : f32 to vector<8x64xf32>
    %1424 = arith.maximumf %1422, %1423 : vector<8x64xf32>
    %c0_433 = arith.constant 0 : index
    %c0_434 = arith.constant 0 : index
    %1425 = vector.load %arg8[%c0_433, %c0_434] : memref<64x128xf32, #tpu.memory_space<vmem>>, vector<64x128xf32>
    %cst_435 = arith.constant dense<0.000000e+00> : vector<8x128xf32>
    %1426 = tpu.matmul %1424, %1425, %cst_435 {dimension_numbers = #tpu.dot_dimension_numbers<[1], [0], [0], [1], [0, 0, 1, 1], [], []>} : vector<8x64xf32>, vector<64x128xf32>, vector<8x128xf32> -> vector<8x128xf32>
    %c0_436 = arith.constant 0 : index
    %c0_437 = arith.constant 0 : index
    %1427 = vector.load %arg9[%c0_436, %c0_437] : memref<1x128xf32, #tpu.memory_space<vmem>>, vector<1x128xf32>
    %1428 = vector.broadcast %1427 : vector<1x128xf32> to vector<8x128xf32>
    %1429 = arith.addf %1426, %1428 : vector<8x128xf32>
    %c0_438 = arith.constant 0 : index
    %c0_439 = arith.constant 0 : index
    %1430 = vector.load %arg10[%c0_438, %c0_439] : memref<8x128xf32, #tpu.memory_space<vmem>>, vector<8x128xf32>
    tpu.vector_store %arg10[%c0_438, %c0_439], %1429 {strides = array<i32>} : memref<8x128xf32, #tpu.memory_space<vmem>>, vector<8x128xf32>,
    return
  }
  func.func @transform_0(%arg0: i32) -> (i32, i32, i32) {
    %c0_i32 = arith.constant 0 : i32
    %c0_i32_0 = arith.constant 0 : i32
    %c0_i32_1 = arith.constant 0 : i32
    return %arg0, %c0_i32, %c0_i32_0 : i32, i32, i32
  }
  func.func @transform_1(%arg0: i32) -> (i32, i32) {
    %c0_i32 = arith.constant 0 : i32
    %c0_i32_0 = arith.constant 0 : i32
    %c0_i32_1 = arith.constant 0 : i32
    return %c0_i32, %c0_i32_0 : i32, i32
  }
  func.func @transform_2(%arg0: i32) -> (i32, i32, i32) {
    %c0_i32 = arith.constant 0 : i32
    %c0_i32_0 = arith.constant 0 : i32
    %c0_i32_1 = arith.constant 0 : i32
    %c0_i32_2 = arith.constant 0 : i32
    return %c0_i32, %c0_i32_0, %c0_i32_1 : i32, i32, i32
  }
  func.func @transform_3(%arg0: i32) -> (i32, i32, i32) {
    %c0_i32 = arith.constant 0 : i32
    %c0_i32_0 = arith.constant 0 : i32
    %c0_i32_1 = arith.constant 0 : i32
    %c0_i32_2 = arith.constant 0 : i32
    return %c0_i32, %c0_i32_0, %c0_i32_1 : i32, i32, i32
  }
  func.func @transform_4(%arg0: i32) -> (i32, i32, i32) {
    %c0_i32 = arith.constant 0 : i32
    %c0_i32_0 = arith.constant 0 : i32
    %c0_i32_1 = arith.constant 0 : i32
    %c0_i32_2 = arith.constant 0 : i32
    return %c0_i32, %c0_i32_0, %c0_i32_1 : i32, i32, i32
  }
  func.func @transform_5(%arg0: i32) -> (i32, i32) {
    %c0_i32 = arith.constant 0 : i32
    %c0_i32_0 = arith.constant 0 : i32
    %c0_i32_1 = arith.constant 0 : i32
    return %c0_i32, %c0_i32_0 : i32, i32
  }
  func.func @transform_6(%arg0: i32) -> (i32, i32) {
    %c0_i32 = arith.constant 0 : i32
    %c0_i32_0 = arith.constant 0 : i32
    %c0_i32_1 = arith.constant 0 : i32
    return %c0_i32, %c0_i32_0 : i32, i32
  }
  func.func @transform_7(%arg0: i32) -> (i32, i32) {
    %c0_i32 = arith.constant 0 : i32
    %c0_i32_0 = arith.constant 0 : i32
    %c0_i32_1 = arith.constant 0 : i32
    return %c0_i32, %c0_i32_0 : i32, i32
  }
  func.func @transform_8(%arg0: i32) -> (i32, i32) {
    %c0_i32 = arith.constant 0 : i32
    %c0_i32_0 = arith.constant 0 : i32
    %c0_i32_1 = arith.constant 0 : i32
    return %c0_i32, %c0_i32_0 : i32, i32
  }
  func.func @transform_9(%arg0: i32) -> (i32, i32) {
    %c0_i32 = arith.constant 0 : i32
    %c0_i32_0 = arith.constant 0 : i32
    return %arg0, %c0_i32 : i32, i32
  }
}

</mosaic_0001>

<bundles_post_ra>
// kernel: siamese_forward.1
= control target key start
LH: loop header
LB: loop body
LE: loop exit
PB: predicated region body
PF: predicated region fallthrough
CT: control target
= control target key end

     0   :  { %14 = vsyncpa [#allocation6], 0  ;;  %s9432_s0 = inlined_call_operand.vmem [shape: f32[1,8,8], index: 0, kind: input, shape index: {}]   ;;  %s9433_s1 = inlined_call_operand.vmem [shape: f32[1,512], index: 1, kind: input, shape index: {}]   ;;  %s9434_s2 = inlined_call_operand.hbm [shape: bf16[2,128,512], index: 2, kind: input, shape index: {}]   ;;  %s9435_s3 = inlined_call_operand.hbm [shape: bf16[3,128,512], index: 3, kind: input, shape index: {}]   ;;  %s9436_s4 = inlined_call_operand.vmem [shape: f32[3,1,512], index: 4, kind: input, shape index: {}]   ;;  %s9437_s5 = inlined_call_operand.vmem [shape: f32[128,64], index: 5, kind: input, shape index: {}]   ;;  %s9438_s6 = inlined_call_operand.vmem [shape: f32[1,64], index: 6, kind: input, shape index: {}]   ;;  %s9439_s7 = inlined_call_operand.vmem [shape: f32[64,128], index: 7, kind: input, shape index: {}]   ;;  %s9440_s8 = inlined_call_operand.vmem [shape: f32[1,128], index: 8, kind: input, shape index: {}]   ;;  %s9441_s9 = inlined_call_operand.vmem [shape: f32[8,128], index: 9, kind: output, shape index: {}]  }
   0x1   :  { %15 = vsyncpa [#allocation8], 0  ;;  %s7144_s30 = smov [#allocation5]  }
   0x2   :  { %s25_s10 = sshll.u32 %s7144_s30, 4  ;;  %s26_s10 = int_to_ptr.vmem [resolvable:$true] %s25_s10 }
   0x3   :  { %s7108_s11 = scalar_lea.vmem %s26_s10, 8192  ;;  %p7113_p1 = scmp.lt.s32.totalorder %s26_s10, %s26_s10 }
   0x4   :  { %p7109_p0 = scmp.ne.s32.totalorder %s26_s10, %s7108_s11  ;;  %p7114_p2 = scmp.lt.s32.totalorder %s7108_s11, %s7108_s11 }
   0x6   :  { %p7115_p3 = por %p7114_p2, %p7113_p1 }
   0x8   :  { %p7116_p4 = pnand %p7115_p3, %p7109_p0 }
   0xa   :  { %7119 = shalt.err (!%p7116_p4)
}
   0xb   :  { %s7145_s12 = smov 256   ;;  %s7146_s13 = smov 16  }
   0xc   :  { %31 = dma.hbm_to_vmem [thread:$0]  %s9434_s2, 8192, %s26_s10, [#allocation6], %s7145_s12, %s7145_s12, %s7146_s13  }
   0xd   :  { %s7147_s16 = smov [#allocation7]  }
   0xe   :  { %s37_s17 = sshll.u32 %s7147_s16, 4  ;;  %s38_s17 = int_to_ptr.vmem [resolvable:$true] %s37_s17 }
   0xf   :  { %s7128_s18 = scalar_lea.vmem %s38_s17, 12288  ;;  %p7133_p6 = scmp.lt.s32.totalorder %s38_s17, %s38_s17 }
  0x10   :  { %p7129_p5 = scmp.ne.s32.totalorder %s38_s17, %s7128_s18  ;;  %p7134_p7 = scmp.lt.s32.totalorder %s7128_s18, %s7128_s18 }
  0x12   :  { %p7135_p8 = por %p7134_p7, %p7133_p6 }
  0x14   :  { %p7136_p9 = pnand %p7135_p8, %p7129_p5 }
  0x16   :  { %7139 = shalt.err (!%p7136_p9)
}
  0x17   :  { %43 = dma.hbm_to_vmem [thread:$0]  %s9435_s3, 12288, %s38_s17, [#allocation8], %s7145_s12, %s7145_s12, %s7146_s13  }
  0x18   :  { %7140 = dma.done.wait [#allocation6], 8192  }
  0x19   :  { %7141 = vsyncadd [#allocation6], 4294959104 }
  0x1a   :  { %7142 = dma.done.wait [#allocation8], 12288  }
  0x1b   :  { %7143 = vsyncadd [#allocation8], 4294955008  ;;  %v9442_v0 = vmov 0   ;;  %v7210_v1 = vld [vmem:[#allocation7 + $0xec] ss:$16 sps:$4 sm:$0xff]   ;;  %v63_v15 = vlaneseq  ;;  %v7292_v31 = vld [vmem:[%s9432_s0] sm:$0xff] }
  0x1c   :  { %523 = vmatprep.mubr.bf16.mxu1 %v9442_v0  ;;  %482 = vmatprep.mubr.bf16.mxu0 %v9442_v0  ;;  %v7212_v2 = vld [vmem:[#allocation7 + $0xe8] ss:$16 sps:$4 sm:$0xff]   ;;  %v7215_v3 = vld [vmem:[#allocation7 + $0xe4] ss:$16 sps:$4 sm:$0xff]   ;;  %v7218_v4 = vld [vmem:[#allocation7 + $0xcc] ss:$16 sps:$4 sm:$0xff]  }
  0x1d   :  { %491 = vmatprep.subr.bf16.mxu1 %v7210_v1  ;;  %v7220_v5 = vld [vmem:[#allocation7 + $0xe0] ss:$16 sps:$4 sm:$0xff]   ;;  %v7222_v6 = vld [vmem:[#allocation7 + $0xc8] ss:$16 sps:$4 sm:$0xff]   ;;  %450 = vmatprep.subr.bf16.mxu0 %v7215_v3  ;;  %v7225_v7 = vld [vmem:[#allocation7 + $0xc4] ss:$16 sps:$4 sm:$0xff]  }
  0x1e   :  { %492 = vmatpush1.bf16.msra.mxu1 %v7212_v2  ;;  %451 = vmatpush1.bf16.msra.mxu0 %v7220_v5  ;;  %v7229_v8 = vld [vmem:[#allocation7 + $0xac] ss:$16 sps:$4 sm:$0xff]   ;;  %v7232_v9 = vld [vmem:[#allocation7 + $0xc0] ss:$16 sps:$4 sm:$0xff]   ;;  %v7234_v10 = vld [vmem:[#allocation7 + $0xa8] ss:$16 sps:$4 sm:$0xff]  }
  0x1f   :  { %493 = vmatprep.subr.bf16.mxu1 %v7218_v4  ;;  %452 = vmatprep.subr.bf16.mxu0 %v7225_v7  ;;  %v7237_v11 = vld [vmem:[#allocation7 + $0xa4] ss:$16 sps:$4 sm:$0xff]   ;;  %v7240_v12 = vld [vmem:[#allocation7 + $0x8c] ss:$16 sps:$4 sm:$0xff]   ;;  %v7243_v13 = vld [vmem:[#allocation7 + $0xa0] ss:$16 sps:$4 sm:$0xff]  }
  0x20   :  { %v7246_v14 = vld [vmem:[#allocation7 + $0x84] ss:$16 sps:$4 sm:$0xff]   ;;  %v7249_v16 = vld [vmem:[#allocation7 + $0x88] ss:$16 sps:$4 sm:$0xff]   ;;  %v7252_v17 = vld [vmem:[#allocation7 + $0x6c] ss:$16 sps:$4 sm:$0xff]  }
  0x21   :  { %v7255_v18 = vld [vmem:[#allocation7 + $0x80] ss:$16 sps:$4 sm:$0xff]   ;;  %v7258_v19 = vld [vmem:[#allocation7 + $0x64] ss:$16 sps:$4 sm:$0xff]   ;;  %v7260_v20 = vshrl.u32 %v63_v15, 7  ;;  %s7149_s24 = smov 64  }
  0x22   :  { %494 = vmatpush1.bf16.msra.mxu1 %v7222_v6  ;;  %453 = vmatpush1.bf16.msra.mxu0 %v7232_v9  ;;  %v7263_v21 = vld [vmem:[#allocation7 + $0x68] ss:$16 sps:$4 sm:$0xff]   ;;  %v7266_v22 = vld [vmem:[#allocation7 + $0x4c] ss:$16 sps:$4 sm:$0xff]   ;;  %v7269_v23 = vld [vmem:[#allocation7 + $0x60] ss:$16 sps:$4 sm:$0xff]  }
  0x23   :  { %495 = vmatprep.subr.bf16.mxu1 %v7229_v8  ;;  %454 = vmatprep.subr.bf16.mxu0 %v7237_v11  ;;  %v7272_v24 = vld [vmem:[#allocation7 + $0x44] ss:$16 sps:$4 sm:$0xff]   ;;  %v114_v25 = vsub.s32 7, %v7260_v20  ;;  %v7276_v26 = vld [vmem:[#allocation7 + $0x48] ss:$16 sps:$4 sm:$0xff]   ;;  %v7282_v28 = vsub.s32 0, %v7260_v20 }
  0x24   :  { %v7279_v27 = vld [vmem:[#allocation7 + $0x2c] ss:$16 sps:$4 sm:$0xff]   ;;  %v7285_v29 = vld [vmem:[#allocation7 + $0x40] ss:$16 sps:$4 sm:$0xff]   ;;  %v7287_v30 = vld [vmem:[#allocation7 + $0x28] ss:$16 sps:$4 sm:$0xff]  }
  0x25   :  { %9469 = vst [vmem:[#allocation11_spill] sm:$0xff] %v7282_v28  ;;  %v7295_v32 = vld [vmem:[#allocation7 + $0x24] ss:$16 sps:$4 sm:$0xff]   ;;  %v7297_v33 = vld [vmem:[#allocation7 + $0xc] ss:$16 sps:$4 sm:$0xff]   ;;  %v115_v34 = vrot.slane %v7292_v31, %v114_v25  ;;  %v66_v39 = vrot.slane %v7292_v31, %v7282_v28  ;;  %v7368_v42 = vsub.s32 3, %v7260_v20 }
  0x26   :  { %496 = vmatpush1.bf16.msra.mxu1 %v7234_v10  ;;  %455 = vmatpush1.bf16.msra.mxu0 %v7243_v13  ;;  %v7303_v35 = vld [vmem:[%s9433_s1] sm:$0xf]  ;;  %v7313_v38 = vld [vmem:[#allocation7 + $0x4] ss:$16 sps:$4 sm:$0xff]   ;;  %v7318_v40 = vld [vmem:[#allocation7 + $0x8] ss:$16 sps:$4 sm:$0xff]  }
  0x27   :  { %497 = vmatprep.subr.bf16.mxu1 %v7240_v12  ;;  %456 = vmatprep.subr.bf16.mxu0 %v7246_v14  ;;  %v7306_v36 = vld [vmem:[#allocation7 + $0x20] ss:$16 sps:$4 sm:$0xff]   ;;  %v7310_v37 = vrot.slane %v7303_v35, %v7282_v28  ;;  %9471 = vst [vmem:[#allocation13_spill] sm:$0xff] %v7368_v42  ;;  %v7372_v43 = vrot.slane %v7303_v35, %v7368_v42  ;;  %v7377_v45 = vsub.s32 1, %v7260_v20  ;;  %vm601_vm0 = vcmask 523264  }
  0x28   :  { %117 = vbcast.lane.b32.xlu0 %v115_v34, 256  ;;  %v7322_v41 = vld [vmem:[#allocation7] ss:$16 sps:$4 sm:$0xff]   ;;  %vm7151_vm1 = vmmov 0  }
  0x29   :  { %9470 = vst [vmem:[#allocation12_spill] sm:$0xff] %v7310_v37  ;;  %9473 = vst [vmem:[#allocation15_spill] sm:$0xff] %v7377_v45  ;;  %v62_v46 = vld [vmem:[%s9436_s4] sm:$0xf]  ;;  %v7391_v50 = vrot.slane %v7303_v35, %v7377_v45 }
  0x2a   :  { %498 = vmatpush1.bf16.msra.mxu1 %v7249_v16  ;;  %457 = vmatpush1.bf16.msra.mxu0 %v7255_v18  ;;  %v7385_v48 = vrot.slane %v62_v46, %v7368_v42  ;;  %v7397_v54 = vrot.slane %v62_v46, %v7377_v45 }
  0x2b   :  { %499 = vmatprep.subr.bf16.mxu1 %v7252_v17  ;;  %458 = vmatprep.subr.bf16.mxu0 %v7258_v19 }
  0x2c   :  { %68 = vbcast.lane.b32.xlu0 %v66_v39, 256  ;;  %v7403_v39 = vsub.s32 2, %v7260_v20 }
  0x2e   :  { %500 = vmatpush1.bf16.msra.mxu1 %v7263_v21  ;;  %459 = vmatpush1.bf16.msra.mxu0 %v7269_v23  ;;  %9475 = vst [vmem:[#allocation17_spill] sm:$0xff] %v7403_v39 }
  0x2f   :  { %501 = vmatprep.subr.bf16.mxu1 %v7266_v22  ;;  %460 = vmatprep.subr.bf16.mxu0 %v7272_v24 }
  0x32   :  { %502 = vmatpush1.bf16.msra.mxu1 %v7276_v26  ;;  %461 = vmatpush1.bf16.msra.mxu0 %v7285_v29 }
  0x33   :  { %503 = vmatprep.subr.bf16.mxu1 %v7279_v27  ;;  %462 = vmatprep.subr.bf16.mxu0 %v7295_v32 }
  0x36   :  { %504 = vmatpush1.bf16.msra.mxu1 %v7287_v30  ;;  %463 = vmatpush1.bf16.msra.mxu0 %v7306_v36 }
  0x37   :  { %505 = vmatprep.subr.bf16.mxu1 %v7297_v33  ;;  %464 = vmatprep.subr.bf16.mxu0 %v7313_v38 }
  0x3a   :  { %506 = vmatpush1.bf16.msra.mxu1 %v7318_v40  ;;  %465 = vmatpush1.bf16.msra.mxu0 %v7322_v41 }
  0x3b   :  { %652 = vmatprep.subr.bf16.mxu1 %v7210_v1  ;;  %611 = vmatprep.subr.bf16.mxu0 %v7215_v3 }
  0x3d   :  { %524 = vmatmul.mubr.bf16.vlgmr.msra.gmra.mxu1 %v9442_v0  ;;  %483 = vmatmul.mubr.bf16.vlgmr.msra.gmra.mxu0 %v9442_v0 }
  0x3e   :  { %653 = vmatpush1.bf16.msra.mxu1 %v7212_v2  ;;  %684 = vmatprep.mubr.bf16.mxu1 %v9442_v0 }
  0x3f   :  { %654 = vmatprep.subr.bf16.mxu1 %v7218_v4  ;;  %612 = vmatpush1.bf16.msra.mxu0 %v7220_v5 }
  0x40   :  { %643 = vmatprep.mubr.bf16.mxu0 %v9442_v0  ;;  %613 = vmatprep.subr.bf16.mxu0 %v7225_v7 }
  0x42   :  { %655 = vmatpush1.bf16.msra.mxu1 %v7222_v6 }
  0x43   :  { %656 = vmatprep.subr.bf16.mxu1 %v7229_v8  ;;  %614 = vmatpush1.bf16.msra.mxu0 %v7232_v9 }
  0x44   :  { %615 = vmatprep.subr.bf16.mxu0 %v7237_v11 }
  0x46   :  { %657 = vmatpush1.bf16.msra.mxu1 %v7234_v10 }
  0x47   :  { %658 = vmatprep.subr.bf16.mxu1 %v7240_v12  ;;  %616 = vmatpush1.bf16.msra.mxu0 %v7243_v13 }
  0x48   :  { %617 = vmatprep.subr.bf16.mxu0 %v7246_v14 }
  0x4a   :  { %659 = vmatpush1.bf16.msra.mxu1 %v7249_v16 }
  0x4b   :  { %660 = vmatprep.subr.bf16.mxu1 %v7252_v17  ;;  %618 = vmatpush1.bf16.msra.mxu0 %v7255_v18 }
  0x4c   :  { %619 = vmatprep.subr.bf16.mxu0 %v7258_v19 }
  0x4e   :  { %661 = vmatpush1.bf16.msra.mxu1 %v7263_v21 }
  0x4f   :  { %662 = vmatprep.subr.bf16.mxu1 %v7266_v22  ;;  %620 = vmatpush1.bf16.msra.mxu0 %v7269_v23 }
  0x50   :  { %621 = vmatprep.subr.bf16.mxu0 %v7272_v24 }
  0x52   :  { %663 = vmatpush1.bf16.msra.mxu1 %v7276_v26 }
  0x53   :  { %664 = vmatprep.subr.bf16.mxu1 %v7279_v27  ;;  %622 = vmatpush1.bf16.msra.mxu0 %v7285_v29 }
  0x54   :  { %623 = vmatprep.subr.bf16.mxu0 %v7295_v32 }
  0x56   :  { %665 = vmatpush1.bf16.msra.mxu1 %v7287_v30 }
  0x57   :  { %666 = vmatprep.subr.bf16.mxu1 %v7297_v33  ;;  %624 = vmatpush1.bf16.msra.mxu0 %v7306_v36 }
  0x58   :  { %625 = vmatprep.subr.bf16.mxu0 %v7313_v38 }
  0x5a   :  { %667 = vmatpush1.bf16.msra.mxu1 %v7318_v40 }
  0x5b   :  { %814 = vmatprep.subr.bf16.mxu1 %v7210_v1  ;;  %626 = vmatpush1.bf16.msra.mxu0 %v7322_v41 }
  0x5c   :  { %773 = vmatprep.subr.bf16.mxu0 %v7215_v3 }
  0x9a   :  { %v7374_v44 = vpop.permute.xlu0 %117 }
  0x9b   :  { %9472 = vst [vmem:[#allocation14_spill] sm:$0xff] %v7374_v44  ;;  %v172_v47 = vmul.f32 %v7372_v43, %v7374_v44 }
  0x9d   :  { %v225_v52 = vadd.f32 %v7385_v48, %v172_v47  ;;  %v7407_v47 = vrot.slane %v7303_v35, %v7403_v39 }
  0x9e   :  { %v7387_v49 = vpop.permute.xlu0 %68 }
  0x9f   :  { %9474 = vst [vmem:[#allocation16_spill] sm:$0xff] %v7387_v49  ;;  %v142_v51 = vmul.f32 %v7391_v50, %v7387_v49  ;;  %9476 = vst [vmem:[#allocation18_spill] sm:$0xff] %v7407_v47 }
  0xa1   :  { %v195_v57 = vadd.f32 %v7397_v54, %v142_v51  ;;  %v171_v51 = vmul.f32 %v7407_v47, %v7374_v44 }
  0xfd   :  { %v525_v53 = vpop.f32.mrf.mxu1  ;;  %v484_v56 = vpop.f32.mrf.mxu0 }
  0xff   :  { %v527_v55 = vpop.f32.mrf.mxu1  ;;  %v486_v60 = vpop.f32.mrf.mxu0 }
 0x100   :  { %v540_v58 = vadd.f32 %v527_v55, %v225_v52  ;;  %v535_v61 = vadd.f32 %v486_v60, %v195_v57  ;;  %v7412_v52 = vrot.slane %v62_v46, %v7403_v39  ;;  %v141_v55 = vmul.f32 %v7310_v37, %v7387_v49 }
 0x101   :  { %v529_v59 = vpop.f32.mrf.mxu1  ;;  %v488_v63 = vpop.f32.mrf.mxu0  ;;  %v7417_v57 = vrot.slane %v62_v46, %v7282_v28 }
 0x102   :  { %6427 = vtanh.f32 %v540_v58  ;;  %v224_v59 = vadd.f32 %v7412_v52, %v171_v51 }
 0x103   :  { %v530_v62 = vpop.f32.mrf.mxu1  ;;  %v489_v15 = vpop.f32.mrf.mxu0  ;;  %6429 = vtanh.f32 %v535_v61  ;;  %v194_v60 = vadd.f32 %v7417_v57, %v141_v55 }
 0x104   :  { %v539_v62 = vadd.f32 %v525_v53, %v224_v59 }
 0x105   :  { %v534_v63 = vadd.f32 %v484_v56, %v194_v60 }
 0x106   :  { %v5832_v35 = vmul.f32 -1.442695, %v539_v62 }
 0x107   :  { %v5830_v15 = vmul.f32 -1.442695, %v534_v63  ;;  %v5833_v63 = vmul.f32 -1.442695, %v540_v58  ;;  %v73_v58 = vrot.slane %v7292_v31, %v7377_v45 }
 0x108   :  { %6431 = vpow2.f32 %v5832_v35 }
 0x109   :  { %6433 = vpow2.f32 %v5830_v15 }
 0x10f   :  { %v6428_v25 = vpop.eup %6427 }
 0x110   :  { %586 = vrot.lane.b32.xlu1 %v6428_v25, %s7149_s24  ;;  %v6430_v34 = vpop.eup %6429 }
 0x114   :  { %556 = vrot.lane.b32.xlu1 %v6430_v34, %s7149_s24 }
 0x115   :  { %v6432_v25 = vpop.eup %6431 }
 0x116   :  { %v6434_v34 = vpop.eup %6433  ;;  %v577_v0 = vadd.f32 1.0, %v6432_v25 }
 0x117   :  { %v547_v44 = vadd.f32 1.0, %v6434_v34  ;;  %v107_v34 = vsub.s32 6, %v7260_v20 }
 0x118   :  { %6435 = vrcp.f32 %v577_v0 }
 0x119   :  { %6437 = vrcp.f32 %v547_v44 }
 0x125   :  { %v6436_v49 = vpop.eup %6435 }
 0x126   :  { %v6438_v28 = vpop.eup %6437  ;;  %v584_v53 = vmul.f32 0.0, %v6436_v49 }
 0x127   :  { %v554_v60 = vmul.f32 0.0, %v6438_v28 }
 0x182   :  { %v587_v42 = vpop.permute.xlu1 %586 }
 0x183   :  { %v589_v46 = vmul.f32 %v6436_v49, %v587_v42  ;;  %v5831_v49 = vmul.f32 -1.442695, %v535_v61 }
 0x185   :  { %591 = vrot.lane.b32.xlu0 %v589_v46, %s7149_s24  ;;  %v108_v46 = vrot.slane %v7292_v31, %v107_v34 }
 0x186   :  { %v557_v51 = vpop.permute.xlu1 %556 }
 0x187   :  { %v559_v55 = vmul.f32 %v6438_v28, %v557_v51 }
 0x189   :  { %561 = vrot.lane.b32.xlu1 %v559_v55, %s7149_s24 }
 0x1f7   :  { %v592_v56 = vpop.permute.xlu0 %591 }
 0x1f8   :  { %v7423_v59 = vadd.f32 %v592_v56, %v584_v53 }
 0x1fa   :  { %6439 = vtanh.f32 %v7423_v59 }
 0x1fb   :  { %v562_v62 = vpop.permute.xlu1 %561 }
 0x1fc   :  { %v7426_v0 = vadd.f32 %v562_v62, %v554_v60 }
 0x1fe   :  { %6441 = vtanh.f32 %v7426_v0 }
 0x1ff   :  { %6443 = vpow2.f32 %v5833_v63  ;;  %v9477_v63 = vmov 0  }
 0x200   :  { %6445 = vpow2.f32 %v5831_v49 }
 0x207   :  { %v6440_v42 = vpop.eup %6439 }
 0x208   :  { %597 = vrot.lane.b32.xlu0 %v6440_v42, %s7149_s24 }
 0x20b   :  { %v6442_v44 = vpop.eup %6441 }
 0x20c   :  { %567 = vrot.lane.b32.xlu1 %v6442_v44, %s7149_s24  ;;  %v6444_v35 = vpop.eup %6443 }
 0x20d   :  { %v578_v15 = vadd.f32 1.0, %v6444_v35  ;;  %v6446_v25 = vpop.eup %6445 }
 0x20e   :  { %v548_v28 = vadd.f32 1.0, %v6446_v25 }
 0x20f   :  { %6447 = vrcp.f32 %v578_v15 }
 0x210   :  { %6449 = vrcp.f32 %v548_v28  ;;  %110 = vbcast.lane.b32.xlu1 %v108_v46, 256 }
 0x21c   :  { %v6448_v51 = vpop.eup %6447 }
 0x21d   :  { %v6450_v61 = vpop.eup %6449 }
 0x27a   :  { %v598_v55 = vpop.permute.xlu0 %597 }
 0x27b   :  { %v600_v53 = vmul.f32 %v6448_v51, %v598_v55 }
 0x27d   :  { %604 = vst.msk [vmem:[#allocation2 + $0x78] sm:$0xff] %vm601_vm0, %v600_v53  ;;  %606 = vrot.lane.b32.xlu0 %v600_v53, %s7149_s24 }
 0x27e   :  { %v568_v56 = vpop.permute.xlu1 %567 }
 0x27f   :  { %v570_v60 = vmul.f32 %v6450_v61, %v568_v56 }
 0x281   :  { %602 = vst.msk [vmem:[#allocation2] sm:$0xff] %vm601_vm0, %v570_v60  ;;  %75 = vbcast.lane.b32.xlu0 %v73_v58, 256 }
 0x282   :  { %v7477_v15 = vpop.permute.xlu1 %110 }
 0x283   :  { %9479 = vst [vmem:[#allocation20_spill] sm:$0xff] %v7477_v15  ;;  %v168_v25 = vmul.f32 %v7372_v43, %v7477_v15 }
 0x285   :  { %v221_v55 = vadd.f32 %v7385_v48, %v168_v25 }
 0x2ef   :  { %v607_v62 = vpop.permute.xlu0 %606 }
 0x2f0   :  { %v609_v42 = vsel %vm601_vm0, %v570_v60, %v607_v62 }
 0x2f1   :  { %v610_v44 = vpack.c.bf16 %v609_v42, %v609_v42 }
 0x2f3   :  { %644 = vmatmul.mubr.bf16.vlgmr.msra.gmra.mxu0 %v610_v44  ;;  %685 = vmatmul.mubr.bf16.vlgmr.msra.gmra.mxu1 %v610_v44  ;;  %v7473_v49 = vpop.permute.xlu0 %75 }
 0x2f4   :  { %774 = vmatpush1.bf16.msra.mxu0 %v7220_v5  ;;  %815 = vmatpush1.bf16.msra.mxu1 %v7212_v2  ;;  %9478 = vst [vmem:[#allocation19_spill] sm:$0xff] %v7473_v49  ;;  %v146_v35 = vmul.f32 %v7391_v50, %v7473_v49  ;;  %v145_v44 = vmul.f32 %v7310_v37, %v7473_v49 }
 0x2f5   :  { %775 = vmatprep.subr.bf16.mxu0 %v7225_v7  ;;  %816 = vmatprep.subr.bf16.mxu1 %v7218_v4 }
 0x2f6   :  { %805 = vmatprep.mubr.bf16.mxu0 %v9477_v63  ;;  %846 = vmatprep.mubr.bf16.mxu1 %v9477_v63  ;;  %v199_v46 = vadd.f32 %v7397_v54, %v146_v35  ;;  %v167_v35 = vmul.f32 %v7407_v47, %v7477_v15  ;;  %v198_v25 = vadd.f32 %v7417_v57, %v145_v44 }
 0x2f8   :  { %776 = vmatpush1.bf16.msra.mxu0 %v7232_v9  ;;  %817 = vmatpush1.bf16.msra.mxu1 %v7222_v6 }
 0x2f9   :  { %777 = vmatprep.subr.bf16.mxu0 %v7237_v11  ;;  %818 = vmatprep.subr.bf16.mxu1 %v7229_v8 }
 0x2fc   :  { %778 = vmatpush1.bf16.msra.mxu0 %v7243_v13  ;;  %819 = vmatpush1.bf16.msra.mxu1 %v7234_v10 }
 0x2fd   :  { %779 = vmatprep.subr.bf16.mxu0 %v7246_v14  ;;  %820 = vmatprep.subr.bf16.mxu1 %v7240_v12 }
 0x300   :  { %780 = vmatpush1.bf16.msra.mxu0 %v7255_v18  ;;  %821 = vmatpush1.bf16.msra.mxu1 %v7249_v16 }
 0x301   :  { %781 = vmatprep.subr.bf16.mxu0 %v7258_v19  ;;  %822 = vmatprep.subr.bf16.mxu1 %v7252_v17 }
 0x304   :  { %782 = vmatpush1.bf16.msra.mxu0 %v7269_v23  ;;  %823 = vmatpush1.bf16.msra.mxu1 %v7263_v21 }
 0x305   :  { %783 = vmatprep.subr.bf16.mxu0 %v7272_v24  ;;  %824 = vmatprep.subr.bf16.mxu1 %v7266_v22 }
 0x308   :  { %784 = vmatpush1.bf16.msra.mxu0 %v7285_v29  ;;  %825 = vmatpush1.bf16.msra.mxu1 %v7276_v26 }
 0x309   :  { %785 = vmatprep.subr.bf16.mxu0 %v7295_v32  ;;  %826 = vmatprep.subr.bf16.mxu1 %v7279_v27 }
 0x30c   :  { %786 = vmatpush1.bf16.msra.mxu0 %v7306_v36  ;;  %827 = vmatpush1.bf16.msra.mxu1 %v7287_v30 }
 0x30d   :  { %828 = vmatprep.subr.bf16.mxu1 %v7297_v33  ;;  %787 = vmatprep.subr.bf16.mxu0 %v7313_v38 }
 0x310   :  { %788 = vmatpush1.bf16.msra.mxu0 %v7322_v41  ;;  %829 = vmatpush1.bf16.msra.mxu1 %v7318_v40 }
 0x311   :  { %935 = vmatprep.subr.bf16.mxu0 %v7215_v3  ;;  %976 = vmatprep.subr.bf16.mxu1 %v7210_v1 }
 0x3b3   :  { %v645_v28 = vpop.f32.mrf.mxu0  ;;  %v686_v34 = vpop.f32.mrf.mxu1 }
 0x3b5   :  { %v647_v51 = vpop.f32.mrf.mxu0  ;;  %v688_v3 = vpop.f32.mrf.mxu1 }
 0x3b6   :  { %v697_v53 = vadd.f32 %v647_v51, %v199_v46  ;;  %v702_v61 = vadd.f32 %v688_v3, %v221_v55  ;;  %v220_v46 = vadd.f32 %v7412_v52, %v167_v35  ;;  %v696_v51 = vadd.f32 %v645_v28, %v198_v25 }
 0x3b7   :  { %v649_v1 = vpop.f32.mrf.mxu0  ;;  %v690_v58 = vpop.f32.mrf.mxu1 }
 0x3b8   :  { %6451 = vtanh.f32 %v697_v53  ;;  %v701_v55 = vadd.f32 %v686_v34, %v220_v46  ;;  %v5834_v3 = vmul.f32 -1.442695, %v696_v51 }
 0x3b9   :  { %v650_v56 = vpop.f32.mrf.mxu0  ;;  %v691_v60 = vpop.f32.mrf.mxu1  ;;  %6453 = vtanh.f32 %v702_v61 }
 0x3ba   :  { %v5836_v1 = vmul.f32 -1.442695, %v701_v55  ;;  %6455 = vpow2.f32 %v5834_v3 }
 0x3bc   :  { %6457 = vpow2.f32 %v5836_v1  ;;  %v100_v1 = vsub.s32 5, %v7260_v20 }
 0x3c5   :  { %v6452_v62 = vpop.eup %6451 }
 0x3c6   :  { %718 = vrot.lane.b32.xlu0 %v6452_v62, %s7149_s24  ;;  %v6454_v42 = vpop.eup %6453 }
 0x3c7   :  { %748 = vrot.lane.b32.xlu1 %v6454_v42, %s7149_s24  ;;  %v6456_v58 = vpop.eup %6455 }
 0x3c8   :  { %v709_v60 = vadd.f32 1.0, %v6456_v58  ;;  %v101_v58 = vrot.slane %v7292_v31, %v100_v1 }
 0x3c9   :  { %v6458_v56 = vpop.eup %6457 }
 0x3ca   :  { %v739_v62 = vadd.f32 1.0, %v6458_v56  ;;  %6459 = vrcp.f32 %v709_v60 }
 0x3cc   :  { %6461 = vrcp.f32 %v739_v62 }
 0x3d7   :  { %v6460_v42 = vpop.eup %6459 }
 0x3d8   :  { %v716_v28 = vmul.f32 %v6460_v42, %v7426_v0  ;;  %v5837_v0 = vmul.f32 -1.442695, %v702_v61  ;;  %v80_v61 = vrot.slane %v7292_v31, %v7403_v39 }
 0x3d9   :  { %v6462_v15 = vpop.eup %6461 }
 0x3da   :  { %v746_v35 = vmul.f32 %v6462_v15, %v7423_v59 }
 0x438   :  { %v719_v45 = vpop.permute.xlu0 %718 }
 0x439   :  { %v721_v49 = vmul.f32 %v6460_v42, %v719_v45  ;;  %v749_v47 = vpop.permute.xlu1 %748 }
 0x43a   :  { %v751_v44 = vmul.f32 %v6462_v15, %v749_v47 }
 0x43b   :  { %723 = vrot.lane.b32.xlu0 %v721_v49, %s7149_s24  ;;  %v5835_v49 = vmul.f32 -1.442695, %v697_v53 }
 0x43c   :  { %753 = vrot.lane.b32.xlu1 %v751_v44, %s7149_s24 }
 0x4ad   :  { %v724_v34 = vpop.permute.xlu0 %723 }
 0x4ae   :  { %v7495_v25 = vadd.f32 %v724_v34, %v716_v28  ;;  %v754_v46 = vpop.permute.xlu1 %753 }
 0x4af   :  { %v7497_v51 = vadd.f32 %v754_v46, %v746_v35 }
 0x4b0   :  { %6463 = vtanh.f32 %v7495_v25 }
 0x4b1   :  { %6465 = vtanh.f32 %v7497_v51 }
 0x4b2   :  { %6467 = vpow2.f32 %v5835_v49 }
 0x4b3   :  { %6469 = vpow2.f32 %v5837_v0 }
 0x4bd   :  { %v6464_v45 = vpop.eup %6463 }
 0x4be   :  { %729 = vrot.lane.b32.xlu0 %v6464_v45, %s7149_s24  ;;  %v6466_v47 = vpop.eup %6465 }
 0x4bf   :  { %759 = vrot.lane.b32.xlu1 %v6466_v47, %s7149_s24  ;;  %v6468_v59 = vpop.eup %6467 }
 0x4c0   :  { %v6470_v15 = vpop.eup %6469  ;;  %v710_v55 = vadd.f32 1.0, %v6468_v59 }
 0x4c1   :  { %v740_v3 = vadd.f32 1.0, %v6470_v15 }
 0x4c2   :  { %6471 = vrcp.f32 %v710_v55  ;;  %103 = vbcast.lane.b32.xlu0 %v101_v58, 256 }
 0x4c3   :  { %6473 = vrcp.f32 %v740_v3 }
 0x4cf   :  { %v6472_v56 = vpop.eup %6471 }
 0x4d0   :  { %v6474_v42 = vpop.eup %6473 }
 0x530   :  { %v730_v60 = vpop.permute.xlu0 %729 }
 0x531   :  { %v732_v62 = vmul.f32 %v6472_v56, %v730_v60  ;;  %v760_v44 = vpop.permute.xlu1 %759 }
 0x532   :  { %v762_v53 = vmul.f32 %v6474_v42, %v760_v44 }
 0x533   :  { %764 = vst.msk [vmem:[#allocation2 + $0x8] sm:$0xff] %vm601_vm0, %v732_v62 }
 0x534   :  { %766 = vst.msk [vmem:[#allocation2 + $0x70] sm:$0xff] %vm601_vm0, %v762_v53  ;;  %768 = vrot.lane.b32.xlu1 %v762_v53, %s7149_s24 }
 0x538   :  { %82 = vbcast.lane.b32.xlu1 %v80_v61, 256 }
 0x5a6   :  { %v769_v28 = vpop.permute.xlu1 %768 }
 0x5a7   :  { %v771_v34 = vsel %vm601_vm0, %v732_v62, %v769_v28 }
 0x5a8   :  { %v772_v35 = vpack.c.bf16 %v771_v34, %v771_v34 }
 0x5aa   :  { %806 = vmatmul.mubr.bf16.vlgmr.msra.gmra.mxu0 %v772_v35  ;;  %847 = vmatmul.mubr.bf16.vlgmr.msra.gmra.mxu1 %v772_v35  ;;  %v93_v35 = vsub.s32 4, %v7260_v20 }
 0x5ab   :  { %936 = vmatpush1.bf16.msra.mxu0 %v7220_v5  ;;  %977 = vmatpush1.bf16.msra.mxu1 %v7212_v2  ;;  %v7543_v2 = vld [vmem:[#allocation7 + $0xe4] ss:$16 sps:$4 sm:$0xff]   ;;  %v7549_v5 = vpop.permute.xlu1 %82 }
 0x5ac   :  { %937 = vmatprep.subr.bf16.mxu0 %v7225_v7  ;;  %978 = vmatprep.subr.bf16.mxu1 %v7218_v4  ;;  %v7546_v4 = vld [vmem:[#allocation7 + $0xec] ss:$16 sps:$4 sm:$0xff]   ;;  %9480 = vst [vmem:[#allocation21_spill] sm:$0xff] %v7549_v5  ;;  %v7553_v7 = vpop.permute.xlu0 %103 }
 0x5ad   :  { %967 = vmatprep.mubr.bf16.mxu0 %v9477_v63  ;;  %1008 = vmatprep.mubr.bf16.mxu1 %v9477_v63  ;;  %9481 = vst [vmem:[#allocation22_spill] sm:$0xff] %v7553_v7 }
 0x5af   :  { %938 = vmatpush1.bf16.msra.mxu0 %v7232_v9  ;;  %979 = vmatpush1.bf16.msra.mxu1 %v7222_v6  ;;  %v150_v6 = vmul.f32 %v7391_v50, %v7549_v5 }
 0x5b0   :  { %939 = vmatprep.subr.bf16.mxu0 %v7237_v11  ;;  %980 = vmatprep.subr.bf16.mxu1 %v7229_v8  ;;  %v164_v8 = vmul.f32 %v7372_v43, %v7553_v7 }
 0x5b1   :  { %v203_v11 = vadd.f32 %v7397_v54, %v150_v6  ;;  %v7005_v6 = vld [vmem:[%s9432_s0] sm:$0xff] }
 0x5b3   :  { %940 = vmatpush1.bf16.msra.mxu0 %v7243_v13  ;;  %981 = vmatpush1.bf16.msra.mxu1 %v7234_v10  ;;  %v217_v13 = vadd.f32 %v7385_v48, %v164_v8  ;;  %v94_v8 = vrot.slane %v7005_v6, %v93_v35 }
 0x5b4   :  { %941 = vmatprep.subr.bf16.mxu0 %v7246_v14  ;;  %982 = vmatprep.subr.bf16.mxu1 %v7240_v12 }
 0x5b7   :  { %942 = vmatpush1.bf16.msra.mxu0 %v7255_v18  ;;  %983 = vmatpush1.bf16.msra.mxu1 %v7249_v16 }
 0x5b8   :  { %943 = vmatprep.subr.bf16.mxu0 %v7258_v19  ;;  %984 = vmatprep.subr.bf16.mxu1 %v7252_v17 }
 0x5bb   :  { %944 = vmatpush1.bf16.msra.mxu0 %v7269_v23  ;;  %985 = vmatpush1.bf16.msra.mxu1 %v7263_v21 }
 0x5bc   :  { %945 = vmatprep.subr.bf16.mxu0 %v7272_v24  ;;  %986 = vmatprep.subr.bf16.mxu1 %v7266_v22 }
 0x5bf   :  { %946 = vmatpush1.bf16.msra.mxu0 %v7285_v29  ;;  %987 = vmatpush1.bf16.msra.mxu1 %v7276_v26  ;;  %v149_v26 = vmul.f32 %v7310_v37, %v7549_v5 }
 0x5c0   :  { %947 = vmatprep.subr.bf16.mxu0 %v7295_v32  ;;  %988 = vmatprep.subr.bf16.mxu1 %v7279_v27  ;;  %v9482_v27 = vld [vmem:[#allocation18_spill] sm:$0xff] }
 0x5c1   :  { %v163_v29 = vmul.f32 %v9482_v27, %v7553_v7 }
 0x5c3   :  { %948 = vmatpush1.bf16.msra.mxu0 %v7306_v36  ;;  %989 = vmatpush1.bf16.msra.mxu1 %v7287_v30  ;;  %v202_v30 = vadd.f32 %v7417_v57, %v149_v26  ;;  %v216_v31 = vadd.f32 %v7412_v52, %v163_v29  ;;  %v7602_v26 = vld [vmem:[#allocation7 + $0xc0] ss:$16 sps:$4 sm:$0xff]   ;;  %v7605_v29 = vld [vmem:[#allocation7 + $0xc8] ss:$16 sps:$4 sm:$0xff]  }
 0x5c4   :  { %949 = vmatprep.subr.bf16.mxu0 %v7313_v38  ;;  %990 = vmatprep.subr.bf16.mxu1 %v7297_v33 }
 0x5c7   :  { %950 = vmatpush1.bf16.msra.mxu0 %v7322_v41  ;;  %991 = vmatpush1.bf16.msra.mxu1 %v7318_v40 }
 0x5c8   :  { %1097 = vmatprep.subr.bf16.mxu0 %v7543_v2  ;;  %1138 = vmatprep.subr.bf16.mxu1 %v7546_v4 }
 0x66a   :  { %v807_v9 = vpop.f32.mrf.mxu0  ;;  %v848_v10 = vpop.f32.mrf.mxu1 }
 0x66b   :  { %v858_v32 = vadd.f32 %v807_v9, %v202_v30  ;;  %v863_v33 = vadd.f32 %v848_v10, %v216_v31  ;;  %v7608_v30 = vld [vmem:[#allocation7 + $0xa4] ss:$16 sps:$4 sm:$0xff]   ;;  %v7611_v31 = vld [vmem:[#allocation7 + $0xac] ss:$16 sps:$4 sm:$0xff]  }
 0x66c   :  { %v809_v12 = vpop.f32.mrf.mxu0  ;;  %v850_v14 = vpop.f32.mrf.mxu1 }
 0x66d   :  { %v859_v16 = vadd.f32 %v809_v12, %v203_v11  ;;  %v864_v19 = vadd.f32 %v850_v14, %v217_v13  ;;  %v5838_v36 = vmul.f32 -1.442695, %v858_v32  ;;  %v5840_v38 = vmul.f32 -1.442695, %v863_v33  ;;  %v7614_v32 = vld [vmem:[#allocation7 + $0xa0] ss:$16 sps:$4 sm:$0xff]  }
 0x66e   :  { %v811_v17 = vpop.f32.mrf.mxu0  ;;  %v852_v18 = vpop.f32.mrf.mxu1  ;;  %v7617_v33 = vld [vmem:[#allocation7 + $0xa8] ss:$16 sps:$4 sm:$0xff]  }
 0x66f   :  { %6475 = vtanh.f32 %v859_v16  ;;  %v5839_v53 = vmul.f32 -1.442695, %v859_v16  ;;  %v9483_v16 = vld [vmem:[#allocation13_spill] sm:$0xff] }
 0x670   :  { %v812_v21 = vpop.f32.mrf.mxu0  ;;  %v853_v22 = vpop.f32.mrf.mxu1  ;;  %6477 = vtanh.f32 %v864_v19  ;;  %v87_v20 = vrot.slane %v7005_v6, %v9483_v16 }
 0x671   :  { %6479 = vpow2.f32 %v5838_v36  ;;  %v7588_v21 = vld [vmem:[#allocation7 + $0xe0] ss:$16 sps:$4 sm:$0xff]   ;;  %v7591_v22 = vld [vmem:[#allocation7 + $0xe8] ss:$16 sps:$4 sm:$0xff]   ;;  %v7620_v36 = vld [vmem:[#allocation7 + $0x84] ss:$16 sps:$4 sm:$0xff]  }
 0x672   :  { %6481 = vpow2.f32 %v5840_v38  ;;  %v7623_v38 = vld [vmem:[#allocation7 + $0x8c] ss:$16 sps:$4 sm:$0xff]  }
 0x67c   :  { %v6476_v23 = vpop.eup %6475 }
 0x67d   :  { %880 = vrot.lane.b32.xlu1 %v6476_v23, %s7149_s24  ;;  %v6478_v24 = vpop.eup %6477  ;;  %v7594_v23 = vld [vmem:[#allocation7 + $0xc4] ss:$16 sps:$4 sm:$0xff]  }
 0x67e   :  { %910 = vrot.lane.b32.xlu0 %v6478_v24, %s7149_s24  ;;  %v6480_v40 = vpop.eup %6479  ;;  %v7597_v24 = vld [vmem:[#allocation7 + $0xcc] ss:$16 sps:$4 sm:$0xff]  }
 0x67f   :  { %v6482_v41 = vpop.eup %6481  ;;  %v871_v46 = vadd.f32 1.0, %v6480_v40  ;;  %v7626_v40 = vld [vmem:[#allocation7 + $0x80] ss:$16 sps:$4 sm:$0xff]  }
 0x680   :  { %v901_v45 = vadd.f32 1.0, %v6482_v41  ;;  %v7629_v41 = vld [vmem:[#allocation7 + $0x88] ss:$16 sps:$4 sm:$0xff]  }
 0x681   :  { %6483 = vrcp.f32 %v871_v46  ;;  %v7632_v46 = vld [vmem:[#allocation7 + $0x64] ss:$16 sps:$4 sm:$0xff]  }
 0x682   :  { %6485 = vrcp.f32 %v901_v45  ;;  %v7635_v45 = vld [vmem:[#allocation7 + $0x6c] ss:$16 sps:$4 sm:$0xff]  }
 0x68e   :  { %v6484_v47 = vpop.eup %6483 }
 0x68f   :  { %v6486_v59 = vpop.eup %6485  ;;  %v878_v3 = vmul.f32 %v6484_v47, %v7495_v25  ;;  %v5841_v25 = vmul.f32 -1.442695, %v864_v19 }
 0x690   :  { %v908_v56 = vmul.f32 %v6486_v59, %v7497_v51 }
 0x6ef   :  { %v881_v49 = vpop.permute.xlu1 %880 }
 0x6f0   :  { %v883_v0 = vmul.f32 %v6484_v47, %v881_v49  ;;  %v911_v15 = vpop.permute.xlu0 %910  ;;  %v7638_v47 = vld [vmem:[#allocation7 + $0x60] ss:$16 sps:$4 sm:$0xff]   ;;  %v7641_v49 = vld [vmem:[#allocation7 + $0x68] ss:$16 sps:$4 sm:$0xff]  }
 0x6f1   :  { %v913_v55 = vmul.f32 %v6486_v59, %v911_v15  ;;  %v7647_v59 = vld [vmem:[#allocation7 + $0x4c] ss:$16 sps:$4 sm:$0xff]   ;;  %v7650_v15 = vld [vmem:[#allocation7 + $0x40] ss:$16 sps:$4 sm:$0xff]  }
 0x6f2   :  { %885 = vrot.lane.b32.xlu1 %v883_v0, %s7149_s24  ;;  %v7644_v0 = vld [vmem:[#allocation7 + $0x44] ss:$16 sps:$4 sm:$0xff]  }
 0x6f3   :  { %915 = vrot.lane.b32.xlu0 %v913_v55, %s7149_s24  ;;  %v7653_v55 = vld [vmem:[#allocation7 + $0x48] ss:$16 sps:$4 sm:$0xff]  }
 0x764   :  { %v886_v1 = vpop.permute.xlu1 %885 }
 0x765   :  { %v7570_v58 = vadd.f32 %v886_v1, %v878_v3  ;;  %v916_v60 = vpop.permute.xlu0 %915  ;;  %v7656_v3 = vld [vmem:[#allocation7 + $0x24] ss:$16 sps:$4 sm:$0xff]   ;;  %v7659_v1 = vld [vmem:[#allocation7 + $0x2c] ss:$16 sps:$4 sm:$0xff]  }
 0x766   :  { %v7574_v62 = vadd.f32 %v916_v60, %v908_v56  ;;  %v7662_v56 = vld [vmem:[#allocation7 + $0x20] ss:$16 sps:$4 sm:$0xff]   ;;  %v7665_v60 = vld [vmem:[#allocation7 + $0x28] ss:$16 sps:$4 sm:$0xff]  }
 0x767   :  { %6487 = vtanh.f32 %v7570_v58 }
 0x768   :  { %6489 = vtanh.f32 %v7574_v62 }
 0x769   :  { %6491 = vpow2.f32 %v5839_v53  ;;  %v7674_v53 = vld [vmem:[#allocation7] ss:$16 sps:$4 sm:$0xff]  }
 0x76a   :  { %6493 = vpow2.f32 %v5841_v25  ;;  %v7677_v25 = vld [vmem:[#allocation7 + $0x8] ss:$16 sps:$4 sm:$0xff]  }
 0x774   :  { %v6488_v42 = vpop.eup %6487 }
 0x775   :  { %891 = vrot.lane.b32.xlu1 %v6488_v42, %s7149_s24  ;;  %v6490_v44 = vpop.eup %6489  ;;  %v7668_v42 = vld [vmem:[#allocation7 + $0xc] ss:$16 sps:$4 sm:$0xff]  }
 0x776   :  { %921 = vrot.lane.b32.xlu0 %v6490_v44, %s7149_s24  ;;  %v6492_v61 = vpop.eup %6491  ;;  %v7671_v44 = vld [vmem:[#allocation7 + $0x4] ss:$16 sps:$4 sm:$0xff]  }
 0x777   :  { %v6494_v28 = vpop.eup %6493  ;;  %v872_v51 = vadd.f32 1.0, %v6492_v61 }
 0x778   :  { %v902_v34 = vadd.f32 1.0, %v6494_v28 }
 0x779   :  { %6495 = vrcp.f32 %v872_v51  ;;  %96 = vbcast.lane.b32.xlu1 %v94_v8, 256 }
 0x77a   :  { %6497 = vrcp.f32 %v902_v34 }
 0x786   :  { %v6496_v9 = vpop.eup %6495 }
 0x787   :  { %v6498_v12 = vpop.eup %6497 }
 0x7e7   :  { %v892_v10 = vpop.permute.xlu1 %891 }
 0x7e8   :  { %v894_v11 = vmul.f32 %v6496_v9, %v892_v10  ;;  %v922_v13 = vpop.permute.xlu0 %921 }
 0x7e9   :  { %v924_v14 = vmul.f32 %v6498_v12, %v922_v13 }
 0x7ea   :  { %926 = vst.msk [vmem:[#allocation2 + $0x10] sm:$0xff] %vm601_vm0, %v894_v11 }
 0x7eb   :  { %928 = vst.msk [vmem:[#allocation2 + $0x68] sm:$0xff] %vm601_vm0, %v924_v14  ;;  %930 = vrot.lane.b32.xlu0 %v924_v14, %s7149_s24  ;;  %v7686_v51 = vpop.permute.xlu1 %96 }
 0x7ec   :  { %v160_v34 = vmul.f32 %v7372_v43, %v7686_v51 }
 0x7ee   :  { %v213_v10 = vadd.f32 %v7385_v48, %v160_v34  ;;  %v159_v34 = vmul.f32 %v9482_v27, %v7686_v51 }
 0x7ef   :  { %89 = vbcast.lane.b32.xlu0 %v87_v20, 256 }
 0x85d   :  { %v931_v17 = vpop.permute.xlu0 %930 }
 0x85e   :  { %v933_v18 = vsel %vm601_vm0, %v894_v11, %v931_v17 }
 0x85f   :  { %v934_v19 = vpack.c.bf16 %v933_v18, %v933_v18 }
 0x861   :  { %968 = vmatmul.mubr.bf16.vlgmr.msra.gmra.mxu0 %v934_v19  ;;  %1009 = vmatmul.mubr.bf16.vlgmr.msra.gmra.mxu1 %v934_v19  ;;  %v7682_v61 = vpop.permute.xlu0 %89 }
 0x862   :  { %1098 = vmatpush1.bf16.msra.mxu0 %v7588_v21  ;;  %1139 = vmatpush1.bf16.msra.mxu1 %v7591_v22  ;;  %v154_v28 = vmul.f32 %v7391_v50, %v7682_v61 }
 0x863   :  { %1099 = vmatprep.subr.bf16.mxu0 %v7594_v23  ;;  %1140 = vmatprep.subr.bf16.mxu1 %v7597_v24 }
 0x864   :  { %1129 = vmatprep.mubr.bf16.mxu0 %v9477_v63  ;;  %1170 = vmatprep.mubr.bf16.mxu1 %v9477_v63  ;;  %v207_v8 = vadd.f32 %v7397_v54, %v154_v28  ;;  %v153_v28 = vmul.f32 %v7310_v37, %v7682_v61 }
 0x866   :  { %1100 = vmatpush1.bf16.msra.mxu0 %v7602_v26  ;;  %1141 = vmatpush1.bf16.msra.mxu1 %v7605_v29 }
 0x867   :  { %1101 = vmatprep.subr.bf16.mxu0 %v7608_v30  ;;  %1142 = vmatprep.subr.bf16.mxu1 %v7611_v31 }
 0x86a   :  { %1102 = vmatpush1.bf16.msra.mxu0 %v7614_v32  ;;  %1143 = vmatpush1.bf16.msra.mxu1 %v7617_v33 }
 0x86b   :  { %1103 = vmatprep.subr.bf16.mxu0 %v7620_v36  ;;  %1144 = vmatprep.subr.bf16.mxu1 %v7623_v38 }
 0x86e   :  { %1104 = vmatpush1.bf16.msra.mxu0 %v7626_v40  ;;  %1145 = vmatpush1.bf16.msra.mxu1 %v7629_v41 }
 0x86f   :  { %1105 = vmatprep.subr.bf16.mxu0 %v7632_v46  ;;  %1146 = vmatprep.subr.bf16.mxu1 %v7635_v45 }
 0x872   :  { %1106 = vmatpush1.bf16.msra.mxu0 %v7638_v47  ;;  %1147 = vmatpush1.bf16.msra.mxu1 %v7641_v49 }
 0x873   :  { %1107 = vmatprep.subr.bf16.mxu0 %v7644_v0  ;;  %1148 = vmatprep.subr.bf16.mxu1 %v7647_v59 }
 0x876   :  { %1108 = vmatpush1.bf16.msra.mxu0 %v7650_v15  ;;  %1149 = vmatpush1.bf16.msra.mxu1 %v7653_v55 }
 0x877   :  { %1109 = vmatprep.subr.bf16.mxu0 %v7656_v3  ;;  %1150 = vmatprep.subr.bf16.mxu1 %v7659_v1 }
 0x87a   :  { %1110 = vmatpush1.bf16.msra.mxu0 %v7662_v56  ;;  %1151 = vmatpush1.bf16.msra.mxu1 %v7665_v60 }
 0x87b   :  { %1152 = vmatprep.subr.bf16.mxu1 %v7668_v42  ;;  %1111 = vmatprep.subr.bf16.mxu0 %v7671_v44 }
 0x87e   :  { %1112 = vmatpush1.bf16.msra.mxu0 %v7674_v53  ;;  %1153 = vmatpush1.bf16.msra.mxu1 %v7677_v25 }
 0x87f   :  { %1257 = vmatprep.subr.bf16.mxu0 %v7543_v2  ;;  %1298 = vmatprep.subr.bf16.mxu1 %v7546_v4 }
 0x921   :  { %v969_v35 = vpop.f32.mrf.mxu0  ;;  %v1010_v6 = vpop.f32.mrf.mxu1 }
 0x923   :  { %v971_v9 = vpop.f32.mrf.mxu0  ;;  %v1012_v11 = vpop.f32.mrf.mxu1 }
 0x924   :  { %v1021_v12 = vadd.f32 %v971_v9, %v207_v8  ;;  %v1026_v20 = vadd.f32 %v1012_v11, %v213_v10  ;;  %v206_v8 = vadd.f32 %v7417_v57, %v153_v28  ;;  %v212_v9 = vadd.f32 %v7412_v52, %v159_v34 }
 0x925   :  { %v973_v13 = vpop.f32.mrf.mxu0  ;;  %v1014_v14 = vpop.f32.mrf.mxu1 }
 0x926   :  { %6499 = vtanh.f32 %v1021_v12  ;;  %v1020_v10 = vadd.f32 %v969_v35, %v206_v8  ;;  %v1025_v11 = vadd.f32 %v1010_v6, %v212_v9 }
 0x927   :  { %v974_v17 = vpop.f32.mrf.mxu0  ;;  %v1015_v18 = vpop.f32.mrf.mxu1  ;;  %6501 = vtanh.f32 %v1026_v20 }
 0x928   :  { %v5842_v13 = vmul.f32 -1.442695, %v1020_v10  ;;  %v5844_v14 = vmul.f32 -1.442695, %v1025_v11 }
 0x92a   :  { %6503 = vpow2.f32 %v5842_v13 }
 0x92b   :  { %6505 = vpow2.f32 %v5844_v14 }
 0x933   :  { %v6500_v19 = vpop.eup %6499 }
 0x934   :  { %1042 = vrot.lane.b32.xlu0 %v6500_v19, %s7149_s24  ;;  %v6502_v16 = vpop.eup %6501 }
 0x935   :  { %1072 = vrot.lane.b32.xlu1 %v6502_v16, %s7149_s24 }
 0x937   :  { %v6504_v17 = vpop.eup %6503 }
 0x938   :  { %v6506_v18 = vpop.eup %6505  ;;  %v1033_v19 = vadd.f32 1.0, %v6504_v17 }
 0x939   :  { %v1063_v16 = vadd.f32 1.0, %v6506_v18 }
 0x93a   :  { %6507 = vrcp.f32 %v1033_v19 }
 0x93b   :  { %6509 = vrcp.f32 %v1063_v16 }
 0x947   :  { %v6508_v39 = vpop.eup %6507 }
 0x948   :  { %v6510_v27 = vpop.eup %6509  ;;  %v1040_v35 = vmul.f32 %v6508_v39, %v7570_v58 }
 0x949   :  { %v1070_v34 = vmul.f32 %v6510_v27, %v7574_v62 }
 0x9a6   :  { %v1043_v5 = vpop.permute.xlu0 %1042 }
 0x9a7   :  { %v1045_v7 = vmul.f32 %v6508_v39, %v1043_v5  ;;  %v1073_v37 = vpop.permute.xlu1 %1072  ;;  %v5845_v39 = vmul.f32 -1.442695, %v1026_v20 }
 0x9a8   :  { %v1075_v28 = vmul.f32 %v6510_v27, %v1073_v37 }
 0x9a9   :  { %1047 = vrot.lane.b32.xlu0 %v1045_v7, %s7149_s24  ;;  %v5843_v7 = vmul.f32 -1.442695, %v1021_v12 }
 0x9aa   :  { %1077 = vrot.lane.b32.xlu1 %v1075_v28, %s7149_s24 }
 0xa1b   :  { %v1048_v6 = vpop.permute.xlu0 %1047 }
 0xa1c   :  { %v7704_v8 = vadd.f32 %v1048_v6, %v1040_v35  ;;  %v1078_v9 = vpop.permute.xlu1 %1077  ;;  %v158_v35 = vmul.f32 %v7391_v50, %v7686_v51 }
 0xa1d   :  { %v7706_v10 = vadd.f32 %v1078_v9, %v1070_v34  ;;  %v156_v9 = vmul.f32 %v7372_v43, %v7682_v61 }
 0xa1e   :  { %6511 = vtanh.f32 %v7704_v8 }
 0xa1f   :  { %6513 = vtanh.f32 %v7706_v10 }
 0xa20   :  { %6515 = vpow2.f32 %v5843_v7 }
 0xa21   :  { %6517 = vpow2.f32 %v5845_v39 }
 0xa2b   :  { %v6512_v5 = vpop.eup %6511 }
 0xa2c   :  { %1053 = vrot.lane.b32.xlu0 %v6512_v5, %s7149_s24  ;;  %v6514_v37 = vpop.eup %6513  ;;  %v211_v5 = vadd.f32 %v7397_v54, %v158_v35 }
 0xa2d   :  { %1083 = vrot.lane.b32.xlu1 %v6514_v37, %s7149_s24  ;;  %v6516_v27 = vpop.eup %6515 }
 0xa2e   :  { %v6518_v58 = vpop.eup %6517  ;;  %v1034_v62 = vadd.f32 1.0, %v6516_v27  ;;  %v209_v27 = vadd.f32 %v7385_v48, %v156_v9 }
 0xa2f   :  { %v1064_v11 = vadd.f32 1.0, %v6518_v58 }
 0xa30   :  { %6519 = vrcp.f32 %v1034_v62 }
 0xa31   :  { %6521 = vrcp.f32 %v1064_v11 }
 0xa3d   :  { %v6520_v13 = vpop.eup %6519 }
 0xa3e   :  { %v6522_v18 = vpop.eup %6521 }
 0xa9e   :  { %v1054_v14 = vpop.permute.xlu0 %1053 }
 0xa9f   :  { %v1056_v17 = vmul.f32 %v6520_v13, %v1054_v14  ;;  %v1084_v19 = vpop.permute.xlu1 %1083 }
 0xaa0   :  { %v1086_v16 = vmul.f32 %v6522_v18, %v1084_v19  ;;  %v9484_v19 = vld [vmem:[#allocation12_spill] sm:$0xff] }
 0xaa1   :  { %1088 = vst.msk [vmem:[#allocation2 + $0x18] sm:$0xff] %vm601_vm0, %v1056_v17 }
 0xaa2   :  { %1090 = vst.msk [vmem:[#allocation2 + $0x60] sm:$0xff] %vm601_vm0, %v1086_v16  ;;  %1092 = vrot.lane.b32.xlu1 %v1086_v16, %s7149_s24  ;;  %v157_v16 = vmul.f32 %v9484_v19, %v7686_v51 }
 0xb14   :  { %v1093_v12 = vpop.permute.xlu1 %1092 }
 0xb15   :  { %v1095_v20 = vsel %vm601_vm0, %v1056_v17, %v1093_v12  ;;  %v9485_v12 = vld [vmem:[#allocation18_spill] sm:$0xff] }
 0xb16   :  { %v1096_v28 = vpack.c.bf16 %v1095_v20, %v1095_v20  ;;  %v155_v20 = vmul.f32 %v9485_v12, %v7682_v61 }
 0xb18   :  { %1130 = vmatmul.mubr.bf16.vlgmr.msra.gmra.mxu0 %v1096_v28  ;;  %1171 = vmatmul.mubr.bf16.vlgmr.msra.gmra.mxu1 %v1096_v28  ;;  %v210_v28 = vadd.f32 %v7417_v57, %v157_v16  ;;  %v208_v9 = vadd.f32 %v7412_v52, %v155_v20 }
 0xb19   :  { %1258 = vmatpush1.bf16.msra.mxu0 %v7588_v21  ;;  %1299 = vmatpush1.bf16.msra.mxu1 %v7591_v22 }
 0xb1a   :  { %1259 = vmatprep.subr.bf16.mxu0 %v7594_v23  ;;  %1300 = vmatprep.subr.bf16.mxu1 %v7597_v24 }
 0xb1b   :  { %1289 = vmatprep.mubr.bf16.mxu0 %v9477_v63  ;;  %1330 = vmatprep.mubr.bf16.mxu1 %v9477_v63 }
 0xb1d   :  { %1260 = vmatpush1.bf16.msra.mxu0 %v7602_v26  ;;  %1301 = vmatpush1.bf16.msra.mxu1 %v7605_v29 }
 0xb1e   :  { %1261 = vmatprep.subr.bf16.mxu0 %v7608_v30  ;;  %1302 = vmatprep.subr.bf16.mxu1 %v7611_v31 }
 0xb21   :  { %1262 = vmatpush1.bf16.msra.mxu0 %v7614_v32  ;;  %1303 = vmatpush1.bf16.msra.mxu1 %v7617_v33 }
 0xb22   :  { %1263 = vmatprep.subr.bf16.mxu0 %v7620_v36  ;;  %1304 = vmatprep.subr.bf16.mxu1 %v7623_v38 }
 0xb25   :  { %1264 = vmatpush1.bf16.msra.mxu0 %v7626_v40  ;;  %1305 = vmatpush1.bf16.msra.mxu1 %v7629_v41 }
 0xb26   :  { %1265 = vmatprep.subr.bf16.mxu0 %v7632_v46  ;;  %1306 = vmatprep.subr.bf16.mxu1 %v7635_v45 }
 0xb29   :  { %1266 = vmatpush1.bf16.msra.mxu0 %v7638_v47  ;;  %1307 = vmatpush1.bf16.msra.mxu1 %v7641_v49 }
 0xb2a   :  { %1267 = vmatprep.subr.bf16.mxu0 %v7644_v0  ;;  %1308 = vmatprep.subr.bf16.mxu1 %v7647_v59 }
 0xb2d   :  { %1268 = vmatpush1.bf16.msra.mxu0 %v7650_v15  ;;  %1309 = vmatpush1.bf16.msra.mxu1 %v7653_v55 }
 0xb2e   :  { %1269 = vmatprep.subr.bf16.mxu0 %v7656_v3  ;;  %1310 = vmatprep.subr.bf16.mxu1 %v7659_v1 }
 0xb31   :  { %1270 = vmatpush1.bf16.msra.mxu0 %v7662_v56  ;;  %1311 = vmatpush1.bf16.msra.mxu1 %v7665_v60 }
 0xb32   :  { %1312 = vmatprep.subr.bf16.mxu1 %v7668_v42  ;;  %1271 = vmatprep.subr.bf16.mxu0 %v7671_v44 }
 0xb35   :  { %1272 = vmatpush1.bf16.msra.mxu0 %v7674_v53  ;;  %1313 = vmatpush1.bf16.msra.mxu1 %v7677_v25 }
 0xb36   :  { %1417 = vmatprep.subr.bf16.mxu0 %v7543_v2  ;;  %1458 = vmatprep.subr.bf16.mxu1 %v7546_v4 }
 0xbd8   :  { %v1131_v6 = vpop.f32.mrf.mxu0  ;;  %v1172_v34 = vpop.f32.mrf.mxu1 }
 0xbd9   :  { %v1181_v35 = vadd.f32 %v1131_v6, %v210_v28 }
 0xbda   :  { %v1133_v37 = vpop.f32.mrf.mxu0  ;;  %v1174_v7 = vpop.f32.mrf.mxu1 }
 0xbdb   :  { %v1182_v39 = vadd.f32 %v1133_v37, %v211_v5  ;;  %v1186_v11 = vadd.f32 %v1174_v7, %v209_v27  ;;  %v1185_v5 = vadd.f32 %v1172_v34, %v208_v9  ;;  %v5846_v37 = vmul.f32 -1.442695, %v1181_v35 }
 0xbdc   :  { %v1135_v58 = vpop.f32.mrf.mxu0  ;;  %v1176_v62 = vpop.f32.mrf.mxu1 }
 0xbdd   :  { %6523 = vtanh.f32 %v1182_v39  ;;  %v5848_v7 = vmul.f32 -1.442695, %v1185_v5 }
 0xbde   :  { %v1136_v13 = vpop.f32.mrf.mxu0  ;;  %v1177_v14 = vpop.f32.mrf.mxu1  ;;  %6525 = vtanh.f32 %v1186_v11 }
 0xbdf   :  { %6527 = vpow2.f32 %v5846_v37 }
 0xbe0   :  { %6529 = vpow2.f32 %v5848_v7  ;;  %v5847_v7 = vmul.f32 -1.442695, %v1182_v39 }
 0xbea   :  { %v6524_v17 = vpop.eup %6523 }
 0xbeb   :  { %1202 = vrot.lane.b32.xlu1 %v6524_v17, %s7149_s24  ;;  %v6526_v18 = vpop.eup %6525 }
 0xbec   :  { %1232 = vrot.lane.b32.xlu0 %v6526_v18, %s7149_s24  ;;  %v6528_v27 = vpop.eup %6527 }
 0xbed   :  { %v6530_v58 = vpop.eup %6529  ;;  %v1193_v62 = vadd.f32 1.0, %v6528_v27 }
 0xbee   :  { %v1223_v13 = vadd.f32 1.0, %v6530_v58 }
 0xbef   :  { %6531 = vrcp.f32 %v1193_v62 }
 0xbf0   :  { %6533 = vrcp.f32 %v1223_v13 }
 0xbfc   :  { %v6532_v51 = vpop.eup %6531 }
 0xbfd   :  { %v6534_v61 = vpop.eup %6533  ;;  %v1200_v6 = vmul.f32 %v6532_v51, %v7704_v8  ;;  %v5849_v8 = vmul.f32 -1.442695, %v1186_v11 }
 0xbfe   :  { %v1230_v20 = vmul.f32 %v6534_v61, %v7706_v10 }
 0xc5d   :  { %v1203_v14 = vpop.permute.xlu1 %1202 }
 0xc5e   :  { %v1205_v17 = vmul.f32 %v6532_v51, %v1203_v14  ;;  %v1233_v18 = vpop.permute.xlu0 %1232 }
 0xc5f   :  { %v1235_v16 = vmul.f32 %v6534_v61, %v1233_v18 }
 0xc60   :  { %1207 = vrot.lane.b32.xlu1 %v1205_v17, %s7149_s24 }
 0xc61   :  { %1237 = vrot.lane.b32.xlu0 %v1235_v16, %s7149_s24 }
 0xcd2   :  { %v1208_v34 = vpop.permute.xlu1 %1207 }
 0xcd3   :  { %v7768_v28 = vadd.f32 %v1208_v34, %v1200_v6  ;;  %v1238_v35 = vpop.permute.xlu0 %1237  ;;  %v9486_v6 = vld [vmem:[#allocation22_spill] sm:$0xff] }
 0xcd4   :  { %v7770_v9 = vadd.f32 %v1238_v35, %v1230_v20  ;;  %v162_v34 = vmul.f32 %v7391_v50, %v9486_v6 }
 0xcd5   :  { %6535 = vtanh.f32 %v7768_v28 }
 0xcd6   :  { %6537 = vtanh.f32 %v7770_v9 }
 0xcd7   :  { %6539 = vpow2.f32 %v5847_v7  ;;  %v215_v7 = vadd.f32 %v7397_v54, %v162_v34 }
 0xcd8   :  { %6541 = vpow2.f32 %v5849_v8 }
 0xce2   :  { %v6536_v5 = vpop.eup %6535 }
 0xce3   :  { %1213 = vrot.lane.b32.xlu1 %v6536_v5, %s7149_s24  ;;  %v6538_v37 = vpop.eup %6537  ;;  %v9487_v5 = vld [vmem:[#allocation21_spill] sm:$0xff] }
 0xce4   :  { %1243 = vrot.lane.b32.xlu0 %v6538_v37, %s7149_s24  ;;  %v6540_v10 = vpop.eup %6539  ;;  %v152_v37 = vmul.f32 %v7372_v43, %v9487_v5 }
 0xce5   :  { %v6542_v27 = vpop.eup %6541  ;;  %v1194_v58 = vadd.f32 1.0, %v6540_v10 }
 0xce6   :  { %v1224_v62 = vadd.f32 1.0, %v6542_v27 }
 0xce7   :  { %6543 = vrcp.f32 %v1194_v58  ;;  %v205_v58 = vadd.f32 %v7385_v48, %v152_v37 }
 0xce8   :  { %6545 = vrcp.f32 %v1224_v62 }
 0xcf4   :  { %v6544_v13 = vpop.eup %6543 }
 0xcf5   :  { %v6546_v17 = vpop.eup %6545 }
 0xd55   :  { %v1214_v51 = vpop.permute.xlu1 %1213 }
 0xd56   :  { %v1216_v14 = vmul.f32 %v6544_v13, %v1214_v51  ;;  %v1244_v61 = vpop.permute.xlu0 %1243 }
 0xd57   :  { %v1246_v18 = vmul.f32 %v6546_v17, %v1244_v61  ;;  %v161_v61 = vmul.f32 %v9484_v19, %v9486_v6 }
 0xd58   :  { %1248 = vst.msk [vmem:[#allocation2 + $0x20] sm:$0xff] %vm601_vm0, %v1216_v14 }
 0xd59   :  { %1250 = vst.msk [vmem:[#allocation2 + $0x58] sm:$0xff] %vm601_vm0, %v1246_v18  ;;  %1252 = vrot.lane.b32.xlu0 %v1246_v18, %s7149_s24  ;;  %v151_v18 = vmul.f32 %v9485_v12, %v9487_v5 }
 0xdcb   :  { %v1253_v39 = vpop.permute.xlu0 %1252 }
 0xdcc   :  { %v1255_v11 = vsel %vm601_vm0, %v1216_v14, %v1253_v39  ;;  %v214_v39 = vadd.f32 %v7417_v57, %v161_v61 }
 0xdcd   :  { %v1256_v16 = vpack.c.bf16 %v1255_v11, %v1255_v11 }
 0xdcf   :  { %1290 = vmatmul.mubr.bf16.vlgmr.msra.gmra.mxu0 %v1256_v16  ;;  %1331 = vmatmul.mubr.bf16.vlgmr.msra.gmra.mxu1 %v1256_v16  ;;  %v204_v16 = vadd.f32 %v7412_v52, %v151_v18 }
 0xdd0   :  { %1418 = vmatpush1.bf16.msra.mxu0 %v7588_v21  ;;  %1459 = vmatpush1.bf16.msra.mxu1 %v7591_v22 }
 0xdd1   :  { %1419 = vmatprep.subr.bf16.mxu0 %v7594_v23  ;;  %1460 = vmatprep.subr.bf16.mxu1 %v7597_v24 }
 0xdd2   :  { %1449 = vmatprep.mubr.bf16.mxu0 %v9477_v63  ;;  %1490 = vmatprep.mubr.bf16.mxu1 %v9477_v63 }
 0xdd4   :  { %1420 = vmatpush1.bf16.msra.mxu0 %v7602_v26  ;;  %1461 = vmatpush1.bf16.msra.mxu1 %v7605_v29 }
 0xdd5   :  { %1421 = vmatprep.subr.bf16.mxu0 %v7608_v30  ;;  %1462 = vmatprep.subr.bf16.mxu1 %v7611_v31 }
 0xdd8   :  { %1422 = vmatpush1.bf16.msra.mxu0 %v7614_v32  ;;  %1463 = vmatpush1.bf16.msra.mxu1 %v7617_v33 }
 0xdd9   :  { %1423 = vmatprep.subr.bf16.mxu0 %v7620_v36  ;;  %1464 = vmatprep.subr.bf16.mxu1 %v7623_v38 }
 0xddc   :  { %1424 = vmatpush1.bf16.msra.mxu0 %v7626_v40  ;;  %1465 = vmatpush1.bf16.msra.mxu1 %v7629_v41 }
 0xddd   :  { %1425 = vmatprep.subr.bf16.mxu0 %v7632_v46  ;;  %1466 = vmatprep.subr.bf16.mxu1 %v7635_v45 }
 0xde0   :  { %1426 = vmatpush1.bf16.msra.mxu0 %v7638_v47  ;;  %1467 = vmatpush1.bf16.msra.mxu1 %v7641_v49 }
 0xde1   :  { %1427 = vmatprep.subr.bf16.mxu0 %v7644_v0  ;;  %1468 = vmatprep.subr.bf16.mxu1 %v7647_v59 }
 0xde4   :  { %1428 = vmatpush1.bf16.msra.mxu0 %v7650_v15  ;;  %1469 = vmatpush1.bf16.msra.mxu1 %v7653_v55 }
 0xde5   :  { %1429 = vmatprep.subr.bf16.mxu0 %v7656_v3  ;;  %1470 = vmatprep.subr.bf16.mxu1 %v7659_v1 }
 0xde8   :  { %1430 = vmatpush1.bf16.msra.mxu0 %v7662_v56  ;;  %1471 = vmatpush1.bf16.msra.mxu1 %v7665_v60 }
 0xde9   :  { %1472 = vmatprep.subr.bf16.mxu1 %v7668_v42  ;;  %1431 = vmatprep.subr.bf16.mxu0 %v7671_v44 }
 0xdec   :  { %1432 = vmatpush1.bf16.msra.mxu0 %v7674_v53  ;;  %1473 = vmatpush1.bf16.msra.mxu1 %v7677_v25 }
 0xded   :  { %1577 = vmatprep.subr.bf16.mxu0 %v7543_v2  ;;  %1618 = vmatprep.subr.bf16.mxu1 %v7546_v4 }
 0xe8f   :  { %v1291_v20 = vpop.f32.mrf.mxu0  ;;  %v1332_v35 = vpop.f32.mrf.mxu1 }
 0xe90   :  { %v1341_v11 = vadd.f32 %v1291_v20, %v214_v39  ;;  %v1345_v34 = vadd.f32 %v1332_v35, %v204_v16 }
 0xe91   :  { %v1293_v8 = vpop.f32.mrf.mxu0  ;;  %v1334_v10 = vpop.f32.mrf.mxu1 }
 0xe92   :  { %v1342_v27 = vadd.f32 %v1293_v8, %v215_v7  ;;  %v1346_v2 = vadd.f32 %v1334_v10, %v205_v58  ;;  %v5850_v37 = vmul.f32 -1.442695, %v1341_v11  ;;  %v5852_v7 = vmul.f32 -1.442695, %v1345_v34 }
 0xe93   :  { %v1295_v62 = vpop.f32.mrf.mxu0  ;;  %v1336_v13 = vpop.f32.mrf.mxu1 }
 0xe94   :  { %6547 = vtanh.f32 %v1342_v27  ;;  %v5851_v34 = vmul.f32 -1.442695, %v1342_v27 }
 0xe95   :  { %v1296_v51 = vpop.f32.mrf.mxu0  ;;  %v1337_v4 = vpop.f32.mrf.mxu1  ;;  %6549 = vtanh.f32 %v1346_v2 }
 0xe96   :  { %6551 = vpow2.f32 %v5850_v37 }
 0xe97   :  { %6553 = vpow2.f32 %v5852_v7 }
 0xea1   :  { %v6548_v14 = vpop.eup %6547 }
 0xea2   :  { %1362 = vrot.lane.b32.xlu0 %v6548_v14, %s7149_s24  ;;  %v6550_v17 = vpop.eup %6549 }
 0xea3   :  { %1392 = vrot.lane.b32.xlu1 %v6550_v17, %s7149_s24  ;;  %v6552_v8 = vpop.eup %6551 }
 0xea4   :  { %v6554_v10 = vpop.eup %6553  ;;  %v1353_v58 = vadd.f32 1.0, %v6552_v8 }
 0xea5   :  { %v1383_v62 = vadd.f32 1.0, %v6554_v10 }
 0xea6   :  { %6555 = vrcp.f32 %v1353_v58 }
 0xea7   :  { %6557 = vrcp.f32 %v1383_v62 }
 0xeb3   :  { %v6556_v6 = vpop.eup %6555 }
 0xeb4   :  { %v6558_v5 = vpop.eup %6557  ;;  %v1360_v20 = vmul.f32 %v6556_v6, %v7768_v28  ;;  %v5853_v28 = vmul.f32 -1.442695, %v1346_v2 }
 0xeb5   :  { %v1390_v17 = vmul.f32 %v6558_v5, %v7770_v9 }
 0xf14   :  { %v1363_v13 = vpop.permute.xlu0 %1362 }
 0xf15   :  { %v1365_v51 = vmul.f32 %v6556_v6, %v1363_v13  ;;  %v1393_v4 = vpop.permute.xlu1 %1392 }
 0xf16   :  { %v1395_v14 = vmul.f32 %v6558_v5, %v1393_v4 }
 0xf17   :  { %1367 = vrot.lane.b32.xlu0 %v1365_v51, %s7149_s24 }
 0xf18   :  { %1397 = vrot.lane.b32.xlu1 %v1395_v14, %s7149_s24 }
 0xf89   :  { %v1368_v35 = vpop.permute.xlu0 %1367 }
 0xf8a   :  { %v7832_v61 = vadd.f32 %v1368_v35, %v1360_v20  ;;  %v1398_v18 = vpop.permute.xlu1 %1397 }
 0xf8b   :  { %v7834_v39 = vadd.f32 %v1398_v18, %v1390_v17 }
 0xf8c   :  { %6559 = vtanh.f32 %v7832_v61 }
 0xf8d   :  { %6561 = vtanh.f32 %v7834_v39 }
 0xf8e   :  { %6563 = vpow2.f32 %v5851_v34 }
 0xf8f   :  { %6565 = vpow2.f32 %v5853_v28 }
 0xf99   :  { %v6560_v11 = vpop.eup %6559 }
 0xf9a   :  { %1373 = vrot.lane.b32.xlu0 %v6560_v11, %s7149_s24  ;;  %v6562_v16 = vpop.eup %6561 }
 0xf9b   :  { %1403 = vrot.lane.b32.xlu1 %v6562_v16, %s7149_s24  ;;  %v6564_v9 = vpop.eup %6563 }
 0xf9c   :  { %v6566_v37 = vpop.eup %6565  ;;  %v1354_v7 = vadd.f32 1.0, %v6564_v9 }
 0xf9d   :  { %v1384_v8 = vadd.f32 1.0, %v6566_v37 }
 0xf9e   :  { %6567 = vrcp.f32 %v1354_v7 }
 0xf9f   :  { %6569 = vrcp.f32 %v1384_v8 }
 0xfab   :  { %v6568_v10 = vpop.eup %6567 }
 0xfac   :  { %v6570_v6 = vpop.eup %6569 }
0x100c   :  { %v1374_v58 = vpop.permute.xlu0 %1373 }
0x100d   :  { %v1376_v62 = vmul.f32 %v6568_v10, %v1374_v58  ;;  %v1404_v13 = vpop.permute.xlu1 %1403 }
0x100e   :  { %v1406_v51 = vmul.f32 %v6570_v6, %v1404_v13 }
0x100f   :  { %1408 = vst.msk [vmem:[#allocation2 + $0x28] sm:$0xff] %vm601_vm0, %v1376_v62 }
0x1010   :  { %1410 = vst.msk [vmem:[#allocation2 + $0x50] sm:$0xff] %vm601_vm0, %v1406_v51  ;;  %1412 = vrot.lane.b32.xlu1 %v1406_v51, %s7149_s24 }
0x1082   :  { %v1413_v27 = vpop.permute.xlu1 %1412 }
0x1083   :  { %v1415_v2 = vsel %vm601_vm0, %v1376_v62, %v1413_v27 }
0x1084   :  { %v1416_v5 = vpack.c.bf16 %v1415_v2, %v1415_v2 }
0x1086   :  { %1450 = vmatmul.mubr.bf16.vlgmr.msra.gmra.mxu0 %v1416_v5  ;;  %1491 = vmatmul.mubr.bf16.vlgmr.msra.gmra.mxu1 %v1416_v5 }
0x1087   :  { %1578 = vmatpush1.bf16.msra.mxu0 %v7588_v21  ;;  %1619 = vmatpush1.bf16.msra.mxu1 %v7591_v22  ;;  %v9488_v21 = vld [vmem:[#allocation20_spill] sm:$0xff] }
0x1088   :  { %1579 = vmatprep.subr.bf16.mxu0 %v7594_v23  ;;  %1620 = vmatprep.subr.bf16.mxu1 %v7597_v24  ;;  %v166_v22 = vmul.f32 %v7391_v50, %v9488_v21 }
0x1089   :  { %1609 = vmatprep.mubr.bf16.mxu0 %v9477_v63  ;;  %1650 = vmatprep.mubr.bf16.mxu1 %v9477_v63 }
0x108b   :  { %1580 = vmatpush1.bf16.msra.mxu0 %v7602_v26  ;;  %1621 = vmatpush1.bf16.msra.mxu1 %v7605_v29  ;;  %v9489_v26 = vld [vmem:[#allocation19_spill] sm:$0xff] }
0x108c   :  { %1581 = vmatprep.subr.bf16.mxu0 %v7608_v30  ;;  %1622 = vmatprep.subr.bf16.mxu1 %v7611_v31  ;;  %v148_v29 = vmul.f32 %v7372_v43, %v9489_v26  ;;  %v219_v30 = vadd.f32 %v7397_v54, %v166_v22 }
0x108f   :  { %1582 = vmatpush1.bf16.msra.mxu0 %v7614_v32  ;;  %1623 = vmatpush1.bf16.msra.mxu1 %v7617_v33 }
0x1090   :  { %1583 = vmatprep.subr.bf16.mxu0 %v7620_v36  ;;  %1624 = vmatprep.subr.bf16.mxu1 %v7623_v38  ;;  %v201_v36 = vadd.f32 %v7385_v48, %v148_v29 }
0x1093   :  { %1584 = vmatpush1.bf16.msra.mxu0 %v7626_v40  ;;  %1625 = vmatpush1.bf16.msra.mxu1 %v7629_v41 }
0x1094   :  { %1585 = vmatprep.subr.bf16.mxu0 %v7632_v46  ;;  %1626 = vmatprep.subr.bf16.mxu1 %v7635_v45 }
0x1097   :  { %1586 = vmatpush1.bf16.msra.mxu0 %v7638_v47  ;;  %1627 = vmatpush1.bf16.msra.mxu1 %v7641_v49 }
0x1098   :  { %1587 = vmatprep.subr.bf16.mxu0 %v7644_v0  ;;  %1628 = vmatprep.subr.bf16.mxu1 %v7647_v59  ;;  %v165_v0 = vmul.f32 %v9484_v19, %v9488_v21  ;;  %v147_v59 = vmul.f32 %v9485_v12, %v9489_v26 }
0x109b   :  { %1588 = vmatpush1.bf16.msra.mxu0 %v7650_v15  ;;  %1629 = vmatpush1.bf16.msra.mxu1 %v7653_v55  ;;  %v218_v15 = vadd.f32 %v7417_v57, %v165_v0 }
0x109c   :  { %1589 = vmatprep.subr.bf16.mxu0 %v7656_v3  ;;  %1630 = vmatprep.subr.bf16.mxu1 %v7659_v1  ;;  %v200_v3 = vadd.f32 %v7412_v52, %v147_v59 }
0x109f   :  { %1590 = vmatpush1.bf16.msra.mxu0 %v7662_v56  ;;  %1631 = vmatpush1.bf16.msra.mxu1 %v7665_v60 }
0x10a0   :  { %1632 = vmatprep.subr.bf16.mxu1 %v7668_v42  ;;  %1591 = vmatprep.subr.bf16.mxu0 %v7671_v44 }
0x10a3   :  { %1592 = vmatpush1.bf16.msra.mxu0 %v7674_v53  ;;  %1633 = vmatpush1.bf16.msra.mxu1 %v7677_v25 }
0x1146   :  { %v1451_v23 = vpop.f32.mrf.mxu0  ;;  %v1492_v24 = vpop.f32.mrf.mxu1 }
0x1147   :  { %v1501_v55 = vadd.f32 %v1451_v23, %v218_v15  ;;  %v1505_v1 = vadd.f32 %v1492_v24, %v200_v3 }
0x1148   :  { %v1453_v31 = vpop.f32.mrf.mxu0  ;;  %v1494_v32 = vpop.f32.mrf.mxu1 }
0x1149   :  { %v1502_v33 = vadd.f32 %v1453_v31, %v219_v30  ;;  %v1506_v41 = vadd.f32 %v1494_v32, %v201_v36  ;;  %v5854_v56 = vmul.f32 -1.442695, %v1501_v55  ;;  %v5856_v60 = vmul.f32 -1.442695, %v1505_v1  ;;  %v9490_v30 = vld [vmem:[#allocation16_spill] sm:$0xff]  ;;  %v9491_v36 = vld [vmem:[#allocation14_spill] sm:$0xff] }
0x114a   :  { %v1455_v38 = vpop.f32.mrf.mxu0  ;;  %v1496_v40 = vpop.f32.mrf.mxu1  ;;  %v144_v31 = vmul.f32 %v7372_v43, %v9490_v30  ;;  %v169_v15 = vmul.f32 %v9484_v19, %v9491_v36 }
0x114b   :  { %6571 = vtanh.f32 %v1502_v33  ;;  %v5855_v10 = vmul.f32 -1.442695, %v1502_v33  ;;  %v170_v38 = vmul.f32 %v7391_v50, %v9491_v36  ;;  %v6265_v36 = vld [vmem:[#allocation5 + $0x48] ss:$16 sps:$4 sm:$0xff]  }
0x114c   :  { %v1456_v46 = vpop.f32.mrf.mxu0  ;;  %v1497_v45 = vpop.f32.mrf.mxu1  ;;  %6573 = vtanh.f32 %v1506_v41  ;;  %v197_v40 = vadd.f32 %v7385_v48, %v144_v31  ;;  %v143_v48 = vmul.f32 %v9485_v12, %v9490_v30  ;;  %v222_v3 = vadd.f32 %v7417_v57, %v169_v15  ;;  %v6259_v30 = vld [vmem:[#allocation5 + $0x68] ss:$16 sps:$4 sm:$0xff]   ;;  %v6262_v31 = vld [vmem:[#allocation5 + $0x60] ss:$16 sps:$4 sm:$0xff]  }
0x114d   :  { %6575 = vpow2.f32 %v5854_v56  ;;  %v223_v0 = vadd.f32 %v7397_v54, %v170_v38  ;;  %v6268_v38 = vld [vmem:[#allocation5 + $0x40] ss:$16 sps:$4 sm:$0xff]  }
0x114e   :  { %6577 = vpow2.f32 %v5856_v60  ;;  %v196_v54 = vadd.f32 %v7412_v52, %v143_v48 }
0x1158   :  { %v6572_v47 = vpop.eup %6571 }
0x1159   :  { %1522 = vrot.lane.b32.xlu1 %v6572_v47, %s7149_s24  ;;  %v6574_v49 = vpop.eup %6573 }
0x115a   :  { %1552 = vrot.lane.b32.xlu0 %v6574_v49, %s7149_s24  ;;  %v6576_v42 = vpop.eup %6575 }
0x115b   :  { %v6578_v44 = vpop.eup %6577  ;;  %v1513_v53 = vadd.f32 1.0, %v6576_v42 }
0x115c   :  { %v1543_v25 = vadd.f32 1.0, %v6578_v44 }
0x115d   :  { %6579 = vrcp.f32 %v1513_v53 }
0x115e   :  { %6581 = vrcp.f32 %v1543_v25 }
0x116a   :  { %v6580_v4 = vpop.eup %6579 }
0x116b   :  { %v6582_v35 = vpop.eup %6581  ;;  %v1520_v11 = vmul.f32 %v6580_v4, %v7832_v61  ;;  %v5857_v61 = vmul.f32 -1.442695, %v1506_v41 }
0x116c   :  { %v1550_v34 = vmul.f32 %v6582_v35, %v7834_v39 }
0x11cb   :  { %v1523_v14 = vpop.permute.xlu1 %1522 }
0x11cc   :  { %v1525_v20 = vmul.f32 %v6580_v4, %v1523_v14  ;;  %v1553_v17 = vpop.permute.xlu0 %1552 }
0x11cd   :  { %v1555_v18 = vmul.f32 %v6582_v35, %v1553_v17  ;;  %v1776_v35 = vld [vmem:[#allocation2 + $0x58] sm:$0xff] }
0x11ce   :  { %1527 = vrot.lane.b32.xlu1 %v1525_v20, %s7149_s24  ;;  %v1775_v20 = vld [vmem:[#allocation2 + $0x50] sm:$0xff] }
0x11cf   :  { %1557 = vrot.lane.b32.xlu0 %v1555_v18, %s7149_s24  ;;  %v6152_v17 = vpack.i.bf16 %v1776_v35, %v1775_v20  ;;  %v1777_v18 = vld [vmem:[#allocation2 + $0x60] sm:$0xff] }
0x1240   :  { %v1528_v16 = vpop.permute.xlu1 %1527 }
0x1241   :  { %v7894_v28 = vadd.f32 %v1528_v16, %v1520_v11  ;;  %v1558_v9 = vpop.permute.xlu0 %1557  ;;  %v1778_v11 = vld [vmem:[#allocation2 + $0x68] sm:$0xff] }
0x1242   :  { %v7896_v37 = vadd.f32 %v1558_v9, %v1550_v34  ;;  %v6157_v16 = vpack.i.bf16 %v1778_v11, %v1777_v18 }
0x1243   :  { %6583 = vtanh.f32 %v7894_v28 }
0x1244   :  { %6585 = vtanh.f32 %v7896_v37 }
0x1245   :  { %6587 = vpow2.f32 %v5855_v10  ;;  %v6235_v10 = vld [vmem:[#allocation5 + $0xe8] ss:$16 sps:$4 sm:$0xff]  }
0x1246   :  { %6589 = vpow2.f32 %v5857_v61  ;;  %v6237_v61 = vld [vmem:[#allocation5 + $0xec] ss:$16 sps:$4 sm:$0xff]  }
0x1247   :  { %2079 = vmatprep.subr.bf16.mxu1 %v6237_v61 }
0x1250   :  { %v6584_v7 = vpop.eup %6583 }
0x1251   :  { %1533 = vrot.lane.b32.xlu1 %v6584_v7, %s7149_s24  ;;  %v6586_v8 = vpop.eup %6585 }
0x1252   :  { %1563 = vrot.lane.b32.xlu0 %v6586_v8, %s7149_s24  ;;  %v6588_v39 = vpop.eup %6587 }
0x1253   :  { %v6590_v58 = vpop.eup %6589  ;;  %v1514_v62 = vadd.f32 1.0, %v6588_v39  ;;  %v6238_v39 = vld [vmem:[#allocation5 + $0xe0] ss:$16 sps:$4 sm:$0xff]  }
0x1254   :  { %v1544_v6 = vadd.f32 1.0, %v6590_v58  ;;  %v6240_v58 = vld [vmem:[#allocation5 + $0xe4] ss:$16 sps:$4 sm:$0xff]  }
0x1255   :  { %6591 = vrcp.f32 %v1514_v62  ;;  %v6243_v62 = vld [vmem:[#allocation5 + $0xcc] ss:$16 sps:$4 sm:$0xff]   ;;  %2006 = vmatprep.subr.bf16.mxu0 %v6240_v58 }
0x1256   :  { %6593 = vrcp.f32 %v1544_v6  ;;  %v6246_v6 = vld [vmem:[#allocation5 + $0xc4] ss:$16 sps:$4 sm:$0xff]   ;;  %v7957_v58 = vld [vmem:[#allocation7 + $0x1cc] ss:$16 sps:$4 sm:$0xff]  }
0x1262   :  { %v6592_v13 = vpop.eup %6591 }
0x1263   :  { %v6594_v2 = vpop.eup %6593 }
0x12c3   :  { %v1534_v51 = vpop.permute.xlu1 %1533 }
0x12c4   :  { %v1536_v27 = vmul.f32 %v6592_v13, %v1534_v51  ;;  %v1564_v5 = vpop.permute.xlu0 %1563  ;;  %v6241_v13 = vld [vmem:[#allocation5 + $0xc8] ss:$16 sps:$4 sm:$0xff]   ;;  %v6244_v51 = vld [vmem:[#allocation5 + $0xc0] ss:$16 sps:$4 sm:$0xff]  }
0x12c5   :  { %v1566_v21 = vmul.f32 %v6594_v2, %v1564_v5  ;;  %v6247_v2 = vld [vmem:[#allocation5 + $0xa8] ss:$16 sps:$4 sm:$0xff]   ;;  %v6250_v5 = vld [vmem:[#allocation5 + $0xa0] ss:$16 sps:$4 sm:$0xff]  }
0x12c6   :  { %1568 = vst.msk [vmem:[#allocation2 + $0x30] sm:$0xff] %vm601_vm0, %v1536_v27 }
0x12c7   :  { %1570 = vst.msk [vmem:[#allocation2 + $0x48] sm:$0xff] %vm601_vm0, %v1566_v21  ;;  %1572 = vrot.lane.b32.xlu0 %v1566_v21, %s7149_s24  ;;  %v6255_v21 = vld [vmem:[#allocation5 + $0x8c] ss:$16 sps:$4 sm:$0xff]  }
0x1339   :  { %v1573_v22 = vpop.permute.xlu0 %1572 }
0x133a   :  { %v1575_v23 = vsel %vm601_vm0, %v1536_v27, %v1573_v22  ;;  %v6252_v27 = vld [vmem:[#allocation5 + $0xa4] ss:$16 sps:$4 sm:$0xff]  }
0x133b   :  { %v1576_v24 = vpack.c.bf16 %v1575_v23, %v1575_v23  ;;  %v6258_v22 = vld [vmem:[#allocation5 + $0x84] ss:$16 sps:$4 sm:$0xff]   ;;  %v6253_v23 = vld [vmem:[#allocation5 + $0x88] ss:$16 sps:$4 sm:$0xff]  }
0x133d   :  { %1610 = vmatmul.mubr.bf16.vlgmr.msra.gmra.mxu0 %v1576_v24  ;;  %1651 = vmatmul.mubr.bf16.vlgmr.msra.gmra.mxu1 %v1576_v24  ;;  %v6256_v24 = vld [vmem:[#allocation5 + $0x80] ss:$16 sps:$4 sm:$0xff]  }
0x133e   :  { %2038 = vmatprep.mubr.bf16.mxu0 %v9477_v63  ;;  %2111 = vmatprep.mubr.bf16.mxu1 %v9477_v63 }
0x133f   :  { %2080 = vmatpush1.bf16.msra.mxu1 %v6235_v10  ;;  %2007 = vmatpush1.bf16.msra.mxu0 %v6238_v39  ;;  %v7955_v10 = vld [vmem:[#allocation7 + $0x1e0] ss:$16 sps:$4 sm:$0xff]  }
0x1340   :  { %2081 = vmatprep.subr.bf16.mxu1 %v6243_v62  ;;  %2008 = vmatprep.subr.bf16.mxu0 %v6246_v6  ;;  %v7959_v62 = vld [vmem:[#allocation7 + $0x1c4] ss:$16 sps:$4 sm:$0xff]  }
0x1343   :  { %2082 = vmatpush1.bf16.msra.mxu1 %v6241_v13  ;;  %2009 = vmatpush1.bf16.msra.mxu0 %v6244_v51 }
0x1344   :  { %2010 = vmatprep.subr.bf16.mxu0 %v6252_v27  ;;  %v7966_v27 = vld [vmem:[#allocation7 + $0x1c0] ss:$16 sps:$4 sm:$0xff]  }
0x1347   :  { %2011 = vmatpush1.bf16.msra.mxu0 %v6250_v5  ;;  %v7970_v5 = vld [vmem:[#allocation7 + $0x1ac] ss:$16 sps:$4 sm:$0xff]  }
0x1348   :  { %2012 = vmatprep.subr.bf16.mxu0 %v6258_v22  ;;  %v7972_v22 = vld [vmem:[#allocation7 + $0x1a4] ss:$16 sps:$4 sm:$0xff]  }
0x134b   :  { %2013 = vmatpush1.bf16.msra.mxu0 %v6256_v24 }
0x13fd   :  { %v1611_v26 = vpop.f32.mrf.mxu0  ;;  %v1652_v29 = vpop.f32.mrf.mxu1 }
0x13fe   :  { %v1665_v55 = vadd.f32 %v1652_v29, %v196_v54  ;;  %v1661_v1 = vadd.f32 %v1611_v26, %v222_v3  ;;  %v6261_v26 = vld [vmem:[#allocation5 + $0x6c] ss:$16 sps:$4 sm:$0xff]   ;;  %v6264_v29 = vld [vmem:[#allocation5 + $0x64] ss:$16 sps:$4 sm:$0xff]  }
0x13ff   :  { %v1613_v32 = vpop.f32.mrf.mxu0  ;;  %v1654_v33 = vpop.f32.mrf.mxu1  ;;  %2014 = vmatprep.subr.bf16.mxu0 %v6264_v29  ;;  %v6279_v54 = vld [vmem:[#allocation5 + $0xc] ss:$16 sps:$4 sm:$0xff]   ;;  %v7980_v29 = vld [vmem:[#allocation7 + $0x1a8] ss:$16 sps:$4 sm:$0xff]  }
0x1400   :  { %v7913_v45 = vadd.f32 %v1654_v33, %v197_v40  ;;  %v7916_v59 = vadd.f32 %v1613_v32, %v223_v0  ;;  %v5860_v56 = vmul.f32 -1.442695, %v1665_v55  ;;  %v5858_v60 = vmul.f32 -1.442695, %v1661_v1  ;;  %v6267_v32 = vld [vmem:[#allocation5 + $0x4c] ss:$16 sps:$4 sm:$0xff]   ;;  %2015 = vmatpush1.bf16.msra.mxu0 %v6262_v31 }
0x1401   :  { %v1615_v41 = vpop.f32.mrf.mxu0  ;;  %v1656_v46 = vpop.f32.mrf.mxu1  ;;  %v6270_v33 = vld [vmem:[#allocation5 + $0x44] ss:$16 sps:$4 sm:$0xff]   ;;  %v6273_v40 = vld [vmem:[#allocation5 + $0x2c] ss:$16 sps:$4 sm:$0xff]  }
0x1402   :  { %6595 = vtanh.f32 %v7913_v45  ;;  %2016 = vmatprep.subr.bf16.mxu0 %v6270_v33  ;;  %v6276_v41 = vld [vmem:[#allocation5 + $0x24] ss:$16 sps:$4 sm:$0xff]   ;;  %v6271_v46 = vld [vmem:[#allocation5 + $0x28] ss:$16 sps:$4 sm:$0xff]  }
0x1403   :  { %v1616_v47 = vpop.f32.mrf.mxu0  ;;  %v1657_v49 = vpop.f32.mrf.mxu1  ;;  %6597 = vtanh.f32 %v7916_v59  ;;  %v6282_v55 = vld [vmem:[#allocation5 + $0x4] ss:$16 sps:$4 sm:$0xff]  }
0x1404   :  { %6599 = vpow2.f32 %v5860_v56  ;;  %2017 = vmatpush1.bf16.msra.mxu0 %v6268_v38  ;;  %v6274_v47 = vld [vmem:[#allocation5 + $0x20] ss:$16 sps:$4 sm:$0xff]   ;;  %v5861_v49 = vmul.f32 -1.442695, %v7913_v45  ;;  %v6277_v56 = vld [vmem:[#allocation5 + $0x8] ss:$16 sps:$4 sm:$0xff]  }
0x1405   :  { %6601 = vpow2.f32 %v5858_v60  ;;  %2018 = vmatprep.subr.bf16.mxu0 %v6276_v41  ;;  %v6280_v60 = vld [vmem:[#allocation5] ss:$16 sps:$4 sm:$0xff]   ;;  %v7941_v45 = vld [vmem:[#allocation7 + $0x1ec] ss:$16 sps:$4 sm:$0xff]   ;;  %v7988_v33 = vld [vmem:[#allocation7 + $0x184] ss:$16 sps:$4 sm:$0xff]  }
0x1406   :  { %v7994_v41 = vld [vmem:[#allocation7 + $0x180] ss:$16 sps:$4 sm:$0xff]  }
0x1408   :  { %2019 = vmatpush1.bf16.msra.mxu0 %v6274_v47  ;;  %v7998_v47 = vld [vmem:[#allocation7 + $0x16c] ss:$16 sps:$4 sm:$0xff]  }
0x1409   :  { %2020 = vmatprep.subr.bf16.mxu0 %v6282_v55 }
0x140c   :  { %2021 = vmatpush1.bf16.msra.mxu0 %v6280_v60 }
0x140f   :  { %v6596_v43 = vpop.eup %6595 }
0x1410   :  { %1712 = vrot.lane.b32.xlu1 %v6596_v43, %s7149_s24  ;;  %v6598_v50 = vpop.eup %6597 }
0x1411   :  { %v6600_v42 = vpop.eup %6599 }
0x1412   :  { %v1703_v44 = vadd.f32 1.0, %v6600_v42  ;;  %v6602_v53 = vpop.eup %6601 }
0x1413   :  { %v1673_v25 = vadd.f32 1.0, %v6602_v53  ;;  %v1774_v53 = vld [vmem:[#allocation2 + $0x48] sm:$0xff] }
0x1414   :  { %1682 = vrot.lane.b32.xlu1 %v6598_v50, %s7149_s24  ;;  %6603 = vrcp.f32 %v1703_v44  ;;  %v7943_v44 = vld [vmem:[#allocation7 + $0x1e4] ss:$16 sps:$4 sm:$0xff]  }
0x1415   :  { %6605 = vrcp.f32 %v1673_v25  ;;  %2377 = vmatprep.subr.bf16.mxu0 %v7943_v44 }
0x1421   :  { %v6604_v12 = vpop.eup %6603 }
0x1422   :  { %v7929_v52 = vpop.eup %6605  ;;  %v1710_v34 = vmul.f32 %v6604_v12, %v7896_v37  ;;  %v6249_v37 = vld [vmem:[#allocation5 + $0xac] ss:$16 sps:$4 sm:$0xff]  }
0x1423   :  { %2083 = vmatprep.subr.bf16.mxu1 %v6249_v37  ;;  %v1680_v48 = vmul.f32 %v7929_v52, %v7894_v28  ;;  %v7964_v37 = vld [vmem:[#allocation7 + $0x1c8] ss:$16 sps:$4 sm:$0xff]  }
0x1424   :  { %2084 = vmatpush1.bf16.msra.mxu1 %v6247_v2  ;;  %v1767_v2 = vld [vmem:[#allocation2 + $0x10] sm:$0xff] }
0x1425   :  { %2085 = vmatprep.subr.bf16.mxu1 %v6255_v21  ;;  %v1768_v21 = vld [vmem:[#allocation2 + $0x18] sm:$0xff] }
0x1428   :  { %2086 = vmatpush1.bf16.msra.mxu1 %v6253_v23 }
0x1429   :  { %2087 = vmatprep.subr.bf16.mxu1 %v6261_v26 }
0x142c   :  { %2088 = vmatpush1.bf16.msra.mxu1 %v6259_v30  ;;  %v7982_v30 = vld [vmem:[#allocation7 + $0x1a0] ss:$16 sps:$4 sm:$0xff]  }
0x142d   :  { %2089 = vmatprep.subr.bf16.mxu1 %v6267_v32  ;;  %v7986_v32 = vld [vmem:[#allocation7 + $0x18c] ss:$16 sps:$4 sm:$0xff]  }
0x1430   :  { %2090 = vmatpush1.bf16.msra.mxu1 %v6265_v36 }
0x1431   :  { %2091 = vmatprep.subr.bf16.mxu1 %v6273_v40  ;;  %v7992_v40 = vld [vmem:[#allocation7 + $0x188] ss:$16 sps:$4 sm:$0xff]  }
0x1434   :  { %2092 = vmatpush1.bf16.msra.mxu1 %v6271_v46  ;;  %v1769_v46 = vld [vmem:[#allocation2 + $0x20] sm:$0xff] }
0x1435   :  { %2093 = vmatprep.subr.bf16.mxu1 %v6279_v54 }
0x1438   :  { %2094 = vmatpush1.bf16.msra.mxu1 %v6277_v56 }
0x1439   :  { %2418 = vmatprep.subr.bf16.mxu1 %v7941_v45 }
0x1482   :  { %v1713_v4 = vpop.permute.xlu1 %1712 }
0x1483   :  { %v1715_v14 = vmul.f32 %v6604_v12, %v1713_v4  ;;  %v1779_v4 = vld [vmem:[#allocation2 + $0x70] sm:$0xff] }
0x1485   :  { %1717 = vrot.lane.b32.xlu0 %v1715_v14, %s7149_s24  ;;  %v1780_v14 = vld [vmem:[#allocation2 + $0x78] sm:$0xff] }
0x1486   :  { %v1683_v19 = vpop.permute.xlu1 %1682 }
0x1487   :  { %v1685_v57 = vmul.f32 %v7929_v52, %v1683_v19  ;;  %v6162_v52 = vpack.i.bf16 %v1780_v14, %v1779_v4  ;;  %v5859_v19 = vmul.f32 -1.442695, %v7916_v59  ;;  %v1771_v14 = vld [vmem:[#allocation2 + $0x30] sm:$0xff] }
0x1489   :  { %1687 = vrot.lane.b32.xlu1 %v1685_v57, %s7149_s24 }
0x148d   :  { %6153 = vrot.lane.b32.xlu1 %v6152_v17, %s7149_s24 }
0x1491   :  { %6158 = vrot.lane.b32.xlu1 %v6157_v16, %s7149_s24  ;;  %v1765_v16 = vld [vmem:[#allocation2] sm:$0xff] }
0x14f7   :  { %v1718_v9 = vpop.permute.xlu0 %1717 }
0x14f8   :  { %v1720_v7 = vadd.f32 %v1718_v9, %v1710_v34  ;;  %v1766_v34 = vld [vmem:[#allocation2 + $0x8] sm:$0xff] }
0x14fa   :  { %6607 = vtanh.f32 %v1720_v7 }
0x14fb   :  { %6609 = vpow2.f32 %v5861_v49  ;;  %v1688_v50 = vpop.permute.xlu1 %1687  ;;  %v1770_v49 = vld [vmem:[#allocation2 + $0x28] sm:$0xff] }
0x14fc   :  { %v1690_v15 = vadd.f32 %v1688_v50, %v1680_v48  ;;  %v8008_v48 = vld [vmem:[#allocation7 + $0x168] ss:$16 sps:$4 sm:$0xff]  }
0x14ff   :  { %v6154_v11 = vpop.permute.xlu1 %6153 }
0x1500   :  { %v6156_v6 = vunpack.i.h.bf16 %v6154_v11  ;;  %v6155_v13 = vunpack.i.l.bf16 %v6154_v11  ;;  %v8050_v11 = vld [vmem:[#allocation7 + $0x100] ss:$16 sps:$4 sm:$0xff]  }
0x1502   :  { %v1815_v23 = vsel %vm601_vm0, %v1767_v2, %v6155_v13  ;;  %v1816_v24 = vsel %vm601_vm0, %v1768_v21, %v6156_v6 }
0x1503   :  { %v6159_v26 = vpop.permute.xlu1 %6158  ;;  %v1822_v31 = vpack.c.bf16 %v1816_v24, %v1815_v23 }
0x1504   :  { %v6161_v36 = vunpack.i.h.bf16 %v6159_v26  ;;  %v6160_v38 = vunpack.i.l.bf16 %v6159_v26 }
0x1506   :  { %v1818_v50 = vsel %vm601_vm0, %v1770_v49, %v6161_v36  ;;  %v9497_v36 = vld [vmem:[#allocation15_spill] sm:$0xff] }
0x1507   :  { %v6608_v8 = vpop.eup %6607 }
0x1508   :  { %1723 = vrot.lane.b32.xlu0 %v6608_v8, %s7149_s24  ;;  %v6610_v0 = vpop.eup %6609  ;;  %v7953_v8 = vld [vmem:[#allocation7 + $0x1e8] ss:$16 sps:$4 sm:$0xff]  }
0x1509   :  { %v1704_v43 = vadd.f32 1.0, %v6610_v0  ;;  %v8000_v0 = vld [vmem:[#allocation7 + $0x164] ss:$16 sps:$4 sm:$0xff]  }
0x150b   :  { %6611 = vrcp.f32 %v1704_v43  ;;  %v1817_v43 = vsel %vm601_vm0, %v1769_v46, %v6160_v38 }
0x150c   :  { %6613 = vtanh.f32 %v1690_v15  ;;  %v8010_v15 = vld [vmem:[#allocation7 + $0x160] ss:$16 sps:$4 sm:$0xff]   ;;  %v1823_v55 = vpack.c.bf16 %v1818_v50, %v1817_v43 }
0x150d   :  { %6615 = vpow2.f32 %v5859_v19  ;;  %v8036_v19 = vld [vmem:[#allocation7 + $0x128] ss:$16 sps:$4 sm:$0xff]  }
0x1518   :  { %v6612_v3 = vpop.eup %6611 }
0x1519   :  { %v6614_v12 = vpop.eup %6613 }
0x151a   :  { %v6616_v57 = vpop.eup %6615 }
0x151b   :  { %v1674_v20 = vadd.f32 1.0, %v6616_v57  ;;  %v8038_v57 = vld [vmem:[#allocation7 + $0x120] ss:$16 sps:$4 sm:$0xff]  }
0x151d   :  { %6617 = vrcp.f32 %v1674_v20 }
0x152a   :  { %v6618_v61 = vpop.eup %6617 }
0x157a   :  { %v1724_v1 = vpop.permute.xlu0 %1723 }
0x157b   :  { %v1726_v42 = vmul.f32 %v6612_v3, %v1724_v1  ;;  %v8014_v3 = vld [vmem:[#allocation7 + $0x14c] ss:$16 sps:$4 sm:$0xff]   ;;  %v8016_v1 = vld [vmem:[#allocation7 + $0x144] ss:$16 sps:$4 sm:$0xff]  }
0x157d   :  { %1730 = vst.msk [vmem:[#allocation2 + $0x40] sm:$0xff] %vm601_vm0, %v1726_v42 }
0x1584   :  { %v1773_v28 = vld [vmem:[#allocation2 + $0x40] sm:$0xff] }
0x1585   :  { %v6147_v25 = vpack.i.bf16 %v1774_v53, %v1773_v28  ;;  %v8020_v28 = vld [vmem:[#allocation7 + $0x148] ss:$16 sps:$4 sm:$0xff]   ;;  %v8022_v53 = vld [vmem:[#allocation7 + $0x140] ss:$16 sps:$4 sm:$0xff]  }
0x1587   :  { %6148 = vrot.lane.b32.xlu0 %v6147_v25, %s7149_s24  ;;  %v8026_v25 = vld [vmem:[#allocation7 + $0x12c] ss:$16 sps:$4 sm:$0xff]  }
0x158b   :  { %1693 = vrot.lane.b32.xlu0 %v6614_v12, %s7149_s24  ;;  %v8028_v12 = vld [vmem:[#allocation7 + $0x124] ss:$16 sps:$4 sm:$0xff]  }
0x158f   :  { %6163 = vrot.lane.b32.xlu0 %v6162_v52, %s7149_s24 }
0x15f9   :  { %v6149_v35 = vpop.permute.xlu0 %6148 }
0x15fa   :  { %v6151_v17 = vunpack.i.h.bf16 %v6149_v35  ;;  %v6150_v18 = vunpack.i.l.bf16 %v6149_v35  ;;  %v8042_v35 = vld [vmem:[#allocation7 + $0x10c] ss:$16 sps:$4 sm:$0xff]  }
0x15fc   :  { %v1814_v9 = vsel %vm601_vm0, %v1766_v34, %v6151_v17  ;;  %v1813_v7 = vsel %vm601_vm0, %v1765_v16, %v6150_v18  ;;  %v8044_v17 = vld [vmem:[#allocation7 + $0x104] ss:$16 sps:$4 sm:$0xff]   ;;  %v8048_v18 = vld [vmem:[#allocation7 + $0x108] ss:$16 sps:$4 sm:$0xff]  }
0x15fd   :  { %v1694_v59 = vpop.permute.xlu0 %1693  ;;  %v1821_v39 = vpack.c.bf16 %v1814_v9, %v1813_v7  ;;  %v5862_v16 = vld [vmem:[%s9436_s4 + $0x4] sm:$0xf]  ;;  %v9493_v7 = vld [vmem:[#allocation17_spill] sm:$0xff] }
0x15fe   :  { %v1696_v51 = vmul.f32 %v6618_v61, %v1694_v59  ;;  %v9492_v34 = vld [vmem:[#allocation11_spill] sm:$0xff]  ;;  %v8101_v61 = vrot.slane %v5862_v16, %v9493_v7  ;;  %v9494_v59 = vld [vmem:[#allocation13_spill] sm:$0xff]  ;;  %v1833_v38 = vrot.slane %v5862_v16, %v9497_v36 }
0x15ff   :  { %2039 = vmatmul.mubr.bf16.vlgmr.msra.gmra.mxu0 %v1821_v39  ;;  %2112 = vmatmul.mubr.bf16.vlgmr.msra.gmra.mxu1 %v1821_v39  ;;  %v1829_v9 = vrot.slane %v5862_v16, %v9492_v34  ;;  %v8104_v39 = vrot.slane %v5862_v16, %v9494_v59 }
0x1600   :  { %1728 = vst.msk [vmem:[#allocation2 + $0x38] sm:$0xff] %vm601_vm0, %v1696_v51  ;;  %2419 = vmatpush1.bf16.msra.mxu1 %v7953_v8  ;;  %2378 = vmatpush1.bf16.msra.mxu0 %v7955_v10 }
0x1601   :  { %2420 = vmatprep.subr.bf16.mxu1 %v7957_v58  ;;  %2379 = vmatprep.subr.bf16.mxu0 %v7959_v62  ;;  %v6164_v54 = vpop.permute.xlu0 %6163 }
0x1602   :  { %2048 = vmatprep.mubr.bf16.mxu0 %v9477_v63  ;;  %2121 = vmatprep.mubr.bf16.mxu1 %v9477_v63  ;;  %v6166_v60 = vunpack.i.h.bf16 %v6164_v54  ;;  %v6165_v42 = vunpack.i.l.bf16 %v6164_v54 }
0x1604   :  { %2421 = vmatpush1.bf16.msra.mxu1 %v7964_v37  ;;  %2380 = vmatpush1.bf16.msra.mxu0 %v7966_v27  ;;  %v1819_v52 = vsel %vm601_vm0, %v1771_v14, %v6165_v42 }
0x1605   :  { %2422 = vmatprep.subr.bf16.mxu1 %v7970_v5  ;;  %2381 = vmatprep.subr.bf16.mxu0 %v7972_v22 }
0x1607   :  { %2049 = vmatmul.mubr.bf16.gmra.mxu0 %v1822_v31  ;;  %2122 = vmatmul.mubr.bf16.gmra.mxu1 %v1822_v31  ;;  %v1772_v56 = vld [vmem:[#allocation2 + $0x38] sm:$0xff] }
0x1608   :  { %2423 = vmatpush1.bf16.msra.mxu1 %v7980_v29  ;;  %2382 = vmatpush1.bf16.msra.mxu0 %v7982_v30  ;;  %v1820_v4 = vsel %vm601_vm0, %v1772_v56, %v6166_v60 }
0x1609   :  { %2424 = vmatprep.subr.bf16.mxu1 %v7986_v32  ;;  %2383 = vmatprep.subr.bf16.mxu0 %v7988_v33  ;;  %v1824_v20 = vpack.c.bf16 %v1820_v4, %v1819_v52 }
0x160a   :  { %2058 = vmatprep.mubr.bf16.mxu0 %v9477_v63  ;;  %2131 = vmatprep.mubr.bf16.mxu1 %v9477_v63 }
0x160c   :  { %2425 = vmatpush1.bf16.msra.mxu1 %v7992_v40  ;;  %2384 = vmatpush1.bf16.msra.mxu0 %v7994_v41 }
0x160d   :  { %2426 = vmatprep.subr.bf16.mxu1 %v7998_v47  ;;  %2385 = vmatprep.subr.bf16.mxu0 %v8000_v0 }
0x160f   :  { %2059 = vmatmul.mubr.bf16.gmra.mxu0 %v1823_v55  ;;  %2132 = vmatmul.mubr.bf16.gmra.mxu1 %v1823_v55 }
0x1610   :  { %2427 = vmatpush1.bf16.msra.mxu1 %v8008_v48  ;;  %2386 = vmatpush1.bf16.msra.mxu0 %v8010_v15 }
0x1611   :  { %2428 = vmatprep.subr.bf16.mxu1 %v8014_v3  ;;  %2387 = vmatprep.subr.bf16.mxu0 %v8016_v1 }
0x1612   :  { %2068 = vmatprep.mubr.bf16.mxu0 %v9477_v63  ;;  %2141 = vmatprep.mubr.bf16.mxu1 %v9477_v63 }
0x1614   :  { %2429 = vmatpush1.bf16.msra.mxu1 %v8020_v28  ;;  %2388 = vmatpush1.bf16.msra.mxu0 %v8022_v53 }
0x1615   :  { %2430 = vmatprep.subr.bf16.mxu1 %v8026_v25  ;;  %2389 = vmatprep.subr.bf16.mxu0 %v8028_v12 }
0x1617   :  { %2069 = vmatmul.mubr.bf16.gmra.mxu0 %v1824_v20  ;;  %2142 = vmatmul.mubr.bf16.gmra.mxu1 %v1824_v20 }
0x1618   :  { %2431 = vmatpush1.bf16.msra.mxu1 %v8036_v19  ;;  %2390 = vmatpush1.bf16.msra.mxu0 %v8038_v57 }
0x1619   :  { %2432 = vmatprep.subr.bf16.mxu1 %v8042_v35  ;;  %2391 = vmatprep.subr.bf16.mxu0 %v8044_v17 }
0x161a   :  { %2409 = vmatprep.mubr.bf16.mxu0 %v9477_v63  ;;  %2450 = vmatprep.mubr.bf16.mxu1 %v9477_v63 }
0x161c   :  { %2433 = vmatpush1.bf16.msra.mxu1 %v8048_v18  ;;  %2392 = vmatpush1.bf16.msra.mxu0 %v8050_v11 }
0x161d   :  { %2536 = vmatprep.subr.bf16.mxu0 %v7943_v44  ;;  %2577 = vmatprep.subr.bf16.mxu1 %v7941_v45 }
0x161f   :  { %2410 = vmatmul.mubr.bf16.vlgmr.msra.gmra.mxu0 %v9477_v63  ;;  %2451 = vmatmul.mubr.bf16.vlgmr.msra.gmra.mxu1 %v9477_v63 }
0x1620   :  { %2537 = vmatpush1.bf16.msra.mxu0 %v7955_v10  ;;  %2578 = vmatpush1.bf16.msra.mxu1 %v7953_v8 }
0x1621   :  { %2538 = vmatprep.subr.bf16.mxu0 %v7959_v62  ;;  %2579 = vmatprep.subr.bf16.mxu1 %v7957_v58 }
0x1622   :  { %2568 = vmatprep.mubr.bf16.mxu0 %v9477_v63  ;;  %2609 = vmatprep.mubr.bf16.mxu1 %v9477_v63 }
0x1624   :  { %2539 = vmatpush1.bf16.msra.mxu0 %v7966_v27  ;;  %2580 = vmatpush1.bf16.msra.mxu1 %v7964_v37 }
0x1625   :  { %2540 = vmatprep.subr.bf16.mxu0 %v7972_v22  ;;  %2581 = vmatprep.subr.bf16.mxu1 %v7970_v5 }
0x1628   :  { %2541 = vmatpush1.bf16.msra.mxu0 %v7982_v30  ;;  %2582 = vmatpush1.bf16.msra.mxu1 %v7980_v29 }
0x1629   :  { %2542 = vmatprep.subr.bf16.mxu0 %v7988_v33  ;;  %2583 = vmatprep.subr.bf16.mxu1 %v7986_v32 }
0x162c   :  { %2543 = vmatpush1.bf16.msra.mxu0 %v7994_v41  ;;  %2584 = vmatpush1.bf16.msra.mxu1 %v7992_v40 }
0x162d   :  { %2544 = vmatprep.subr.bf16.mxu0 %v8000_v0  ;;  %2585 = vmatprep.subr.bf16.mxu1 %v7998_v47 }
0x1630   :  { %2545 = vmatpush1.bf16.msra.mxu0 %v8010_v15  ;;  %2586 = vmatpush1.bf16.msra.mxu1 %v8008_v48 }
0x1631   :  { %2546 = vmatprep.subr.bf16.mxu0 %v8016_v1  ;;  %2587 = vmatprep.subr.bf16.mxu1 %v8014_v3 }
0x1634   :  { %2547 = vmatpush1.bf16.msra.mxu0 %v8022_v53  ;;  %2588 = vmatpush1.bf16.msra.mxu1 %v8020_v28 }
0x1635   :  { %2548 = vmatprep.subr.bf16.mxu0 %v8028_v12  ;;  %2589 = vmatprep.subr.bf16.mxu1 %v8026_v25 }
0x1638   :  { %2549 = vmatpush1.bf16.msra.mxu0 %v8038_v57  ;;  %2590 = vmatpush1.bf16.msra.mxu1 %v8036_v19 }
0x1639   :  { %2591 = vmatprep.subr.bf16.mxu1 %v8042_v35  ;;  %2550 = vmatprep.subr.bf16.mxu0 %v8044_v17 }
0x163c   :  { %2551 = vmatpush1.bf16.msra.mxu0 %v8050_v11  ;;  %2592 = vmatpush1.bf16.msra.mxu1 %v8048_v18 }
0x163d   :  { %2696 = vmatprep.subr.bf16.mxu0 %v7943_v44  ;;  %2737 = vmatprep.subr.bf16.mxu1 %v7941_v45 }
0x16bf   :  { %v2040_v6 = vpop.f32.mrf.mxu0  ;;  %v2113_v13 = vpop.f32.mrf.mxu1 }
0x16c0   :  { %v8106_v51 = vadd.f32 %v2040_v6, %v1829_v9  ;;  %v8109_v2 = vadd.f32 %v2113_v13, %v8101_v61 }
0x16c1   :  { %v8111_v21 = vpop.f32.mrf.mxu0  ;;  %v2115_v23 = vpop.f32.mrf.mxu1 }
0x16c2   :  { %9495 = vst [vmem:[#allocation12_spill] sm:$0xff] %v8109_v2  ;;  %v8114_v24 = vadd.f32 %v2115_v23, %v8104_v39 }
0x16c3   :  { %v2044_v26 = vpop.f32.mrf.mxu0  ;;  %v2117_v31 = vpop.f32.mrf.mxu1 }
0x16c4   :  { %9496 = vst [vmem:[#allocation18_spill] sm:$0xff] %v8114_v24  ;;  %v8117_v46 = vadd.f32 %v2044_v26, %v1829_v9  ;;  %v8120_v49 = vadd.f32 %v2117_v31, %v8101_v61 }
0x16c5   :  { %v2046_v43 = vpop.f32.mrf.mxu0  ;;  %v2119_v50 = vpop.f32.mrf.mxu1 }
0x16c6   :  { %9498 = vst [vmem:[#allocation22_spill] sm:$0xff] %v8120_v49  ;;  %v8122_v54 = vadd.f32 %v2046_v43, %v1833_v38  ;;  %v8125_v55 = vadd.f32 %v2119_v50, %v8104_v39 }
0x16c7   :  { %v2050_v56 = vpop.f32.mrf.mxu0  ;;  %v2123_v60 = vpop.f32.mrf.mxu1 }
0x16c8   :  { %9499 = vst [vmem:[#allocation21_spill] sm:$0xff] %v8125_v55  ;;  %v8127_v42 = vadd.f32 %v2050_v56, %v1829_v9  ;;  %v8130_v4 = vadd.f32 %v2123_v60, %v8101_v61 }
0x16c9   :  { %v2052_v14 = vpop.f32.mrf.mxu0  ;;  %v2125_v52 = vpop.f32.mrf.mxu1 }
0x16ca   :  { %9500 = vst [vmem:[#allocation20_spill] sm:$0xff] %v8130_v4  ;;  %v8132_v20 = vadd.f32 %v2052_v14, %v1833_v38  ;;  %v8135_v16 = vadd.f32 %v2125_v52, %v8104_v39 }
0x16cb   :  { %v2054_v6 = vpop.f32.mrf.mxu0  ;;  %v2127_v13 = vpop.f32.mrf.mxu1 }
0x16cc   :  { %9501 = vst [vmem:[#allocation19_spill] sm:$0xff] %v8135_v16  ;;  %v8137_v23 = vadd.f32 %v2054_v6, %v1829_v9  ;;  %v8140_v26 = vadd.f32 %v2127_v13, %v8101_v61 }
0x16cd   :  { %v2056_v31 = vpop.f32.mrf.mxu0  ;;  %v2129_v43 = vpop.f32.mrf.mxu1 }
0x16ce   :  { %9502 = vst [vmem:[#allocation16_spill] sm:$0xff] %v8137_v23  ;;  %9503 = vst [vmem:[#allocation14_spill] sm:$0xff] %v8140_v26  ;;  %v8142_v50 = vadd.f32 %v2056_v31, %v1833_v38  ;;  %v8145_v56 = vadd.f32 %v2129_v43, %v8104_v39 }
0x16cf   :  { %v2060_v60 = vpop.f32.mrf.mxu0  ;;  %v2133_v14 = vpop.f32.mrf.mxu1 }
0x16d0   :  { %9504 = vst [vmem:[#allocation23_spill] sm:$0xff] %v8142_v50  ;;  %9505 = vst [vmem:[#allocation24_spill] sm:$0xff] %v8145_v56  ;;  %v8147_v36 = vadd.f32 %v2060_v60, %v1829_v9  ;;  %v8150_v52 = vadd.f32 %v2133_v14, %v8101_v61 }
0x16d1   :  { %v2062_v59 = vpop.f32.mrf.mxu0  ;;  %v2135_v6 = vpop.f32.mrf.mxu1 }
0x16d2   :  { %9506 = vst [vmem:[#allocation25_spill] sm:$0xff] %v8147_v36  ;;  %9507 = vst [vmem:[#allocation26_spill] sm:$0xff] %v8150_v52  ;;  %v8152_v7 = vadd.f32 %v2062_v59, %v1833_v38  ;;  %v8155_v13 = vadd.f32 %v2135_v6, %v8104_v39 }
0x16d3   :  { %v2064_v34 = vpop.f32.mrf.mxu0  ;;  %v2137_v31 = vpop.f32.mrf.mxu1 }
0x16d4   :  { %9508 = vst [vmem:[#allocation27_spill] sm:$0xff] %v8152_v7  ;;  %9509 = vst [vmem:[#allocation28_spill] sm:$0xff] %v8155_v13  ;;  %v8157_v24 = vadd.f32 %v2064_v34, %v1829_v9  ;;  %v8160_v43 = vadd.f32 %v2137_v31, %v8101_v61 }
0x16d5   :  { %v2066_v2 = vpop.f32.mrf.mxu0  ;;  %v2139_v60 = vpop.f32.mrf.mxu1 }
0x16d6   :  { %9510 = vst [vmem:[#allocation29_spill] sm:$0xff] %v8157_v24  ;;  %v8162_v55 = vadd.f32 %v2066_v2, %v1833_v38  ;;  %v8165_v14 = vadd.f32 %v2139_v60, %v8104_v39 }
0x16d7   :  { %v2070_v49 = vpop.f32.mrf.mxu0  ;;  %v2143_v59 = vpop.f32.mrf.mxu1 }
0x16d8   :  { %9511 = vst [vmem:[#allocation30_spill] sm:$0xff] %v8162_v55  ;;  %9512 = vst [vmem:[#allocation31_spill] sm:$0xff] %v8165_v14  ;;  %v8167_v16 = vadd.f32 %v2070_v49, %v1829_v9  ;;  %v8170_v6 = vadd.f32 %v2143_v59, %v8101_v61 }
0x16d9   :  { %v2072_v4 = vpop.f32.mrf.mxu0  ;;  %v2145_v34 = vpop.f32.mrf.mxu1 }
0x16da   :  { %9513 = vst [vmem:[#allocation32_spill] sm:$0xff] %v8167_v16  ;;  %v8172_v24 = vadd.f32 %v2072_v4, %v1833_v38  ;;  %v8175_v31 = vadd.f32 %v2145_v34, %v8104_v39  ;;  %v2043_v4 = vadd.f32 %v8111_v21, %v1833_v38 }
0x16db   :  { %v2074_v56 = vpop.f32.mrf.mxu0  ;;  %v2147_v2 = vpop.f32.mrf.mxu1 }
0x16dc   :  { %9514 = vst [vmem:[#allocation33_spill] sm:$0xff] %v8172_v24  ;;  %v8177_v55 = vadd.f32 %v2074_v56, %v1829_v9  ;;  %v2148_v26 = vadd.f32 %v2147_v2, %v8101_v61 }
0x16dd   :  { %v2076_v60 = vpop.f32.mrf.mxu0  ;;  %v2149_v7 = vpop.f32.mrf.mxu1 }
0x16de   :  { %9515 = vst [vmem:[#allocation34_spill] sm:$0xff] %v8177_v55  ;;  %v8180_v49 = vadd.f32 %v2076_v60, %v1833_v38  ;;  %v2150_v50 = vadd.f32 %v2149_v7, %v8104_v39 }
0x16df   :  { %v2411_v16 = vpop.f32.mrf.mxu0  ;;  %v2452_v59 = vpop.f32.mrf.mxu1 }
0x16e0   :  { %v2461_v36 = vadd.f32 %v2411_v16, %v8106_v51  ;;  %v2465_v13 = vadd.f32 %v2452_v59, %v2148_v26 }
0x16e1   :  { %v2413_v24 = vpop.f32.mrf.mxu0  ;;  %v2454_v34 = vpop.f32.mrf.mxu1 }
0x16e2   :  { %v2462_v52 = vadd.f32 %v2413_v24, %v2043_v4  ;;  %v2466_v55 = vadd.f32 %v2454_v34, %v2150_v50  ;;  %v5927_v51 = vmul.f32 -1.442695, %v2461_v36  ;;  %v5929_v21 = vmul.f32 -1.442695, %v2465_v13 }
0x16e3   :  { %v2456_v9 = vpop.f32.mrf.mxu1  ;;  %v2415_v56 = vpop.f32.mrf.mxu0 }
0x16e4   :  { %6619 = vtanh.f32 %v2462_v52 }
0x16e5   :  { %v2457_v23 = vpop.f32.mrf.mxu1  ;;  %v2416_v14 = vpop.f32.mrf.mxu0  ;;  %6621 = vtanh.f32 %v2466_v55 }
0x16e6   :  { %6623 = vpow2.f32 %v5927_v51  ;;  %v5930_v51 = vmul.f32 -1.442695, %v2466_v55 }
0x16e7   :  { %6625 = vpow2.f32 %v5929_v21 }
0x16f1   :  { %v6620_v61 = vpop.eup %6619 }
0x16f2   :  { %2482 = vrot.lane.b32.xlu0 %v6620_v61, %s7149_s24  ;;  %v6622_v2 = vpop.eup %6621 }
0x16f3   :  { %2512 = vrot.lane.b32.xlu1 %v6622_v2, %s7149_s24  ;;  %v6624_v38 = vpop.eup %6623  ;;  %v5928_v2 = vmul.f32 -1.442695, %v2462_v52 }
0x16f4   :  { %v6626_v7 = vpop.eup %6625  ;;  %v2473_v39 = vadd.f32 1.0, %v6624_v38 }
0x16f5   :  { %v2503_v24 = vadd.f32 1.0, %v6626_v7 }
0x16f6   :  { %6627 = vrcp.f32 %v2473_v39 }
0x16f7   :  { %6629 = vrcp.f32 %v2503_v24 }
0x1703   :  { %v6628_v16 = vpop.eup %6627 }
0x1704   :  { %v6630_v50 = vpop.eup %6629  ;;  %v2480_v36 = vmul.f32 0.0, %v6628_v16 }
0x1705   :  { %v2510_v59 = vmul.f32 0.0, %v6630_v50 }
0x1764   :  { %v2483_v23 = vpop.permute.xlu0 %2482 }
0x1765   :  { %v2485_v26 = vmul.f32 %v6628_v16, %v2483_v23  ;;  %v2513_v14 = vpop.permute.xlu1 %2512 }
0x1766   :  { %v2515_v60 = vmul.f32 %v6630_v50, %v2513_v14 }
0x1767   :  { %2487 = vrot.lane.b32.xlu0 %v2485_v26, %s7149_s24 }
0x1768   :  { %2517 = vrot.lane.b32.xlu1 %v2515_v60, %s7149_s24 }
0x17d9   :  { %v2488_v13 = vpop.permute.xlu0 %2487 }
0x17da   :  { %v8189_v4 = vadd.f32 %v2488_v13, %v2480_v36  ;;  %v2518_v34 = vpop.permute.xlu1 %2517 }
0x17db   :  { %v8191_v9 = vadd.f32 %v2518_v34, %v2510_v59 }
0x17dc   :  { %6631 = vtanh.f32 %v8189_v4 }
0x17dd   :  { %6633 = vtanh.f32 %v8191_v9 }
0x17de   :  { %6635 = vpow2.f32 %v5928_v2 }
0x17df   :  { %6637 = vpow2.f32 %v5930_v51 }
0x17e9   :  { %v6632_v56 = vpop.eup %6631 }
0x17ea   :  { %2493 = vrot.lane.b32.xlu0 %v6632_v56, %s7149_s24  ;;  %v6634_v61 = vpop.eup %6633 }
0x17eb   :  { %2523 = vrot.lane.b32.xlu1 %v6634_v61, %s7149_s24  ;;  %v6636_v21 = vpop.eup %6635 }
0x17ec   :  { %v6638_v38 = vpop.eup %6637  ;;  %v2474_v7 = vadd.f32 1.0, %v6636_v21 }
0x17ed   :  { %v2504_v39 = vadd.f32 1.0, %v6638_v38 }
0x17ee   :  { %6639 = vrcp.f32 %v2474_v7 }
0x17ef   :  { %6641 = vrcp.f32 %v2504_v39 }
0x17fb   :  { %v6640_v24 = vpop.eup %6639 }
0x17fc   :  { %v6642_v26 = vpop.eup %6641 }
0x185c   :  { %v2494_v16 = vpop.permute.xlu0 %2493 }
0x185d   :  { %v2496_v23 = vmul.f32 %v6640_v24, %v2494_v16  ;;  %v2524_v50 = vpop.permute.xlu1 %2523 }
0x185e   :  { %v2526_v14 = vmul.f32 %v6642_v26, %v2524_v50 }
0x185f   :  { %2527 = vst.msk [vmem:[#allocation3] sm:$0xff] %vm601_vm0, %v2496_v23 }
0x1860   :  { %2529 = vst.msk [vmem:[#allocation3 + $0x78] sm:$0xff] %vm601_vm0, %v2526_v14  ;;  %2531 = vrot.lane.b32.xlu1 %v2526_v14, %s7149_s24 }
0x18d2   :  { %v2532_v55 = vpop.permute.xlu1 %2531 }
0x18d3   :  { %v2534_v52 = vsel %vm601_vm0, %v2496_v23, %v2532_v55 }
0x18d4   :  { %v2535_v60 = vpack.c.bf16 %v2534_v52, %v2534_v52 }
0x18d6   :  { %2569 = vmatmul.mubr.bf16.vlgmr.msra.gmra.mxu0 %v2535_v60  ;;  %2610 = vmatmul.mubr.bf16.vlgmr.msra.gmra.mxu1 %v2535_v60 }
0x18d7   :  { %2697 = vmatpush1.bf16.msra.mxu0 %v7955_v10  ;;  %2738 = vmatpush1.bf16.msra.mxu1 %v7953_v8 }
0x18d8   :  { %2698 = vmatprep.subr.bf16.mxu0 %v7959_v62  ;;  %2739 = vmatprep.subr.bf16.mxu1 %v7957_v58 }
0x18d9   :  { %2728 = vmatprep.mubr.bf16.mxu0 %v9477_v63  ;;  %2769 = vmatprep.mubr.bf16.mxu1 %v9477_v63 }
0x18db   :  { %2699 = vmatpush1.bf16.msra.mxu0 %v7966_v27  ;;  %2740 = vmatpush1.bf16.msra.mxu1 %v7964_v37 }
0x18dc   :  { %2700 = vmatprep.subr.bf16.mxu0 %v7972_v22  ;;  %2741 = vmatprep.subr.bf16.mxu1 %v7970_v5 }
0x18df   :  { %2701 = vmatpush1.bf16.msra.mxu0 %v7982_v30  ;;  %2742 = vmatpush1.bf16.msra.mxu1 %v7980_v29 }
0x18e0   :  { %2702 = vmatprep.subr.bf16.mxu0 %v7988_v33  ;;  %2743 = vmatprep.subr.bf16.mxu1 %v7986_v32 }
0x18e3   :  { %2703 = vmatpush1.bf16.msra.mxu0 %v7994_v41  ;;  %2744 = vmatpush1.bf16.msra.mxu1 %v7992_v40 }
0x18e4   :  { %2704 = vmatprep.subr.bf16.mxu0 %v8000_v0  ;;  %2745 = vmatprep.subr.bf16.mxu1 %v7998_v47 }
0x18e7   :  { %2705 = vmatpush1.bf16.msra.mxu0 %v8010_v15  ;;  %2746 = vmatpush1.bf16.msra.mxu1 %v8008_v48 }
0x18e8   :  { %2706 = vmatprep.subr.bf16.mxu0 %v8016_v1  ;;  %2747 = vmatprep.subr.bf16.mxu1 %v8014_v3 }
0x18eb   :  { %2707 = vmatpush1.bf16.msra.mxu0 %v8022_v53  ;;  %2748 = vmatpush1.bf16.msra.mxu1 %v8020_v28 }
0x18ec   :  { %2708 = vmatprep.subr.bf16.mxu0 %v8028_v12  ;;  %2749 = vmatprep.subr.bf16.mxu1 %v8026_v25 }
0x18ef   :  { %2709 = vmatpush1.bf16.msra.mxu0 %v8038_v57  ;;  %2750 = vmatpush1.bf16.msra.mxu1 %v8036_v19 }
0x18f0   :  { %2751 = vmatprep.subr.bf16.mxu1 %v8042_v35  ;;  %2710 = vmatprep.subr.bf16.mxu0 %v8044_v17 }
0x18f3   :  { %2711 = vmatpush1.bf16.msra.mxu0 %v8050_v11  ;;  %2752 = vmatpush1.bf16.msra.mxu1 %v8048_v18 }
0x18f4   :  { %2856 = vmatprep.subr.bf16.mxu0 %v7943_v44  ;;  %2897 = vmatprep.subr.bf16.mxu1 %v7941_v45 }
0x1996   :  { %v2570_v36 = vpop.f32.mrf.mxu0  ;;  %v2611_v13 = vpop.f32.mrf.mxu1 }
0x1997   :  { %v2620_v59 = vadd.f32 %v2570_v36, %v8117_v46  ;;  %v2624_v34 = vadd.f32 %v2611_v13, %v8170_v6 }
0x1998   :  { %v2572_v56 = vpop.f32.mrf.mxu0  ;;  %v2613_v61 = vpop.f32.mrf.mxu1 }
0x1999   :  { %v2621_v2 = vadd.f32 %v2572_v56, %v8122_v54  ;;  %v2625_v38 = vadd.f32 %v2613_v61, %v8175_v31  ;;  %v5931_v46 = vmul.f32 -1.442695, %v2620_v59  ;;  %v5933_v6 = vmul.f32 -1.442695, %v2624_v34 }
0x199a   :  { %v2574_v51 = vpop.f32.mrf.mxu0  ;;  %v2615_v21 = vpop.f32.mrf.mxu1 }
0x199b   :  { %6643 = vtanh.f32 %v2621_v2 }
0x199c   :  { %v2575_v7 = vpop.f32.mrf.mxu0  ;;  %v2616_v39 = vpop.f32.mrf.mxu1  ;;  %6645 = vtanh.f32 %v2625_v38 }
0x199d   :  { %6647 = vpow2.f32 %v5931_v46  ;;  %v5932_v39 = vmul.f32 -1.442695, %v2621_v2 }
0x199e   :  { %6649 = vpow2.f32 %v5933_v6 }
0x19a8   :  { %v6644_v24 = vpop.eup %6643 }
0x19a9   :  { %2641 = vrot.lane.b32.xlu1 %v6644_v24, %s7149_s24  ;;  %v6646_v16 = vpop.eup %6645 }
0x19aa   :  { %2671 = vrot.lane.b32.xlu0 %v6646_v16, %s7149_s24  ;;  %v6648_v23 = vpop.eup %6647 }
0x19ab   :  { %v6650_v54 = vpop.eup %6649  ;;  %v2632_v26 = vadd.f32 1.0, %v6648_v23 }
0x19ac   :  { %v2662_v50 = vadd.f32 1.0, %v6650_v54 }
0x19ad   :  { %6651 = vrcp.f32 %v2632_v26 }
0x19ae   :  { %6653 = vrcp.f32 %v2662_v50 }
0x19ba   :  { %v6652_v31 = vpop.eup %6651 }
0x19bb   :  { %v6654_v52 = vpop.eup %6653  ;;  %v2639_v13 = vmul.f32 %v6652_v31, %v8189_v4  ;;  %v5934_v4 = vmul.f32 -1.442695, %v2625_v38 }
0x19bc   :  { %v2669_v34 = vmul.f32 %v6654_v52, %v8191_v9 }
0x1a1b   :  { %v2642_v14 = vpop.permute.xlu1 %2641 }
0x1a1c   :  { %v2644_v55 = vmul.f32 %v6652_v31, %v2642_v14  ;;  %v2672_v60 = vpop.permute.xlu0 %2671 }
0x1a1d   :  { %v2674_v36 = vmul.f32 %v6654_v52, %v2672_v60 }
0x1a1e   :  { %2646 = vrot.lane.b32.xlu1 %v2644_v55, %s7149_s24 }
0x1a1f   :  { %2676 = vrot.lane.b32.xlu0 %v2674_v36, %s7149_s24 }
0x1a90   :  { %v2647_v59 = vpop.permute.xlu1 %2646 }
0x1a91   :  { %v8245_v56 = vadd.f32 %v2647_v59, %v2639_v13  ;;  %v2677_v61 = vpop.permute.xlu0 %2676 }
0x1a92   :  { %v8247_v51 = vadd.f32 %v2677_v61, %v2669_v34 }
0x1a93   :  { %6655 = vtanh.f32 %v8245_v56 }
0x1a94   :  { %6657 = vtanh.f32 %v8247_v51 }
0x1a95   :  { %6659 = vpow2.f32 %v5932_v39 }
0x1a96   :  { %6661 = vpow2.f32 %v5934_v4 }
0x1aa0   :  { %v6656_v21 = vpop.eup %6655 }
0x1aa1   :  { %2652 = vrot.lane.b32.xlu1 %v6656_v21, %s7149_s24  ;;  %v6658_v7 = vpop.eup %6657 }
0x1aa2   :  { %2682 = vrot.lane.b32.xlu0 %v6658_v7, %s7149_s24  ;;  %v6660_v9 = vpop.eup %6659  ;;  %v9516_v7 = vld [vmem:[#allocation31_spill] sm:$0xff] }
0x1aa3   :  { %v6662_v24 = vpop.eup %6661  ;;  %v2633_v16 = vadd.f32 1.0, %v6660_v9 }
0x1aa4   :  { %v2663_v46 = vadd.f32 1.0, %v6662_v24 }
0x1aa5   :  { %6663 = vrcp.f32 %v2633_v16 }
0x1aa6   :  { %6665 = vrcp.f32 %v2663_v46 }
0x1ab2   :  { %v6664_v6 = vpop.eup %6663 }
0x1ab3   :  { %v6666_v26 = vpop.eup %6665 }
0x1b13   :  { %v2653_v23 = vpop.permute.xlu1 %2652 }
0x1b14   :  { %v2655_v54 = vmul.f32 %v6664_v6, %v2653_v23  ;;  %v2683_v50 = vpop.permute.xlu0 %2682 }
0x1b15   :  { %v2685_v31 = vmul.f32 %v6666_v26, %v2683_v50 }
0x1b16   :  { %2687 = vst.msk [vmem:[#allocation3 + $0x8] sm:$0xff] %vm601_vm0, %v2655_v54 }
0x1b17   :  { %2689 = vst.msk [vmem:[#allocation3 + $0x70] sm:$0xff] %vm601_vm0, %v2685_v31  ;;  %2691 = vrot.lane.b32.xlu0 %v2685_v31, %s7149_s24 }
0x1b89   :  { %v2692_v2 = vpop.permute.xlu0 %2691 }
0x1b8a   :  { %v2694_v38 = vsel %vm601_vm0, %v2655_v54, %v2692_v2 }
0x1b8b   :  { %v2695_v14 = vpack.c.bf16 %v2694_v38, %v2694_v38 }
0x1b8d   :  { %2729 = vmatmul.mubr.bf16.vlgmr.msra.gmra.mxu0 %v2695_v14  ;;  %2770 = vmatmul.mubr.bf16.vlgmr.msra.gmra.mxu1 %v2695_v14 }
0x1b8e   :  { %2857 = vmatpush1.bf16.msra.mxu0 %v7955_v10  ;;  %2898 = vmatpush1.bf16.msra.mxu1 %v7953_v8 }
0x1b8f   :  { %2858 = vmatprep.subr.bf16.mxu0 %v7959_v62  ;;  %2899 = vmatprep.subr.bf16.mxu1 %v7957_v58 }
0x1b90   :  { %2888 = vmatprep.mubr.bf16.mxu0 %v9477_v63  ;;  %2929 = vmatprep.mubr.bf16.mxu1 %v9477_v63 }
0x1b92   :  { %2859 = vmatpush1.bf16.msra.mxu0 %v7966_v27  ;;  %2900 = vmatpush1.bf16.msra.mxu1 %v7964_v37 }
0x1b93   :  { %2860 = vmatprep.subr.bf16.mxu0 %v7972_v22  ;;  %2901 = vmatprep.subr.bf16.mxu1 %v7970_v5 }
0x1b96   :  { %2861 = vmatpush1.bf16.msra.mxu0 %v7982_v30  ;;  %2902 = vmatpush1.bf16.msra.mxu1 %v7980_v29 }
0x1b97   :  { %2862 = vmatprep.subr.bf16.mxu0 %v7988_v33  ;;  %2903 = vmatprep.subr.bf16.mxu1 %v7986_v32 }
0x1b9a   :  { %2863 = vmatpush1.bf16.msra.mxu0 %v7994_v41  ;;  %2904 = vmatpush1.bf16.msra.mxu1 %v7992_v40 }
0x1b9b   :  { %2864 = vmatprep.subr.bf16.mxu0 %v8000_v0  ;;  %2905 = vmatprep.subr.bf16.mxu1 %v7998_v47 }
0x1b9e   :  { %2865 = vmatpush1.bf16.msra.mxu0 %v8010_v15  ;;  %2906 = vmatpush1.bf16.msra.mxu1 %v8008_v48 }
0x1b9f   :  { %2866 = vmatprep.subr.bf16.mxu0 %v8016_v1  ;;  %2907 = vmatprep.subr.bf16.mxu1 %v8014_v3 }
0x1ba2   :  { %2867 = vmatpush1.bf16.msra.mxu0 %v8022_v53  ;;  %2908 = vmatpush1.bf16.msra.mxu1 %v8020_v28 }
0x1ba3   :  { %2868 = vmatprep.subr.bf16.mxu0 %v8028_v12  ;;  %2909 = vmatprep.subr.bf16.mxu1 %v8026_v25 }
0x1ba6   :  { %2869 = vmatpush1.bf16.msra.mxu0 %v8038_v57  ;;  %2910 = vmatpush1.bf16.msra.mxu1 %v8036_v19 }
0x1ba7   :  { %2911 = vmatprep.subr.bf16.mxu1 %v8042_v35  ;;  %2870 = vmatprep.subr.bf16.mxu0 %v8044_v17 }
0x1baa   :  { %2871 = vmatpush1.bf16.msra.mxu0 %v8050_v11  ;;  %2912 = vmatpush1.bf16.msra.mxu1 %v8048_v18 }
0x1bab   :  { %3016 = vmatprep.subr.bf16.mxu0 %v7943_v44  ;;  %3057 = vmatprep.subr.bf16.mxu1 %v7941_v45 }
0x1c4d   :  { %v2730_v55 = vpop.f32.mrf.mxu0  ;;  %v2771_v52 = vpop.f32.mrf.mxu1 }
0x1c4e   :  { %v2780_v60 = vadd.f32 %v2730_v55, %v8127_v42  ;;  %v2784_v36 = vadd.f32 %v2771_v52, %v8160_v43 }
0x1c4f   :  { %v2732_v13 = vpop.f32.mrf.mxu0  ;;  %v2773_v59 = vpop.f32.mrf.mxu1 }
0x1c50   :  { %v2781_v34 = vadd.f32 %v2732_v13, %v8132_v20  ;;  %v2785_v39 = vadd.f32 %v2773_v59, %v9516_v7  ;;  %v5935_v42 = vmul.f32 -1.442695, %v2780_v60  ;;  %v5937_v43 = vmul.f32 -1.442695, %v2784_v36 }
0x1c51   :  { %v2734_v61 = vpop.f32.mrf.mxu0  ;;  %v2775_v21 = vpop.f32.mrf.mxu1 }
0x1c52   :  { %6667 = vtanh.f32 %v2781_v34  ;;  %v5936_v59 = vmul.f32 -1.442695, %v2781_v34 }
0x1c53   :  { %v2735_v4 = vpop.f32.mrf.mxu0  ;;  %v2776_v9 = vpop.f32.mrf.mxu1  ;;  %6669 = vtanh.f32 %v2785_v39 }
0x1c54   :  { %6671 = vpow2.f32 %v5935_v42 }
0x1c55   :  { %6673 = vpow2.f32 %v5937_v43 }
0x1c5f   :  { %v6668_v44 = vpop.eup %6667 }
0x1c60   :  { %2801 = vrot.lane.b32.xlu0 %v6668_v44, %s7149_s24  ;;  %v6670_v45 = vpop.eup %6669 }
0x1c61   :  { %2831 = vrot.lane.b32.xlu1 %v6670_v45, %s7149_s24  ;;  %v6672_v24 = vpop.eup %6671 }
0x1c62   :  { %v6674_v20 = vpop.eup %6673  ;;  %v2792_v16 = vadd.f32 1.0, %v6672_v24 }
0x1c63   :  { %v2822_v46 = vadd.f32 1.0, %v6674_v20 }
0x1c64   :  { %6675 = vrcp.f32 %v2792_v16 }
0x1c65   :  { %6677 = vrcp.f32 %v2822_v46 }
0x1c71   :  { %v6676_v6 = vpop.eup %6675 }
0x1c72   :  { %v6678_v26 = vpop.eup %6677  ;;  %v2799_v2 = vmul.f32 %v6676_v6, %v8245_v56  ;;  %v5938_v56 = vmul.f32 -1.442695, %v2785_v39 }
0x1c73   :  { %v2829_v14 = vmul.f32 %v6678_v26, %v8247_v51 }
0x1cd2   :  { %v2802_v23 = vpop.permute.xlu0 %2801 }
0x1cd3   :  { %v2804_v54 = vmul.f32 %v6676_v6, %v2802_v23  ;;  %v2832_v50 = vpop.permute.xlu1 %2831 }
0x1cd4   :  { %v2834_v31 = vmul.f32 %v6678_v26, %v2832_v50 }
0x1cd5   :  { %2806 = vrot.lane.b32.xlu0 %v2804_v54, %s7149_s24 }
0x1cd6   :  { %2836 = vrot.lane.b32.xlu1 %v2834_v31, %s7149_s24 }
0x1d47   :  { %v2807_v38 = vpop.permute.xlu0 %2806 }
0x1d48   :  { %v8301_v55 = vadd.f32 %v2807_v38, %v2799_v2  ;;  %v2837_v52 = vpop.permute.xlu1 %2836 }
0x1d49   :  { %v8303_v60 = vadd.f32 %v2837_v52, %v2829_v14 }
0x1d4a   :  { %6679 = vtanh.f32 %v8301_v55 }
0x1d4b   :  { %6681 = vtanh.f32 %v8303_v60 }
0x1d4c   :  { %6683 = vpow2.f32 %v5936_v59 }
0x1d4d   :  { %6685 = vpow2.f32 %v5938_v56 }
0x1d57   :  { %v6680_v36 = vpop.eup %6679 }
0x1d58   :  { %2812 = vrot.lane.b32.xlu0 %v6680_v36, %s7149_s24  ;;  %v6682_v13 = vpop.eup %6681 }
0x1d59   :  { %2842 = vrot.lane.b32.xlu1 %v6682_v13, %s7149_s24  ;;  %v6684_v51 = vpop.eup %6683 }
0x1d5a   :  { %v6686_v61 = vpop.eup %6685  ;;  %v2793_v21 = vadd.f32 1.0, %v6684_v51 }
0x1d5b   :  { %v2823_v7 = vadd.f32 1.0, %v6686_v61 }
0x1d5c   :  { %6687 = vrcp.f32 %v2793_v21 }
0x1d5d   :  { %6689 = vrcp.f32 %v2823_v7 }
0x1d69   :  { %v6688_v4 = vpop.eup %6687 }
0x1d6a   :  { %v6690_v45 = vpop.eup %6689 }
0x1dca   :  { %v2813_v9 = vpop.permute.xlu0 %2812 }
0x1dcb   :  { %v2815_v44 = vmul.f32 %v6688_v4, %v2813_v9  ;;  %v2843_v42 = vpop.permute.xlu1 %2842 }
0x1dcc   :  { %v2845_v43 = vmul.f32 %v6690_v45, %v2843_v42  ;;  %v8376_v45 = vld [vmem:[#allocation7 + $0x1e8] ss:$16 sps:$4 sm:$0xff]   ;;  %v8379_v42 = vld [vmem:[#allocation7 + $0x1c4] ss:$16 sps:$4 sm:$0xff]  }
0x1dcd   :  { %2847 = vst.msk [vmem:[#allocation3 + $0x10] sm:$0xff] %vm601_vm0, %v2815_v44 }
0x1dce   :  { %2849 = vst.msk [vmem:[#allocation3 + $0x68] sm:$0xff] %vm601_vm0, %v2845_v43  ;;  %2851 = vrot.lane.b32.xlu1 %v2845_v43, %s7149_s24  ;;  %v8382_v43 = vld [vmem:[#allocation7 + $0x1cc] ss:$16 sps:$4 sm:$0xff]  }
0x1e40   :  { %v2852_v34 = vpop.permute.xlu1 %2851 }
0x1e41   :  { %v2854_v39 = vsel %vm601_vm0, %v2815_v44, %v2852_v34  ;;  %v8373_v44 = vld [vmem:[#allocation7 + $0x1e0] ss:$16 sps:$4 sm:$0xff]  }
0x1e42   :  { %v2855_v24 = vpack.c.bf16 %v2854_v39, %v2854_v39  ;;  %v8387_v34 = vld [vmem:[#allocation7 + $0x1c0] ss:$16 sps:$4 sm:$0xff]   ;;  %v8390_v39 = vld [vmem:[#allocation7 + $0x1c8] ss:$16 sps:$4 sm:$0xff]  }
0x1e44   :  { %2889 = vmatmul.mubr.bf16.vlgmr.msra.gmra.mxu0 %v2855_v24  ;;  %2930 = vmatmul.mubr.bf16.vlgmr.msra.gmra.mxu1 %v2855_v24  ;;  %v8393_v24 = vld [vmem:[#allocation7 + $0x1a4] ss:$16 sps:$4 sm:$0xff]  }
0x1e45   :  { %3017 = vmatpush1.bf16.msra.mxu0 %v7955_v10  ;;  %3058 = vmatpush1.bf16.msra.mxu1 %v7953_v8  ;;  %v8345_v8 = vld [vmem:[#allocation7 + $0x1e4] ss:$16 sps:$4 sm:$0xff]   ;;  %v8348_v10 = vld [vmem:[#allocation7 + $0x1ec] ss:$16 sps:$4 sm:$0xff]  }
0x1e46   :  { %3018 = vmatprep.subr.bf16.mxu0 %v7959_v62  ;;  %3059 = vmatprep.subr.bf16.mxu1 %v7957_v58 }
0x1e47   :  { %3048 = vmatprep.mubr.bf16.mxu0 %v9477_v63  ;;  %3089 = vmatprep.mubr.bf16.mxu1 %v9477_v63 }
0x1e49   :  { %3019 = vmatpush1.bf16.msra.mxu0 %v7966_v27  ;;  %3060 = vmatpush1.bf16.msra.mxu1 %v7964_v37  ;;  %v9517_v37 = vld [vmem:[#allocation16_spill] sm:$0xff] }
0x1e4a   :  { %3020 = vmatprep.subr.bf16.mxu0 %v7972_v22  ;;  %3061 = vmatprep.subr.bf16.mxu1 %v7970_v5  ;;  %v9518_v5 = vld [vmem:[#allocation26_spill] sm:$0xff] }
0x1e4d   :  { %3021 = vmatpush1.bf16.msra.mxu0 %v7982_v30  ;;  %3062 = vmatpush1.bf16.msra.mxu1 %v7980_v29 }
0x1e4e   :  { %3022 = vmatprep.subr.bf16.mxu0 %v7988_v33  ;;  %3063 = vmatprep.subr.bf16.mxu1 %v7986_v32  ;;  %v9519_v32 = vld [vmem:[#allocation23_spill] sm:$0xff] }
0x1e51   :  { %3023 = vmatpush1.bf16.msra.mxu0 %v7994_v41  ;;  %3064 = vmatpush1.bf16.msra.mxu1 %v7992_v40 }
0x1e52   :  { %3024 = vmatprep.subr.bf16.mxu0 %v8000_v0  ;;  %3065 = vmatprep.subr.bf16.mxu1 %v7998_v47  ;;  %v9520_v47 = vld [vmem:[#allocation28_spill] sm:$0xff] }
0x1e55   :  { %3025 = vmatpush1.bf16.msra.mxu0 %v8010_v15  ;;  %3066 = vmatpush1.bf16.msra.mxu1 %v8008_v48 }
0x1e56   :  { %3026 = vmatprep.subr.bf16.mxu0 %v8016_v1  ;;  %3067 = vmatprep.subr.bf16.mxu1 %v8014_v3 }
0x1e59   :  { %3027 = vmatpush1.bf16.msra.mxu0 %v8022_v53  ;;  %3068 = vmatpush1.bf16.msra.mxu1 %v8020_v28 }
0x1e5a   :  { %3028 = vmatprep.subr.bf16.mxu0 %v8028_v12  ;;  %3069 = vmatprep.subr.bf16.mxu1 %v8026_v25 }
0x1e5d   :  { %3029 = vmatpush1.bf16.msra.mxu0 %v8038_v57  ;;  %3070 = vmatpush1.bf16.msra.mxu1 %v8036_v19 }
0x1e5e   :  { %3071 = vmatprep.subr.bf16.mxu1 %v8042_v35  ;;  %3030 = vmatprep.subr.bf16.mxu0 %v8044_v17 }
0x1e61   :  { %3031 = vmatpush1.bf16.msra.mxu0 %v8050_v11  ;;  %3072 = vmatpush1.bf16.msra.mxu1 %v8048_v18 }
0x1e62   :  { %3176 = vmatprep.subr.bf16.mxu0 %v8345_v8  ;;  %3217 = vmatprep.subr.bf16.mxu1 %v8348_v10 }
0x1f04   :  { %v2890_v58 = vpop.f32.mrf.mxu0  ;;  %v2931_v62 = vpop.f32.mrf.mxu1 }
0x1f05   :  { %v2940_v27 = vadd.f32 %v2890_v58, %v9517_v37  ;;  %v2944_v22 = vadd.f32 %v2931_v62, %v9518_v5  ;;  %v8396_v58 = vld [vmem:[#allocation7 + $0x1ac] ss:$16 sps:$4 sm:$0xff]   ;;  %v8399_v62 = vld [vmem:[#allocation7 + $0x1a0] ss:$16 sps:$4 sm:$0xff]   ;;  %v8402_v37 = vld [vmem:[#allocation7 + $0x1a8] ss:$16 sps:$4 sm:$0xff]  }
0x1f06   :  { %v2892_v29 = vpop.f32.mrf.mxu0  ;;  %v2933_v30 = vpop.f32.mrf.mxu1  ;;  %v8408_v5 = vld [vmem:[#allocation7 + $0x18c] ss:$16 sps:$4 sm:$0xff]  }
0x1f07   :  { %v2941_v33 = vadd.f32 %v2892_v29, %v9519_v32  ;;  %v2945_v0 = vadd.f32 %v2933_v30, %v9520_v47  ;;  %v5939_v28 = vmul.f32 -1.442695, %v2940_v27  ;;  %v5941_v53 = vmul.f32 -1.442695, %v2944_v22  ;;  %v8405_v27 = vld [vmem:[#allocation7 + $0x184] ss:$16 sps:$4 sm:$0xff]  }
0x1f08   :  { %v2894_v40 = vpop.f32.mrf.mxu0  ;;  %v2935_v41 = vpop.f32.mrf.mxu1  ;;  %v8411_v22 = vld [vmem:[#allocation7 + $0x180] ss:$16 sps:$4 sm:$0xff]   ;;  %v8414_v29 = vld [vmem:[#allocation7 + $0x188] ss:$16 sps:$4 sm:$0xff]   ;;  %v8417_v30 = vld [vmem:[#allocation7 + $0x164] ss:$16 sps:$4 sm:$0xff]  }
0x1f09   :  { %6691 = vtanh.f32 %v2941_v33  ;;  %v5940_v38 = vmul.f32 -1.442695, %v2941_v33  ;;  %v5942_v14 = vmul.f32 -1.442695, %v2945_v0  ;;  %v8420_v32 = vld [vmem:[#allocation7 + $0x16c] ss:$16 sps:$4 sm:$0xff]  }
0x1f0a   :  { %v2895_v48 = vpop.f32.mrf.mxu0  ;;  %v2936_v15 = vpop.f32.mrf.mxu1  ;;  %6693 = vtanh.f32 %v2945_v0  ;;  %v8423_v33 = vld [vmem:[#allocation7 + $0x160] ss:$16 sps:$4 sm:$0xff]   ;;  %v8426_v40 = vld [vmem:[#allocation7 + $0x168] ss:$16 sps:$4 sm:$0xff]   ;;  %v8429_v41 = vld [vmem:[#allocation7 + $0x144] ss:$16 sps:$4 sm:$0xff]  }
0x1f0b   :  { %6695 = vpow2.f32 %v5939_v28  ;;  %v8432_v47 = vld [vmem:[#allocation7 + $0x14c] ss:$16 sps:$4 sm:$0xff]   ;;  %v8435_v0 = vld [vmem:[#allocation7 + $0x140] ss:$16 sps:$4 sm:$0xff]   ;;  %v8438_v48 = vld [vmem:[#allocation7 + $0x148] ss:$16 sps:$4 sm:$0xff]  }
0x1f0c   :  { %6697 = vpow2.f32 %v5941_v53  ;;  %v8441_v15 = vld [vmem:[#allocation7 + $0x124] ss:$16 sps:$4 sm:$0xff]   ;;  %v8450_v28 = vld [vmem:[#allocation7 + $0x128] ss:$16 sps:$4 sm:$0xff]   ;;  %v8453_v53 = vld [vmem:[#allocation7 + $0x10c] ss:$16 sps:$4 sm:$0xff]  }
0x1f16   :  { %v6692_v3 = vpop.eup %6691 }
0x1f17   :  { %2961 = vrot.lane.b32.xlu1 %v6692_v3, %s7149_s24  ;;  %v6694_v1 = vpop.eup %6693  ;;  %v8444_v3 = vld [vmem:[#allocation7 + $0x12c] ss:$16 sps:$4 sm:$0xff]  }
0x1f18   :  { %2991 = vrot.lane.b32.xlu0 %v6694_v1, %s7149_s24  ;;  %v6696_v25 = vpop.eup %6695  ;;  %v8447_v1 = vld [vmem:[#allocation7 + $0x120] ss:$16 sps:$4 sm:$0xff]  }
0x1f19   :  { %v6698_v12 = vpop.eup %6697  ;;  %v2952_v19 = vadd.f32 1.0, %v6696_v25  ;;  %v8456_v25 = vld [vmem:[#allocation7 + $0x104] ss:$16 sps:$4 sm:$0xff]  }
0x1f1a   :  { %v2982_v57 = vadd.f32 1.0, %v6698_v12  ;;  %v8459_v12 = vld [vmem:[#allocation7 + $0x100] ss:$16 sps:$4 sm:$0xff]  }
0x1f1b   :  { %6699 = vrcp.f32 %v2952_v19  ;;  %v8462_v19 = vld [vmem:[#allocation7 + $0x108] ss:$16 sps:$4 sm:$0xff]  }
0x1f1c   :  { %6701 = vrcp.f32 %v2982_v57 }
0x1f28   :  { %v6700_v35 = vpop.eup %6699 }
0x1f29   :  { %v6702_v11 = vpop.eup %6701  ;;  %v2959_v46 = vmul.f32 %v6700_v35, %v8301_v55 }
0x1f2a   :  { %v2989_v23 = vmul.f32 %v6702_v11, %v8303_v60 }
0x1f89   :  { %v2962_v17 = vpop.permute.xlu1 %2961 }
0x1f8a   :  { %v2964_v18 = vmul.f32 %v6700_v35, %v2962_v17  ;;  %v2992_v20 = vpop.permute.xlu0 %2991  ;;  %v9521_v17 = vld [vmem:[#allocation25_spill] sm:$0xff] }
0x1f8b   :  { %v2994_v16 = vmul.f32 %v6702_v11, %v2992_v20  ;;  %v9522_v11 = vld [vmem:[#allocation14_spill] sm:$0xff] }
0x1f8c   :  { %2966 = vrot.lane.b32.xlu1 %v2964_v18, %s7149_s24 }
0x1f8d   :  { %2996 = vrot.lane.b32.xlu0 %v2994_v16, %s7149_s24 }
0x1ffe   :  { %v2967_v6 = vpop.permute.xlu1 %2966 }
0x1fff   :  { %v8361_v54 = vadd.f32 %v2967_v6, %v2959_v46  ;;  %v2997_v26 = vpop.permute.xlu0 %2996  ;;  %v9523_v6 = vld [vmem:[#allocation27_spill] sm:$0xff] }
0x2000   :  { %v8363_v50 = vadd.f32 %v2997_v26, %v2989_v23 }
0x2001   :  { %6703 = vtanh.f32 %v8361_v54 }
0x2002   :  { %6705 = vtanh.f32 %v8363_v50 }
0x2003   :  { %6707 = vpow2.f32 %v5940_v38 }
0x2004   :  { %6709 = vpow2.f32 %v5942_v14 }
0x200e   :  { %v6704_v31 = vpop.eup %6703 }
0x200f   :  { %2972 = vrot.lane.b32.xlu1 %v6704_v31, %s7149_s24  ;;  %v6706_v2 = vpop.eup %6705 }
0x2010   :  { %3002 = vrot.lane.b32.xlu0 %v6706_v2, %s7149_s24  ;;  %v6708_v55 = vpop.eup %6707  ;;  %v9524_v2 = vld [vmem:[#allocation24_spill] sm:$0xff] }
0x2011   :  { %v6710_v52 = vpop.eup %6709  ;;  %v2953_v60 = vadd.f32 1.0, %v6708_v55 }
0x2012   :  { %v2983_v36 = vadd.f32 1.0, %v6710_v52 }
0x2013   :  { %6711 = vrcp.f32 %v2953_v60 }
0x2014   :  { %6713 = vrcp.f32 %v2983_v36 }
0x2020   :  { %v6712_v13 = vpop.eup %6711 }
0x2021   :  { %v6714_v51 = vpop.eup %6713 }
0x2081   :  { %v2973_v59 = vpop.permute.xlu1 %2972 }
0x2082   :  { %v2975_v56 = vmul.f32 %v6712_v13, %v2973_v59  ;;  %v3003_v61 = vpop.permute.xlu0 %3002 }
0x2083   :  { %v3005_v21 = vmul.f32 %v6714_v51, %v3003_v61 }
0x2084   :  { %3007 = vst.msk [vmem:[#allocation3 + $0x18] sm:$0xff] %vm601_vm0, %v2975_v56 }
0x2085   :  { %3009 = vst.msk [vmem:[#allocation3 + $0x60] sm:$0xff] %vm601_vm0, %v3005_v21  ;;  %3011 = vrot.lane.b32.xlu0 %v3005_v21, %s7149_s24 }
0x20f7   :  { %v3012_v7 = vpop.permute.xlu0 %3011 }
0x20f8   :  { %v3014_v4 = vsel %vm601_vm0, %v2975_v56, %v3012_v7 }
0x20f9   :  { %v3015_v9 = vpack.c.bf16 %v3014_v4, %v3014_v4 }
0x20fb   :  { %3049 = vmatmul.mubr.bf16.vlgmr.msra.gmra.mxu0 %v3015_v9  ;;  %3090 = vmatmul.mubr.bf16.vlgmr.msra.gmra.mxu1 %v3015_v9 }
0x20fc   :  { %3177 = vmatpush1.bf16.msra.mxu0 %v8373_v44  ;;  %3218 = vmatpush1.bf16.msra.mxu1 %v8376_v45 }
0x20fd   :  { %3178 = vmatprep.subr.bf16.mxu0 %v8379_v42  ;;  %3219 = vmatprep.subr.bf16.mxu1 %v8382_v43 }
0x20fe   :  { %3208 = vmatprep.mubr.bf16.mxu0 %v9477_v63  ;;  %3249 = vmatprep.mubr.bf16.mxu1 %v9477_v63 }
0x2100   :  { %3179 = vmatpush1.bf16.msra.mxu0 %v8387_v34  ;;  %3220 = vmatpush1.bf16.msra.mxu1 %v8390_v39 }
0x2101   :  { %3180 = vmatprep.subr.bf16.mxu0 %v8393_v24  ;;  %3221 = vmatprep.subr.bf16.mxu1 %v8396_v58 }
0x2104   :  { %3181 = vmatpush1.bf16.msra.mxu0 %v8399_v62  ;;  %3222 = vmatpush1.bf16.msra.mxu1 %v8402_v37 }
0x2105   :  { %3182 = vmatprep.subr.bf16.mxu0 %v8405_v27  ;;  %3223 = vmatprep.subr.bf16.mxu1 %v8408_v5 }
0x2108   :  { %3183 = vmatpush1.bf16.msra.mxu0 %v8411_v22  ;;  %3224 = vmatpush1.bf16.msra.mxu1 %v8414_v29 }
0x2109   :  { %3184 = vmatprep.subr.bf16.mxu0 %v8417_v30  ;;  %3225 = vmatprep.subr.bf16.mxu1 %v8420_v32 }
0x210c   :  { %3185 = vmatpush1.bf16.msra.mxu0 %v8423_v33  ;;  %3226 = vmatpush1.bf16.msra.mxu1 %v8426_v40 }
0x210d   :  { %3186 = vmatprep.subr.bf16.mxu0 %v8429_v41  ;;  %3227 = vmatprep.subr.bf16.mxu1 %v8432_v47 }
0x2110   :  { %3187 = vmatpush1.bf16.msra.mxu0 %v8435_v0  ;;  %3228 = vmatpush1.bf16.msra.mxu1 %v8438_v48 }
0x2111   :  { %3188 = vmatprep.subr.bf16.mxu0 %v8441_v15  ;;  %3229 = vmatprep.subr.bf16.mxu1 %v8444_v3 }
0x2114   :  { %3189 = vmatpush1.bf16.msra.mxu0 %v8447_v1  ;;  %3230 = vmatpush1.bf16.msra.mxu1 %v8450_v28 }
0x2115   :  { %3231 = vmatprep.subr.bf16.mxu1 %v8453_v53  ;;  %3190 = vmatprep.subr.bf16.mxu0 %v8456_v25 }
0x2118   :  { %3191 = vmatpush1.bf16.msra.mxu0 %v8459_v12  ;;  %3232 = vmatpush1.bf16.msra.mxu1 %v8462_v19 }
0x2119   :  { %3336 = vmatprep.subr.bf16.mxu0 %v8345_v8  ;;  %3377 = vmatprep.subr.bf16.mxu1 %v8348_v10 }
0x21bb   :  { %v3050_v57 = vpop.f32.mrf.mxu0  ;;  %v3091_v35 = vpop.f32.mrf.mxu1 }
0x21bc   :  { %v3100_v18 = vadd.f32 %v3050_v57, %v9521_v17  ;;  %v3104_v20 = vadd.f32 %v3091_v35, %v9522_v11 }
0x21bd   :  { %v3052_v16 = vpop.f32.mrf.mxu0  ;;  %v3093_v46 = vpop.f32.mrf.mxu1 }
0x21be   :  { %v3101_v23 = vadd.f32 %v3052_v16, %v9523_v6  ;;  %v3105_v38 = vadd.f32 %v3093_v46, %v9524_v2  ;;  %v5943_v36 = vmul.f32 -1.442695, %v3100_v18  ;;  %v5945_v13 = vmul.f32 -1.442695, %v3104_v20 }
0x21bf   :  { %v3054_v26 = vpop.f32.mrf.mxu0  ;;  %v3095_v31 = vpop.f32.mrf.mxu1 }
0x21c0   :  { %6715 = vtanh.f32 %v3101_v23  ;;  %v5944_v31 = vmul.f32 -1.442695, %v3101_v23 }
0x21c1   :  { %v3055_v14 = vpop.f32.mrf.mxu0  ;;  %v3096_v55 = vpop.f32.mrf.mxu1  ;;  %6717 = vtanh.f32 %v3105_v38 }
0x21c2   :  { %6719 = vpow2.f32 %v5943_v36 }
0x21c3   :  { %6721 = vpow2.f32 %v5945_v13 }
0x21cd   :  { %v6716_v52 = vpop.eup %6715 }
0x21ce   :  { %3121 = vrot.lane.b32.xlu0 %v6716_v52, %s7149_s24  ;;  %v6718_v60 = vpop.eup %6717 }
0x21cf   :  { %3151 = vrot.lane.b32.xlu1 %v6718_v60, %s7149_s24  ;;  %v6720_v59 = vpop.eup %6719 }
0x21d0   :  { %v6722_v56 = vpop.eup %6721  ;;  %v3112_v51 = vadd.f32 1.0, %v6720_v59 }
0x21d1   :  { %v3142_v61 = vadd.f32 1.0, %v6722_v56 }
0x21d2   :  { %6723 = vrcp.f32 %v3112_v51 }
0x21d3   :  { %6725 = vrcp.f32 %v3142_v61 }
0x21df   :  { %v6724_v21 = vpop.eup %6723 }
0x21e0   :  { %v6726_v9 = vpop.eup %6725  ;;  %v3119_v17 = vmul.f32 %v6724_v21, %v8361_v54  ;;  %v5946_v54 = vmul.f32 -1.442695, %v3105_v38 }
0x21e1   :  { %v3149_v11 = vmul.f32 %v6726_v9, %v8363_v50 }
0x2240   :  { %v3122_v7 = vpop.permute.xlu0 %3121 }
0x2241   :  { %v3124_v4 = vmul.f32 %v6724_v21, %v3122_v7  ;;  %v3152_v57 = vpop.permute.xlu1 %3151  ;;  %v9525_v7 = vld [vmem:[#allocation29_spill] sm:$0xff] }
0x2242   :  { %v3154_v35 = vmul.f32 %v6726_v9, %v3152_v57  ;;  %v9526_v9 = vld [vmem:[#allocation20_spill] sm:$0xff] }
0x2243   :  { %3126 = vrot.lane.b32.xlu0 %v3124_v4, %s7149_s24 }
0x2244   :  { %3156 = vrot.lane.b32.xlu1 %v3154_v35, %s7149_s24 }
0x22b5   :  { %v3127_v18 = vpop.permute.xlu0 %3126 }
0x22b6   :  { %v8477_v20 = vadd.f32 %v3127_v18, %v3119_v17  ;;  %v3157_v16 = vpop.permute.xlu1 %3156  ;;  %v9527_v18 = vld [vmem:[#allocation30_spill] sm:$0xff] }
0x22b7   :  { %v8479_v46 = vadd.f32 %v3157_v16, %v3149_v11 }
0x22b8   :  { %6727 = vtanh.f32 %v8477_v20 }
0x22b9   :  { %6729 = vtanh.f32 %v8479_v46 }
0x22ba   :  { %6731 = vpow2.f32 %v5944_v31 }
0x22bb   :  { %6733 = vpow2.f32 %v5946_v54 }
0x22c5   :  { %v6728_v6 = vpop.eup %6727 }
0x22c6   :  { %3132 = vrot.lane.b32.xlu0 %v6728_v6, %s7149_s24  ;;  %v6730_v26 = vpop.eup %6729 }
0x22c7   :  { %3162 = vrot.lane.b32.xlu1 %v6730_v26, %s7149_s24  ;;  %v6732_v50 = vpop.eup %6731  ;;  %v9528_v26 = vld [vmem:[#allocation19_spill] sm:$0xff] }
0x22c8   :  { %v6734_v2 = vpop.eup %6733  ;;  %v3113_v14 = vadd.f32 1.0, %v6732_v50 }
0x22c9   :  { %v3143_v55 = vadd.f32 1.0, %v6734_v2 }
0x22ca   :  { %6735 = vrcp.f32 %v3113_v14 }
0x22cb   :  { %6737 = vrcp.f32 %v3143_v55 }
0x22d7   :  { %v6736_v52 = vpop.eup %6735 }
0x22d8   :  { %v6738_v13 = vpop.eup %6737 }
0x2338   :  { %v3133_v60 = vpop.permute.xlu0 %3132 }
0x2339   :  { %v3135_v36 = vmul.f32 %v6736_v52, %v3133_v60  ;;  %v3163_v59 = vpop.permute.xlu1 %3162 }
0x233a   :  { %v3165_v56 = vmul.f32 %v6738_v13, %v3163_v59 }
0x233b   :  { %3167 = vst.msk [vmem:[#allocation3 + $0x20] sm:$0xff] %vm601_vm0, %v3135_v36 }
0x233c   :  { %3169 = vst.msk [vmem:[#allocation3 + $0x58] sm:$0xff] %vm601_vm0, %v3165_v56  ;;  %3171 = vrot.lane.b32.xlu1 %v3165_v56, %s7149_s24 }
0x23ae   :  { %v3172_v23 = vpop.permute.xlu1 %3171 }
0x23af   :  { %v3174_v38 = vsel %vm601_vm0, %v3135_v36, %v3172_v23 }
0x23b0   :  { %v3175_v51 = vpack.c.bf16 %v3174_v38, %v3174_v38 }
0x23b2   :  { %3209 = vmatmul.mubr.bf16.vlgmr.msra.gmra.mxu0 %v3175_v51  ;;  %3250 = vmatmul.mubr.bf16.vlgmr.msra.gmra.mxu1 %v3175_v51 }
0x23b3   :  { %3337 = vmatpush1.bf16.msra.mxu0 %v8373_v44  ;;  %3378 = vmatpush1.bf16.msra.mxu1 %v8376_v45 }
0x23b4   :  { %3338 = vmatprep.subr.bf16.mxu0 %v8379_v42  ;;  %3379 = vmatprep.subr.bf16.mxu1 %v8382_v43 }
0x23b5   :  { %3368 = vmatprep.mubr.bf16.mxu0 %v9477_v63  ;;  %3409 = vmatprep.mubr.bf16.mxu1 %v9477_v63 }
0x23b7   :  { %3339 = vmatpush1.bf16.msra.mxu0 %v8387_v34  ;;  %3380 = vmatpush1.bf16.msra.mxu1 %v8390_v39 }
0x23b8   :  { %3340 = vmatprep.subr.bf16.mxu0 %v8393_v24  ;;  %3381 = vmatprep.subr.bf16.mxu1 %v8396_v58 }
0x23bb   :  { %3341 = vmatpush1.bf16.msra.mxu0 %v8399_v62  ;;  %3382 = vmatpush1.bf16.msra.mxu1 %v8402_v37 }
0x23bc   :  { %3342 = vmatprep.subr.bf16.mxu0 %v8405_v27  ;;  %3383 = vmatprep.subr.bf16.mxu1 %v8408_v5 }
0x23bf   :  { %3343 = vmatpush1.bf16.msra.mxu0 %v8411_v22  ;;  %3384 = vmatpush1.bf16.msra.mxu1 %v8414_v29 }
0x23c0   :  { %3344 = vmatprep.subr.bf16.mxu0 %v8417_v30  ;;  %3385 = vmatprep.subr.bf16.mxu1 %v8420_v32 }
0x23c3   :  { %3345 = vmatpush1.bf16.msra.mxu0 %v8423_v33  ;;  %3386 = vmatpush1.bf16.msra.mxu1 %v8426_v40 }
0x23c4   :  { %3346 = vmatprep.subr.bf16.mxu0 %v8429_v41  ;;  %3387 = vmatprep.subr.bf16.mxu1 %v8432_v47 }
0x23c7   :  { %3347 = vmatpush1.bf16.msra.mxu0 %v8435_v0  ;;  %3388 = vmatpush1.bf16.msra.mxu1 %v8438_v48 }
0x23c8   :  { %3348 = vmatprep.subr.bf16.mxu0 %v8441_v15  ;;  %3389 = vmatprep.subr.bf16.mxu1 %v8444_v3 }
0x23cb   :  { %3349 = vmatpush1.bf16.msra.mxu0 %v8447_v1  ;;  %3390 = vmatpush1.bf16.msra.mxu1 %v8450_v28 }
0x23cc   :  { %3391 = vmatprep.subr.bf16.mxu1 %v8453_v53  ;;  %3350 = vmatprep.subr.bf16.mxu0 %v8456_v25 }
0x23cf   :  { %3351 = vmatpush1.bf16.msra.mxu0 %v8459_v12  ;;  %3392 = vmatpush1.bf16.msra.mxu1 %v8462_v19 }
0x23d0   :  { %3496 = vmatprep.subr.bf16.mxu0 %v8345_v8  ;;  %3537 = vmatprep.subr.bf16.mxu1 %v8348_v10 }
0x2472   :  { %v3210_v61 = vpop.f32.mrf.mxu0  ;;  %v3251_v21 = vpop.f32.mrf.mxu1 }
0x2473   :  { %v3260_v4 = vadd.f32 %v3210_v61, %v9525_v7  ;;  %v3264_v57 = vadd.f32 %v3251_v21, %v9526_v9 }
0x2474   :  { %v3212_v35 = vpop.f32.mrf.mxu0  ;;  %v3253_v17 = vpop.f32.mrf.mxu1 }
0x2475   :  { %v3261_v11 = vadd.f32 %v3212_v35, %v9527_v18  ;;  %v3265_v31 = vadd.f32 %v3253_v17, %v9528_v26  ;;  %v5947_v2 = vmul.f32 -1.442695, %v3260_v4  ;;  %v5949_v14 = vmul.f32 -1.442695, %v3264_v57 }
0x2476   :  { %v3214_v16 = vpop.f32.mrf.mxu0  ;;  %v3255_v6 = vpop.f32.mrf.mxu1 }
0x2477   :  { %6739 = vtanh.f32 %v3261_v11  ;;  %v5948_v18 = vmul.f32 -1.442695, %v3261_v11 }
0x2478   :  { %v3215_v54 = vpop.f32.mrf.mxu0  ;;  %v3256_v50 = vpop.f32.mrf.mxu1  ;;  %6741 = vtanh.f32 %v3265_v31 }
0x2479   :  { %6743 = vpow2.f32 %v5947_v2 }
0x247a   :  { %6745 = vpow2.f32 %v5949_v14 }
0x2484   :  { %v6740_v8 = vpop.eup %6739 }
0x2485   :  { %3281 = vrot.lane.b32.xlu1 %v6740_v8, %s7149_s24  ;;  %v6742_v10 = vpop.eup %6741 }
0x2486   :  { %3311 = vrot.lane.b32.xlu0 %v6742_v10, %s7149_s24  ;;  %v6744_v55 = vpop.eup %6743 }
0x2487   :  { %v6746_v52 = vpop.eup %6745  ;;  %v3272_v60 = vadd.f32 1.0, %v6744_v55 }
0x2488   :  { %v3302_v36 = vadd.f32 1.0, %v6746_v52 }
0x2489   :  { %6747 = vrcp.f32 %v3272_v60 }
0x248a   :  { %6749 = vrcp.f32 %v3302_v36 }
0x2496   :  { %v6748_v13 = vpop.eup %6747 }
0x2497   :  { %v6750_v23 = vpop.eup %6749  ;;  %v3279_v61 = vmul.f32 %v6748_v13, %v8477_v20  ;;  %v5950_v20 = vmul.f32 -1.442695, %v3265_v31 }
0x2498   :  { %v3309_v7 = vmul.f32 %v6750_v23, %v8479_v46 }
0x24f7   :  { %v3282_v59 = vpop.permute.xlu1 %3281 }
0x24f8   :  { %v3284_v56 = vmul.f32 %v6748_v13, %v3282_v59  ;;  %v3312_v38 = vpop.permute.xlu0 %3311 }
0x24f9   :  { %v3314_v51 = vmul.f32 %v6750_v23, %v3312_v38 }
0x24fa   :  { %3286 = vrot.lane.b32.xlu1 %v3284_v56, %s7149_s24 }
0x24fb   :  { %3316 = vrot.lane.b32.xlu0 %v3314_v51, %s7149_s24 }
0x256c   :  { %v3287_v21 = vpop.permute.xlu1 %3286 }
0x256d   :  { %v8533_v4 = vadd.f32 %v3287_v21, %v3279_v61  ;;  %v3317_v9 = vpop.permute.xlu0 %3316 }
0x256e   :  { %v8535_v57 = vadd.f32 %v3317_v9, %v3309_v7 }
0x256f   :  { %6751 = vtanh.f32 %v8533_v4 }
0x2570   :  { %6753 = vtanh.f32 %v8535_v57 }
0x2571   :  { %6755 = vpow2.f32 %v5948_v18 }
0x2572   :  { %6757 = vpow2.f32 %v5950_v20 }
0x257c   :  { %v6752_v35 = vpop.eup %6751 }
0x257d   :  { %3292 = vrot.lane.b32.xlu1 %v6752_v35, %s7149_s24  ;;  %v6754_v17 = vpop.eup %6753 }
0x257e   :  { %3322 = vrot.lane.b32.xlu0 %v6754_v17, %s7149_s24  ;;  %v6756_v46 = vpop.eup %6755 }
0x257f   :  { %v6758_v16 = vpop.eup %6757  ;;  %v3273_v6 = vadd.f32 1.0, %v6756_v46 }
0x2580   :  { %v3303_v26 = vadd.f32 1.0, %v6758_v16 }
0x2581   :  { %6759 = vrcp.f32 %v3273_v6 }
0x2582   :  { %6761 = vrcp.f32 %v3303_v26 }
0x258e   :  { %v6760_v54 = vpop.eup %6759 }
0x258f   :  { %v6762_v10 = vpop.eup %6761 }
0x25ef   :  { %v3293_v50 = vpop.permute.xlu1 %3292 }
0x25f0   :  { %v3295_v8 = vmul.f32 %v6760_v54, %v3293_v50  ;;  %v3323_v2 = vpop.permute.xlu0 %3322 }
0x25f1   :  { %v3325_v14 = vmul.f32 %v6762_v10, %v3323_v2  ;;  %v9534_v2 = vld [vmem:[#allocation12_spill] sm:$0xff] }
0x25f2   :  { %3327 = vst.msk [vmem:[#allocation3 + $0x28] sm:$0xff] %vm601_vm0, %v3295_v8 }
0x25f3   :  { %3329 = vst.msk [vmem:[#allocation3 + $0x50] sm:$0xff] %vm601_vm0, %v3325_v14  ;;  %3331 = vrot.lane.b32.xlu0 %v3325_v14, %s7149_s24 }
0x2665   :  { %v3332_v11 = vpop.permute.xlu0 %3331 }
0x2666   :  { %v3334_v31 = vsel %vm601_vm0, %v3295_v8, %v3332_v11  ;;  %v9533_v8 = vld [vmem:[#allocation34_spill] sm:$0xff] }
0x2667   :  { %v3335_v55 = vpack.c.bf16 %v3334_v31, %v3334_v31 }
0x2669   :  { %3369 = vmatmul.mubr.bf16.vlgmr.msra.gmra.mxu0 %v3335_v55  ;;  %3410 = vmatmul.mubr.bf16.vlgmr.msra.gmra.mxu1 %v3335_v55 }
0x266a   :  { %3497 = vmatpush1.bf16.msra.mxu0 %v8373_v44  ;;  %3538 = vmatpush1.bf16.msra.mxu1 %v8376_v45 }
0x266b   :  { %3498 = vmatprep.subr.bf16.mxu0 %v8379_v42  ;;  %3539 = vmatprep.subr.bf16.mxu1 %v8382_v43  ;;  %v9529_v42 = vld [vmem:[#allocation32_spill] sm:$0xff] }
0x266c   :  { %3528 = vmatprep.mubr.bf16.mxu0 %v9477_v63  ;;  %3569 = vmatprep.mubr.bf16.mxu1 %v9477_v63 }
0x266e   :  { %3499 = vmatpush1.bf16.msra.mxu0 %v8387_v34  ;;  %3540 = vmatpush1.bf16.msra.mxu1 %v8390_v39  ;;  %v9530_v34 = vld [vmem:[#allocation22_spill] sm:$0xff] }
0x266f   :  { %3500 = vmatprep.subr.bf16.mxu0 %v8393_v24  ;;  %3541 = vmatprep.subr.bf16.mxu1 %v8396_v58 }
0x2672   :  { %3501 = vmatpush1.bf16.msra.mxu0 %v8399_v62  ;;  %3542 = vmatpush1.bf16.msra.mxu1 %v8402_v37  ;;  %v9531_v62 = vld [vmem:[#allocation33_spill] sm:$0xff] }
0x2673   :  { %3502 = vmatprep.subr.bf16.mxu0 %v8405_v27  ;;  %3543 = vmatprep.subr.bf16.mxu1 %v8408_v5 }
0x2676   :  { %3503 = vmatpush1.bf16.msra.mxu0 %v8411_v22  ;;  %3544 = vmatpush1.bf16.msra.mxu1 %v8414_v29  ;;  %v9532_v22 = vld [vmem:[#allocation21_spill] sm:$0xff] }
0x2677   :  { %3504 = vmatprep.subr.bf16.mxu0 %v8417_v30  ;;  %3545 = vmatprep.subr.bf16.mxu1 %v8420_v32 }
0x267a   :  { %3505 = vmatpush1.bf16.msra.mxu0 %v8423_v33  ;;  %3546 = vmatpush1.bf16.msra.mxu1 %v8426_v40 }
0x267b   :  { %3506 = vmatprep.subr.bf16.mxu0 %v8429_v41  ;;  %3547 = vmatprep.subr.bf16.mxu1 %v8432_v47 }
0x267e   :  { %3507 = vmatpush1.bf16.msra.mxu0 %v8435_v0  ;;  %3548 = vmatpush1.bf16.msra.mxu1 %v8438_v48 }
0x267f   :  { %3508 = vmatprep.subr.bf16.mxu0 %v8441_v15  ;;  %3549 = vmatprep.subr.bf16.mxu1 %v8444_v3 }
0x2682   :  { %3509 = vmatpush1.bf16.msra.mxu0 %v8447_v1  ;;  %3550 = vmatpush1.bf16.msra.mxu1 %v8450_v28 }
0x2683   :  { %3551 = vmatprep.subr.bf16.mxu1 %v8453_v53  ;;  %3510 = vmatprep.subr.bf16.mxu0 %v8456_v25 }
0x2686   :  { %3511 = vmatpush1.bf16.msra.mxu0 %v8459_v12  ;;  %3552 = vmatpush1.bf16.msra.mxu1 %v8462_v19 }
0x2729   :  { %v3370_v44 = vpop.f32.mrf.mxu0  ;;  %v3411_v45 = vpop.f32.mrf.mxu1 }
0x272a   :  { %v3420_v43 = vadd.f32 %v3370_v44, %v9529_v42  ;;  %v3424_v39 = vadd.f32 %v3411_v45, %v9530_v34  ;;  %v9535_v45 = vld [vmem:[#allocation18_spill] sm:$0xff] }
0x272b   :  { %v3372_v24 = vpop.f32.mrf.mxu0  ;;  %v3413_v58 = vpop.f32.mrf.mxu1 }
0x272c   :  { %v3421_v37 = vadd.f32 %v3372_v24, %v9531_v62  ;;  %v3425_v29 = vadd.f32 %v3413_v58, %v9532_v22  ;;  %v5951_v41 = vmul.f32 -1.442695, %v3420_v43  ;;  %v5953_v47 = vmul.f32 -1.442695, %v3424_v39 }
0x272d   :  { %v3374_v27 = vpop.f32.mrf.mxu0  ;;  %v3415_v5 = vpop.f32.mrf.mxu1 }
0x272e   :  { %6763 = vtanh.f32 %v3421_v37  ;;  %v5952_v51 = vmul.f32 -1.442695, %v3421_v37  ;;  %v5954_v61 = vmul.f32 -1.442695, %v3425_v29 }
0x272f   :  { %v3375_v30 = vpop.f32.mrf.mxu0  ;;  %v3416_v32 = vpop.f32.mrf.mxu1  ;;  %6765 = vtanh.f32 %v3425_v29 }
0x2730   :  { %6767 = vpow2.f32 %v5951_v41 }
0x2731   :  { %6769 = vpow2.f32 %v5953_v47  ;;  %v3695_v47 = vld [vmem:[#allocation3 + $0x50] sm:$0xff] }
0x273b   :  { %v6764_v33 = vpop.eup %6763 }
0x273c   :  { %3441 = vrot.lane.b32.xlu0 %v6764_v33, %s7149_s24  ;;  %v6766_v40 = vpop.eup %6765 }
0x273d   :  { %3471 = vrot.lane.b32.xlu1 %v6766_v40, %s7149_s24  ;;  %v6768_v0 = vpop.eup %6767 }
0x273e   :  { %v6770_v48 = vpop.eup %6769  ;;  %v3432_v15 = vadd.f32 1.0, %v6768_v0  ;;  %v3696_v0 = vld [vmem:[#allocation3 + $0x58] sm:$0xff] }
0x273f   :  { %v3462_v3 = vadd.f32 1.0, %v6770_v48  ;;  %v6172_v48 = vpack.i.bf16 %v3696_v0, %v3695_v47 }
0x2740   :  { %6771 = vrcp.f32 %v3432_v15  ;;  %v3697_v15 = vld [vmem:[#allocation3 + $0x60] sm:$0xff] }
0x2741   :  { %6773 = vrcp.f32 %v3462_v3  ;;  %v3698_v3 = vld [vmem:[#allocation3 + $0x68] sm:$0xff] }
0x274d   :  { %v6772_v1 = vpop.eup %6771 }
0x274e   :  { %v6774_v25 = vpop.eup %6773  ;;  %v3439_v52 = vmul.f32 %v6772_v1, %v8533_v4 }
0x274f   :  { %v3469_v36 = vmul.f32 %v6774_v25, %v8535_v57 }
0x27ae   :  { %v3442_v28 = vpop.permute.xlu0 %3441 }
0x27af   :  { %v3444_v53 = vmul.f32 %v6772_v1, %v3442_v28  ;;  %v3472_v12 = vpop.permute.xlu1 %3471  ;;  %v6177_v1 = vpack.i.bf16 %v3698_v3, %v3697_v15 }
0x27b0   :  { %v3474_v19 = vmul.f32 %v6774_v25, %v3472_v12 }
0x27b1   :  { %3446 = vrot.lane.b32.xlu0 %v3444_v53, %s7149_s24 }
0x27b2   :  { %3476 = vrot.lane.b32.xlu1 %v3474_v19, %s7149_s24  ;;  %v6331_v19 = vld [vmem:[#allocation5 + $0x1e8] ss:$16 sps:$4 sm:$0xff]  }
0x2823   :  { %v3447_v60 = vpop.permute.xlu0 %3446 }
0x2824   :  { %v8587_v13 = vadd.f32 %v3447_v60, %v3439_v52  ;;  %v3477_v59 = vpop.permute.xlu1 %3476  ;;  %v6333_v52 = vld [vmem:[#allocation5 + $0x1ec] ss:$16 sps:$4 sm:$0xff]   ;;  %v6334_v60 = vld [vmem:[#allocation5 + $0x1e0] ss:$16 sps:$4 sm:$0xff]  }
0x2825   :  { %v8589_v56 = vadd.f32 %v3477_v59, %v3469_v36  ;;  %v6336_v36 = vld [vmem:[#allocation5 + $0x1e4] ss:$16 sps:$4 sm:$0xff]   ;;  %v6339_v59 = vld [vmem:[#allocation5 + $0x1cc] ss:$16 sps:$4 sm:$0xff]   ;;  %3999 = vmatprep.subr.bf16.mxu1 %v6333_v52 }
0x2826   :  { %6775 = vtanh.f32 %v8587_v13  ;;  %3926 = vmatprep.subr.bf16.mxu0 %v6336_v36  ;;  %v8642_v36 = vld [vmem:[#allocation7 + $0x2cc] ss:$16 sps:$4 sm:$0xff]  }
0x2827   :  { %6777 = vtanh.f32 %v8589_v56 }
0x2828   :  { %6779 = vpow2.f32 %v5952_v51  ;;  %v6340_v51 = vld [vmem:[#allocation5 + $0x1c0] ss:$16 sps:$4 sm:$0xff]  }
0x2829   :  { %6781 = vpow2.f32 %v5954_v61  ;;  %v6348_v61 = vld [vmem:[#allocation5 + $0x1a4] ss:$16 sps:$4 sm:$0xff]  }
0x2833   :  { %v6776_v23 = vpop.eup %6775 }
0x2834   :  { %3452 = vrot.lane.b32.xlu0 %v6776_v23, %s7149_s24  ;;  %v6778_v38 = vpop.eup %6777  ;;  %v6342_v23 = vld [vmem:[#allocation5 + $0x1c4] ss:$16 sps:$4 sm:$0xff]  }
0x2835   :  { %3482 = vrot.lane.b32.xlu1 %v6778_v38, %s7149_s24  ;;  %v6780_v21 = vpop.eup %6779  ;;  %v6337_v38 = vld [vmem:[#allocation5 + $0x1c8] ss:$16 sps:$4 sm:$0xff]  }
0x2836   :  { %v6782_v7 = vpop.eup %6781  ;;  %v3433_v4 = vadd.f32 1.0, %v6780_v21  ;;  %v6343_v21 = vld [vmem:[#allocation5 + $0x1a8] ss:$16 sps:$4 sm:$0xff]  }
0x2837   :  { %v3463_v9 = vadd.f32 1.0, %v6782_v7  ;;  %v6346_v7 = vld [vmem:[#allocation5 + $0x1a0] ss:$16 sps:$4 sm:$0xff]  }
0x2838   :  { %6783 = vrcp.f32 %v3433_v4  ;;  %v6351_v4 = vld [vmem:[#allocation5 + $0x18c] ss:$16 sps:$4 sm:$0xff]  }
0x2839   :  { %6785 = vrcp.f32 %v3463_v9  ;;  %v6354_v9 = vld [vmem:[#allocation5 + $0x184] ss:$16 sps:$4 sm:$0xff]  }
0x2845   :  { %v6784_v57 = vpop.eup %6783 }
0x2846   :  { %v6786_v18 = vpop.eup %6785 }
0x28a6   :  { %v3453_v35 = vpop.permute.xlu0 %3452 }
0x28a7   :  { %v3455_v17 = vmul.f32 %v6784_v57, %v3453_v35  ;;  %v3483_v20 = vpop.permute.xlu1 %3482  ;;  %v6349_v57 = vld [vmem:[#allocation5 + $0x188] ss:$16 sps:$4 sm:$0xff]   ;;  %v6352_v35 = vld [vmem:[#allocation5 + $0x180] ss:$16 sps:$4 sm:$0xff]  }
0x28a8   :  { %v3485_v46 = vmul.f32 %v6786_v18, %v3483_v20  ;;  %v6360_v18 = vld [vmem:[#allocation5 + $0x164] ss:$16 sps:$4 sm:$0xff]   ;;  %v6355_v20 = vld [vmem:[#allocation5 + $0x168] ss:$16 sps:$4 sm:$0xff]  }
0x28a9   :  { %3487 = vst.msk [vmem:[#allocation3 + $0x30] sm:$0xff] %vm601_vm0, %v3455_v17 }
0x28aa   :  { %3489 = vst.msk [vmem:[#allocation3 + $0x48] sm:$0xff] %vm601_vm0, %v3485_v46  ;;  %3491 = vrot.lane.b32.xlu1 %v3485_v46, %s7149_s24  ;;  %v6358_v46 = vld [vmem:[#allocation5 + $0x160] ss:$16 sps:$4 sm:$0xff]  }
0x291c   :  { %v3492_v16 = vpop.permute.xlu1 %3491 }
0x291d   :  { %v3494_v6 = vsel %vm601_vm0, %v3455_v17, %v3492_v16  ;;  %v6357_v17 = vld [vmem:[#allocation5 + $0x16c] ss:$16 sps:$4 sm:$0xff]  }
0x291e   :  { %v3495_v26 = vpack.c.bf16 %v3494_v6, %v3494_v6  ;;  %v6363_v16 = vld [vmem:[#allocation5 + $0x14c] ss:$16 sps:$4 sm:$0xff]   ;;  %v6366_v6 = vld [vmem:[#allocation5 + $0x144] ss:$16 sps:$4 sm:$0xff]  }
0x2920   :  { %3529 = vmatmul.mubr.bf16.vlgmr.msra.gmra.mxu0 %v3495_v26  ;;  %3570 = vmatmul.mubr.bf16.vlgmr.msra.gmra.mxu1 %v3495_v26  ;;  %v6361_v26 = vld [vmem:[#allocation5 + $0x148] ss:$16 sps:$4 sm:$0xff]  }
0x2921   :  { %3958 = vmatprep.mubr.bf16.mxu0 %v9477_v63  ;;  %4031 = vmatprep.mubr.bf16.mxu1 %v9477_v63 }
0x2922   :  { %4000 = vmatpush1.bf16.msra.mxu1 %v6331_v19  ;;  %3927 = vmatpush1.bf16.msra.mxu0 %v6334_v60  ;;  %v8640_v19 = vld [vmem:[#allocation7 + $0x2e0] ss:$16 sps:$4 sm:$0xff]  }
0x2923   :  { %4001 = vmatprep.subr.bf16.mxu1 %v6339_v59  ;;  %3928 = vmatprep.subr.bf16.mxu0 %v6342_v23  ;;  %v8644_v59 = vld [vmem:[#allocation7 + $0x2c4] ss:$16 sps:$4 sm:$0xff]  }
0x2926   :  { %4002 = vmatpush1.bf16.msra.mxu1 %v6337_v38  ;;  %3929 = vmatpush1.bf16.msra.mxu0 %v6340_v51 }
0x2927   :  { %3930 = vmatprep.subr.bf16.mxu0 %v6348_v61  ;;  %v8651_v61 = vld [vmem:[#allocation7 + $0x2c0] ss:$16 sps:$4 sm:$0xff]  }
0x292a   :  { %3931 = vmatpush1.bf16.msra.mxu0 %v6346_v7  ;;  %v8655_v7 = vld [vmem:[#allocation7 + $0x2ac] ss:$16 sps:$4 sm:$0xff]  }
0x292b   :  { %3932 = vmatprep.subr.bf16.mxu0 %v6354_v9  ;;  %v8657_v9 = vld [vmem:[#allocation7 + $0x2a4] ss:$16 sps:$4 sm:$0xff]  }
0x292e   :  { %3933 = vmatpush1.bf16.msra.mxu0 %v6352_v35 }
0x292f   :  { %3934 = vmatprep.subr.bf16.mxu0 %v6360_v18  ;;  %v8665_v18 = vld [vmem:[#allocation7 + $0x2a8] ss:$16 sps:$4 sm:$0xff]  }
0x2932   :  { %3935 = vmatpush1.bf16.msra.mxu0 %v6358_v46 }
0x2933   :  { %3936 = vmatprep.subr.bf16.mxu0 %v6366_v6  ;;  %v8673_v6 = vld [vmem:[#allocation7 + $0x284] ss:$16 sps:$4 sm:$0xff]  }
0x29e0   :  { %v3530_v54 = vpop.f32.mrf.mxu0  ;;  %v3571_v50 = vpop.f32.mrf.mxu1 }
0x29e1   :  { %v3580_v10 = vadd.f32 %v3530_v54, %v9533_v8  ;;  %v3584_v14 = vadd.f32 %v3571_v50, %v9534_v2  ;;  %v6364_v54 = vld [vmem:[#allocation5 + $0x140] ss:$16 sps:$4 sm:$0xff]   ;;  %v6369_v50 = vld [vmem:[#allocation5 + $0x12c] ss:$16 sps:$4 sm:$0xff]   ;;  %v6372_v8 = vld [vmem:[#allocation5 + $0x124] ss:$16 sps:$4 sm:$0xff]  }
0x29e2   :  { %v3532_v11 = vpop.f32.mrf.mxu0  ;;  %v3573_v31 = vpop.f32.mrf.mxu1  ;;  %3937 = vmatpush1.bf16.msra.mxu0 %v6364_v54  ;;  %v6370_v2 = vld [vmem:[#allocation5 + $0x120] ss:$16 sps:$4 sm:$0xff]  }
0x29e3   :  { %v8604_v42 = vadd.f32 %v3573_v31, %v9535_v45  ;;  %v8607_v39 = vadd.f32 %v3532_v11, %v8180_v49  ;;  %v5957_v62 = vmul.f32 -1.442695, %v3584_v14  ;;  %v5955_v37 = vmul.f32 -1.442695, %v3580_v10  ;;  %v6367_v10 = vld [vmem:[#allocation5 + $0x128] ss:$16 sps:$4 sm:$0xff]   ;;  %3938 = vmatprep.subr.bf16.mxu0 %v6372_v8 }
0x29e4   :  { %v3534_v55 = vpop.f32.mrf.mxu0  ;;  %v3575_v44 = vpop.f32.mrf.mxu1  ;;  %v8679_v8 = vld [vmem:[#allocation7 + $0x280] ss:$16 sps:$4 sm:$0xff]  }
0x29e5   :  { %6787 = vtanh.f32 %v8604_v42  ;;  %v5958_v14 = vmul.f32 -1.442695, %v8604_v42  ;;  %v8626_v42 = vld [vmem:[#allocation7 + $0x2ec] ss:$16 sps:$4 sm:$0xff]  }
0x29e6   :  { %v3535_v43 = vpop.f32.mrf.mxu0  ;;  %v3576_v34 = vpop.f32.mrf.mxu1  ;;  %6789 = vtanh.f32 %v8607_v39  ;;  %3939 = vmatpush1.bf16.msra.mxu0 %v6370_v2  ;;  %v8683_v2 = vld [vmem:[#allocation7 + $0x26c] ss:$16 sps:$4 sm:$0xff]  }
0x29e7   :  { %6791 = vpow2.f32 %v5957_v62  ;;  %v6375_v43 = vld [vmem:[#allocation5 + $0x10c] ss:$16 sps:$4 sm:$0xff]   ;;  %v6378_v34 = vld [vmem:[#allocation5 + $0x104] ss:$16 sps:$4 sm:$0xff]   ;;  %v6373_v62 = vld [vmem:[#allocation5 + $0x108] ss:$16 sps:$4 sm:$0xff]  }
0x29e8   :  { %6793 = vpow2.f32 %v5955_v37  ;;  %v6376_v37 = vld [vmem:[#allocation5 + $0x100] ss:$16 sps:$4 sm:$0xff]   ;;  %3940 = vmatprep.subr.bf16.mxu0 %v6378_v34 }
0x29ea   :  { %3941 = vmatpush1.bf16.msra.mxu0 %v6376_v37 }
0x29f2   :  { %v6788_v24 = vpop.eup %6787 }
0x29f3   :  { %3631 = vrot.lane.b32.xlu0 %v6788_v24, %s7149_s24  ;;  %v6790_v58 = vpop.eup %6789 }
0x29f4   :  { %v6792_v27 = vpop.eup %6791 }
0x29f5   :  { %v3622_v5 = vadd.f32 1.0, %v6792_v27  ;;  %v6794_v22 = vpop.eup %6793 }
0x29f6   :  { %v3592_v29 = vadd.f32 1.0, %v6794_v22  ;;  %v3694_v22 = vld [vmem:[#allocation3 + $0x48] sm:$0xff] }
0x29f7   :  { %3601 = vrot.lane.b32.xlu0 %v6790_v58, %s7149_s24  ;;  %6795 = vrcp.f32 %v3622_v5  ;;  %v8628_v5 = vld [vmem:[#allocation7 + $0x2e4] ss:$16 sps:$4 sm:$0xff]  }
0x29f8   :  { %6797 = vrcp.f32 %v3592_v29  ;;  %4297 = vmatprep.subr.bf16.mxu0 %v8628_v5 }
0x2a04   :  { %v6796_v49 = vpop.eup %6795 }
0x2a05   :  { %v8614_v33 = vpop.eup %6797  ;;  %v3629_v28 = vmul.f32 %v6796_v49, %v8589_v56  ;;  %v6345_v56 = vld [vmem:[#allocation5 + $0x1ac] ss:$16 sps:$4 sm:$0xff]  }
0x2a06   :  { %4003 = vmatprep.subr.bf16.mxu1 %v6345_v56  ;;  %v3599_v44 = vmul.f32 %v8614_v33, %v8587_v13  ;;  %v8649_v56 = vld [vmem:[#allocation7 + $0x2c8] ss:$16 sps:$4 sm:$0xff]  }
0x2a07   :  { %4004 = vmatpush1.bf16.msra.mxu1 %v6343_v21  ;;  %v3687_v21 = vld [vmem:[#allocation3 + $0x10] sm:$0xff] }
0x2a08   :  { %4005 = vmatprep.subr.bf16.mxu1 %v6351_v4  ;;  %v3688_v4 = vld [vmem:[#allocation3 + $0x18] sm:$0xff] }
0x2a0b   :  { %4006 = vmatpush1.bf16.msra.mxu1 %v6349_v57 }
0x2a0c   :  { %4007 = vmatprep.subr.bf16.mxu1 %v6357_v17 }
0x2a0f   :  { %4008 = vmatpush1.bf16.msra.mxu1 %v6355_v20  ;;  %v8667_v20 = vld [vmem:[#allocation7 + $0x2a0] ss:$16 sps:$4 sm:$0xff]  }
0x2a10   :  { %4009 = vmatprep.subr.bf16.mxu1 %v6363_v16  ;;  %v8671_v16 = vld [vmem:[#allocation7 + $0x28c] ss:$16 sps:$4 sm:$0xff]  }
0x2a13   :  { %4010 = vmatpush1.bf16.msra.mxu1 %v6361_v26 }
0x2a14   :  { %4011 = vmatprep.subr.bf16.mxu1 %v6369_v50  ;;  %v8677_v50 = vld [vmem:[#allocation7 + $0x288] ss:$16 sps:$4 sm:$0xff]  }
0x2a17   :  { %4012 = vmatpush1.bf16.msra.mxu1 %v6367_v10  ;;  %v3689_v10 = vld [vmem:[#allocation3 + $0x20] sm:$0xff] }
0x2a18   :  { %4013 = vmatprep.subr.bf16.mxu1 %v6375_v43 }
0x2a1b   :  { %4014 = vmatpush1.bf16.msra.mxu1 %v6373_v62 }
0x2a1c   :  { %4338 = vmatprep.subr.bf16.mxu1 %v8626_v42 }
0x2a65   :  { %v3632_v30 = vpop.permute.xlu0 %3631 }
0x2a66   :  { %v3634_v32 = vmul.f32 %v6796_v49, %v3632_v30  ;;  %v3699_v30 = vld [vmem:[#allocation3 + $0x70] sm:$0xff] }
0x2a68   :  { %3636 = vrot.lane.b32.xlu1 %v3634_v32, %s7149_s24  ;;  %v3700_v32 = vld [vmem:[#allocation3 + $0x78] sm:$0xff] }
0x2a69   :  { %v3602_v40 = vpop.permute.xlu0 %3601 }
0x2a6a   :  { %v3604_v41 = vmul.f32 %v8614_v33, %v3602_v40  ;;  %v6182_v33 = vpack.i.bf16 %v3700_v32, %v3699_v30  ;;  %v5956_v40 = vmul.f32 -1.442695, %v8607_v39  ;;  %v3691_v32 = vld [vmem:[#allocation3 + $0x30] sm:$0xff] }
0x2a6c   :  { %3606 = vrot.lane.b32.xlu0 %v3604_v41, %s7149_s24 }
0x2a70   :  { %6173 = vrot.lane.b32.xlu0 %v6172_v48, %s7149_s24 }
0x2a74   :  { %6178 = vrot.lane.b32.xlu0 %v6177_v1, %s7149_s24  ;;  %v3685_v1 = vld [vmem:[#allocation3] sm:$0xff] }
0x2ada   :  { %v3637_v53 = vpop.permute.xlu1 %3636 }
0x2adb   :  { %v3639_v25 = vadd.f32 %v3637_v53, %v3629_v28  ;;  %v3686_v28 = vld [vmem:[#allocation3 + $0x8] sm:$0xff] }
0x2add   :  { %6799 = vtanh.f32 %v3639_v25 }
0x2ade   :  { %6801 = vpow2.f32 %v5958_v14  ;;  %v3607_v55 = vpop.permute.xlu0 %3606  ;;  %v3690_v14 = vld [vmem:[#allocation3 + $0x28] sm:$0xff] }
0x2adf   :  { %v3609_v45 = vadd.f32 %v3607_v55, %v3599_v44  ;;  %v8693_v44 = vld [vmem:[#allocation7 + $0x268] ss:$16 sps:$4 sm:$0xff]  }
0x2ae2   :  { %v6174_v3 = vpop.permute.xlu0 %6173 }
0x2ae3   :  { %v6176_v23 = vunpack.i.h.bf16 %v6174_v3  ;;  %v6175_v38 = vunpack.i.l.bf16 %v6174_v3  ;;  %v8735_v3 = vld [vmem:[#allocation7 + $0x200] ss:$16 sps:$4 sm:$0xff]  }
0x2ae5   :  { %v3735_v57 = vsel %vm601_vm0, %v3687_v21, %v6175_v38  ;;  %v3736_v35 = vsel %vm601_vm0, %v3688_v4, %v6176_v23 }
0x2ae6   :  { %v6179_v17 = vpop.permute.xlu0 %6178  ;;  %v3742_v46 = vpack.c.bf16 %v3736_v35, %v3735_v57 }
0x2ae7   :  { %v6181_v26 = vunpack.i.h.bf16 %v6179_v17  ;;  %v6180_v54 = vunpack.i.l.bf16 %v6179_v17 }
0x2ae9   :  { %v3738_v55 = vsel %vm601_vm0, %v3690_v14, %v6181_v26  ;;  %v9541_v26 = vld [vmem:[#allocation15_spill] sm:$0xff] }
0x2aea   :  { %v6800_v12 = vpop.eup %6799 }
0x2aeb   :  { %3642 = vrot.lane.b32.xlu1 %v6800_v12, %s7149_s24  ;;  %v6802_v11 = vpop.eup %6801  ;;  %v8638_v12 = vld [vmem:[#allocation7 + $0x2e8] ss:$16 sps:$4 sm:$0xff]  }
0x2aec   :  { %v3623_v31 = vadd.f32 1.0, %v6802_v11  ;;  %v8685_v11 = vld [vmem:[#allocation7 + $0x264] ss:$16 sps:$4 sm:$0xff]  }
0x2aee   :  { %6803 = vrcp.f32 %v3623_v31  ;;  %v3737_v31 = vsel %vm601_vm0, %v3689_v10, %v6180_v54 }
0x2aef   :  { %6805 = vtanh.f32 %v3609_v45  ;;  %v8695_v45 = vld [vmem:[#allocation7 + $0x260] ss:$16 sps:$4 sm:$0xff]   ;;  %v3743_v34 = vpack.c.bf16 %v3738_v55, %v3737_v31 }
0x2af0   :  { %6807 = vpow2.f32 %v5956_v40  ;;  %v8721_v40 = vld [vmem:[#allocation7 + $0x228] ss:$16 sps:$4 sm:$0xff]  }
0x2afb   :  { %v6804_v24 = vpop.eup %6803 }
0x2afc   :  { %v6806_v49 = vpop.eup %6805 }
0x2afd   :  { %v6808_v41 = vpop.eup %6807 }
0x2afe   :  { %v3593_v47 = vadd.f32 1.0, %v6808_v41  ;;  %v8723_v41 = vld [vmem:[#allocation7 + $0x220] ss:$16 sps:$4 sm:$0xff]  }
0x2b00   :  { %6809 = vrcp.f32 %v3593_v47 }
0x2b0d   :  { %v6810_v52 = vpop.eup %6809 }
0x2b5d   :  { %v3643_v58 = vpop.permute.xlu1 %3642 }
0x2b5e   :  { %v3645_v27 = vmul.f32 %v6804_v24, %v3643_v58  ;;  %v8699_v24 = vld [vmem:[#allocation7 + $0x24c] ss:$16 sps:$4 sm:$0xff]   ;;  %v8701_v58 = vld [vmem:[#allocation7 + $0x244] ss:$16 sps:$4 sm:$0xff]  }
0x2b60   :  { %3649 = vst.msk [vmem:[#allocation3 + $0x40] sm:$0xff] %vm601_vm0, %v3645_v27 }
0x2b67   :  { %v3693_v13 = vld [vmem:[#allocation3 + $0x40] sm:$0xff] }
0x2b68   :  { %v6167_v29 = vpack.i.bf16 %v3694_v22, %v3693_v13  ;;  %v8705_v13 = vld [vmem:[#allocation7 + $0x248] ss:$16 sps:$4 sm:$0xff]   ;;  %v8707_v22 = vld [vmem:[#allocation7 + $0x240] ss:$16 sps:$4 sm:$0xff]  }
0x2b6a   :  { %6168 = vrot.lane.b32.xlu1 %v6167_v29, %s7149_s24  ;;  %v8711_v29 = vld [vmem:[#allocation7 + $0x22c] ss:$16 sps:$4 sm:$0xff]  }
0x2b6e   :  { %3612 = vrot.lane.b32.xlu1 %v6806_v49, %s7149_s24  ;;  %v8713_v49 = vld [vmem:[#allocation7 + $0x224] ss:$16 sps:$4 sm:$0xff]  }
0x2b72   :  { %6183 = vrot.lane.b32.xlu1 %v6182_v33, %s7149_s24 }
0x2bdc   :  { %v6169_v0 = vpop.permute.xlu1 %6168 }
0x2bdd   :  { %v6171_v48 = vunpack.i.h.bf16 %v6169_v0  ;;  %v6170_v15 = vunpack.i.l.bf16 %v6169_v0  ;;  %v8727_v0 = vld [vmem:[#allocation7 + $0x20c] ss:$16 sps:$4 sm:$0xff]  }
0x2bdf   :  { %v3734_v53 = vsel %vm601_vm0, %v3686_v28, %v6171_v48  ;;  %v3733_v25 = vsel %vm601_vm0, %v3685_v1, %v6170_v15  ;;  %v8729_v48 = vld [vmem:[#allocation7 + $0x204] ss:$16 sps:$4 sm:$0xff]   ;;  %v8733_v15 = vld [vmem:[#allocation7 + $0x208] ss:$16 sps:$4 sm:$0xff]  }
0x2be0   :  { %v3741_v39 = vpack.c.bf16 %v3734_v53, %v3733_v25  ;;  %v3613_v60 = vpop.permute.xlu1 %3612  ;;  %v5959_v1 = vld [vmem:[%s9436_s4 + $0x8] sm:$0xf]  ;;  %v9536_v28 = vld [vmem:[#allocation11_spill] sm:$0xff]  ;;  %v9537_v25 = vld [vmem:[#allocation17_spill] sm:$0xff] }
0x2be1   :  { %v3615_v51 = vmul.f32 %v6810_v52, %v3613_v60  ;;  %v3749_v53 = vrot.slane %v5959_v1, %v9536_v28  ;;  %v8786_v52 = vrot.slane %v5959_v1, %v9537_v25  ;;  %v3753_v54 = vrot.slane %v5959_v1, %v9541_v26 }
0x2be2   :  { %3959 = vmatmul.mubr.bf16.vlgmr.msra.gmra.mxu0 %v3741_v39  ;;  %4032 = vmatmul.mubr.bf16.vlgmr.msra.gmra.mxu1 %v3741_v39  ;;  %v9538_v39 = vld [vmem:[#allocation13_spill] sm:$0xff] }
0x2be3   :  { %3647 = vst.msk [vmem:[#allocation3 + $0x38] sm:$0xff] %vm601_vm0, %v3615_v51  ;;  %4339 = vmatpush1.bf16.msra.mxu1 %v8638_v12  ;;  %4298 = vmatpush1.bf16.msra.mxu0 %v8640_v19  ;;  %v8789_v60 = vrot.slane %v5959_v1, %v9538_v39 }
0x2be4   :  { %4340 = vmatprep.subr.bf16.mxu1 %v8642_v36  ;;  %4299 = vmatprep.subr.bf16.mxu0 %v8644_v59  ;;  %v6184_v43 = vpop.permute.xlu1 %6183 }
0x2be5   :  { %3968 = vmatprep.mubr.bf16.mxu0 %v9477_v63  ;;  %4041 = vmatprep.mubr.bf16.mxu1 %v9477_v63  ;;  %v6186_v37 = vunpack.i.h.bf16 %v6184_v43  ;;  %v6185_v27 = vunpack.i.l.bf16 %v6184_v43 }
0x2be7   :  { %4341 = vmatpush1.bf16.msra.mxu1 %v8649_v56  ;;  %4300 = vmatpush1.bf16.msra.mxu0 %v8651_v61  ;;  %v3739_v33 = vsel %vm601_vm0, %v3691_v32, %v6185_v27 }
0x2be8   :  { %4342 = vmatprep.subr.bf16.mxu1 %v8655_v7  ;;  %4301 = vmatprep.subr.bf16.mxu0 %v8657_v9 }
0x2bea   :  { %3969 = vmatmul.mubr.bf16.gmra.mxu0 %v3742_v46  ;;  %4042 = vmatmul.mubr.bf16.gmra.mxu1 %v3742_v46  ;;  %v3692_v62 = vld [vmem:[#allocation3 + $0x38] sm:$0xff] }
0x2beb   :  { %4343 = vmatpush1.bf16.msra.mxu1 %v8665_v18  ;;  %4302 = vmatpush1.bf16.msra.mxu0 %v8667_v20  ;;  %v3740_v30 = vsel %vm601_vm0, %v3692_v62, %v6186_v37 }
0x2bec   :  { %4344 = vmatprep.subr.bf16.mxu1 %v8671_v16  ;;  %4303 = vmatprep.subr.bf16.mxu0 %v8673_v6  ;;  %v3744_v47 = vpack.c.bf16 %v3740_v30, %v3739_v33 }
0x2bed   :  { %3978 = vmatprep.mubr.bf16.mxu0 %v9477_v63  ;;  %4051 = vmatprep.mubr.bf16.mxu1 %v9477_v63 }
0x2bef   :  { %4345 = vmatpush1.bf16.msra.mxu1 %v8677_v50  ;;  %4304 = vmatpush1.bf16.msra.mxu0 %v8679_v8 }
0x2bf0   :  { %4346 = vmatprep.subr.bf16.mxu1 %v8683_v2  ;;  %4305 = vmatprep.subr.bf16.mxu0 %v8685_v11 }
0x2bf2   :  { %3979 = vmatmul.mubr.bf16.gmra.mxu0 %v3743_v34  ;;  %4052 = vmatmul.mubr.bf16.gmra.mxu1 %v3743_v34 }
0x2bf3   :  { %4347 = vmatpush1.bf16.msra.mxu1 %v8693_v44  ;;  %4306 = vmatpush1.bf16.msra.mxu0 %v8695_v45 }
0x2bf4   :  { %4348 = vmatprep.subr.bf16.mxu1 %v8699_v24  ;;  %4307 = vmatprep.subr.bf16.mxu0 %v8701_v58 }
0x2bf5   :  { %3988 = vmatprep.mubr.bf16.mxu0 %v9477_v63  ;;  %4061 = vmatprep.mubr.bf16.mxu1 %v9477_v63 }
0x2bf7   :  { %4349 = vmatpush1.bf16.msra.mxu1 %v8705_v13  ;;  %4308 = vmatpush1.bf16.msra.mxu0 %v8707_v22 }
0x2bf8   :  { %4350 = vmatprep.subr.bf16.mxu1 %v8711_v29  ;;  %4309 = vmatprep.subr.bf16.mxu0 %v8713_v49 }
0x2bfa   :  { %3989 = vmatmul.mubr.bf16.gmra.mxu0 %v3744_v47  ;;  %4062 = vmatmul.mubr.bf16.gmra.mxu1 %v3744_v47 }
0x2bfb   :  { %4351 = vmatpush1.bf16.msra.mxu1 %v8721_v40  ;;  %4310 = vmatpush1.bf16.msra.mxu0 %v8723_v41 }
0x2bfc   :  { %4352 = vmatprep.subr.bf16.mxu1 %v8727_v0  ;;  %4311 = vmatprep.subr.bf16.mxu0 %v8729_v48 }
0x2bfd   :  { %4329 = vmatprep.mubr.bf16.mxu0 %v9477_v63  ;;  %4370 = vmatprep.mubr.bf16.mxu1 %v9477_v63 }
0x2bff   :  { %4353 = vmatpush1.bf16.msra.mxu1 %v8733_v15  ;;  %4312 = vmatpush1.bf16.msra.mxu0 %v8735_v3 }
0x2c00   :  { %4455 = vmatprep.subr.bf16.mxu0 %v8628_v5  ;;  %4496 = vmatprep.subr.bf16.mxu1 %v8626_v42 }
0x2c02   :  { %4330 = vmatmul.mubr.bf16.vlgmr.msra.gmra.mxu0 %v9477_v63  ;;  %4371 = vmatmul.mubr.bf16.vlgmr.msra.gmra.mxu1 %v9477_v63 }
0x2c03   :  { %4456 = vmatpush1.bf16.msra.mxu0 %v8640_v19  ;;  %4497 = vmatpush1.bf16.msra.mxu1 %v8638_v12 }
0x2c04   :  { %4457 = vmatprep.subr.bf16.mxu0 %v8644_v59  ;;  %4498 = vmatprep.subr.bf16.mxu1 %v8642_v36 }
0x2c05   :  { %4487 = vmatprep.mubr.bf16.mxu0 %v9477_v63  ;;  %4528 = vmatprep.mubr.bf16.mxu1 %v9477_v63 }
0x2c07   :  { %4458 = vmatpush1.bf16.msra.mxu0 %v8651_v61  ;;  %4499 = vmatpush1.bf16.msra.mxu1 %v8649_v56 }
0x2c08   :  { %4459 = vmatprep.subr.bf16.mxu0 %v8657_v9  ;;  %4500 = vmatprep.subr.bf16.mxu1 %v8655_v7 }
0x2c0b   :  { %4460 = vmatpush1.bf16.msra.mxu0 %v8667_v20  ;;  %4501 = vmatpush1.bf16.msra.mxu1 %v8665_v18 }
0x2c0c   :  { %4461 = vmatprep.subr.bf16.mxu0 %v8673_v6  ;;  %4502 = vmatprep.subr.bf16.mxu1 %v8671_v16 }
0x2c0f   :  { %4462 = vmatpush1.bf16.msra.mxu0 %v8679_v8  ;;  %4503 = vmatpush1.bf16.msra.mxu1 %v8677_v50 }
0x2c10   :  { %4463 = vmatprep.subr.bf16.mxu0 %v8685_v11  ;;  %4504 = vmatprep.subr.bf16.mxu1 %v8683_v2 }
0x2c13   :  { %4464 = vmatpush1.bf16.msra.mxu0 %v8695_v45  ;;  %4505 = vmatpush1.bf16.msra.mxu1 %v8693_v44 }
0x2c14   :  { %4465 = vmatprep.subr.bf16.mxu0 %v8701_v58  ;;  %4506 = vmatprep.subr.bf16.mxu1 %v8699_v24 }
0x2c17   :  { %4466 = vmatpush1.bf16.msra.mxu0 %v8707_v22  ;;  %4507 = vmatpush1.bf16.msra.mxu1 %v8705_v13 }
0x2c18   :  { %4467 = vmatprep.subr.bf16.mxu0 %v8713_v49  ;;  %4508 = vmatprep.subr.bf16.mxu1 %v8711_v29 }
0x2c1b   :  { %4468 = vmatpush1.bf16.msra.mxu0 %v8723_v41  ;;  %4509 = vmatpush1.bf16.msra.mxu1 %v8721_v40 }
0x2c1c   :  { %4510 = vmatprep.subr.bf16.mxu1 %v8727_v0  ;;  %4469 = vmatprep.subr.bf16.mxu0 %v8729_v48 }
0x2c1f   :  { %4470 = vmatpush1.bf16.msra.mxu0 %v8735_v3  ;;  %4511 = vmatpush1.bf16.msra.mxu1 %v8733_v15 }
0x2c20   :  { %4613 = vmatprep.subr.bf16.mxu0 %v8628_v5  ;;  %4654 = vmatprep.subr.bf16.mxu1 %v8626_v42 }
0x2ca2   :  { %v3960_v23 = vpop.f32.mrf.mxu0  ;;  %v4033_v38 = vpop.f32.mrf.mxu1 }
0x2ca3   :  { %v8791_v51 = vadd.f32 %v3960_v23, %v3749_v53  ;;  %v8794_v21 = vadd.f32 %v4033_v38, %v8786_v52 }
0x2ca4   :  { %v8796_v4 = vpop.f32.mrf.mxu0  ;;  %v4035_v57 = vpop.f32.mrf.mxu1 }
0x2ca5   :  { %9539 = vst [vmem:[#allocation31_spill] sm:$0xff] %v8794_v21  ;;  %v8799_v35 = vadd.f32 %v4035_v57, %v8789_v60 }
0x2ca6   :  { %v3964_v17 = vpop.f32.mrf.mxu0  ;;  %v4037_v46 = vpop.f32.mrf.mxu1 }
0x2ca7   :  { %9540 = vst [vmem:[#allocation16_spill] sm:$0xff] %v8799_v35  ;;  %v8802_v10 = vadd.f32 %v3964_v17, %v3749_v53  ;;  %v8805_v14 = vadd.f32 %v4037_v46, %v8786_v52 }
0x2ca8   :  { %v3966_v31 = vpop.f32.mrf.mxu0  ;;  %v4039_v55 = vpop.f32.mrf.mxu1 }
0x2ca9   :  { %9542 = vst [vmem:[#allocation26_spill] sm:$0xff] %v8805_v14  ;;  %v8807_v43 = vadd.f32 %v3966_v31, %v3753_v54  ;;  %v8810_v34 = vadd.f32 %v4039_v55, %v8789_v60 }
0x2caa   :  { %v3970_v62 = vpop.f32.mrf.mxu0  ;;  %v4043_v37 = vpop.f32.mrf.mxu1 }
0x2cab   :  { %9543 = vst [vmem:[#allocation23_spill] sm:$0xff] %v8810_v34  ;;  %v8812_v27 = vadd.f32 %v3970_v62, %v3749_v53  ;;  %v8815_v30 = vadd.f32 %v4043_v37, %v8786_v52 }
0x2cac   :  { %v3972_v32 = vpop.f32.mrf.mxu0  ;;  %v4045_v33 = vpop.f32.mrf.mxu1 }
0x2cad   :  { %9544 = vst [vmem:[#allocation28_spill] sm:$0xff] %v8815_v30  ;;  %v8817_v47 = vadd.f32 %v3972_v32, %v3753_v54  ;;  %v8820_v1 = vadd.f32 %v4045_v33, %v8789_v60 }
0x2cae   :  { %v3974_v28 = vpop.f32.mrf.mxu0  ;;  %v4047_v25 = vpop.f32.mrf.mxu1 }
0x2caf   :  { %9545 = vst [vmem:[#allocation25_spill] sm:$0xff] %v8820_v1  ;;  %v8822_v39 = vadd.f32 %v3974_v28, %v3749_v53  ;;  %v8825_v23 = vadd.f32 %v4047_v25, %v8786_v52 }
0x2cb0   :  { %v3976_v38 = vpop.f32.mrf.mxu0  ;;  %v4049_v57 = vpop.f32.mrf.mxu1 }
0x2cb1   :  { %9546 = vst [vmem:[#allocation14_spill] sm:$0xff] %v8822_v39  ;;  %9547 = vst [vmem:[#allocation27_spill] sm:$0xff] %v8825_v23  ;;  %v8827_v17 = vadd.f32 %v3976_v38, %v3753_v54  ;;  %v8830_v46 = vadd.f32 %v4049_v57, %v8789_v60 }
0x2cb2   :  { %v3980_v26 = vpop.f32.mrf.mxu0  ;;  %v4053_v31 = vpop.f32.mrf.mxu1 }
0x2cb3   :  { %9548 = vst [vmem:[#allocation24_spill] sm:$0xff] %v8827_v17  ;;  %9549 = vst [vmem:[#allocation29_spill] sm:$0xff] %v8830_v46  ;;  %v8832_v55 = vadd.f32 %v3980_v26, %v3749_v53  ;;  %v8835_v62 = vadd.f32 %v4053_v31, %v8786_v52 }
0x2cb4   :  { %v3982_v37 = vpop.f32.mrf.mxu0  ;;  %v4055_v32 = vpop.f32.mrf.mxu1 }
0x2cb5   :  { %9550 = vst [vmem:[#allocation20_spill] sm:$0xff] %v8832_v55  ;;  %9551 = vst [vmem:[#allocation30_spill] sm:$0xff] %v8835_v62  ;;  %v8837_v33 = vadd.f32 %v3982_v37, %v3753_v54  ;;  %v8840_v28 = vadd.f32 %v4055_v32, %v8789_v60 }
0x2cb6   :  { %v3984_v25 = vpop.f32.mrf.mxu0  ;;  %v4057_v38 = vpop.f32.mrf.mxu1 }
0x2cb7   :  { %9552 = vst [vmem:[#allocation19_spill] sm:$0xff] %v8837_v33  ;;  %9553 = vst [vmem:[#allocation32_spill] sm:$0xff] %v8840_v28  ;;  %v8842_v35 = vadd.f32 %v3984_v25, %v3749_v53  ;;  %v8845_v57 = vadd.f32 %v4057_v38, %v8786_v52 }
0x2cb8   :  { %v3986_v21 = vpop.f32.mrf.mxu0  ;;  %v4059_v26 = vpop.f32.mrf.mxu1 }
0x2cb9   :  { %9554 = vst [vmem:[#allocation22_spill] sm:$0xff] %v8842_v35  ;;  %v8847_v34 = vadd.f32 %v3986_v21, %v3753_v54  ;;  %v8850_v31 = vadd.f32 %v4059_v26, %v8789_v60 }
0x2cba   :  { %v3990_v14 = vpop.f32.mrf.mxu0  ;;  %v4063_v37 = vpop.f32.mrf.mxu1 }
0x2cbb   :  { %9555 = vst [vmem:[#allocation33_spill] sm:$0xff] %v8847_v34  ;;  %9556 = vst [vmem:[#allocation21_spill] sm:$0xff] %v8850_v31  ;;  %v8852_v1 = vadd.f32 %v3990_v14, %v3749_v53  ;;  %v8855_v32 = vadd.f32 %v4063_v37, %v8786_v52 }
0x2cbc   :  { %v3992_v30 = vpop.f32.mrf.mxu0  ;;  %v4065_v25 = vpop.f32.mrf.mxu1 }
0x2cbd   :  { %9557 = vst [vmem:[#allocation34_spill] sm:$0xff] %v8852_v1  ;;  %v8857_v35 = vadd.f32 %v3992_v30, %v3753_v54  ;;  %v8860_v38 = vadd.f32 %v4065_v25, %v8789_v60  ;;  %v3963_v30 = vadd.f32 %v8796_v4, %v3753_v54 }
0x2cbe   :  { %v3994_v46 = vpop.f32.mrf.mxu0  ;;  %v4067_v21 = vpop.f32.mrf.mxu1 }
0x2cbf   :  { %9558 = vst [vmem:[#allocation12_spill] sm:$0xff] %v8857_v35  ;;  %v8862_v34 = vadd.f32 %v3994_v46, %v3749_v53  ;;  %v4068_v23 = vadd.f32 %v4067_v21, %v8786_v52 }
0x2cc0   :  { %v3996_v26 = vpop.f32.mrf.mxu0  ;;  %v4069_v33 = vpop.f32.mrf.mxu1 }
0x2cc1   :  { %9559 = vst [vmem:[#allocation18_spill] sm:$0xff] %v8862_v34  ;;  %v8865_v14 = vadd.f32 %v3996_v26, %v3753_v54  ;;  %v4070_v17 = vadd.f32 %v4069_v33, %v8789_v60 }
0x2cc2   :  { %v4331_v1 = vpop.f32.mrf.mxu0  ;;  %v4372_v37 = vpop.f32.mrf.mxu1 }
0x2cc3   :  { %v4381_v55 = vadd.f32 %v4331_v1, %v8791_v51  ;;  %v4385_v28 = vadd.f32 %v4372_v37, %v4068_v23 }
0x2cc4   :  { %v4333_v35 = vpop.f32.mrf.mxu0  ;;  %v4374_v25 = vpop.f32.mrf.mxu1 }
0x2cc5   :  { %v4382_v62 = vadd.f32 %v4333_v35, %v3963_v30  ;;  %v4386_v34 = vadd.f32 %v4374_v25, %v4070_v17  ;;  %v6024_v51 = vmul.f32 -1.442695, %v4381_v55  ;;  %v6026_v4 = vmul.f32 -1.442695, %v4385_v28 }
0x2cc6   :  { %v4376_v53 = vpop.f32.mrf.mxu1  ;;  %v4335_v46 = vpop.f32.mrf.mxu0 }
0x2cc7   :  { %6811 = vtanh.f32 %v4382_v62 }
0x2cc8   :  { %v4377_v39 = vpop.f32.mrf.mxu1  ;;  %v4336_v31 = vpop.f32.mrf.mxu0  ;;  %6813 = vtanh.f32 %v4386_v34 }
0x2cc9   :  { %6815 = vpow2.f32 %v6024_v51  ;;  %v6027_v51 = vmul.f32 -1.442695, %v4386_v34 }
0x2cca   :  { %6817 = vpow2.f32 %v6026_v4 }
0x2cd4   :  { %v6812_v52 = vpop.eup %6811 }
0x2cd5   :  { %4402 = vrot.lane.b32.xlu1 %v6812_v52, %s7149_s24  ;;  %v6814_v21 = vpop.eup %6813 }
0x2cd6   :  { %4432 = vrot.lane.b32.xlu0 %v6814_v21, %s7149_s24  ;;  %v6816_v54 = vpop.eup %6815  ;;  %v6025_v21 = vmul.f32 -1.442695, %v4382_v62 }
0x2cd7   :  { %v6818_v60 = vpop.eup %6817  ;;  %v4393_v35 = vadd.f32 1.0, %v6816_v54 }
0x2cd8   :  { %v4423_v1 = vadd.f32 1.0, %v6818_v60 }
0x2cd9   :  { %6819 = vrcp.f32 %v4393_v35 }
0x2cda   :  { %6821 = vrcp.f32 %v4423_v1 }
0x2ce6   :  { %v6820_v39 = vpop.eup %6819 }
0x2ce7   :  { %v6822_v33 = vpop.eup %6821  ;;  %v4400_v55 = vmul.f32 0.0, %v6820_v39 }
0x2ce8   :  { %v4430_v37 = vmul.f32 0.0, %v6822_v33 }
0x2d47   :  { %v4403_v23 = vpop.permute.xlu1 %4402 }
0x2d48   :  { %v4405_v17 = vmul.f32 %v6820_v39, %v4403_v23  ;;  %v4433_v31 = vpop.permute.xlu0 %4432 }
0x2d49   :  { %v4435_v26 = vmul.f32 %v6822_v33, %v4433_v31 }
0x2d4a   :  { %4407 = vrot.lane.b32.xlu1 %v4405_v17, %s7149_s24 }
0x2d4b   :  { %4437 = vrot.lane.b32.xlu0 %v4435_v26, %s7149_s24 }
0x2dbc   :  { %v4408_v28 = vpop.permute.xlu1 %4407 }
0x2dbd   :  { %v8874_v30 = vadd.f32 %v4408_v28, %v4400_v55  ;;  %v4438_v25 = vpop.permute.xlu0 %4437 }
0x2dbe   :  { %v8876_v53 = vadd.f32 %v4438_v25, %v4430_v37 }
0x2dbf   :  { %6823 = vtanh.f32 %v8874_v30 }
0x2dc0   :  { %6825 = vtanh.f32 %v8876_v53 }
0x2dc1   :  { %6827 = vpow2.f32 %v6025_v21 }
0x2dc2   :  { %6829 = vpow2.f32 %v6027_v51 }
0x2dcc   :  { %v6824_v46 = vpop.eup %6823 }
0x2dcd   :  { %4413 = vrot.lane.b32.xlu1 %v6824_v46, %s7149_s24  ;;  %v6826_v52 = vpop.eup %6825 }
0x2dce   :  { %4443 = vrot.lane.b32.xlu0 %v6826_v52, %s7149_s24  ;;  %v6828_v4 = vpop.eup %6827 }
0x2dcf   :  { %v6830_v54 = vpop.eup %6829  ;;  %v4394_v60 = vadd.f32 1.0, %v6828_v4 }
0x2dd0   :  { %v4424_v35 = vadd.f32 1.0, %v6830_v54 }
0x2dd1   :  { %6831 = vrcp.f32 %v4394_v60 }
0x2dd2   :  { %6833 = vrcp.f32 %v4424_v35 }
0x2dde   :  { %v6832_v1 = vpop.eup %6831 }
0x2ddf   :  { %v6834_v17 = vpop.eup %6833 }
0x2e3f   :  { %v4414_v39 = vpop.permute.xlu1 %4413 }
0x2e40   :  { %v4416_v23 = vmul.f32 %v6832_v1, %v4414_v39  ;;  %v4444_v33 = vpop.permute.xlu0 %4443 }
0x2e41   :  { %v4446_v31 = vmul.f32 %v6834_v17, %v4444_v33 }
0x2e42   :  { %4447 = vst.msk [vmem:[#allocation2] sm:$0xff] %vm601_vm0, %v4416_v23 }
0x2e43   :  { %4448 = vst.msk [vmem:[#allocation2 + $0x78] sm:$0xff] %vm601_vm0, %v4446_v31  ;;  %4450 = vrot.lane.b32.xlu0 %v4446_v31, %s7149_s24 }
0x2eb5   :  { %v4451_v34 = vpop.permute.xlu0 %4450 }
0x2eb6   :  { %v4453_v62 = vsel %vm601_vm0, %v4416_v23, %v4451_v34 }
0x2eb7   :  { %v4454_v26 = vpack.c.bf16 %v4453_v62, %v4453_v62 }
0x2eb9   :  { %4488 = vmatmul.mubr.bf16.vlgmr.msra.gmra.mxu0 %v4454_v26  ;;  %4529 = vmatmul.mubr.bf16.vlgmr.msra.gmra.mxu1 %v4454_v26 }
0x2eba   :  { %4614 = vmatpush1.bf16.msra.mxu0 %v8640_v19  ;;  %4655 = vmatpush1.bf16.msra.mxu1 %v8638_v12 }
0x2ebb   :  { %4615 = vmatprep.subr.bf16.mxu0 %v8644_v59  ;;  %4656 = vmatprep.subr.bf16.mxu1 %v8642_v36 }
0x2ebc   :  { %4645 = vmatprep.mubr.bf16.mxu0 %v9477_v63  ;;  %4686 = vmatprep.mubr.bf16.mxu1 %v9477_v63 }
0x2ebe   :  { %4616 = vmatpush1.bf16.msra.mxu0 %v8651_v61  ;;  %4657 = vmatpush1.bf16.msra.mxu1 %v8649_v56 }
0x2ebf   :  { %4617 = vmatprep.subr.bf16.mxu0 %v8657_v9  ;;  %4658 = vmatprep.subr.bf16.mxu1 %v8655_v7 }
0x2ec2   :  { %4618 = vmatpush1.bf16.msra.mxu0 %v8667_v20  ;;  %4659 = vmatpush1.bf16.msra.mxu1 %v8665_v18 }
0x2ec3   :  { %4619 = vmatprep.subr.bf16.mxu0 %v8673_v6  ;;  %4660 = vmatprep.subr.bf16.mxu1 %v8671_v16 }
0x2ec6   :  { %4620 = vmatpush1.bf16.msra.mxu0 %v8679_v8  ;;  %4661 = vmatpush1.bf16.msra.mxu1 %v8677_v50 }
0x2ec7   :  { %4621 = vmatprep.subr.bf16.mxu0 %v8685_v11  ;;  %4662 = vmatprep.subr.bf16.mxu1 %v8683_v2 }
0x2eca   :  { %4622 = vmatpush1.bf16.msra.mxu0 %v8695_v45  ;;  %4663 = vmatpush1.bf16.msra.mxu1 %v8693_v44 }
0x2ecb   :  { %4623 = vmatprep.subr.bf16.mxu0 %v8701_v58  ;;  %4664 = vmatprep.subr.bf16.mxu1 %v8699_v24 }
0x2ece   :  { %4624 = vmatpush1.bf16.msra.mxu0 %v8707_v22  ;;  %4665 = vmatpush1.bf16.msra.mxu1 %v8705_v13 }
0x2ecf   :  { %4625 = vmatprep.subr.bf16.mxu0 %v8713_v49  ;;  %4666 = vmatprep.subr.bf16.mxu1 %v8711_v29 }
0x2ed2   :  { %4626 = vmatpush1.bf16.msra.mxu0 %v8723_v41  ;;  %4667 = vmatpush1.bf16.msra.mxu1 %v8721_v40 }
0x2ed3   :  { %4668 = vmatprep.subr.bf16.mxu1 %v8727_v0  ;;  %4627 = vmatprep.subr.bf16.mxu0 %v8729_v48 }
0x2ed6   :  { %4628 = vmatpush1.bf16.msra.mxu0 %v8735_v3  ;;  %4669 = vmatpush1.bf16.msra.mxu1 %v8733_v15 }
0x2ed7   :  { %4771 = vmatprep.subr.bf16.mxu0 %v8628_v5  ;;  %4812 = vmatprep.subr.bf16.mxu1 %v8626_v42 }
0x2f79   :  { %v4489_v55 = vpop.f32.mrf.mxu0  ;;  %v4530_v28 = vpop.f32.mrf.mxu1 }
0x2f7a   :  { %v4539_v37 = vadd.f32 %v4489_v55, %v8802_v10  ;;  %v4543_v25 = vadd.f32 %v4530_v28, %v8855_v32 }
0x2f7b   :  { %v4491_v46 = vpop.f32.mrf.mxu0  ;;  %v4532_v52 = vpop.f32.mrf.mxu1 }
0x2f7c   :  { %v4540_v21 = vadd.f32 %v4491_v46, %v8807_v43  ;;  %v4544_v54 = vadd.f32 %v4532_v52, %v8860_v38  ;;  %v6028_v10 = vmul.f32 -1.442695, %v4539_v37  ;;  %v6030_v32 = vmul.f32 -1.442695, %v4543_v25 }
0x2f7d   :  { %v4493_v51 = vpop.f32.mrf.mxu0  ;;  %v4534_v4 = vpop.f32.mrf.mxu1 }
0x2f7e   :  { %6835 = vtanh.f32 %v4540_v21 }
0x2f7f   :  { %v4494_v60 = vpop.f32.mrf.mxu0  ;;  %v4535_v35 = vpop.f32.mrf.mxu1  ;;  %6837 = vtanh.f32 %v4544_v54 }
0x2f80   :  { %6839 = vpow2.f32 %v6028_v10  ;;  %v6029_v35 = vmul.f32 -1.442695, %v4540_v21 }
0x2f81   :  { %6841 = vpow2.f32 %v6030_v32 }
0x2f8b   :  { %v6836_v1 = vpop.eup %6835 }
0x2f8c   :  { %4560 = vrot.lane.b32.xlu0 %v6836_v1, %s7149_s24  ;;  %v6838_v39 = vpop.eup %6837 }
0x2f8d   :  { %4590 = vrot.lane.b32.xlu1 %v6838_v39, %s7149_s24  ;;  %v6840_v23 = vpop.eup %6839 }
0x2f8e   :  { %v6842_v43 = vpop.eup %6841  ;;  %v4551_v17 = vadd.f32 1.0, %v6840_v23 }
0x2f8f   :  { %v4581_v33 = vadd.f32 1.0, %v6842_v43 }
0x2f90   :  { %6843 = vrcp.f32 %v4551_v17 }
0x2f91   :  { %6845 = vrcp.f32 %v4581_v33 }
0x2f9d   :  { %v6844_v38 = vpop.eup %6843 }
0x2f9e   :  { %v6846_v62 = vpop.eup %6845  ;;  %v4558_v28 = vmul.f32 %v6844_v38, %v8874_v30  ;;  %v6031_v30 = vmul.f32 -1.442695, %v4544_v54 }
0x2f9f   :  { %v4588_v25 = vmul.f32 %v6846_v62, %v8876_v53 }
0x2ffe   :  { %v4561_v31 = vpop.permute.xlu0 %4560 }
0x2fff   :  { %v4563_v34 = vmul.f32 %v6844_v38, %v4561_v31  ;;  %v4591_v26 = vpop.permute.xlu1 %4590 }
0x3000   :  { %v4593_v55 = vmul.f32 %v6846_v62, %v4591_v26 }
0x3001   :  { %4565 = vrot.lane.b32.xlu0 %v4563_v34, %s7149_s24 }
0x3002   :  { %4595 = vrot.lane.b32.xlu1 %v4593_v55, %s7149_s24 }
0x3073   :  { %v4566_v37 = vpop.permute.xlu0 %4565 }
0x3074   :  { %v8930_v46 = vadd.f32 %v4566_v37, %v4558_v28  ;;  %v4596_v52 = vpop.permute.xlu1 %4595 }
0x3075   :  { %v8932_v51 = vadd.f32 %v4596_v52, %v4588_v25 }
0x3076   :  { %6847 = vtanh.f32 %v8930_v46 }
0x3077   :  { %6849 = vtanh.f32 %v8932_v51 }
0x3078   :  { %6851 = vpow2.f32 %v6029_v35 }
0x3079   :  { %6853 = vpow2.f32 %v6031_v30 }
0x3083   :  { %v6848_v4 = vpop.eup %6847 }
0x3084   :  { %4571 = vrot.lane.b32.xlu0 %v6848_v4, %s7149_s24  ;;  %v6850_v60 = vpop.eup %6849 }
0x3085   :  { %4601 = vrot.lane.b32.xlu1 %v6850_v60, %s7149_s24  ;;  %v6852_v53 = vpop.eup %6851  ;;  %v9560_v60 = vld [vmem:[#allocation21_spill] sm:$0xff] }
0x3086   :  { %v6854_v1 = vpop.eup %6853  ;;  %v4552_v39 = vadd.f32 1.0, %v6852_v53 }
0x3087   :  { %v4582_v10 = vadd.f32 1.0, %v6854_v1 }
0x3088   :  { %6855 = vrcp.f32 %v4552_v39 }
0x3089   :  { %6857 = vrcp.f32 %v4582_v10 }
0x3095   :  { %v6856_v32 = vpop.eup %6855 }
0x3096   :  { %v6858_v17 = vpop.eup %6857 }
0x30f6   :  { %v4572_v23 = vpop.permute.xlu0 %4571 }
0x30f7   :  { %v4574_v43 = vmul.f32 %v6856_v32, %v4572_v23  ;;  %v4602_v33 = vpop.permute.xlu1 %4601 }
0x30f8   :  { %v4604_v38 = vmul.f32 %v6858_v17, %v4602_v33 }
0x30f9   :  { %4605 = vst.msk [vmem:[#allocation2 + $0x8] sm:$0xff] %vm601_vm0, %v4574_v43 }
0x30fa   :  { %4606 = vst.msk [vmem:[#allocation2 + $0x70] sm:$0xff] %vm601_vm0, %v4604_v38  ;;  %4608 = vrot.lane.b32.xlu1 %v4604_v38, %s7149_s24 }
0x316c   :  { %v4609_v21 = vpop.permute.xlu1 %4608 }
0x316d   :  { %v4611_v54 = vsel %vm601_vm0, %v4574_v43, %v4609_v21 }
0x316e   :  { %v4612_v31 = vpack.c.bf16 %v4611_v54, %v4611_v54 }
0x3170   :  { %4646 = vmatmul.mubr.bf16.vlgmr.msra.gmra.mxu0 %v4612_v31  ;;  %4687 = vmatmul.mubr.bf16.vlgmr.msra.gmra.mxu1 %v4612_v31 }
0x3171   :  { %4772 = vmatpush1.bf16.msra.mxu0 %v8640_v19  ;;  %4813 = vmatpush1.bf16.msra.mxu1 %v8638_v12 }
0x3172   :  { %4773 = vmatprep.subr.bf16.mxu0 %v8644_v59  ;;  %4814 = vmatprep.subr.bf16.mxu1 %v8642_v36 }
0x3173   :  { %4803 = vmatprep.mubr.bf16.mxu0 %v9477_v63  ;;  %4844 = vmatprep.mubr.bf16.mxu1 %v9477_v63 }
0x3175   :  { %4774 = vmatpush1.bf16.msra.mxu0 %v8651_v61  ;;  %4815 = vmatpush1.bf16.msra.mxu1 %v8649_v56 }
0x3176   :  { %4775 = vmatprep.subr.bf16.mxu0 %v8657_v9  ;;  %4816 = vmatprep.subr.bf16.mxu1 %v8655_v7 }
0x3179   :  { %4776 = vmatpush1.bf16.msra.mxu0 %v8667_v20  ;;  %4817 = vmatpush1.bf16.msra.mxu1 %v8665_v18 }
0x317a   :  { %4777 = vmatprep.subr.bf16.mxu0 %v8673_v6  ;;  %4818 = vmatprep.subr.bf16.mxu1 %v8671_v16 }
0x317d   :  { %4778 = vmatpush1.bf16.msra.mxu0 %v8679_v8  ;;  %4819 = vmatpush1.bf16.msra.mxu1 %v8677_v50 }
0x317e   :  { %4779 = vmatprep.subr.bf16.mxu0 %v8685_v11  ;;  %4820 = vmatprep.subr.bf16.mxu1 %v8683_v2 }
0x3181   :  { %4780 = vmatpush1.bf16.msra.mxu0 %v8695_v45  ;;  %4821 = vmatpush1.bf16.msra.mxu1 %v8693_v44 }
0x3182   :  { %4781 = vmatprep.subr.bf16.mxu0 %v8701_v58  ;;  %4822 = vmatprep.subr.bf16.mxu1 %v8699_v24 }
0x3185   :  { %4782 = vmatpush1.bf16.msra.mxu0 %v8707_v22  ;;  %4823 = vmatpush1.bf16.msra.mxu1 %v8705_v13 }
0x3186   :  { %4783 = vmatprep.subr.bf16.mxu0 %v8713_v49  ;;  %4824 = vmatprep.subr.bf16.mxu1 %v8711_v29 }
0x3189   :  { %4784 = vmatpush1.bf16.msra.mxu0 %v8723_v41  ;;  %4825 = vmatpush1.bf16.msra.mxu1 %v8721_v40 }
0x318a   :  { %4826 = vmatprep.subr.bf16.mxu1 %v8727_v0  ;;  %4785 = vmatprep.subr.bf16.mxu0 %v8729_v48 }
0x318d   :  { %4786 = vmatpush1.bf16.msra.mxu0 %v8735_v3  ;;  %4827 = vmatpush1.bf16.msra.mxu1 %v8733_v15 }
0x318e   :  { %4929 = vmatprep.subr.bf16.mxu0 %v8628_v5  ;;  %4970 = vmatprep.subr.bf16.mxu1 %v8626_v42 }
0x3230   :  { %v4647_v34 = vpop.f32.mrf.mxu0  ;;  %v4688_v62 = vpop.f32.mrf.mxu1 }
0x3231   :  { %v4697_v26 = vadd.f32 %v4647_v34, %v8812_v27  ;;  %v4701_v55 = vadd.f32 %v4688_v62, %v8845_v57 }
0x3232   :  { %v4649_v28 = vpop.f32.mrf.mxu0  ;;  %v4690_v37 = vpop.f32.mrf.mxu1 }
0x3233   :  { %v4698_v25 = vadd.f32 %v4649_v28, %v8817_v47  ;;  %v4702_v35 = vadd.f32 %v4690_v37, %v9560_v60  ;;  %v6032_v27 = vmul.f32 -1.442695, %v4697_v26  ;;  %v6034_v57 = vmul.f32 -1.442695, %v4701_v55 }
0x3234   :  { %v4651_v52 = vpop.f32.mrf.mxu0  ;;  %v4692_v4 = vpop.f32.mrf.mxu1 }
0x3235   :  { %6859 = vtanh.f32 %v4698_v25  ;;  %v6033_v37 = vmul.f32 -1.442695, %v4698_v25 }
0x3236   :  { %v4652_v30 = vpop.f32.mrf.mxu0  ;;  %v4693_v53 = vpop.f32.mrf.mxu1  ;;  %6861 = vtanh.f32 %v4702_v35 }
0x3237   :  { %6863 = vpow2.f32 %v6032_v27 }
0x3238   :  { %6865 = vpow2.f32 %v6034_v57 }
0x3242   :  { %v6860_v5 = vpop.eup %6859 }
0x3243   :  { %4718 = vrot.lane.b32.xlu1 %v6860_v5, %s7149_s24  ;;  %v6862_v42 = vpop.eup %6861 }
0x3244   :  { %4748 = vrot.lane.b32.xlu0 %v6862_v42, %s7149_s24  ;;  %v6864_v1 = vpop.eup %6863 }
0x3245   :  { %v6866_v47 = vpop.eup %6865  ;;  %v4709_v39 = vadd.f32 1.0, %v6864_v1 }
0x3246   :  { %v4739_v10 = vadd.f32 1.0, %v6866_v47 }
0x3247   :  { %6867 = vrcp.f32 %v4709_v39 }
0x3248   :  { %6869 = vrcp.f32 %v4739_v10 }
0x3254   :  { %v6868_v32 = vpop.eup %6867 }
0x3255   :  { %v6870_v17 = vpop.eup %6869  ;;  %v4716_v21 = vmul.f32 %v6868_v32, %v8930_v46  ;;  %v6035_v46 = vmul.f32 -1.442695, %v4702_v35 }
0x3256   :  { %v4746_v31 = vmul.f32 %v6870_v17, %v8932_v51 }
0x32b5   :  { %v4719_v23 = vpop.permute.xlu1 %4718 }
0x32b6   :  { %v4721_v43 = vmul.f32 %v6868_v32, %v4719_v23  ;;  %v4749_v33 = vpop.permute.xlu0 %4748 }
0x32b7   :  { %v4751_v38 = vmul.f32 %v6870_v17, %v4749_v33 }
0x32b8   :  { %4723 = vrot.lane.b32.xlu1 %v4721_v43, %s7149_s24 }
0x32b9   :  { %4753 = vrot.lane.b32.xlu0 %v4751_v38, %s7149_s24 }
0x332a   :  { %v4724_v54 = vpop.permute.xlu1 %4723 }
0x332b   :  { %v8986_v34 = vadd.f32 %v4724_v54, %v4716_v21  ;;  %v4754_v62 = vpop.permute.xlu0 %4753 }
0x332c   :  { %v8988_v26 = vadd.f32 %v4754_v62, %v4746_v31 }
0x332d   :  { %6871 = vtanh.f32 %v8986_v34 }
0x332e   :  { %6873 = vtanh.f32 %v8988_v26 }
0x332f   :  { %6875 = vpow2.f32 %v6033_v37 }
0x3330   :  { %6877 = vpow2.f32 %v6035_v46 }
0x333a   :  { %v6872_v55 = vpop.eup %6871 }
0x333b   :  { %4729 = vrot.lane.b32.xlu1 %v6872_v55, %s7149_s24  ;;  %v6874_v28 = vpop.eup %6873 }
0x333c   :  { %4759 = vrot.lane.b32.xlu0 %v6874_v28, %s7149_s24  ;;  %v6876_v51 = vpop.eup %6875 }
0x333d   :  { %v6878_v52 = vpop.eup %6877  ;;  %v4710_v4 = vadd.f32 1.0, %v6876_v51 }
0x333e   :  { %v4740_v60 = vadd.f32 1.0, %v6878_v52 }
0x333f   :  { %6879 = vrcp.f32 %v4710_v4 }
0x3340   :  { %6881 = vrcp.f32 %v4740_v60 }
0x334c   :  { %v6880_v30 = vpop.eup %6879 }
0x334d   :  { %v6882_v42 = vpop.eup %6881 }
0x33ad   :  { %v4730_v53 = vpop.permute.xlu1 %4729 }
0x33ae   :  { %v4732_v5 = vmul.f32 %v6880_v30, %v4730_v53  ;;  %v4760_v27 = vpop.permute.xlu0 %4759 }
0x33af   :  { %v4762_v57 = vmul.f32 %v6882_v42, %v4760_v27  ;;  %v9061_v42 = vld [vmem:[#allocation7 + $0x2e8] ss:$16 sps:$4 sm:$0xff]   ;;  %v9064_v27 = vld [vmem:[#allocation7 + $0x2c4] ss:$16 sps:$4 sm:$0xff]  }
0x33b0   :  { %4763 = vst.msk [vmem:[#allocation2 + $0x10] sm:$0xff] %vm601_vm0, %v4732_v5 }
0x33b1   :  { %4764 = vst.msk [vmem:[#allocation2 + $0x68] sm:$0xff] %vm601_vm0, %v4762_v57  ;;  %4766 = vrot.lane.b32.xlu0 %v4762_v57, %s7149_s24  ;;  %v9067_v57 = vld [vmem:[#allocation7 + $0x2cc] ss:$16 sps:$4 sm:$0xff]  }
0x3423   :  { %v4767_v25 = vpop.permute.xlu0 %4766 }
0x3424   :  { %v4769_v35 = vsel %vm601_vm0, %v4732_v5, %v4767_v25  ;;  %v9058_v5 = vld [vmem:[#allocation7 + $0x2e0] ss:$16 sps:$4 sm:$0xff]  }
0x3425   :  { %v4770_v1 = vpack.c.bf16 %v4769_v35, %v4769_v35  ;;  %v9072_v25 = vld [vmem:[#allocation7 + $0x2c0] ss:$16 sps:$4 sm:$0xff]   ;;  %v9075_v35 = vld [vmem:[#allocation7 + $0x2c8] ss:$16 sps:$4 sm:$0xff]  }
0x3427   :  { %4804 = vmatmul.mubr.bf16.vlgmr.msra.gmra.mxu0 %v4770_v1  ;;  %4845 = vmatmul.mubr.bf16.vlgmr.msra.gmra.mxu1 %v4770_v1  ;;  %v9078_v1 = vld [vmem:[#allocation7 + $0x2a4] ss:$16 sps:$4 sm:$0xff]  }
0x3428   :  { %4930 = vmatpush1.bf16.msra.mxu0 %v8640_v19  ;;  %4971 = vmatpush1.bf16.msra.mxu1 %v8638_v12  ;;  %v9030_v12 = vld [vmem:[#allocation7 + $0x2e4] ss:$16 sps:$4 sm:$0xff]   ;;  %v9033_v19 = vld [vmem:[#allocation7 + $0x2ec] ss:$16 sps:$4 sm:$0xff]  }
0x3429   :  { %4931 = vmatprep.subr.bf16.mxu0 %v8644_v59  ;;  %4972 = vmatprep.subr.bf16.mxu1 %v8642_v36 }
0x342a   :  { %4961 = vmatprep.mubr.bf16.mxu0 %v9477_v63  ;;  %5002 = vmatprep.mubr.bf16.mxu1 %v9477_v63 }
0x342c   :  { %4932 = vmatpush1.bf16.msra.mxu0 %v8651_v61  ;;  %4973 = vmatpush1.bf16.msra.mxu1 %v8649_v56  ;;  %v9561_v56 = vld [vmem:[#allocation14_spill] sm:$0xff] }
0x342d   :  { %4933 = vmatprep.subr.bf16.mxu0 %v8657_v9  ;;  %4974 = vmatprep.subr.bf16.mxu1 %v8655_v7  ;;  %v9562_v7 = vld [vmem:[#allocation30_spill] sm:$0xff] }
0x3430   :  { %4934 = vmatpush1.bf16.msra.mxu0 %v8667_v20  ;;  %4975 = vmatpush1.bf16.msra.mxu1 %v8665_v18 }
0x3431   :  { %4935 = vmatprep.subr.bf16.mxu0 %v8673_v6  ;;  %4976 = vmatprep.subr.bf16.mxu1 %v8671_v16  ;;  %v9563_v16 = vld [vmem:[#allocation24_spill] sm:$0xff] }
0x3434   :  { %4936 = vmatpush1.bf16.msra.mxu0 %v8679_v8  ;;  %4977 = vmatpush1.bf16.msra.mxu1 %v8677_v50 }
0x3435   :  { %4937 = vmatprep.subr.bf16.mxu0 %v8685_v11  ;;  %4978 = vmatprep.subr.bf16.mxu1 %v8683_v2  ;;  %v9564_v2 = vld [vmem:[#allocation32_spill] sm:$0xff] }
0x3438   :  { %4938 = vmatpush1.bf16.msra.mxu0 %v8695_v45  ;;  %4979 = vmatpush1.bf16.msra.mxu1 %v8693_v44 }
0x3439   :  { %4939 = vmatprep.subr.bf16.mxu0 %v8701_v58  ;;  %4980 = vmatprep.subr.bf16.mxu1 %v8699_v24 }
0x343c   :  { %4940 = vmatpush1.bf16.msra.mxu0 %v8707_v22  ;;  %4981 = vmatpush1.bf16.msra.mxu1 %v8705_v13 }
0x343d   :  { %4941 = vmatprep.subr.bf16.mxu0 %v8713_v49  ;;  %4982 = vmatprep.subr.bf16.mxu1 %v8711_v29 }
0x3440   :  { %4942 = vmatpush1.bf16.msra.mxu0 %v8723_v41  ;;  %4983 = vmatpush1.bf16.msra.mxu1 %v8721_v40 }
0x3441   :  { %4984 = vmatprep.subr.bf16.mxu1 %v8727_v0  ;;  %4943 = vmatprep.subr.bf16.mxu0 %v8729_v48 }
0x3444   :  { %4944 = vmatpush1.bf16.msra.mxu0 %v8735_v3  ;;  %4985 = vmatpush1.bf16.msra.mxu1 %v8733_v15 }
0x3445   :  { %5087 = vmatprep.subr.bf16.mxu0 %v9030_v12  ;;  %5128 = vmatprep.subr.bf16.mxu1 %v9033_v19 }
0x34e7   :  { %v4805_v36 = vpop.f32.mrf.mxu0  ;;  %v4846_v59 = vpop.f32.mrf.mxu1 }
0x34e8   :  { %v4855_v61 = vadd.f32 %v4805_v36, %v9561_v56  ;;  %v4859_v9 = vadd.f32 %v4846_v59, %v9562_v7  ;;  %v9081_v36 = vld [vmem:[#allocation7 + $0x2ac] ss:$16 sps:$4 sm:$0xff]   ;;  %v9084_v59 = vld [vmem:[#allocation7 + $0x2a0] ss:$16 sps:$4 sm:$0xff]   ;;  %v9087_v56 = vld [vmem:[#allocation7 + $0x2a8] ss:$16 sps:$4 sm:$0xff]  }
0x34e9   :  { %v4807_v18 = vpop.f32.mrf.mxu0  ;;  %v4848_v20 = vpop.f32.mrf.mxu1  ;;  %v9093_v7 = vld [vmem:[#allocation7 + $0x28c] ss:$16 sps:$4 sm:$0xff]  }
0x34ea   :  { %v4856_v6 = vadd.f32 %v4807_v18, %v9563_v16  ;;  %v4860_v11 = vadd.f32 %v4848_v20, %v9564_v2  ;;  %v6036_v13 = vmul.f32 -1.442695, %v4855_v61  ;;  %v6038_v22 = vmul.f32 -1.442695, %v4859_v9  ;;  %v9090_v61 = vld [vmem:[#allocation7 + $0x284] ss:$16 sps:$4 sm:$0xff]  }
0x34eb   :  { %v4809_v50 = vpop.f32.mrf.mxu0  ;;  %v4850_v8 = vpop.f32.mrf.mxu1  ;;  %v9096_v9 = vld [vmem:[#allocation7 + $0x280] ss:$16 sps:$4 sm:$0xff]   ;;  %v9099_v18 = vld [vmem:[#allocation7 + $0x288] ss:$16 sps:$4 sm:$0xff]   ;;  %v9102_v20 = vld [vmem:[#allocation7 + $0x264] ss:$16 sps:$4 sm:$0xff]  }
0x34ec   :  { %6883 = vtanh.f32 %v4856_v6  ;;  %v6037_v54 = vmul.f32 -1.442695, %v4856_v6  ;;  %v6039_v31 = vmul.f32 -1.442695, %v4860_v11  ;;  %v9105_v16 = vld [vmem:[#allocation7 + $0x26c] ss:$16 sps:$4 sm:$0xff]  }
0x34ed   :  { %v4810_v44 = vpop.f32.mrf.mxu0  ;;  %v4851_v45 = vpop.f32.mrf.mxu1  ;;  %6885 = vtanh.f32 %v4860_v11  ;;  %v9108_v6 = vld [vmem:[#allocation7 + $0x260] ss:$16 sps:$4 sm:$0xff]   ;;  %v9111_v50 = vld [vmem:[#allocation7 + $0x268] ss:$16 sps:$4 sm:$0xff]   ;;  %v9114_v8 = vld [vmem:[#allocation7 + $0x244] ss:$16 sps:$4 sm:$0xff]  }
0x34ee   :  { %6887 = vpow2.f32 %v6036_v13  ;;  %v9117_v2 = vld [vmem:[#allocation7 + $0x24c] ss:$16 sps:$4 sm:$0xff]   ;;  %v9120_v11 = vld [vmem:[#allocation7 + $0x240] ss:$16 sps:$4 sm:$0xff]   ;;  %v9123_v44 = vld [vmem:[#allocation7 + $0x248] ss:$16 sps:$4 sm:$0xff]  }
0x34ef   :  { %6889 = vpow2.f32 %v6038_v22  ;;  %v9126_v45 = vld [vmem:[#allocation7 + $0x224] ss:$16 sps:$4 sm:$0xff]   ;;  %v9135_v13 = vld [vmem:[#allocation7 + $0x228] ss:$16 sps:$4 sm:$0xff]   ;;  %v9138_v22 = vld [vmem:[#allocation7 + $0x20c] ss:$16 sps:$4 sm:$0xff]  }
0x34f9   :  { %v6884_v24 = vpop.eup %6883 }
0x34fa   :  { %4876 = vrot.lane.b32.xlu0 %v6884_v24, %s7149_s24  ;;  %v6886_v58 = vpop.eup %6885  ;;  %v9129_v24 = vld [vmem:[#allocation7 + $0x22c] ss:$16 sps:$4 sm:$0xff]  }
0x34fb   :  { %4906 = vrot.lane.b32.xlu1 %v6886_v58, %s7149_s24  ;;  %v6888_v29 = vpop.eup %6887  ;;  %v9132_v58 = vld [vmem:[#allocation7 + $0x220] ss:$16 sps:$4 sm:$0xff]  }
0x34fc   :  { %v6890_v49 = vpop.eup %6889  ;;  %v4867_v40 = vadd.f32 1.0, %v6888_v29  ;;  %v9141_v29 = vld [vmem:[#allocation7 + $0x204] ss:$16 sps:$4 sm:$0xff]  }
0x34fd   :  { %v4897_v41 = vadd.f32 1.0, %v6890_v49  ;;  %v9144_v49 = vld [vmem:[#allocation7 + $0x200] ss:$16 sps:$4 sm:$0xff]  }
0x34fe   :  { %6891 = vrcp.f32 %v4867_v40  ;;  %v9147_v40 = vld [vmem:[#allocation7 + $0x208] ss:$16 sps:$4 sm:$0xff]  }
0x34ff   :  { %6893 = vrcp.f32 %v4897_v41 }
0x350b   :  { %v6892_v0 = vpop.eup %6891 }
0x350c   :  { %v6894_v3 = vpop.eup %6893  ;;  %v4874_v10 = vmul.f32 %v6892_v0, %v8986_v34 }
0x350d   :  { %v4904_v23 = vmul.f32 %v6894_v3, %v8988_v26 }
0x356c   :  { %v4877_v48 = vpop.permute.xlu0 %4876 }
0x356d   :  { %v4879_v15 = vmul.f32 %v6892_v0, %v4877_v48  ;;  %v4907_v47 = vpop.permute.xlu1 %4906  ;;  %v9565_v48 = vld [vmem:[#allocation20_spill] sm:$0xff] }
0x356e   :  { %v4909_v39 = vmul.f32 %v6894_v3, %v4907_v47  ;;  %v9566_v3 = vld [vmem:[#allocation27_spill] sm:$0xff] }
0x356f   :  { %4881 = vrot.lane.b32.xlu0 %v4879_v15, %s7149_s24 }
0x3570   :  { %4911 = vrot.lane.b32.xlu1 %v4909_v39, %s7149_s24 }
0x35e1   :  { %v4882_v32 = vpop.permute.xlu0 %4881 }
0x35e2   :  { %v9046_v43 = vadd.f32 %v4882_v32, %v4874_v10  ;;  %v4912_v17 = vpop.permute.xlu1 %4911  ;;  %v9567_v32 = vld [vmem:[#allocation19_spill] sm:$0xff] }
0x35e3   :  { %v9048_v33 = vadd.f32 %v4912_v17, %v4904_v23 }
0x35e4   :  { %6895 = vtanh.f32 %v9046_v43 }
0x35e5   :  { %6897 = vtanh.f32 %v9048_v33 }
0x35e6   :  { %6899 = vpow2.f32 %v6037_v54 }
0x35e7   :  { %6901 = vpow2.f32 %v6039_v31 }
0x35f1   :  { %v6896_v38 = vpop.eup %6895 }
0x35f2   :  { %4887 = vrot.lane.b32.xlu0 %v6896_v38, %s7149_s24  ;;  %v6898_v21 = vpop.eup %6897 }
0x35f3   :  { %4917 = vrot.lane.b32.xlu1 %v6898_v21, %s7149_s24  ;;  %v6900_v34 = vpop.eup %6899  ;;  %v9568_v21 = vld [vmem:[#allocation29_spill] sm:$0xff] }
0x35f4   :  { %v6902_v62 = vpop.eup %6901  ;;  %v4868_v26 = vadd.f32 1.0, %v6900_v34 }
0x35f5   :  { %v4898_v55 = vadd.f32 1.0, %v6902_v62 }
0x35f6   :  { %6903 = vrcp.f32 %v4868_v26 }
0x35f7   :  { %6905 = vrcp.f32 %v4898_v55 }
0x3603   :  { %v6904_v28 = vpop.eup %6903 }
0x3604   :  { %v6906_v51 = vpop.eup %6905 }
0x3664   :  { %v4888_v37 = vpop.permute.xlu0 %4887 }
0x3665   :  { %v4890_v46 = vmul.f32 %v6904_v28, %v4888_v37  ;;  %v4918_v52 = vpop.permute.xlu1 %4917 }
0x3666   :  { %v4920_v4 = vmul.f32 %v6906_v51, %v4918_v52 }
0x3667   :  { %4921 = vst.msk [vmem:[#allocation2 + $0x18] sm:$0xff] %vm601_vm0, %v4890_v46 }
0x3668   :  { %4922 = vst.msk [vmem:[#allocation2 + $0x60] sm:$0xff] %vm601_vm0, %v4920_v4  ;;  %4924 = vrot.lane.b32.xlu1 %v4920_v4, %s7149_s24 }
0x36da   :  { %v4925_v60 = vpop.permute.xlu1 %4924 }
0x36db   :  { %v4927_v30 = vsel %vm601_vm0, %v4890_v46, %v4925_v60 }
0x36dc   :  { %v4928_v53 = vpack.c.bf16 %v4927_v30, %v4927_v30 }
0x36de   :  { %4962 = vmatmul.mubr.bf16.vlgmr.msra.gmra.mxu0 %v4928_v53  ;;  %5003 = vmatmul.mubr.bf16.vlgmr.msra.gmra.mxu1 %v4928_v53 }
0x36df   :  { %5088 = vmatpush1.bf16.msra.mxu0 %v9058_v5  ;;  %5129 = vmatpush1.bf16.msra.mxu1 %v9061_v42 }
0x36e0   :  { %5089 = vmatprep.subr.bf16.mxu0 %v9064_v27  ;;  %5130 = vmatprep.subr.bf16.mxu1 %v9067_v57 }
0x36e1   :  { %5119 = vmatprep.mubr.bf16.mxu0 %v9477_v63  ;;  %5160 = vmatprep.mubr.bf16.mxu1 %v9477_v63 }
0x36e3   :  { %5090 = vmatpush1.bf16.msra.mxu0 %v9072_v25  ;;  %5131 = vmatpush1.bf16.msra.mxu1 %v9075_v35 }
0x36e4   :  { %5091 = vmatprep.subr.bf16.mxu0 %v9078_v1  ;;  %5132 = vmatprep.subr.bf16.mxu1 %v9081_v36 }
0x36e7   :  { %5092 = vmatpush1.bf16.msra.mxu0 %v9084_v59  ;;  %5133 = vmatpush1.bf16.msra.mxu1 %v9087_v56 }
0x36e8   :  { %5093 = vmatprep.subr.bf16.mxu0 %v9090_v61  ;;  %5134 = vmatprep.subr.bf16.mxu1 %v9093_v7 }
0x36eb   :  { %5094 = vmatpush1.bf16.msra.mxu0 %v9096_v9  ;;  %5135 = vmatpush1.bf16.msra.mxu1 %v9099_v18 }
0x36ec   :  { %5095 = vmatprep.subr.bf16.mxu0 %v9102_v20  ;;  %5136 = vmatprep.subr.bf16.mxu1 %v9105_v16 }
0x36ef   :  { %5096 = vmatpush1.bf16.msra.mxu0 %v9108_v6  ;;  %5137 = vmatpush1.bf16.msra.mxu1 %v9111_v50 }
0x36f0   :  { %5097 = vmatprep.subr.bf16.mxu0 %v9114_v8  ;;  %5138 = vmatprep.subr.bf16.mxu1 %v9117_v2 }
0x36f3   :  { %5098 = vmatpush1.bf16.msra.mxu0 %v9120_v11  ;;  %5139 = vmatpush1.bf16.msra.mxu1 %v9123_v44 }
0x36f4   :  { %5099 = vmatprep.subr.bf16.mxu0 %v9126_v45  ;;  %5140 = vmatprep.subr.bf16.mxu1 %v9129_v24 }
0x36f7   :  { %5100 = vmatpush1.bf16.msra.mxu0 %v9132_v58  ;;  %5141 = vmatpush1.bf16.msra.mxu1 %v9135_v13 }
0x36f8   :  { %5142 = vmatprep.subr.bf16.mxu1 %v9138_v22  ;;  %5101 = vmatprep.subr.bf16.mxu0 %v9141_v29 }
0x36fb   :  { %5102 = vmatpush1.bf16.msra.mxu0 %v9144_v49  ;;  %5143 = vmatpush1.bf16.msra.mxu1 %v9147_v40 }
0x36fc   :  { %5245 = vmatprep.subr.bf16.mxu0 %v9030_v12  ;;  %5286 = vmatprep.subr.bf16.mxu1 %v9033_v19 }
0x379e   :  { %v4963_v41 = vpop.f32.mrf.mxu0  ;;  %v5004_v0 = vpop.f32.mrf.mxu1 }
0x379f   :  { %v5013_v15 = vadd.f32 %v4963_v41, %v9565_v48  ;;  %v5017_v47 = vadd.f32 %v5004_v0, %v9566_v3 }
0x37a0   :  { %v4965_v39 = vpop.f32.mrf.mxu0  ;;  %v5006_v10 = vpop.f32.mrf.mxu1 }
0x37a1   :  { %v5014_v23 = vadd.f32 %v4965_v39, %v9567_v32  ;;  %v5018_v54 = vadd.f32 %v5006_v10, %v9568_v21  ;;  %v6040_v55 = vmul.f32 -1.442695, %v5013_v15  ;;  %v6042_v28 = vmul.f32 -1.442695, %v5017_v47 }
0x37a2   :  { %v4967_v17 = vpop.f32.mrf.mxu0  ;;  %v5008_v38 = vpop.f32.mrf.mxu1 }
0x37a3   :  { %6907 = vtanh.f32 %v5014_v23  ;;  %v6041_v38 = vmul.f32 -1.442695, %v5014_v23 }
0x37a4   :  { %v4968_v31 = vpop.f32.mrf.mxu0  ;;  %v5009_v34 = vpop.f32.mrf.mxu1  ;;  %6909 = vtanh.f32 %v5018_v54 }
0x37a5   :  { %6911 = vpow2.f32 %v6040_v55 }
0x37a6   :  { %6913 = vpow2.f32 %v6042_v28 }
0x37b0   :  { %v6908_v62 = vpop.eup %6907 }
0x37b1   :  { %5034 = vrot.lane.b32.xlu1 %v6908_v62, %s7149_s24  ;;  %v6910_v26 = vpop.eup %6909 }
0x37b2   :  { %5064 = vrot.lane.b32.xlu0 %v6910_v26, %s7149_s24  ;;  %v6912_v37 = vpop.eup %6911 }
0x37b3   :  { %v6914_v46 = vpop.eup %6913  ;;  %v5025_v51 = vadd.f32 1.0, %v6912_v37 }
0x37b4   :  { %v5055_v52 = vadd.f32 1.0, %v6914_v46 }
0x37b5   :  { %6915 = vrcp.f32 %v5025_v51 }
0x37b6   :  { %6917 = vrcp.f32 %v5055_v52 }
0x37c2   :  { %v6916_v4 = vpop.eup %6915 }
0x37c3   :  { %v6918_v53 = vpop.eup %6917  ;;  %v5032_v48 = vmul.f32 %v6916_v4, %v9046_v43  ;;  %v6043_v43 = vmul.f32 -1.442695, %v5018_v54 }
0x37c4   :  { %v5062_v3 = vmul.f32 %v6918_v53, %v9048_v33 }
0x3823   :  { %v5035_v60 = vpop.permute.xlu1 %5034 }
0x3824   :  { %v5037_v30 = vmul.f32 %v6916_v4, %v5035_v60  ;;  %v5065_v41 = vpop.permute.xlu0 %5064  ;;  %v9569_v60 = vld [vmem:[#allocation22_spill] sm:$0xff] }
0x3825   :  { %v5067_v0 = vmul.f32 %v6918_v53, %v5065_v41  ;;  %v9570_v53 = vld [vmem:[#allocation28_spill] sm:$0xff] }
0x3826   :  { %5039 = vrot.lane.b32.xlu1 %v5037_v30, %s7149_s24 }
0x3827   :  { %5069 = vrot.lane.b32.xlu0 %v5067_v0, %s7149_s24 }
0x3898   :  { %v5040_v15 = vpop.permute.xlu1 %5039 }
0x3899   :  { %v9162_v47 = vadd.f32 %v5040_v15, %v5032_v48  ;;  %v5070_v39 = vpop.permute.xlu0 %5069  ;;  %v9571_v15 = vld [vmem:[#allocation33_spill] sm:$0xff] }
0x389a   :  { %v9164_v10 = vadd.f32 %v5070_v39, %v5062_v3 }
0x389b   :  { %6919 = vtanh.f32 %v9162_v47 }
0x389c   :  { %6921 = vtanh.f32 %v9164_v10 }
0x389d   :  { %6923 = vpow2.f32 %v6041_v38 }
0x389e   :  { %6925 = vpow2.f32 %v6043_v43 }
0x38a8   :  { %v6920_v32 = vpop.eup %6919 }
0x38a9   :  { %5045 = vrot.lane.b32.xlu1 %v6920_v32, %s7149_s24  ;;  %v6922_v17 = vpop.eup %6921 }
0x38aa   :  { %5075 = vrot.lane.b32.xlu0 %v6922_v17, %s7149_s24  ;;  %v6924_v33 = vpop.eup %6923  ;;  %v9572_v17 = vld [vmem:[#allocation25_spill] sm:$0xff] }
0x38ab   :  { %v6926_v21 = vpop.eup %6925  ;;  %v5026_v31 = vadd.f32 1.0, %v6924_v33 }
0x38ac   :  { %v5056_v34 = vadd.f32 1.0, %v6926_v21 }
0x38ad   :  { %6927 = vrcp.f32 %v5026_v31 }
0x38ae   :  { %6929 = vrcp.f32 %v5056_v34 }
0x38ba   :  { %v6928_v62 = vpop.eup %6927 }
0x38bb   :  { %v6930_v28 = vpop.eup %6929 }
0x391b   :  { %v5046_v26 = vpop.permute.xlu1 %5045 }
0x391c   :  { %v5048_v55 = vmul.f32 %v6928_v62, %v5046_v26  ;;  %v5076_v37 = vpop.permute.xlu0 %5075 }
0x391d   :  { %v5078_v46 = vmul.f32 %v6930_v28, %v5076_v37 }
0x391e   :  { %5079 = vst.msk [vmem:[#allocation2 + $0x20] sm:$0xff] %vm601_vm0, %v5048_v55 }
0x391f   :  { %5080 = vst.msk [vmem:[#allocation2 + $0x58] sm:$0xff] %vm601_vm0, %v5078_v46  ;;  %5082 = vrot.lane.b32.xlu0 %v5078_v46, %s7149_s24 }
0x3991   :  { %v5083_v23 = vpop.permute.xlu0 %5082 }
0x3992   :  { %v5085_v54 = vsel %vm601_vm0, %v5048_v55, %v5083_v23 }
0x3993   :  { %v5086_v51 = vpack.c.bf16 %v5085_v54, %v5085_v54 }
0x3995   :  { %5120 = vmatmul.mubr.bf16.vlgmr.msra.gmra.mxu0 %v5086_v51  ;;  %5161 = vmatmul.mubr.bf16.vlgmr.msra.gmra.mxu1 %v5086_v51 }
0x3996   :  { %5246 = vmatpush1.bf16.msra.mxu0 %v9058_v5  ;;  %5287 = vmatpush1.bf16.msra.mxu1 %v9061_v42 }
0x3997   :  { %5247 = vmatprep.subr.bf16.mxu0 %v9064_v27  ;;  %5288 = vmatprep.subr.bf16.mxu1 %v9067_v57 }
0x3998   :  { %5277 = vmatprep.mubr.bf16.mxu0 %v9477_v63  ;;  %5318 = vmatprep.mubr.bf16.mxu1 %v9477_v63 }
0x399a   :  { %5248 = vmatpush1.bf16.msra.mxu0 %v9072_v25  ;;  %5289 = vmatpush1.bf16.msra.mxu1 %v9075_v35 }
0x399b   :  { %5249 = vmatprep.subr.bf16.mxu0 %v9078_v1  ;;  %5290 = vmatprep.subr.bf16.mxu1 %v9081_v36 }
0x399e   :  { %5250 = vmatpush1.bf16.msra.mxu0 %v9084_v59  ;;  %5291 = vmatpush1.bf16.msra.mxu1 %v9087_v56 }
0x399f   :  { %5251 = vmatprep.subr.bf16.mxu0 %v9090_v61  ;;  %5292 = vmatprep.subr.bf16.mxu1 %v9093_v7 }
0x39a2   :  { %5252 = vmatpush1.bf16.msra.mxu0 %v9096_v9  ;;  %5293 = vmatpush1.bf16.msra.mxu1 %v9099_v18 }
0x39a3   :  { %5253 = vmatprep.subr.bf16.mxu0 %v9102_v20  ;;  %5294 = vmatprep.subr.bf16.mxu1 %v9105_v16 }
0x39a6   :  { %5254 = vmatpush1.bf16.msra.mxu0 %v9108_v6  ;;  %5295 = vmatpush1.bf16.msra.mxu1 %v9111_v50 }
0x39a7   :  { %5255 = vmatprep.subr.bf16.mxu0 %v9114_v8  ;;  %5296 = vmatprep.subr.bf16.mxu1 %v9117_v2 }
0x39aa   :  { %5256 = vmatpush1.bf16.msra.mxu0 %v9120_v11  ;;  %5297 = vmatpush1.bf16.msra.mxu1 %v9123_v44 }
0x39ab   :  { %5257 = vmatprep.subr.bf16.mxu0 %v9126_v45  ;;  %5298 = vmatprep.subr.bf16.mxu1 %v9129_v24 }
0x39ae   :  { %5258 = vmatpush1.bf16.msra.mxu0 %v9132_v58  ;;  %5299 = vmatpush1.bf16.msra.mxu1 %v9135_v13 }
0x39af   :  { %5300 = vmatprep.subr.bf16.mxu1 %v9138_v22  ;;  %5259 = vmatprep.subr.bf16.mxu0 %v9141_v29 }
0x39b2   :  { %5260 = vmatpush1.bf16.msra.mxu0 %v9144_v49  ;;  %5301 = vmatpush1.bf16.msra.mxu1 %v9147_v40 }
0x39b3   :  { %5403 = vmatprep.subr.bf16.mxu0 %v9030_v12  ;;  %5444 = vmatprep.subr.bf16.mxu1 %v9033_v19 }
0x3a55   :  { %v5121_v52 = vpop.f32.mrf.mxu0  ;;  %v5162_v4 = vpop.f32.mrf.mxu1 }
0x3a56   :  { %v5171_v30 = vadd.f32 %v5121_v52, %v9569_v60  ;;  %v5175_v41 = vadd.f32 %v5162_v4, %v9570_v53 }
0x3a57   :  { %v5123_v0 = vpop.f32.mrf.mxu0  ;;  %v5164_v48 = vpop.f32.mrf.mxu1 }
0x3a58   :  { %v5172_v3 = vadd.f32 %v5123_v0, %v9571_v15  ;;  %v5176_v38 = vadd.f32 %v5164_v48, %v9572_v17  ;;  %v6044_v21 = vmul.f32 -1.442695, %v5171_v30  ;;  %v6046_v31 = vmul.f32 -1.442695, %v5175_v41 }
0x3a59   :  { %v5125_v39 = vpop.f32.mrf.mxu0  ;;  %v5166_v32 = vpop.f32.mrf.mxu1 }
0x3a5a   :  { %6931 = vtanh.f32 %v5172_v3  ;;  %v6045_v15 = vmul.f32 -1.442695, %v5172_v3 }
0x3a5b   :  { %v5126_v43 = vpop.f32.mrf.mxu0  ;;  %v5167_v33 = vpop.f32.mrf.mxu1  ;;  %6933 = vtanh.f32 %v5176_v38 }
0x3a5c   :  { %6935 = vpow2.f32 %v6044_v21 }
0x3a5d   :  { %6937 = vpow2.f32 %v6046_v31 }
0x3a67   :  { %v6932_v12 = vpop.eup %6931 }
0x3a68   :  { %5192 = vrot.lane.b32.xlu0 %v6932_v12, %s7149_s24  ;;  %v6934_v19 = vpop.eup %6933 }
0x3a69   :  { %5222 = vrot.lane.b32.xlu1 %v6934_v19, %s7149_s24  ;;  %v6936_v34 = vpop.eup %6935 }
0x3a6a   :  { %v6938_v62 = vpop.eup %6937  ;;  %v5183_v26 = vadd.f32 1.0, %v6936_v34 }
0x3a6b   :  { %v5213_v55 = vadd.f32 1.0, %v6938_v62 }
0x3a6c   :  { %6939 = vrcp.f32 %v5183_v26 }
0x3a6d   :  { %6941 = vrcp.f32 %v5213_v55 }
0x3a79   :  { %v6940_v28 = vpop.eup %6939 }
0x3a7a   :  { %v6942_v23 = vpop.eup %6941  ;;  %v5190_v52 = vmul.f32 %v6940_v28, %v9162_v47  ;;  %v6047_v47 = vmul.f32 -1.442695, %v5176_v38 }
0x3a7b   :  { %v5220_v60 = vmul.f32 %v6942_v23, %v9164_v10 }
0x3ada   :  { %v5193_v37 = vpop.permute.xlu0 %5192 }
0x3adb   :  { %v5195_v46 = vmul.f32 %v6940_v28, %v5193_v37  ;;  %v5223_v54 = vpop.permute.xlu1 %5222 }
0x3adc   :  { %v5225_v51 = vmul.f32 %v6942_v23, %v5223_v54 }
0x3add   :  { %5197 = vrot.lane.b32.xlu0 %v5195_v46, %s7149_s24 }
0x3ade   :  { %5227 = vrot.lane.b32.xlu1 %v5225_v51, %s7149_s24 }
0x3b4f   :  { %v5198_v4 = vpop.permute.xlu0 %5197 }
0x3b50   :  { %v9218_v30 = vadd.f32 %v5198_v4, %v5190_v52  ;;  %v5228_v53 = vpop.permute.xlu1 %5227 }
0x3b51   :  { %v9220_v41 = vadd.f32 %v5228_v53, %v5220_v60 }
0x3b52   :  { %6943 = vtanh.f32 %v9218_v30 }
0x3b53   :  { %6945 = vtanh.f32 %v9220_v41 }
0x3b54   :  { %6947 = vpow2.f32 %v6045_v15 }
0x3b55   :  { %6949 = vpow2.f32 %v6047_v47 }
0x3b5f   :  { %v6944_v0 = vpop.eup %6943 }
0x3b60   :  { %5203 = vrot.lane.b32.xlu0 %v6944_v0, %s7149_s24  ;;  %v6946_v48 = vpop.eup %6945 }
0x3b61   :  { %5233 = vrot.lane.b32.xlu1 %v6946_v48, %s7149_s24  ;;  %v6948_v10 = vpop.eup %6947 }
0x3b62   :  { %v6950_v39 = vpop.eup %6949  ;;  %v5184_v32 = vadd.f32 1.0, %v6948_v10 }
0x3b63   :  { %v5214_v17 = vadd.f32 1.0, %v6950_v39 }
0x3b64   :  { %6951 = vrcp.f32 %v5184_v32 }
0x3b65   :  { %6953 = vrcp.f32 %v5214_v17 }
0x3b71   :  { %v6952_v43 = vpop.eup %6951 }
0x3b72   :  { %v6954_v19 = vpop.eup %6953 }
0x3bd2   :  { %v5204_v33 = vpop.permute.xlu0 %5203 }
0x3bd3   :  { %v5206_v12 = vmul.f32 %v6952_v43, %v5204_v33  ;;  %v5234_v21 = vpop.permute.xlu1 %5233  ;;  %v9577_v33 = vld [vmem:[#allocation18_spill] sm:$0xff] }
0x3bd4   :  { %v5236_v31 = vmul.f32 %v6954_v19, %v5234_v21  ;;  %v9578_v19 = vld [vmem:[#allocation31_spill] sm:$0xff] }
0x3bd5   :  { %5237 = vst.msk [vmem:[#allocation2 + $0x28] sm:$0xff] %vm601_vm0, %v5206_v12 }
0x3bd6   :  { %5238 = vst.msk [vmem:[#allocation2 + $0x50] sm:$0xff] %vm601_vm0, %v5236_v31  ;;  %5240 = vrot.lane.b32.xlu1 %v5236_v31, %s7149_s24 }
0x3c48   :  { %v5241_v3 = vpop.permute.xlu1 %5240 }
0x3c49   :  { %v5243_v38 = vsel %vm601_vm0, %v5206_v12, %v5241_v3 }
0x3c4a   :  { %v5244_v34 = vpack.c.bf16 %v5243_v38, %v5243_v38 }
0x3c4c   :  { %5278 = vmatmul.mubr.bf16.vlgmr.msra.gmra.mxu0 %v5244_v34  ;;  %5319 = vmatmul.mubr.bf16.vlgmr.msra.gmra.mxu1 %v5244_v34 }
0x3c4d   :  { %5404 = vmatpush1.bf16.msra.mxu0 %v9058_v5  ;;  %5445 = vmatpush1.bf16.msra.mxu1 %v9061_v42  ;;  %v9573_v42 = vld [vmem:[#allocation34_spill] sm:$0xff] }
0x3c4e   :  { %5405 = vmatprep.subr.bf16.mxu0 %v9064_v27  ;;  %5446 = vmatprep.subr.bf16.mxu1 %v9067_v57  ;;  %v9574_v57 = vld [vmem:[#allocation26_spill] sm:$0xff] }
0x3c4f   :  { %5435 = vmatprep.mubr.bf16.mxu0 %v9477_v63  ;;  %5476 = vmatprep.mubr.bf16.mxu1 %v9477_v63 }
0x3c51   :  { %5406 = vmatpush1.bf16.msra.mxu0 %v9072_v25  ;;  %5447 = vmatpush1.bf16.msra.mxu1 %v9075_v35 }
0x3c52   :  { %5407 = vmatprep.subr.bf16.mxu0 %v9078_v1  ;;  %5448 = vmatprep.subr.bf16.mxu1 %v9081_v36  ;;  %v9575_v36 = vld [vmem:[#allocation12_spill] sm:$0xff] }
0x3c55   :  { %5408 = vmatpush1.bf16.msra.mxu0 %v9084_v59  ;;  %5449 = vmatpush1.bf16.msra.mxu1 %v9087_v56 }
0x3c56   :  { %5409 = vmatprep.subr.bf16.mxu0 %v9090_v61  ;;  %5450 = vmatprep.subr.bf16.mxu1 %v9093_v7  ;;  %v9576_v7 = vld [vmem:[#allocation23_spill] sm:$0xff] }
0x3c59   :  { %5410 = vmatpush1.bf16.msra.mxu0 %v9096_v9  ;;  %5451 = vmatpush1.bf16.msra.mxu1 %v9099_v18 }
0x3c5a   :  { %5411 = vmatprep.subr.bf16.mxu0 %v9102_v20  ;;  %5452 = vmatprep.subr.bf16.mxu1 %v9105_v16 }
0x3c5d   :  { %5412 = vmatpush1.bf16.msra.mxu0 %v9108_v6  ;;  %5453 = vmatpush1.bf16.msra.mxu1 %v9111_v50 }
0x3c5e   :  { %5413 = vmatprep.subr.bf16.mxu0 %v9114_v8  ;;  %5454 = vmatprep.subr.bf16.mxu1 %v9117_v2 }
0x3c61   :  { %5414 = vmatpush1.bf16.msra.mxu0 %v9120_v11  ;;  %5455 = vmatpush1.bf16.msra.mxu1 %v9123_v44 }
0x3c62   :  { %5415 = vmatprep.subr.bf16.mxu0 %v9126_v45  ;;  %5456 = vmatprep.subr.bf16.mxu1 %v9129_v24 }
0x3c65   :  { %5416 = vmatpush1.bf16.msra.mxu0 %v9132_v58  ;;  %5457 = vmatpush1.bf16.msra.mxu1 %v9135_v13 }
0x3c66   :  { %5458 = vmatprep.subr.bf16.mxu1 %v9138_v22  ;;  %5417 = vmatprep.subr.bf16.mxu0 %v9141_v29 }
0x3c69   :  { %5418 = vmatpush1.bf16.msra.mxu0 %v9144_v49  ;;  %5459 = vmatpush1.bf16.msra.mxu1 %v9147_v40 }
0x3d0c   :  { %v5279_v63 = vpop.f32.mrf.mxu0  ;;  %v5320_v5 = vpop.f32.mrf.mxu1 }
0x3d0d   :  { %v5329_v27 = vadd.f32 %v5279_v63, %v9573_v42  ;;  %v5333_v25 = vadd.f32 %v5320_v5, %v9574_v57  ;;  %v9579_v63 = vld [vmem:[#allocation16_spill] sm:$0xff] }
0x3d0e   :  { %v5281_v35 = vpop.f32.mrf.mxu0  ;;  %v5322_v1 = vpop.f32.mrf.mxu1 }
0x3d0f   :  { %v5330_v59 = vadd.f32 %v5281_v35, %v9575_v36  ;;  %v5334_v9 = vadd.f32 %v5322_v1, %v9576_v7  ;;  %v6048_v50 = vmul.f32 -1.442695, %v5329_v27  ;;  %v6050_v8 = vmul.f32 -1.442695, %v5333_v25 }
0x3d10   :  { %v5283_v56 = vpop.f32.mrf.mxu0  ;;  %v5324_v61 = vpop.f32.mrf.mxu1 }
0x3d11   :  { %6955 = vtanh.f32 %v5330_v59  ;;  %v6049_v54 = vmul.f32 -1.442695, %v5330_v59  ;;  %v6051_v51 = vmul.f32 -1.442695, %v5334_v9 }
0x3d12   :  { %v5284_v18 = vpop.f32.mrf.mxu0  ;;  %v5325_v20 = vpop.f32.mrf.mxu1  ;;  %6957 = vtanh.f32 %v5334_v9 }
0x3d13   :  { %6959 = vpow2.f32 %v6048_v50 }
0x3d14   :  { %6961 = vpow2.f32 %v6050_v8 }
0x3d1e   :  { %v6956_v16 = vpop.eup %6955 }
0x3d1f   :  { %5350 = vrot.lane.b32.xlu1 %v6956_v16, %s7149_s24  ;;  %v6958_v6 = vpop.eup %6957 }
0x3d20   :  { %5380 = vrot.lane.b32.xlu0 %v6958_v6, %s7149_s24  ;;  %v6960_v2 = vpop.eup %6959 }
0x3d21   :  { %v6962_v11 = vpop.eup %6961  ;;  %v5341_v44 = vadd.f32 1.0, %v6960_v2 }
0x3d22   :  { %v5371_v45 = vadd.f32 1.0, %v6962_v11 }
0x3d23   :  { %6963 = vrcp.f32 %v5341_v44 }
0x3d24   :  { %6965 = vrcp.f32 %v5371_v45 }
0x3d30   :  { %v6964_v24 = vpop.eup %6963 }
0x3d31   :  { %v6966_v22 = vpop.eup %6965  ;;  %v5348_v40 = vmul.f32 %v6964_v24, %v9218_v30 }
0x3d32   :  { %v5378_v26 = vmul.f32 %v6966_v22, %v9220_v41 }
0x3d91   :  { %v5351_v58 = vpop.permute.xlu1 %5350 }
0x3d92   :  { %v5353_v13 = vmul.f32 %v6964_v24, %v5351_v58  ;;  %v5381_v29 = vpop.permute.xlu0 %5380 }
0x3d93   :  { %v5383_v49 = vmul.f32 %v6966_v22, %v5381_v29  ;;  %v7150_v22 = vmov 0.0   ;;  %v5623_v29 = vld [vmem:[%s9437_s5 + $0x70] sm:$0xff] }
0x3d94   :  { %5355 = vrot.lane.b32.xlu1 %v5353_v13, %s7149_s24  ;;  %v5624_v13 = vld [vmem:[%s9437_s5 + $0x78] sm:$0xff]  ;;  %6085 = vmatprep.subr.mxu0 %v7150_v22 }
0x3d95   :  { %5385 = vrot.lane.b32.xlu0 %v5383_v49, %s7149_s24  ;;  %6120 = vmatprep.subr.mxu1 %v7150_v22  ;;  %v5622_v49 = vld [vmem:[%s9437_s5 + $0x68] sm:$0xff] }
0x3e06   :  { %v5356_v62 = vpop.permute.xlu1 %5355 }
0x3e07   :  { %v9272_v55 = vadd.f32 %v5356_v62, %v5348_v40  ;;  %v5386_v28 = vpop.permute.xlu0 %5385  ;;  %v5621_v40 = vld [vmem:[%s9437_s5 + $0x60] sm:$0xff]  ;;  %v5620_v62 = vld [vmem:[%s9437_s5 + $0x58] sm:$0xff] }
0x3e08   :  { %v9274_v37 = vadd.f32 %v5386_v28, %v5378_v26  ;;  %v5619_v26 = vld [vmem:[%s9437_s5 + $0x50] sm:$0xff]  ;;  %v5617_v28 = vld [vmem:[%s9437_s5 + $0x40] sm:$0xff] }
0x3e09   :  { %6967 = vtanh.f32 %v9272_v55 }
0x3e0a   :  { %6969 = vtanh.f32 %v9274_v37 }
0x3e0b   :  { %6971 = vpow2.f32 %v6049_v54  ;;  %v5613_v54 = vld [vmem:[%s9437_s5 + $0x20] sm:$0xff] }
0x3e0c   :  { %6973 = vpow2.f32 %v6051_v51  ;;  %v5612_v51 = vld [vmem:[%s9437_s5 + $0x18] sm:$0xff] }
0x3e16   :  { %v6968_v46 = vpop.eup %6967 }
0x3e17   :  { %5361 = vrot.lane.b32.xlu1 %v6968_v46, %s7149_s24  ;;  %v6970_v23 = vpop.eup %6969  ;;  %v5615_v46 = vld [vmem:[%s9437_s5 + $0x30] sm:$0xff] }
0x3e18   :  { %5391 = vrot.lane.b32.xlu0 %v6970_v23, %s7149_s24  ;;  %v6972_v52 = vpop.eup %6971  ;;  %v5614_v23 = vld [vmem:[%s9437_s5 + $0x28] sm:$0xff] }
0x3e19   :  { %v6974_v4 = vpop.eup %6973  ;;  %v5342_v60 = vadd.f32 1.0, %v6972_v52  ;;  %v5611_v52 = vld [vmem:[%s9437_s5 + $0x10] sm:$0xff] }
0x3e1a   :  { %v5372_v30 = vadd.f32 1.0, %v6974_v4  ;;  %v5610_v4 = vld [vmem:[%s9437_s5 + $0x8] sm:$0xff] }
0x3e1b   :  { %6975 = vrcp.f32 %v5342_v60 }
0x3e1c   :  { %6977 = vrcp.f32 %v5372_v30 }
0x3e28   :  { %v6976_v53 = vpop.eup %6975 }
0x3e29   :  { %v6978_v48 = vpop.eup %6977 }
0x3e89   :  { %v5362_v41 = vpop.permute.xlu1 %5361 }
0x3e8a   :  { %v5364_v0 = vmul.f32 %v6976_v53, %v5362_v41  ;;  %v5392_v15 = vpop.permute.xlu0 %5391 }
0x3e8b   :  { %v5394_v47 = vmul.f32 %v6978_v48, %v5392_v15 }
0x3e8c   :  { %5395 = vst.msk [vmem:[#allocation2 + $0x30] sm:$0xff] %vm601_vm0, %v5364_v0 }
0x3e8d   :  { %5396 = vst.msk [vmem:[#allocation2 + $0x48] sm:$0xff] %vm601_vm0, %v5394_v47  ;;  %5398 = vrot.lane.b32.xlu0 %v5394_v47, %s7149_s24 }
0x3eff   :  { %v5399_v10 = vpop.permute.xlu0 %5398 }
0x3f00   :  { %v5401_v39 = vsel %vm601_vm0, %v5364_v0, %v5399_v10 }
0x3f01   :  { %v5402_v32 = vpack.c.bf16 %v5401_v39, %v5401_v39 }
0x3f03   :  { %5436 = vmatmul.mubr.bf16.vlgmr.msra.gmra.mxu0 %v5402_v32  ;;  %5477 = vmatmul.mubr.bf16.vlgmr.msra.gmra.mxu1 %v5402_v32 }
0x3f04   :  { %6086 = vmatpush3.msra.mxu0 %v5624_v13  ;;  %6117 = vmatprep.mubr.msk.f32.mxu0 %vm7151_vm1, %v7150_v22 }
0x3f05   :  { %6087 = vmatprep.subr.mxu0 %v7150_v22  ;;  %6136 = vmatprep.mubr.msk.f32.mxu1 %vm7151_vm1, %v7150_v22 }
0x3f06   :  { %6088 = vmatpush3.msra.mxu0 %v5623_v29  ;;  %v5559_v29 = vld [vmem:[#allocation2 + $0x20] sm:$0xff] }
0x3f07   :  { %6089 = vmatprep.subr.mxu0 %v7150_v22 }
0x3f08   :  { %6090 = vmatpush3.msra.mxu0 %v5622_v49 }
0x3f09   :  { %6091 = vmatprep.subr.mxu0 %v7150_v22 }
0x3f0a   :  { %6092 = vmatpush3.msra.mxu0 %v5621_v40 }
0x3f0b   :  { %6093 = vmatprep.subr.mxu0 %v7150_v22 }
0x3f0c   :  { %6094 = vmatpush3.msra.mxu0 %v5620_v62  ;;  %v5560_v62 = vld [vmem:[#allocation2 + $0x28] sm:$0xff] }
0x3f0d   :  { %6095 = vmatprep.subr.mxu0 %v7150_v22 }
0x3f0e   :  { %6096 = vmatpush3.msra.mxu0 %v5619_v26 }
0x3f0f   :  { %6097 = vmatprep.subr.mxu0 %v7150_v22 }
0x3fc3   :  { %v5437_v17 = vpop.f32.mrf.mxu0  ;;  %v5478_v43 = vpop.f32.mrf.mxu1 }
0x3fc4   :  { %v5487_v12 = vadd.f32 %v5437_v17, %v9577_v33  ;;  %v5491_v21 = vadd.f32 %v5478_v43, %v9578_v19  ;;  %v5581_v43 = vld [vmem:[#allocation2 + $0x48] sm:$0xff] }
0x3fc5   :  { %v5439_v31 = vpop.f32.mrf.mxu0  ;;  %v5480_v3 = vpop.f32.mrf.mxu1 }
0x3fc6   :  { %v9287_v5 = vadd.f32 %v5480_v3, %v9579_v63  ;;  %v9290_v57 = vadd.f32 %v5439_v31, %v8865_v14  ;;  %v6054_v1 = vmul.f32 -1.442695, %v5491_v21  ;;  %v6052_v36 = vmul.f32 -1.442695, %v5487_v12  ;;  %v5582_v12 = vld [vmem:[#allocation2 + $0x50] sm:$0xff]  ;;  %v5583_v31 = vld [vmem:[#allocation2 + $0x58] sm:$0xff] }
0x3fc7   :  { %v5441_v38 = vpop.f32.mrf.mxu0  ;;  %v5482_v34 = vpop.f32.mrf.mxu1  ;;  %v5589_v21 = vsel %vm601_vm0, %v5581_v43, 0.0 }
0x3fc8   :  { %6979 = vtanh.f32 %v9287_v5  ;;  %v6055_v60 = vmul.f32 -1.442695, %v9287_v5  ;;  %v6053_v30 = vmul.f32 -1.442695, %v9290_v57  ;;  %v5591_v38 = vsel %vm601_vm0, %v5582_v12, 0.0  ;;  %v5584_v34 = vld [vmem:[#allocation2 + $0x60] sm:$0xff] }
0x3fc9   :  { %v5442_v42 = vpop.f32.mrf.mxu0  ;;  %v5483_v27 = vpop.f32.mrf.mxu1  ;;  %6981 = vtanh.f32 %v9290_v57  ;;  %v5609_v5 = vld [vmem:[%s9437_s5] sm:$0xff] }
0x3fca   :  { %6983 = vpow2.f32 %v6054_v1  ;;  %v5593_v42 = vsel %vm601_vm0, %v5583_v31, 0.0  ;;  %v5585_v27 = vld [vmem:[#allocation2 + $0x68] sm:$0xff]  ;;  %v5595_v1 = vsel %vm601_vm0, %v5584_v34, 0.0 }
0x3fcb   :  { %6985 = vpow2.f32 %v6052_v36  ;;  %v5586_v36 = vld [vmem:[#allocation2 + $0x70] sm:$0xff] }
0x3fd5   :  { %v6980_v25 = vpop.eup %6979 }
0x3fd6   :  { %5538 = vrot.lane.b32.xlu1 %v6980_v25, %s7149_s24  ;;  %v6982_v35 = vpop.eup %6981  ;;  %v5710_v25 = vld [vmem:[%s9439_s7 + $0x38] sm:$0xff] }
0x3fd7   :  { %v6984_v59 = vpop.eup %6983  ;;  %6121 = vmatpush3.msra.mxu1 %v5710_v25 }
0x3fd8   :  { %v5529_v56 = vadd.f32 1.0, %v6984_v59  ;;  %v6986_v61 = vpop.eup %6985  ;;  %6122 = vmatprep.subr.mxu1 %v7150_v22 }
0x3fd9   :  { %v5499_v7 = vadd.f32 1.0, %v6986_v61  ;;  %v5597_v61 = vsel %vm601_vm0, %v5585_v27, 0.0 }
0x3fda   :  { %5508 = vrot.lane.b32.xlu1 %v6982_v35, %s7149_s24  ;;  %6987 = vrcp.f32 %v5529_v56  ;;  %v5709_v35 = vld [vmem:[%s9439_s7 + $0x30] sm:$0xff]  ;;  %v5708_v56 = vld [vmem:[%s9439_s7 + $0x28] sm:$0xff] }
0x3fdb   :  { %6989 = vrcp.f32 %v5499_v7  ;;  %6123 = vmatpush3.msra.mxu1 %v5709_v35  ;;  %v5587_v7 = vld [vmem:[#allocation2 + $0x78] sm:$0xff] }
0x3fdc   :  { %6124 = vmatprep.subr.mxu1 %v7150_v22 }
0x3fdd   :  { %6125 = vmatpush3.msra.mxu1 %v5708_v56 }
0x3fde   :  { %6126 = vmatprep.subr.mxu1 %v7150_v22 }
0x3fe7   :  { %v6988_v14 = vpop.eup %6987 }
0x3fe8   :  { %v6990_v20 = vpop.eup %6989  ;;  %v5536_v50 = vmul.f32 %v6988_v14, %v9274_v37  ;;  %v5616_v37 = vld [vmem:[%s9437_s5 + $0x38] sm:$0xff] }
0x3fe9   :  { %v5506_v11 = vmul.f32 %v6990_v20, %v9272_v55  ;;  %v5618_v55 = vld [vmem:[%s9437_s5 + $0x48] sm:$0xff] }
0x3fea   :  { %6098 = vmatpush3.msra.mxu0 %v5618_v55  ;;  %v5570_v55 = vsel %vm601_vm0, %v5559_v29, 0.0 }
0x3feb   :  { %6099 = vmatprep.subr.mxu0 %v7150_v22 }
0x3fec   :  { %6100 = vmatpush3.msra.mxu0 %v5617_v28 }
0x3fed   :  { %6101 = vmatprep.subr.mxu0 %v7150_v22 }
0x3fee   :  { %6102 = vmatpush3.msra.mxu0 %v5616_v37  ;;  %v5561_v37 = vld [vmem:[#allocation2 + $0x30] sm:$0xff] }
0x3fef   :  { %6103 = vmatprep.subr.mxu0 %v7150_v22 }
0x3ff0   :  { %6104 = vmatpush3.msra.mxu0 %v5615_v46  ;;  %v5572_v46 = vsel %vm601_vm0, %v5560_v62, 0.0 }
0x3ff1   :  { %6105 = vmatprep.subr.mxu0 %v7150_v22 }
0x3ff2   :  { %6106 = vmatpush3.msra.mxu0 %v5614_v23 }
0x3ff3   :  { %6107 = vmatprep.subr.mxu0 %v7150_v22 }
0x3ff4   :  { %6108 = vmatpush3.msra.mxu0 %v5613_v54 }
0x3ff5   :  { %6109 = vmatprep.subr.mxu0 %v7150_v22 }
0x3ff6   :  { %6110 = vmatpush3.msra.mxu0 %v5612_v51  ;;  %v5574_v51 = vsel %vm601_vm0, %v5561_v37, 0.0 }
0x3ff7   :  { %6111 = vmatprep.subr.mxu0 %v7150_v22 }
0x3ff8   :  { %6112 = vmatpush3.msra.mxu0 %v5611_v52 }
0x3ff9   :  { %6113 = vmatprep.subr.mxu0 %v7150_v22 }
0x3ffa   :  { %6114 = vmatpush3.msra.mxu0 %v5610_v4 }
0x3ffb   :  { %6115 = vmatprep.subr.mxu0 %v7150_v22 }
0x3ffc   :  { %6116 = vmatpush3.msra.mxu0 %v5609_v5 }
0x4048   :  { %v5539_v9 = vpop.permute.xlu1 %5538 }
0x4049   :  { %v5541_v18 = vmul.f32 %v6988_v14, %v5539_v9  ;;  %v5707_v9 = vld [vmem:[%s9439_s7 + $0x20] sm:$0xff] }
0x404a   :  { %6127 = vmatpush3.msra.mxu1 %v5707_v9 }
0x404b   :  { %5543 = vrot.lane.b32.xlu0 %v5541_v18, %s7149_s24  ;;  %v5599_v18 = vsel %vm601_vm0, %v5586_v36, 0.0  ;;  %6128 = vmatprep.subr.mxu1 %v7150_v22 }
0x404c   :  { %v5509_v16 = vpop.permute.xlu1 %5508 }
0x404d   :  { %v5511_v6 = vmul.f32 %v6990_v20, %v5509_v16  ;;  %v5706_v16 = vld [vmem:[%s9439_s7 + $0x18] sm:$0xff] }
0x404e   :  { %6129 = vmatpush3.msra.mxu1 %v5706_v16 }
0x404f   :  { %5513 = vrot.lane.b32.xlu0 %v5511_v6, %s7149_s24  ;;  %v5601_v6 = vsel %vm601_vm0, %v5587_v7, 0.0  ;;  %6130 = vmatprep.subr.mxu1 %v7150_v22 }
0x40bd   :  { %v5544_v8 = vpop.permute.xlu0 %5543 }
0x40be   :  { %v5546_v2 = vadd.f32 %v5544_v8, %v5536_v50 }
0x40c0   :  { %6991 = vtanh.f32 %v5546_v2  ;;  %v5556_v2 = vld [vmem:[#allocation2 + $0x8] sm:$0xff] }
0x40c1   :  { %v5514_v44 = vpop.permute.xlu0 %5513 }
0x40c2   :  { %v5516_v45 = vadd.f32 %v5514_v44, %v5506_v11  ;;  %v5555_v11 = vld [vmem:[#allocation2] sm:$0xff]  ;;  %v5557_v44 = vld [vmem:[#allocation2 + $0x10] sm:$0xff] }
0x40c3   :  { %v5566_v13 = vsel %vm601_vm0, %v5557_v44, 0.0 }
0x40c4   :  { %6993 = vtanh.f32 %v5516_v45  ;;  %v5564_v45 = vsel %vm601_vm0, %v5556_v2, 0.0 }
0x40c5   :  { %6995 = vpow2.f32 %v6055_v60 }
0x40c6   :  { %6997 = vpow2.f32 %v6053_v30 }
0x40cd   :  { %v6992_v24 = vpop.eup %6991 }
0x40ce   :  { %5549 = vrot.lane.b32.xlu1 %v6992_v24, %s7149_s24  ;;  %v5558_v24 = vld [vmem:[#allocation2 + $0x18] sm:$0xff] }
0x40cf   :  { %v5568_v40 = vsel %vm601_vm0, %v5558_v24, 0.0 }
0x40d1   :  { %v6994_v58 = vpop.eup %6993 }
0x40d2   :  { %5519 = vrot.lane.b32.xlu0 %v6994_v58, %s7149_s24  ;;  %v6996_v53 = vpop.eup %6995  ;;  %v5563_v58 = vsel %vm601_vm0, %v5555_v11, 0.0 }
0x40d3   :  { %v5530_v41 = vadd.f32 1.0, %v6996_v53  ;;  %v6998_v0 = vpop.eup %6997  ;;  %v5565_v49 = vadd.f32 %v5564_v45, %v5563_v58 }
0x40d4   :  { %v5500_v48 = vadd.f32 1.0, %v6998_v0 }
0x40d5   :  { %6999 = vrcp.f32 %v5530_v41  ;;  %v5567_v26 = vadd.f32 %v5566_v13, %v5565_v49 }
0x40d6   :  { %7001 = vrcp.f32 %v5500_v48  ;;  %v5705_v48 = vld [vmem:[%s9439_s7 + $0x10] sm:$0xff] }
0x40d7   :  { %v5569_v28 = vadd.f32 %v5568_v40, %v5567_v26  ;;  %6131 = vmatpush3.msra.mxu1 %v5705_v48 }
0x40d8   :  { %6132 = vmatprep.subr.mxu1 %v7150_v22 }
0x40d9   :  { %v5571_v23 = vadd.f32 %v5570_v55, %v5569_v28 }
0x40db   :  { %v5573_v52 = vadd.f32 %v5572_v46, %v5571_v23 }
0x40dd   :  { %v5575_v60 = vadd.f32 %v5574_v51, %v5573_v52 }
0x40e2   :  { %v7000_v15 = vpop.eup %6999 }
0x40e3   :  { %v7002_v39 = vpop.eup %7001 }
0x4140   :  { %v5550_v47 = vpop.permute.xlu1 %5549 }
0x4141   :  { %v5552_v10 = vmul.f32 %v7000_v15, %v5550_v47  ;;  %v5704_v15 = vld [vmem:[%s9439_s7 + $0x8] sm:$0xff]  ;;  %v5703_v47 = vld [vmem:[%s9439_s7] sm:$0xff] }
0x4142   :  { %6133 = vmatpush3.msra.mxu1 %v5704_v15 }
0x4143   :  { %5554 = vst.msk [vmem:[#allocation2 + $0x40] sm:$0xff] %vm601_vm0, %v5552_v10  ;;  %6134 = vmatprep.subr.mxu1 %v7150_v22  ;;  %v6056_v10 = vld [vmem:[%s9438_s6] ss:$0 sm:$0xff] }
0x4144   :  { %v5520_v32 = vpop.permute.xlu0 %5519  ;;  %6135 = vmatpush3.msra.mxu1 %v5703_v47 }
0x4145   :  { %v5522_v17 = vmul.f32 %v7002_v39, %v5520_v32 }
0x4147   :  { %5553 = vst.msk [vmem:[#allocation2 + $0x38] sm:$0xff] %vm601_vm0, %v5522_v17 }
0x414a   :  { %v5580_v33 = vld [vmem:[#allocation2 + $0x40] sm:$0xff] }
0x414b   :  { %v5588_v19 = vsel %vm601_vm0, %v5580_v33, 0.0  ;;  %v6057_v33 = vld [vmem:[%s9440_s8] ss:$0 sm:$0xff] }
0x414c   :  { %v5590_v3 = vadd.f32 %v5589_v21, %v5588_v19 }
0x414e   :  { %v5592_v63 = vadd.f32 %v5591_v38, %v5590_v3  ;;  %v5562_v54 = vld [vmem:[#allocation2 + $0x38] sm:$0xff] }
0x414f   :  { %v5576_v4 = vsel %vm601_vm0, %v5562_v54, 0.0 }
0x4150   :  { %v5594_v57 = vadd.f32 %v5593_v42, %v5592_v63  ;;  %v5577_v30 = vadd.f32 %v5576_v4, %v5575_v60 }
0x4152   :  { %v5596_v59 = vadd.f32 %v5595_v1, %v5594_v57  ;;  %v5579_v53 = vmul.f32 0.125, %v5577_v30 }
0x4154   :  { %v5598_v14 = vadd.f32 %v5597_v61, %v5596_v59 }
0x4156   :  { %v5600_v20 = vadd.f32 %v5599_v18, %v5598_v14 }
0x4158   :  { %v5602_v50 = vadd.f32 %v5601_v6, %v5600_v20 }
0x415a   :  { %v5603_v8 = vmul.f32 0.125, %v5602_v50 }
0x415c   :  { %5605 = vrot.lane.b32.xlu1 %v5603_v8, %s7149_s24 }
0x41ce   :  { %v5606_v41 = vpop.permute.xlu1 %5605 }
0x41cf   :  { %v5608_v0 = vsel %vm601_vm0, %v5579_v53, %v5606_v41 }
0x41d0   :  { %6118 = vmatmul.mubr.f32.vlgmr.msra.gmra.mxu0 %v5608_v0 }
0x4290   :  { %v5698_v39 = vpop.f32.mrf.mxu0 }
0x4291   :  { %v5699_v32 = vadd.f32 %v6056_v10, %v5698_v39 }
0x4292   :  { %v6119_v17 = vpop.f32.mrf.mxu0 }
0x4293   :  { %v5702_v43 = vmax.f32 %v5699_v32, 0.0 }
0x4295   :  { %6137 = vmatmul.mubr.msk.f32.vlgmr.msra.gmra.mxu1 %vm601_vm0, %v5702_v43 }
0x4355   :  { %v5787_v22 = vpop.f32.mrf.mxu1 }
0x4356   :  { %v5788_v12 = vadd.f32 %v6057_v33, %v5787_v22 }
0x4357   :  { %v6138_v19 = vpop.f32.mrf.mxu1 }
0x4358   :  { %5791 = vst [vmem:[%s9441_s9] sm:$0xff] %v5788_v12 }
0x4359   :  { %5796 = vsyncpa [#allocation6], 1 }
0x435a   :  { %5797 = vsyncpa [#allocation8], 1 }

</bundles_post_ra>
